<compile_context>
chip_gen: v5e
topology: v5e:2x2
jax: 0.10.0
libtpu: 0.0.40
codegen_flags: <defaults>
</compile_context>

<pallas_src>
import jax
import jax.numpy as jnp
from jax.experimental import pallas as pl
from jax.experimental.pallas import tpu as pltpu

D_MODEL = 512
HIDDEN = 2048


# --------------------------------- kernel ------------------------------------
# One grid step = one tile of rows.  Both weight matrices are fully resident in
# VMEM (constant block index across the grid).

def ffn_kernel(x_ref, w1_ref, b1_ref, w2_ref, b2_ref, o_ref):
    x = x_ref[...]                                                    # (tm, D)
    h = jnp.dot(x, w1_ref[...], preferred_element_type=jnp.float32)   # (tm, H)
    h = jnp.maximum(h + b1_ref[...], 0.0)                             # bias + ReLU
    y = jnp.dot(h, w2_ref[...], preferred_element_type=jnp.float32)   # (tm, D)
    o_ref[...] = (y + b2_ref[...]).astype(o_ref.dtype)


# --------------------------------- wrapper ------------------------------------

def feed_forward(x, params, *, row_tile=512):
    """x: (..., d_model).  params hold PyTorch-layout Linear weights."""
    w1, b1, w2, b2 = params["w1"], params["b1"], params["w2"], params["b2"]
    d_hid, d_in = w1.shape          # PyTorch nn.Linear: W is (out, in)
    d_out = w2.shape[0]

    orig_lead = x.shape[:-1]
    x2 = x.reshape(-1, d_in)        # fold batch/seq into one row axis
    m = x2.shape[0]

    # Pre-transpose weights to (in, out) once, outside the kernel.
    w1_t = w1.T                     # (D, H)
    w2_t = w2.T                     # (H, D)
    b1_r = b1.reshape(1, d_hid)
    b2_r = b2.reshape(1, d_out)

    # Row tiling: single grid step at small sizes; parallel row tiles otherwise.
    tm = min(row_tile, m)
    tm = max(8, ((tm + 7) // 8) * 8)             # sublane-aligned tile
    m_pad = ((m + tm - 1) // tm) * tm
    if m_pad != m:
        x2 = jnp.pad(x2, ((0, m_pad - m), (0, 0)))
    grid = (m_pad // tm,)

    flops = 2 * m_pad * d_in * d_hid + 2 * m_pad * d_hid * d_out
    bytes_accessed = 4 * (m_pad * d_in + d_in * d_hid + d_hid
                          + d_hid * d_out + d_out + m_pad * d_out)

    out = pl.pallas_call(
        ffn_kernel,
        out_shape=jax.ShapeDtypeStruct((m_pad, d_out), x.dtype),
        grid=grid,
        in_specs=[
            pl.BlockSpec((tm, d_in), lambda i: (i, 0)),       # x row tile
            pl.BlockSpec((d_in, d_hid), lambda i: (0, 0)),    # W1^T (resident)
            pl.BlockSpec((1, d_hid), lambda i: (0, 0)),       # b1
            pl.BlockSpec((d_hid, d_out), lambda i: (0, 0)),   # W2^T (resident)
            pl.BlockSpec((1, d_out), lambda i: (0, 0)),       # b2
        ],
        out_specs=pl.BlockSpec((tm, d_out), lambda i: (i, 0)),
        compiler_params=pltpu.CompilerParams(
            dimension_semantics=("parallel",),
            vmem_limit_bytes=48 * 1024 * 1024,
        ),
        cost_estimate=pl.CostEstimate(
            flops=flops, transcendentals=0, bytes_accessed=bytes_accessed),
    )(x2, w1_t, b1_r, w2_t, b2_r)

    return out[:m].reshape(orig_lead + (d_out,))


# ----------------------------- parameter building ------------------------------

def init_params(key, d_model=D_MODEL, hidden=HIDDEN):
    k1, k2, k3, k4 = jax.random.split(key, 4)
    return {
        "w1": jax.random.normal(k1, (hidden, d_model), jnp.float32) * 0.02,
        "b1": jax.random.normal(k2, (hidden,), jnp.float32) * 0.02,
        "w2": jax.random.normal(k3, (d_model, hidden), jnp.float32) * 0.02,
        "b2": jax.random.normal(k4, (d_model,), jnp.float32) * 0.02,
    }


# ------------------------------------ main --------------------------------------

if __name__ == "__main__":
    key = jax.random.PRNGKey(0)
    kx, kp = jax.random.split(key)

    B, S = 2, 16
    x = jax.random.normal(kx, (B, S, D_MODEL), jnp.float32)
    params = init_params(kp)

    out = feed_forward(x, params)
    out = jax.block_until_ready(out)

    # Pure-JAX reference (intended semantics of the PyTorch forward).
    hp = jax.lax.Precision.HIGHEST
    h_ref = jnp.maximum(jnp.dot(x, params["w1"].T, precision=hp) + params["b1"], 0.0)
    ref = jnp.dot(h_ref, params["w2"].T, precision=hp) + params["b2"]

    assert out.shape == (B, S, D_MODEL)
    assert jnp.all(jnp.isfinite(out))
    assert jnp.allclose(out, ref, atol=1e-3, rtol=1e-3)
    print("KERNEL_OK")
</pallas_src>

<mosaic_0001>
module attributes {stable_mosaic.version = 11 : i64} {
  func.func @ffn_kernel(%arg0: i32, %arg1: memref<32x512xf32, #tpu.memory_space<vmem>>, %arg2: memref<512x2048xf32, #tpu.memory_space<vmem>>, %arg3: memref<1x2048xf32, #tpu.memory_space<vmem>>, %arg4: memref<2048x512xf32, #tpu.memory_space<vmem>>, %arg5: memref<1x512xf32, #tpu.memory_space<vmem>>, %arg6: memref<32x512xf32, #tpu.memory_space<vmem>>) attributes {dimension_semantics = [#tpu.dimension_semantics<parallel>], iteration_bounds = array<i64: 1>, scalar_prefetch = 0 : i64, scratch_operands = 0 : i64, tpu.core_type = #tpu.core_type<tc>, window_params = [{transform_indices = @transform_0, window_bounds = array<i64: 32, 512>}, {pipeline_mode = #tpu.pipeline_mode<synchronous>, transform_indices = @transform_1, window_bounds = array<i64: 512, 2048>}, {pipeline_mode = #tpu.pipeline_mode<synchronous>, transform_indices = @transform_2, window_bounds = array<i64: 1, 2048>}, {pipeline_mode = #tpu.pipeline_mode<synchronous>, transform_indices = @transform_3, window_bounds = array<i64: 2048, 512>}, {pipeline_mode = #tpu.pipeline_mode<synchronous>, transform_indices = @transform_4, window_bounds = array<i64: 1, 512>}, {transform_indices = @transform_5, window_bounds = array<i64: 32, 512>}]} {
    %c0 = arith.constant 0 : index
    %c0_0 = arith.constant 0 : index
    %0 = vector.load %arg1[%c0, %c0_0] : memref<32x512xf32, #tpu.memory_space<vmem>>, vector<32x512xf32>
    %c0_1 = arith.constant 0 : index
    %c0_2 = arith.constant 0 : index
    %1 = vector.load %arg2[%c0_1, %c0_2] : memref<512x2048xf32, #tpu.memory_space<vmem>>, vector<512x2048xf32>
    %cst = arith.constant dense<0.000000e+00> : vector<32x2048xf32>
    %2 = tpu.matmul %0, %1, %cst {dimension_numbers = #tpu.dot_dimension_numbers<[1], [0], [0], [1], [0, 0, 1, 1], [], []>} : vector<32x512xf32>, vector<512x2048xf32>, vector<32x2048xf32> -> vector<32x2048xf32>
    %c0_3 = arith.constant 0 : index
    %c0_4 = arith.constant 0 : index
    %3 = vector.load %arg3[%c0_3, %c0_4] : memref<1x2048xf32, #tpu.memory_space<vmem>>, vector<1x2048xf32>
    %4 = vector.broadcast %3 : vector<1x2048xf32> to vector<32x2048xf32>
    %5 = arith.addf %2, %4 : vector<32x2048xf32>
    %cst_5 = arith.constant 0.000000e+00 : f32
    %6 = vector.broadcast %cst_5 : f32 to vector<32x2048xf32>
    %7 = arith.maximumf %5, %6 : vector<32x2048xf32>
    %c0_6 = arith.constant 0 : index
    %c0_7 = arith.constant 0 : index
    %8 = vector.load %arg4[%c0_6, %c0_7] : memref<2048x512xf32, #tpu.memory_space<vmem>>, vector<2048x512xf32>
    %cst_8 = arith.constant dense<0.000000e+00> : vector<32x512xf32>
    %9 = tpu.matmul %7, %8, %cst_8 {dimension_numbers = #tpu.dot_dimension_numbers<[1], [0], [0], [1], [0, 0, 1, 1], [], []>} : vector<32x2048xf32>, vector<2048x512xf32>, vector<32x512xf32> -> vector<32x512xf32>
    %c0_9 = arith.constant 0 : index
    %c0_10 = arith.constant 0 : index
    %10 = vector.load %arg5[%c0_9, %c0_10] : memref<1x512xf32, #tpu.memory_space<vmem>>, vector<1x512xf32>
    %11 = vector.broadcast %10 : vector<1x512xf32> to vector<32x512xf32>
    %12 = arith.addf %9, %11 : vector<32x512xf32>
    %c0_11 = arith.constant 0 : index
    %c0_12 = arith.constant 0 : index
    %13 = vector.load %arg6[%c0_11, %c0_12] : memref<32x512xf32, #tpu.memory_space<vmem>>, vector<32x512xf32>
    tpu.vector_store %arg6[%c0_11, %c0_12], %12 {strides = array<i32>} : memref<32x512xf32, #tpu.memory_space<vmem>>, vector<32x512xf32>,
    return
  }
  func.func @transform_0(%arg0: i32) -> (i32, i32) {
    %c0_i32 = arith.constant 0 : i32
    %c0_i32_0 = arith.constant 0 : i32
    return %arg0, %c0_i32 : i32, i32
  }
  func.func @transform_1(%arg0: i32) -> (i32, i32) {
    %c0_i32 = arith.constant 0 : i32
    %c0_i32_0 = arith.constant 0 : i32
    %c0_i32_1 = arith.constant 0 : i32
    return %c0_i32, %c0_i32_0 : i32, i32
  }
  func.func @transform_2(%arg0: i32) -> (i32, i32) {
    %c0_i32 = arith.constant 0 : i32
    %c0_i32_0 = arith.constant 0 : i32
    %c0_i32_1 = arith.constant 0 : i32
    return %c0_i32, %c0_i32_0 : i32, i32
  }
  func.func @transform_3(%arg0: i32) -> (i32, i32) {
    %c0_i32 = arith.constant 0 : i32
    %c0_i32_0 = arith.constant 0 : i32
    %c0_i32_1 = arith.constant 0 : i32
    return %c0_i32, %c0_i32_0 : i32, i32
  }
  func.func @transform_4(%arg0: i32) -> (i32, i32) {
    %c0_i32 = arith.constant 0 : i32
    %c0_i32_0 = arith.constant 0 : i32
    %c0_i32_1 = arith.constant 0 : i32
    return %c0_i32, %c0_i32_0 : i32, i32
  }
  func.func @transform_5(%arg0: i32) -> (i32, i32) {
    %c0_i32 = arith.constant 0 : i32
    %c0_i32_0 = arith.constant 0 : i32
    return %arg0, %c0_i32 : i32, i32
  }
}

</mosaic_0001>

<bundles_post_ra>
// kernel: tpu_custom_call.1
= control target key start
LH: loop header
LB: loop body
LE: loop exit
PB: predicated region body
PF: predicated region fallthrough
CT: control target
= control target key end

     0   :  { %10 = vsyncpa [#allocation3], 0  ;;  %s8445_s0 = inlined_call_operand.hbm [shape: f32[32,512], index: 0, kind: input, shape index: {}]   ;;  %s8446_s1 = inlined_call_operand.hbm [shape: f32[512,2048], index: 1, kind: input, shape index: {}]   ;;  %s8447_s2 = inlined_call_operand.hbm [shape: f32[1,2048], index: 2, kind: input, shape index: {}]   ;;  %s8448_s3 = inlined_call_operand.hbm [shape: f32[2048,512], index: 3, kind: input, shape index: {}]   ;;  %s8449_s4 = inlined_call_operand.hbm [shape: f32[1,512], index: 4, kind: input, shape index: {}]   ;;  %s8450_s5 = inlined_call_operand.hbm [shape: f32[32,512], index: 5, kind: output, shape index: {}]  }
   0x1   :  { %11 = vsyncpa [#allocation6], 0 }
   0x2   :  { %12 = vsyncpa [#allocation9], 0  ;;  %s31_s20 = sshll.u32 %s8446_s1, 4  ;;  %s32_s20 = int_to_ptr.hbm [resolvable:$true] %s31_s20 }
   0x3   :  { %13 = vsyncpa [#allocation4], 0  ;;  %s6230_s21 = smov [#allocation5]   ;;  %s6231_s23 = smov 2048  }
   0x4   :  { %s33_s22 = sshll.u32 %s6230_s21, 4  ;;  %s6232_s24 = smov 128   ;;  %s34_s22 = int_to_ptr.vmem [resolvable:$true] %s33_s22 }
   0x5   :  { %39 = dma.hbm_to_vmem [thread:$0]  %s32_s20, 131072, %s34_s22, [#allocation6], %s6231_s23, %s6231_s23, %s6232_s24  }
   0x6   :  { %s55_s27 = sshll.u32 %s8448_s3, 4  ;;  %s6233_s28 = smov [#allocation8]   ;;  %s56_s27 = int_to_ptr.hbm [resolvable:$true] %s55_s27 }
   0x7   :  { %s57_s29 = sshll.u32 %s6233_s28, 4  ;;  %s18_s7 = sshll.u32 %s8445_s0, 4  ;;  %s58_s29 = int_to_ptr.vmem [resolvable:$true] %s57_s29  ;;  %s19_s7 = int_to_ptr.hbm [resolvable:$true] %s18_s7 }
   0x8   :  { %s6234_s1 = smov 512   ;;  %s6235_s8 = smov 32  }
   0x9   :  { %63 = dma.hbm_to_vmem [thread:$0]  %s56_s27, 131072, %s58_s29, [#allocation9], %s6234_s1, %s6234_s1, %s6235_s8  }
   0xa   :  { %s45_s11 = sshll.u32 %s8447_s2, 4  ;;  %s6236_s3 = smov [#allocation2]   ;;  %s46_s11 = int_to_ptr.hbm [resolvable:$true] %s45_s11 }
   0xb   :  { %s20_s12 = sshll.u32 %s6236_s3, 4  ;;  %s6237_s0 = smov [#allocation7]   ;;  %s21_s12 = int_to_ptr.vmem [resolvable:$true] %s20_s12 }
   0xc   :  { %26 = dma.hbm_to_vmem [thread:$0]  %s19_s7, 2048, %s21_s12, [#allocation3], %s6234_s1, %s6234_s1, %s6235_s8  }
   0xd   :  { %s47_s13 = sshll.u32 %s6237_s0, 4  ;;  %s69_s16 = sshll.u32 %s8449_s4, 4  ;;  %s48_s13 = int_to_ptr.vmem [resolvable:$true] %s47_s13  ;;  %s70_s16 = int_to_ptr.hbm [resolvable:$true] %s69_s16 }
   0xe   :  { %50 = dma.hbm_to_vmem [thread:$0]  %s46_s11, 256, %s48_s13, [#allocation6]  }
   0xf   :  { %s6238_s17 = smov [#allocation10]  }
  0x10   :  { %s71_s18 = sshll.u32 %s6238_s17, 4  ;;  %s72_s18 = int_to_ptr.vmem [resolvable:$true] %s71_s18 }
  0x11   :  { %74 = dma.hbm_to_vmem [thread:$0]  %s70_s16, 64, %s72_s18, [#allocation9]  }
  0x12   :  { %6222 = dma.done.wait [#allocation3], 2048  }
  0x13   :  { %6223 = vsyncadd [#allocation3], 4294965248 }
  0x14   :  { %6224 = dma.done.wait [#allocation6], 131328  }
  0x15   :  { %6225 = vsyncadd [#allocation6], 4294835968 }
  0x16   :  { %6226 = dma.done.wait [#allocation9], 131136  }
  0x17   :  { %6227 = vsyncadd [#allocation9], 4294836160  ;;  %v351_v0 = vld [vmem:[#allocation5 + $0x780] sm:$0xff]  ;;  %s6239_s2 = smov [#allocation11]   ;;  %s6003_s21 = sshll.u32 %s8450_s5, 4  ;;  %s6004_s21 = int_to_ptr.hbm [resolvable:$true] %s6003_s21 }
  0x18   :  { %v607_v1 = vld [vmem:[#allocation5 + $0xf80] sm:$0xff]  ;;  %1171 = vmatpush.msra.mxu0 %v351_v0  ;;  %s6001_s4 = sshll.u32 %s6239_s2, 4  ;;  %s6002_s4 = int_to_ptr.vmem [resolvable:$true] %s6001_s4 }
  0x19   :  { %v863_v2 = vld [vmem:[#allocation5 + $0x1780] sm:$0xff]  ;;  %1200 = vmatpush.msra.mxu1 %v607_v1  ;;  %v6293_v1 = vld [vmem:[#allocation2 + $0x8] sm:$0xff] }
  0x1a   :  { %v1119_v3 = vld [vmem:[#allocation5 + $0x1f80] sm:$0xff]  ;;  %1229 = vmatpush.msra.mxu2 %v863_v2  ;;  %v6295_v2 = vld [vmem:[#allocation2 + $0x10] sm:$0xff] }
  0x1b   :  { %v335_v4 = vld [vmem:[#allocation5 + $0x700] sm:$0xff]  ;;  %1258 = vmatpush.msra.mxu3 %v1119_v3  ;;  %v6297_v3 = vld [vmem:[#allocation2 + $0x18] sm:$0xff] }
  0x1c   :  { %v591_v5 = vld [vmem:[#allocation5 + $0xf00] sm:$0xff]  ;;  %1172 = vmatpush.msra.mxu0 %v335_v4  ;;  %v864_v4 = vld [vmem:[#allocation5 + $0x1788] sm:$0xff] }
  0x1d   :  { %v847_v6 = vld [vmem:[#allocation5 + $0x1700] sm:$0xff]  ;;  %1201 = vmatpush.msra.mxu1 %v591_v5  ;;  %v352_v5 = vld [vmem:[#allocation5 + $0x788] sm:$0xff] }
  0x1e   :  { %v1103_v7 = vld [vmem:[#allocation5 + $0x1f00] sm:$0xff]  ;;  %1230 = vmatpush.msra.mxu2 %v847_v6  ;;  %v608_v6 = vld [vmem:[#allocation5 + $0xf88] sm:$0xff] }
  0x1f   :  { %v319_v8 = vld [vmem:[#allocation5 + $0x680] sm:$0xff]  ;;  %1259 = vmatpush.msra.mxu3 %v1103_v7  ;;  %v1120_v7 = vld [vmem:[#allocation5 + $0x1f88] sm:$0xff] }
  0x20   :  { %v575_v9 = vld [vmem:[#allocation5 + $0xe80] sm:$0xff]  ;;  %1173 = vmatpush.msra.mxu0 %v319_v8  ;;  %v848_v8 = vld [vmem:[#allocation5 + $0x1708] sm:$0xff] }
  0x21   :  { %v831_v10 = vld [vmem:[#allocation5 + $0x1680] sm:$0xff]  ;;  %1202 = vmatpush.msra.mxu1 %v575_v9  ;;  %v336_v9 = vld [vmem:[#allocation5 + $0x708] sm:$0xff] }
  0x22   :  { %v1087_v11 = vld [vmem:[#allocation5 + $0x1e80] sm:$0xff]  ;;  %1231 = vmatpush.msra.mxu2 %v831_v10  ;;  %v592_v10 = vld [vmem:[#allocation5 + $0xf08] sm:$0xff] }
  0x23   :  { %v303_v12 = vld [vmem:[#allocation5 + $0x600] sm:$0xff]  ;;  %1260 = vmatpush.msra.mxu3 %v1087_v11  ;;  %v1104_v11 = vld [vmem:[#allocation5 + $0x1f08] sm:$0xff] }
  0x24   :  { %v559_v13 = vld [vmem:[#allocation5 + $0xe00] sm:$0xff]  ;;  %1174 = vmatpush.msra.mxu0 %v303_v12  ;;  %v832_v12 = vld [vmem:[#allocation5 + $0x1688] sm:$0xff] }
  0x25   :  { %v815_v14 = vld [vmem:[#allocation5 + $0x1600] sm:$0xff]  ;;  %1203 = vmatpush.msra.mxu1 %v559_v13  ;;  %v320_v13 = vld [vmem:[#allocation5 + $0x688] sm:$0xff] }
  0x26   :  { %v1071_v15 = vld [vmem:[#allocation5 + $0x1e00] sm:$0xff]  ;;  %1232 = vmatpush.msra.mxu2 %v815_v14  ;;  %v576_v14 = vld [vmem:[#allocation5 + $0xe88] sm:$0xff] }
  0x27   :  { %v287_v16 = vld [vmem:[#allocation5 + $0x580] sm:$0xff]  ;;  %1261 = vmatpush.msra.mxu3 %v1071_v15  ;;  %v1088_v15 = vld [vmem:[#allocation5 + $0x1e88] sm:$0xff] }
  0x28   :  { %v543_v17 = vld [vmem:[#allocation5 + $0xd80] sm:$0xff]  ;;  %1175 = vmatpush.msra.mxu0 %v287_v16  ;;  %v816_v16 = vld [vmem:[#allocation5 + $0x1608] sm:$0xff] }
  0x29   :  { %v799_v18 = vld [vmem:[#allocation5 + $0x1580] sm:$0xff]  ;;  %1204 = vmatpush.msra.mxu1 %v543_v17  ;;  %v304_v17 = vld [vmem:[#allocation5 + $0x608] sm:$0xff] }
  0x2a   :  { %v1055_v19 = vld [vmem:[#allocation5 + $0x1d80] sm:$0xff]  ;;  %1233 = vmatpush.msra.mxu2 %v799_v18  ;;  %v560_v18 = vld [vmem:[#allocation5 + $0xe08] sm:$0xff] }
  0x2b   :  { %v271_v20 = vld [vmem:[#allocation5 + $0x500] sm:$0xff]  ;;  %1262 = vmatpush.msra.mxu3 %v1055_v19  ;;  %v1072_v19 = vld [vmem:[#allocation5 + $0x1e08] sm:$0xff] }
  0x2c   :  { %v527_v21 = vld [vmem:[#allocation5 + $0xd00] sm:$0xff]  ;;  %1176 = vmatpush.msra.mxu0 %v271_v20 }
  0x2d   :  { %v783_v22 = vld [vmem:[#allocation5 + $0x1500] sm:$0xff]  ;;  %1205 = vmatpush.msra.mxu1 %v527_v21  ;;  %v6305_v21 = vld [vmem:[#allocation2 + $0x28] sm:$0xff] }
  0x2e   :  { %v1039_v23 = vld [vmem:[#allocation5 + $0x1d00] sm:$0xff]  ;;  %1234 = vmatpush.msra.mxu2 %v783_v22  ;;  %v6307_v22 = vld [vmem:[#allocation2 + $0x30] sm:$0xff] }
  0x2f   :  { %v255_v24 = vld [vmem:[#allocation5 + $0x480] sm:$0xff]  ;;  %1263 = vmatpush.msra.mxu3 %v1039_v23  ;;  %v6309_v23 = vld [vmem:[#allocation2 + $0x38] sm:$0xff] }
  0x30   :  { %v511_v25 = vld [vmem:[#allocation5 + $0xc80] sm:$0xff]  ;;  %1177 = vmatpush.msra.mxu0 %v255_v24  ;;  %v800_v24 = vld [vmem:[#allocation5 + $0x1588] sm:$0xff] }
  0x31   :  { %v767_v26 = vld [vmem:[#allocation5 + $0x1480] sm:$0xff]  ;;  %1206 = vmatpush.msra.mxu1 %v511_v25  ;;  %v288_v25 = vld [vmem:[#allocation5 + $0x588] sm:$0xff] }
  0x32   :  { %v1023_v27 = vld [vmem:[#allocation5 + $0x1c80] sm:$0xff]  ;;  %1235 = vmatpush.msra.mxu2 %v767_v26  ;;  %v544_v26 = vld [vmem:[#allocation5 + $0xd88] sm:$0xff] }
  0x33   :  { %v239_v28 = vld [vmem:[#allocation5 + $0x400] sm:$0xff]  ;;  %1264 = vmatpush.msra.mxu3 %v1023_v27  ;;  %v1056_v27 = vld [vmem:[#allocation5 + $0x1d88] sm:$0xff] }
  0x34   :  { %v495_v29 = vld [vmem:[#allocation5 + $0xc00] sm:$0xff]  ;;  %1178 = vmatpush.msra.mxu0 %v239_v28  ;;  %v784_v28 = vld [vmem:[#allocation5 + $0x1508] sm:$0xff] }
  0x35   :  { %v751_v30 = vld [vmem:[#allocation5 + $0x1400] sm:$0xff]  ;;  %1207 = vmatpush.msra.mxu1 %v495_v29  ;;  %v272_v29 = vld [vmem:[#allocation5 + $0x508] sm:$0xff] }
  0x36   :  { %v1007_v31 = vld [vmem:[#allocation5 + $0x1c00] sm:$0xff]  ;;  %1236 = vmatpush.msra.mxu2 %v751_v30  ;;  %v528_v30 = vld [vmem:[#allocation5 + $0xd08] sm:$0xff] }
  0x37   :  { %v223_v32 = vld [vmem:[#allocation5 + $0x380] sm:$0xff]  ;;  %1265 = vmatpush.msra.mxu3 %v1007_v31  ;;  %v1040_v31 = vld [vmem:[#allocation5 + $0x1d08] sm:$0xff] }
  0x38   :  { %v479_v33 = vld [vmem:[#allocation5 + $0xb80] sm:$0xff]  ;;  %1179 = vmatpush.msra.mxu0 %v223_v32  ;;  %v768_v32 = vld [vmem:[#allocation5 + $0x1488] sm:$0xff] }
  0x39   :  { %v735_v34 = vld [vmem:[#allocation5 + $0x1380] sm:$0xff]  ;;  %1208 = vmatpush.msra.mxu1 %v479_v33  ;;  %v256_v33 = vld [vmem:[#allocation5 + $0x488] sm:$0xff] }
  0x3a   :  { %v991_v35 = vld [vmem:[#allocation5 + $0x1b80] sm:$0xff]  ;;  %1237 = vmatpush.msra.mxu2 %v735_v34  ;;  %v512_v34 = vld [vmem:[#allocation5 + $0xc88] sm:$0xff] }
  0x3b   :  { %v207_v36 = vld [vmem:[#allocation5 + $0x300] sm:$0xff]  ;;  %1266 = vmatpush.msra.mxu3 %v991_v35  ;;  %v1024_v35 = vld [vmem:[#allocation5 + $0x1c88] sm:$0xff] }
  0x3c   :  { %v463_v37 = vld [vmem:[#allocation5 + $0xb00] sm:$0xff]  ;;  %1180 = vmatpush.msra.mxu0 %v207_v36  ;;  %v752_v36 = vld [vmem:[#allocation5 + $0x1408] sm:$0xff] }
  0x3d   :  { %v719_v38 = vld [vmem:[#allocation5 + $0x1300] sm:$0xff]  ;;  %1209 = vmatpush.msra.mxu1 %v463_v37  ;;  %v240_v37 = vld [vmem:[#allocation5 + $0x408] sm:$0xff] }
  0x3e   :  { %v975_v39 = vld [vmem:[#allocation5 + $0x1b00] sm:$0xff]  ;;  %1238 = vmatpush.msra.mxu2 %v719_v38  ;;  %v496_v38 = vld [vmem:[#allocation5 + $0xc08] sm:$0xff] }
  0x3f   :  { %v191_v40 = vld [vmem:[#allocation5 + $0x280] sm:$0xff]  ;;  %1267 = vmatpush.msra.mxu3 %v975_v39  ;;  %v1008_v39 = vld [vmem:[#allocation5 + $0x1c08] sm:$0xff] }
  0x40   :  { %v447_v41 = vld [vmem:[#allocation5 + $0xa80] sm:$0xff]  ;;  %1181 = vmatpush.msra.mxu0 %v191_v40 }
  0x41   :  { %v703_v42 = vld [vmem:[#allocation5 + $0x1280] sm:$0xff]  ;;  %1210 = vmatpush.msra.mxu1 %v447_v41  ;;  %v6317_v41 = vld [vmem:[#allocation2 + $0x48] sm:$0xff] }
  0x42   :  { %v959_v43 = vld [vmem:[#allocation5 + $0x1a80] sm:$0xff]  ;;  %1239 = vmatpush.msra.mxu2 %v703_v42  ;;  %v6319_v42 = vld [vmem:[#allocation2 + $0x50] sm:$0xff] }
  0x43   :  { %v175_v44 = vld [vmem:[#allocation5 + $0x200] sm:$0xff]  ;;  %1268 = vmatpush.msra.mxu3 %v959_v43  ;;  %v6321_v43 = vld [vmem:[#allocation2 + $0x58] sm:$0xff] }
  0x44   :  { %v431_v45 = vld [vmem:[#allocation5 + $0xa00] sm:$0xff]  ;;  %1182 = vmatpush.msra.mxu0 %v175_v44  ;;  %v736_v44 = vld [vmem:[#allocation5 + $0x1388] sm:$0xff] }
  0x45   :  { %v687_v46 = vld [vmem:[#allocation5 + $0x1200] sm:$0xff]  ;;  %1211 = vmatpush.msra.mxu1 %v431_v45  ;;  %v224_v45 = vld [vmem:[#allocation5 + $0x388] sm:$0xff] }
  0x46   :  { %v943_v47 = vld [vmem:[#allocation5 + $0x1a00] sm:$0xff]  ;;  %1240 = vmatpush.msra.mxu2 %v687_v46  ;;  %v480_v46 = vld [vmem:[#allocation5 + $0xb88] sm:$0xff] }
  0x47   :  { %v159_v48 = vld [vmem:[#allocation5 + $0x180] sm:$0xff]  ;;  %1269 = vmatpush.msra.mxu3 %v943_v47  ;;  %v992_v47 = vld [vmem:[#allocation5 + $0x1b88] sm:$0xff] }
  0x48   :  { %v415_v49 = vld [vmem:[#allocation5 + $0x980] sm:$0xff]  ;;  %1183 = vmatpush.msra.mxu0 %v159_v48  ;;  %v720_v48 = vld [vmem:[#allocation5 + $0x1308] sm:$0xff] }
  0x49   :  { %v671_v50 = vld [vmem:[#allocation5 + $0x1180] sm:$0xff]  ;;  %1212 = vmatpush.msra.mxu1 %v415_v49  ;;  %v208_v49 = vld [vmem:[#allocation5 + $0x308] sm:$0xff] }
  0x4a   :  { %v927_v51 = vld [vmem:[#allocation5 + $0x1980] sm:$0xff]  ;;  %1241 = vmatpush.msra.mxu2 %v671_v50  ;;  %v464_v50 = vld [vmem:[#allocation5 + $0xb08] sm:$0xff] }
  0x4b   :  { %v143_v52 = vld [vmem:[#allocation5 + $0x100] sm:$0xff]  ;;  %1270 = vmatpush.msra.mxu3 %v927_v51  ;;  %v976_v51 = vld [vmem:[#allocation5 + $0x1b08] sm:$0xff] }
  0x4c   :  { %v399_v53 = vld [vmem:[#allocation5 + $0x900] sm:$0xff]  ;;  %1184 = vmatpush.msra.mxu0 %v143_v52  ;;  %v704_v52 = vld [vmem:[#allocation5 + $0x1288] sm:$0xff] }
  0x4d   :  { %v655_v54 = vld [vmem:[#allocation5 + $0x1100] sm:$0xff]  ;;  %1213 = vmatpush.msra.mxu1 %v399_v53  ;;  %v192_v53 = vld [vmem:[#allocation5 + $0x288] sm:$0xff] }
  0x4e   :  { %v911_v55 = vld [vmem:[#allocation5 + $0x1900] sm:$0xff]  ;;  %1242 = vmatpush.msra.mxu2 %v655_v54  ;;  %v448_v54 = vld [vmem:[#allocation5 + $0xa88] sm:$0xff] }
  0x4f   :  { %v127_v56 = vld [vmem:[#allocation5 + $0x80] sm:$0xff]  ;;  %1271 = vmatpush.msra.mxu3 %v911_v55  ;;  %v960_v55 = vld [vmem:[#allocation5 + $0x1a88] sm:$0xff] }
  0x50   :  { %v383_v57 = vld [vmem:[#allocation5 + $0x880] sm:$0xff]  ;;  %1185 = vmatpush.msra.mxu0 %v127_v56  ;;  %v688_v56 = vld [vmem:[#allocation5 + $0x1208] sm:$0xff] }
  0x51   :  { %v639_v58 = vld [vmem:[#allocation5 + $0x1080] sm:$0xff]  ;;  %1214 = vmatpush.msra.mxu1 %v383_v57  ;;  %v176_v57 = vld [vmem:[#allocation5 + $0x208] sm:$0xff] }
  0x52   :  { %v895_v59 = vld [vmem:[#allocation5 + $0x1880] sm:$0xff]  ;;  %1243 = vmatpush.msra.mxu2 %v639_v58  ;;  %v432_v58 = vld [vmem:[#allocation5 + $0xa08] sm:$0xff] }
  0x53   :  { %v111_v60 = vld [vmem:[#allocation5] sm:$0xff]  ;;  %1272 = vmatpush.msra.mxu3 %v895_v59  ;;  %v944_v59 = vld [vmem:[#allocation5 + $0x1a08] sm:$0xff] }
  0x54   :  { %v367_v61 = vld [vmem:[#allocation5 + $0x800] sm:$0xff]  ;;  %1186 = vmatpush.msra.mxu0 %v111_v60 }
  0x55   :  { %v623_v62 = vld [vmem:[#allocation5 + $0x1000] sm:$0xff]  ;;  %1215 = vmatpush.msra.mxu1 %v367_v61  ;;  %v6329_v61 = vld [vmem:[#allocation2 + $0x68] sm:$0xff] }
  0x56   :  { %v879_v63 = vld [vmem:[#allocation5 + $0x1800] sm:$0xff]  ;;  %1244 = vmatpush.msra.mxu2 %v623_v62  ;;  %1216 = vmatmul.f32.vlgmr.msra.gmra.mxu1 %v6293_v1  ;;  %v6331_v62 = vld [vmem:[#allocation2 + $0x70] sm:$0xff] }
  0x57   :  { %v6291_v0 = vld [vmem:[#allocation2] sm:$0xff]  ;;  %1273 = vmatpush.msra.mxu3 %v879_v63  ;;  %1245 = vmatmul.f32.vlgmr.msra.gmra.mxu2 %v6295_v2  ;;  %v6333_v63 = vld [vmem:[#allocation2 + $0x78] sm:$0xff] }
  0x58   :  { %1187 = vmatmul.f32.vlgmr.msra.gmra.mxu0 %v6291_v0  ;;  %1274 = vmatmul.f32.vlgmr.msra.gmra.mxu3 %v6297_v3  ;;  %v6303_v20 = vld [vmem:[#allocation2 + $0x20] sm:$0xff] }
  0x59   :  { %1345 = vmatpush.msrb.mxu2 %v864_v4  ;;  %1287 = vmatpush.msrb.mxu0 %v352_v5  ;;  %v6315_v40 = vld [vmem:[#allocation2 + $0x40] sm:$0xff]  ;;  %v672_v4 = vld [vmem:[#allocation5 + $0x1188] sm:$0xff] }
  0x5a   :  { %1316 = vmatpush.msrb.mxu1 %v608_v6  ;;  %1374 = vmatpush.msrb.mxu3 %v1120_v7  ;;  %v6327_v60 = vld [vmem:[#allocation2 + $0x60] sm:$0xff]  ;;  %v160_v5 = vld [vmem:[#allocation5 + $0x188] sm:$0xff] }
  0x5b   :  { %1346 = vmatpush.msrb.mxu2 %v848_v8  ;;  %1288 = vmatpush.msrb.mxu0 %v336_v9  ;;  %v416_v6 = vld [vmem:[#allocation5 + $0x988] sm:$0xff] }
  0x5c   :  { %1317 = vmatpush.msrb.mxu1 %v592_v10  ;;  %1375 = vmatpush.msrb.mxu3 %v1104_v11  ;;  %v928_v7 = vld [vmem:[#allocation5 + $0x1988] sm:$0xff] }
  0x5d   :  { %1347 = vmatpush.msrb.mxu2 %v832_v12  ;;  %1289 = vmatpush.msrb.mxu0 %v320_v13  ;;  %v656_v8 = vld [vmem:[#allocation5 + $0x1108] sm:$0xff] }
  0x5e   :  { %1318 = vmatpush.msrb.mxu1 %v576_v14  ;;  %1376 = vmatpush.msrb.mxu3 %v1088_v15  ;;  %v144_v9 = vld [vmem:[#allocation5 + $0x108] sm:$0xff] }
  0x5f   :  { %1348 = vmatpush.msrb.mxu2 %v816_v16  ;;  %1290 = vmatpush.msrb.mxu0 %v304_v17  ;;  %v400_v10 = vld [vmem:[#allocation5 + $0x908] sm:$0xff] }
  0x60   :  { %1319 = vmatpush.msrb.mxu1 %v560_v18  ;;  %1377 = vmatpush.msrb.mxu3 %v1072_v19  ;;  %v912_v11 = vld [vmem:[#allocation5 + $0x1908] sm:$0xff] }
  0x61   :  { %1190 = vmatmul.f32.gmra.mxu0 %v6303_v20  ;;  %1219 = vmatmul.f32.gmra.mxu1 %v6305_v21  ;;  %v640_v12 = vld [vmem:[#allocation5 + $0x1088] sm:$0xff] }
  0x62   :  { %1248 = vmatmul.f32.gmra.mxu2 %v6307_v22  ;;  %1277 = vmatmul.f32.gmra.mxu3 %v6309_v23  ;;  %v128_v13 = vld [vmem:[#allocation5 + $0x88] sm:$0xff] }
  0x63   :  { %1349 = vmatpush.msrb.mxu2 %v800_v24  ;;  %1291 = vmatpush.msrb.mxu0 %v288_v25  ;;  %v384_v14 = vld [vmem:[#allocation5 + $0x888] sm:$0xff]  ;;  %v865_v24 = vld [vmem:[#allocation5 + $0x1790] sm:$0xff] }
  0x64   :  { %1320 = vmatpush.msrb.mxu1 %v544_v26  ;;  %1378 = vmatpush.msrb.mxu3 %v1056_v27  ;;  %v896_v15 = vld [vmem:[#allocation5 + $0x1888] sm:$0xff]  ;;  %v353_v25 = vld [vmem:[#allocation5 + $0x790] sm:$0xff] }
  0x65   :  { %1350 = vmatpush.msrb.mxu2 %v784_v28  ;;  %1292 = vmatpush.msrb.mxu0 %v272_v29  ;;  %v624_v16 = vld [vmem:[#allocation5 + $0x1008] sm:$0xff]  ;;  %v609_v26 = vld [vmem:[#allocation5 + $0xf90] sm:$0xff] }
  0x66   :  { %1321 = vmatpush.msrb.mxu1 %v528_v30  ;;  %1379 = vmatpush.msrb.mxu3 %v1040_v31  ;;  %v112_v17 = vld [vmem:[#allocation5 + $0x8] sm:$0xff]  ;;  %v1121_v27 = vld [vmem:[#allocation5 + $0x1f90] sm:$0xff] }
  0x67   :  { %1351 = vmatpush.msrb.mxu2 %v768_v32  ;;  %1293 = vmatpush.msrb.mxu0 %v256_v33  ;;  %v368_v18 = vld [vmem:[#allocation5 + $0x808] sm:$0xff]  ;;  %v849_v28 = vld [vmem:[#allocation5 + $0x1710] sm:$0xff] }
  0x68   :  { %1322 = vmatpush.msrb.mxu1 %v512_v34  ;;  %1380 = vmatpush.msrb.mxu3 %v1024_v35  ;;  %v880_v19 = vld [vmem:[#allocation5 + $0x1808] sm:$0xff]  ;;  %v337_v29 = vld [vmem:[#allocation5 + $0x710] sm:$0xff] }
  0x69   :  { %1352 = vmatpush.msrb.mxu2 %v752_v36  ;;  %1294 = vmatpush.msrb.mxu0 %v240_v37  ;;  %v593_v30 = vld [vmem:[#allocation5 + $0xf10] sm:$0xff] }
  0x6a   :  { %1323 = vmatpush.msrb.mxu1 %v496_v38  ;;  %1381 = vmatpush.msrb.mxu3 %v1008_v39  ;;  %v1105_v31 = vld [vmem:[#allocation5 + $0x1f10] sm:$0xff] }
  0x6b   :  { %1193 = vmatmul.f32.gmra.mxu0 %v6315_v40  ;;  %1222 = vmatmul.f32.gmra.mxu1 %v6317_v41  ;;  %v833_v32 = vld [vmem:[#allocation5 + $0x1690] sm:$0xff] }
  0x6c   :  { %1251 = vmatmul.f32.gmra.mxu2 %v6319_v42  ;;  %1280 = vmatmul.f32.gmra.mxu3 %v6321_v43  ;;  %v321_v33 = vld [vmem:[#allocation5 + $0x690] sm:$0xff] }
  0x6d   :  { %1353 = vmatpush.msrb.mxu2 %v736_v44  ;;  %1295 = vmatpush.msrb.mxu0 %v224_v45  ;;  %v577_v34 = vld [vmem:[#allocation5 + $0xe90] sm:$0xff] }
  0x6e   :  { %1324 = vmatpush.msrb.mxu1 %v480_v46  ;;  %1382 = vmatpush.msrb.mxu3 %v992_v47  ;;  %v1089_v35 = vld [vmem:[#allocation5 + $0x1e90] sm:$0xff] }
  0x6f   :  { %1354 = vmatpush.msrb.mxu2 %v720_v48  ;;  %1296 = vmatpush.msrb.mxu0 %v208_v49  ;;  %v817_v36 = vld [vmem:[#allocation5 + $0x1610] sm:$0xff] }
  0x70   :  { %1325 = vmatpush.msrb.mxu1 %v464_v50  ;;  %1383 = vmatpush.msrb.mxu3 %v976_v51  ;;  %v305_v37 = vld [vmem:[#allocation5 + $0x610] sm:$0xff] }
  0x71   :  { %1355 = vmatpush.msrb.mxu2 %v704_v52  ;;  %1297 = vmatpush.msrb.mxu0 %v192_v53  ;;  %v561_v38 = vld [vmem:[#allocation5 + $0xe10] sm:$0xff] }
  0x72   :  { %1326 = vmatpush.msrb.mxu1 %v448_v54  ;;  %1384 = vmatpush.msrb.mxu3 %v960_v55  ;;  %v1073_v39 = vld [vmem:[#allocation5 + $0x1e10] sm:$0xff] }
  0x73   :  { %1356 = vmatpush.msrb.mxu2 %v688_v56  ;;  %1298 = vmatpush.msrb.mxu0 %v176_v57  ;;  %v801_v44 = vld [vmem:[#allocation5 + $0x1590] sm:$0xff] }
  0x74   :  { %1327 = vmatpush.msrb.mxu1 %v432_v58  ;;  %1385 = vmatpush.msrb.mxu3 %v944_v59  ;;  %v289_v45 = vld [vmem:[#allocation5 + $0x590] sm:$0xff] }
  0x75   :  { %1196 = vmatmul.f32.gmra.mxu0 %v6327_v60  ;;  %1225 = vmatmul.f32.gmra.mxu1 %v6329_v61  ;;  %v545_v46 = vld [vmem:[#allocation5 + $0xd90] sm:$0xff] }
  0x76   :  { %1254 = vmatmul.f32.gmra.mxu2 %v6331_v62  ;;  %1283 = vmatmul.f32.gmra.mxu3 %v6333_v63  ;;  %v1057_v47 = vld [vmem:[#allocation5 + $0x1d90] sm:$0xff] }
  0x77   :  { %1357 = vmatpush.msrb.mxu2 %v672_v4  ;;  %1299 = vmatpush.msrb.mxu0 %v160_v5  ;;  %v785_v48 = vld [vmem:[#allocation5 + $0x1510] sm:$0xff] }
  0x78   :  { %1328 = vmatpush.msrb.mxu1 %v416_v6  ;;  %1386 = vmatpush.msrb.mxu3 %v928_v7  ;;  %v273_v49 = vld [vmem:[#allocation5 + $0x510] sm:$0xff] }
  0x79   :  { %1358 = vmatpush.msrb.mxu2 %v656_v8  ;;  %1300 = vmatpush.msrb.mxu0 %v144_v9  ;;  %v529_v50 = vld [vmem:[#allocation5 + $0xd10] sm:$0xff] }
  0x7a   :  { %1329 = vmatpush.msrb.mxu1 %v400_v10  ;;  %1387 = vmatpush.msrb.mxu3 %v912_v11  ;;  %v1041_v51 = vld [vmem:[#allocation5 + $0x1d10] sm:$0xff] }
  0x7b   :  { %1359 = vmatpush.msrb.mxu2 %v640_v12  ;;  %1301 = vmatpush.msrb.mxu0 %v128_v13  ;;  %v769_v52 = vld [vmem:[#allocation5 + $0x1490] sm:$0xff] }
  0x7c   :  { %1330 = vmatpush.msrb.mxu1 %v384_v14  ;;  %1388 = vmatpush.msrb.mxu3 %v896_v15  ;;  %v257_v53 = vld [vmem:[#allocation5 + $0x490] sm:$0xff] }
  0x7d   :  { %1360 = vmatpush.msrb.mxu2 %v624_v16  ;;  %1302 = vmatpush.msrb.mxu0 %v112_v17  ;;  %v513_v54 = vld [vmem:[#allocation5 + $0xc90] sm:$0xff] }
  0x7e   :  { %1331 = vmatpush.msrb.mxu1 %v368_v18  ;;  %1389 = vmatpush.msrb.mxu3 %v880_v19  ;;  %v1025_v55 = vld [vmem:[#allocation5 + $0x1c90] sm:$0xff] }
  0x7f   :  { %1303 = vmatmul.f32.vlgmr.msrb.gmra.mxu0 %v6291_v0  ;;  %1332 = vmatmul.f32.vlgmr.msrb.gmra.mxu1 %v6293_v1  ;;  %v753_v56 = vld [vmem:[#allocation5 + $0x1410] sm:$0xff] }
  0x80   :  { %1361 = vmatmul.f32.vlgmr.msrb.gmra.mxu2 %v6295_v2  ;;  %1390 = vmatmul.f32.vlgmr.msrb.gmra.mxu3 %v6297_v3  ;;  %v241_v57 = vld [vmem:[#allocation5 + $0x410] sm:$0xff] }
  0x81   :  { %1461 = vmatpush.msra.mxu2 %v865_v24  ;;  %1403 = vmatpush.msra.mxu0 %v353_v25  ;;  %v497_v58 = vld [vmem:[#allocation5 + $0xc10] sm:$0xff] }
  0x82   :  { %1432 = vmatpush.msra.mxu1 %v609_v26  ;;  %1490 = vmatpush.msra.mxu3 %v1121_v27  ;;  %v1009_v59 = vld [vmem:[#allocation5 + $0x1c10] sm:$0xff] }
  0x83   :  { %1462 = vmatpush.msra.mxu2 %v849_v28  ;;  %1404 = vmatpush.msra.mxu0 %v337_v29  ;;  %v737_v4 = vld [vmem:[#allocation5 + $0x1390] sm:$0xff] }
  0x84   :  { %1433 = vmatpush.msra.mxu1 %v593_v30  ;;  %1491 = vmatpush.msra.mxu3 %v1105_v31  ;;  %v225_v5 = vld [vmem:[#allocation5 + $0x390] sm:$0xff] }
  0x85   :  { %1463 = vmatpush.msra.mxu2 %v833_v32  ;;  %1405 = vmatpush.msra.mxu0 %v321_v33  ;;  %v481_v6 = vld [vmem:[#allocation5 + $0xb90] sm:$0xff] }
  0x86   :  { %1434 = vmatpush.msra.mxu1 %v577_v34  ;;  %1492 = vmatpush.msra.mxu3 %v1089_v35  ;;  %v993_v7 = vld [vmem:[#allocation5 + $0x1b90] sm:$0xff] }
  0x87   :  { %1464 = vmatpush.msra.mxu2 %v817_v36  ;;  %1406 = vmatpush.msra.mxu0 %v305_v37  ;;  %v721_v8 = vld [vmem:[#allocation5 + $0x1310] sm:$0xff] }
  0x88   :  { %1435 = vmatpush.msra.mxu1 %v561_v38  ;;  %1493 = vmatpush.msra.mxu3 %v1073_v39  ;;  %v209_v9 = vld [vmem:[#allocation5 + $0x310] sm:$0xff] }
  0x89   :  { %1306 = vmatmul.f32.gmra.mxu0 %v6303_v20  ;;  %1335 = vmatmul.f32.gmra.mxu1 %v6305_v21  ;;  %v465_v10 = vld [vmem:[#allocation5 + $0xb10] sm:$0xff] }
  0x8a   :  { %1364 = vmatmul.f32.gmra.mxu2 %v6307_v22  ;;  %1393 = vmatmul.f32.gmra.mxu3 %v6309_v23  ;;  %v977_v11 = vld [vmem:[#allocation5 + $0x1b10] sm:$0xff] }
  0x8b   :  { %1465 = vmatpush.msra.mxu2 %v801_v44  ;;  %1407 = vmatpush.msra.mxu0 %v289_v45  ;;  %v705_v12 = vld [vmem:[#allocation5 + $0x1290] sm:$0xff]  ;;  %v866_v44 = vld [vmem:[#allocation5 + $0x1798] sm:$0xff] }
  0x8c   :  { %1436 = vmatpush.msra.mxu1 %v545_v46  ;;  %1494 = vmatpush.msra.mxu3 %v1057_v47  ;;  %v193_v13 = vld [vmem:[#allocation5 + $0x290] sm:$0xff]  ;;  %v354_v45 = vld [vmem:[#allocation5 + $0x798] sm:$0xff] }
  0x8d   :  { %1466 = vmatpush.msra.mxu2 %v785_v48  ;;  %1408 = vmatpush.msra.mxu0 %v273_v49  ;;  %v449_v14 = vld [vmem:[#allocation5 + $0xa90] sm:$0xff]  ;;  %v610_v46 = vld [vmem:[#allocation5 + $0xf98] sm:$0xff] }
  0x8e   :  { %1437 = vmatpush.msra.mxu1 %v529_v50  ;;  %1495 = vmatpush.msra.mxu3 %v1041_v51  ;;  %v961_v15 = vld [vmem:[#allocation5 + $0x1a90] sm:$0xff]  ;;  %v1122_v47 = vld [vmem:[#allocation5 + $0x1f98] sm:$0xff] }
  0x8f   :  { %1467 = vmatpush.msra.mxu2 %v769_v52  ;;  %1409 = vmatpush.msra.mxu0 %v257_v53  ;;  %v689_v16 = vld [vmem:[#allocation5 + $0x1210] sm:$0xff]  ;;  %v850_v48 = vld [vmem:[#allocation5 + $0x1718] sm:$0xff] }
  0x90   :  { %1438 = vmatpush.msra.mxu1 %v513_v54  ;;  %1496 = vmatpush.msra.mxu3 %v1025_v55  ;;  %v177_v17 = vld [vmem:[#allocation5 + $0x210] sm:$0xff]  ;;  %v338_v49 = vld [vmem:[#allocation5 + $0x718] sm:$0xff] }
  0x91   :  { %1468 = vmatpush.msra.mxu2 %v753_v56  ;;  %1410 = vmatpush.msra.mxu0 %v241_v57  ;;  %v433_v18 = vld [vmem:[#allocation5 + $0xa10] sm:$0xff]  ;;  %v594_v50 = vld [vmem:[#allocation5 + $0xf18] sm:$0xff] }
  0x92   :  { %1439 = vmatpush.msra.mxu1 %v497_v58  ;;  %1497 = vmatpush.msra.mxu3 %v1009_v59  ;;  %v945_v19 = vld [vmem:[#allocation5 + $0x1a10] sm:$0xff]  ;;  %v1106_v51 = vld [vmem:[#allocation5 + $0x1f18] sm:$0xff] }
  0x93   :  { %1309 = vmatmul.f32.gmra.mxu0 %v6315_v40  ;;  %1338 = vmatmul.f32.gmra.mxu1 %v6317_v41  ;;  %v673_v24 = vld [vmem:[#allocation5 + $0x1190] sm:$0xff]  ;;  %v834_v52 = vld [vmem:[#allocation5 + $0x1698] sm:$0xff] }
  0x94   :  { %1367 = vmatmul.f32.gmra.mxu2 %v6319_v42  ;;  %1396 = vmatmul.f32.gmra.mxu3 %v6321_v43  ;;  %v161_v25 = vld [vmem:[#allocation5 + $0x190] sm:$0xff]  ;;  %v322_v53 = vld [vmem:[#allocation5 + $0x698] sm:$0xff] }
  0x95   :  { %1469 = vmatpush.msra.mxu2 %v737_v4  ;;  %1411 = vmatpush.msra.mxu0 %v225_v5  ;;  %v417_v26 = vld [vmem:[#allocation5 + $0x990] sm:$0xff]  ;;  %v578_v54 = vld [vmem:[#allocation5 + $0xe98] sm:$0xff] }
  0x96   :  { %1440 = vmatpush.msra.mxu1 %v481_v6  ;;  %1498 = vmatpush.msra.mxu3 %v993_v7  ;;  %v929_v27 = vld [vmem:[#allocation5 + $0x1990] sm:$0xff]  ;;  %v1090_v55 = vld [vmem:[#allocation5 + $0x1e98] sm:$0xff] }
  0x97   :  { %1470 = vmatpush.msra.mxu2 %v721_v8  ;;  %1412 = vmatpush.msra.mxu0 %v209_v9  ;;  %v657_v28 = vld [vmem:[#allocation5 + $0x1110] sm:$0xff]  ;;  %v818_v56 = vld [vmem:[#allocation5 + $0x1618] sm:$0xff] }
  0x98   :  { %1441 = vmatpush.msra.mxu1 %v465_v10  ;;  %1499 = vmatpush.msra.mxu3 %v977_v11  ;;  %v145_v29 = vld [vmem:[#allocation5 + $0x110] sm:$0xff]  ;;  %v306_v57 = vld [vmem:[#allocation5 + $0x618] sm:$0xff] }
  0x99   :  { %1471 = vmatpush.msra.mxu2 %v705_v12  ;;  %1413 = vmatpush.msra.mxu0 %v193_v13  ;;  %v401_v30 = vld [vmem:[#allocation5 + $0x910] sm:$0xff]  ;;  %v562_v58 = vld [vmem:[#allocation5 + $0xe18] sm:$0xff] }
  0x9a   :  { %1442 = vmatpush.msra.mxu1 %v449_v14  ;;  %1500 = vmatpush.msra.mxu3 %v961_v15  ;;  %v913_v31 = vld [vmem:[#allocation5 + $0x1910] sm:$0xff]  ;;  %v1074_v59 = vld [vmem:[#allocation5 + $0x1e18] sm:$0xff] }
  0x9b   :  { %1472 = vmatpush.msra.mxu2 %v689_v16  ;;  %1414 = vmatpush.msra.mxu0 %v177_v17  ;;  %v641_v32 = vld [vmem:[#allocation5 + $0x1090] sm:$0xff]  ;;  %v802_v4 = vld [vmem:[#allocation5 + $0x1598] sm:$0xff] }
  0x9c   :  { %1443 = vmatpush.msra.mxu1 %v433_v18  ;;  %1501 = vmatpush.msra.mxu3 %v945_v19  ;;  %v129_v33 = vld [vmem:[#allocation5 + $0x90] sm:$0xff]  ;;  %v290_v5 = vld [vmem:[#allocation5 + $0x598] sm:$0xff] }
  0x9d   :  { %1312 = vmatmul.f32.gmra.mxu0 %v6327_v60  ;;  %1341 = vmatmul.f32.gmra.mxu1 %v6329_v61  ;;  %v385_v34 = vld [vmem:[#allocation5 + $0x890] sm:$0xff]  ;;  %v546_v6 = vld [vmem:[#allocation5 + $0xd98] sm:$0xff] }
  0x9e   :  { %1370 = vmatmul.f32.gmra.mxu2 %v6331_v62  ;;  %1399 = vmatmul.f32.gmra.mxu3 %v6333_v63  ;;  %v897_v35 = vld [vmem:[#allocation5 + $0x1890] sm:$0xff]  ;;  %v1058_v7 = vld [vmem:[#allocation5 + $0x1d98] sm:$0xff] }
  0x9f   :  { %1473 = vmatpush.msra.mxu2 %v673_v24  ;;  %1415 = vmatpush.msra.mxu0 %v161_v25  ;;  %v625_v36 = vld [vmem:[#allocation5 + $0x1010] sm:$0xff]  ;;  %v786_v8 = vld [vmem:[#allocation5 + $0x1518] sm:$0xff] }
  0xa0   :  { %1444 = vmatpush.msra.mxu1 %v417_v26  ;;  %1502 = vmatpush.msra.mxu3 %v929_v27  ;;  %v113_v37 = vld [vmem:[#allocation5 + $0x10] sm:$0xff]  ;;  %v274_v9 = vld [vmem:[#allocation5 + $0x518] sm:$0xff] }
  0xa1   :  { %1474 = vmatpush.msra.mxu2 %v657_v28  ;;  %1416 = vmatpush.msra.mxu0 %v145_v29  ;;  %v369_v38 = vld [vmem:[#allocation5 + $0x810] sm:$0xff]  ;;  %v530_v10 = vld [vmem:[#allocation5 + $0xd18] sm:$0xff] }
  0xa2   :  { %1445 = vmatpush.msra.mxu1 %v401_v30  ;;  %1503 = vmatpush.msra.mxu3 %v913_v31  ;;  %v881_v39 = vld [vmem:[#allocation5 + $0x1810] sm:$0xff]  ;;  %v1042_v11 = vld [vmem:[#allocation5 + $0x1d18] sm:$0xff] }
  0xa3   :  { %1475 = vmatpush.msra.mxu2 %v641_v32  ;;  %1417 = vmatpush.msra.mxu0 %v129_v33  ;;  %v770_v12 = vld [vmem:[#allocation5 + $0x1498] sm:$0xff] }
  0xa4   :  { %1446 = vmatpush.msra.mxu1 %v385_v34  ;;  %1504 = vmatpush.msra.mxu3 %v897_v35  ;;  %v258_v13 = vld [vmem:[#allocation5 + $0x498] sm:$0xff] }
  0xa5   :  { %1476 = vmatpush.msra.mxu2 %v625_v36  ;;  %1418 = vmatpush.msra.mxu0 %v113_v37  ;;  %v514_v14 = vld [vmem:[#allocation5 + $0xc98] sm:$0xff] }
  0xa6   :  { %1447 = vmatpush.msra.mxu1 %v369_v38  ;;  %1505 = vmatpush.msra.mxu3 %v881_v39  ;;  %v1026_v15 = vld [vmem:[#allocation5 + $0x1c98] sm:$0xff] }
  0xa7   :  { %1419 = vmatmul.f32.vlgmr.msra.gmra.mxu0 %v6291_v0  ;;  %1448 = vmatmul.f32.vlgmr.msra.gmra.mxu1 %v6293_v1  ;;  %v754_v16 = vld [vmem:[#allocation5 + $0x1418] sm:$0xff] }
  0xa8   :  { %1477 = vmatmul.f32.vlgmr.msra.gmra.mxu2 %v6295_v2  ;;  %1506 = vmatmul.f32.vlgmr.msra.gmra.mxu3 %v6297_v3  ;;  %v242_v17 = vld [vmem:[#allocation5 + $0x418] sm:$0xff] }
  0xa9   :  { %1577 = vmatpush.msrb.mxu2 %v866_v44  ;;  %1519 = vmatpush.msrb.mxu0 %v354_v45  ;;  %v498_v18 = vld [vmem:[#allocation5 + $0xc18] sm:$0xff] }
  0xaa   :  { %1548 = vmatpush.msrb.mxu1 %v610_v46  ;;  %1606 = vmatpush.msrb.mxu3 %v1122_v47  ;;  %v1010_v19 = vld [vmem:[#allocation5 + $0x1c18] sm:$0xff] }
  0xab   :  { %1578 = vmatpush.msrb.mxu2 %v850_v48  ;;  %1520 = vmatpush.msrb.mxu0 %v338_v49  ;;  %v738_v24 = vld [vmem:[#allocation5 + $0x1398] sm:$0xff] }
  0xac   :  { %1549 = vmatpush.msrb.mxu1 %v594_v50  ;;  %1607 = vmatpush.msrb.mxu3 %v1106_v51  ;;  %v226_v25 = vld [vmem:[#allocation5 + $0x398] sm:$0xff] }
  0xad   :  { %1579 = vmatpush.msrb.mxu2 %v834_v52  ;;  %1521 = vmatpush.msrb.mxu0 %v322_v53  ;;  %v482_v26 = vld [vmem:[#allocation5 + $0xb98] sm:$0xff] }
  0xae   :  { %1550 = vmatpush.msrb.mxu1 %v578_v54  ;;  %1608 = vmatpush.msrb.mxu3 %v1090_v55  ;;  %v994_v27 = vld [vmem:[#allocation5 + $0x1b98] sm:$0xff] }
  0xaf   :  { %1580 = vmatpush.msrb.mxu2 %v818_v56  ;;  %1522 = vmatpush.msrb.mxu0 %v306_v57  ;;  %v722_v28 = vld [vmem:[#allocation5 + $0x1318] sm:$0xff] }
  0xb0   :  { %1551 = vmatpush.msrb.mxu1 %v562_v58  ;;  %1609 = vmatpush.msrb.mxu3 %v1074_v59  ;;  %v210_v29 = vld [vmem:[#allocation5 + $0x318] sm:$0xff] }
  0xb1   :  { %1422 = vmatmul.f32.gmra.mxu0 %v6303_v20  ;;  %1451 = vmatmul.f32.gmra.mxu1 %v6305_v21  ;;  %v466_v30 = vld [vmem:[#allocation5 + $0xb18] sm:$0xff] }
  0xb2   :  { %1480 = vmatmul.f32.gmra.mxu2 %v6307_v22  ;;  %1509 = vmatmul.f32.gmra.mxu3 %v6309_v23  ;;  %v978_v31 = vld [vmem:[#allocation5 + $0x1b18] sm:$0xff] }
  0xb3   :  { %1581 = vmatpush.msrb.mxu2 %v802_v4  ;;  %1523 = vmatpush.msrb.mxu0 %v290_v5  ;;  %v706_v32 = vld [vmem:[#allocation5 + $0x1298] sm:$0xff]  ;;  %v867_v4 = vld [vmem:[#allocation5 + $0x17a0] sm:$0xff] }
  0xb4   :  { %1552 = vmatpush.msrb.mxu1 %v546_v6  ;;  %1610 = vmatpush.msrb.mxu3 %v1058_v7  ;;  %v194_v33 = vld [vmem:[#allocation5 + $0x298] sm:$0xff]  ;;  %v355_v5 = vld [vmem:[#allocation5 + $0x7a0] sm:$0xff] }
  0xb5   :  { %1582 = vmatpush.msrb.mxu2 %v786_v8  ;;  %1524 = vmatpush.msrb.mxu0 %v274_v9  ;;  %v450_v34 = vld [vmem:[#allocation5 + $0xa98] sm:$0xff]  ;;  %v611_v6 = vld [vmem:[#allocation5 + $0xfa0] sm:$0xff] }
  0xb6   :  { %1553 = vmatpush.msrb.mxu1 %v530_v10  ;;  %1611 = vmatpush.msrb.mxu3 %v1042_v11  ;;  %v962_v35 = vld [vmem:[#allocation5 + $0x1a98] sm:$0xff]  ;;  %v1123_v7 = vld [vmem:[#allocation5 + $0x1fa0] sm:$0xff] }
  0xb7   :  { %1583 = vmatpush.msrb.mxu2 %v770_v12  ;;  %1525 = vmatpush.msrb.mxu0 %v258_v13  ;;  %v690_v36 = vld [vmem:[#allocation5 + $0x1218] sm:$0xff]  ;;  %v851_v8 = vld [vmem:[#allocation5 + $0x1720] sm:$0xff] }
  0xb8   :  { %1554 = vmatpush.msrb.mxu1 %v514_v14  ;;  %1612 = vmatpush.msrb.mxu3 %v1026_v15  ;;  %v178_v37 = vld [vmem:[#allocation5 + $0x218] sm:$0xff]  ;;  %v339_v9 = vld [vmem:[#allocation5 + $0x720] sm:$0xff] }
  0xb9   :  { %1584 = vmatpush.msrb.mxu2 %v754_v16  ;;  %1526 = vmatpush.msrb.mxu0 %v242_v17  ;;  %v434_v38 = vld [vmem:[#allocation5 + $0xa18] sm:$0xff]  ;;  %v595_v10 = vld [vmem:[#allocation5 + $0xf20] sm:$0xff] }
  0xba   :  { %1555 = vmatpush.msrb.mxu1 %v498_v18  ;;  %1613 = vmatpush.msrb.mxu3 %v1010_v19  ;;  %v946_v39 = vld [vmem:[#allocation5 + $0x1a18] sm:$0xff]  ;;  %v1107_v11 = vld [vmem:[#allocation5 + $0x1f20] sm:$0xff] }
  0xbb   :  { %1425 = vmatmul.f32.gmra.mxu0 %v6315_v40  ;;  %1454 = vmatmul.f32.gmra.mxu1 %v6317_v41  ;;  %v674_v44 = vld [vmem:[#allocation5 + $0x1198] sm:$0xff]  ;;  %v835_v12 = vld [vmem:[#allocation5 + $0x16a0] sm:$0xff] }
  0xbc   :  { %1483 = vmatmul.f32.gmra.mxu2 %v6319_v42  ;;  %1512 = vmatmul.f32.gmra.mxu3 %v6321_v43  ;;  %v162_v45 = vld [vmem:[#allocation5 + $0x198] sm:$0xff]  ;;  %v323_v13 = vld [vmem:[#allocation5 + $0x6a0] sm:$0xff] }
  0xbd   :  { %1585 = vmatpush.msrb.mxu2 %v738_v24  ;;  %1527 = vmatpush.msrb.mxu0 %v226_v25  ;;  %v418_v46 = vld [vmem:[#allocation5 + $0x998] sm:$0xff]  ;;  %v819_v14 = vld [vmem:[#allocation5 + $0x1620] sm:$0xff] }
  0xbe   :  { %1556 = vmatpush.msrb.mxu1 %v482_v26  ;;  %1614 = vmatpush.msrb.mxu3 %v994_v27  ;;  %v930_v47 = vld [vmem:[#allocation5 + $0x1998] sm:$0xff]  ;;  %v563_v16 = vld [vmem:[#allocation5 + $0xe20] sm:$0xff] }
  0xbf   :  { %1586 = vmatpush.msrb.mxu2 %v722_v28  ;;  %1528 = vmatpush.msrb.mxu0 %v210_v29  ;;  %v658_v48 = vld [vmem:[#allocation5 + $0x1118] sm:$0xff]  ;;  %v1075_v17 = vld [vmem:[#allocation5 + $0x1e20] sm:$0xff] }
  0xc0   :  { %1557 = vmatpush.msrb.mxu1 %v466_v30  ;;  %1615 = vmatpush.msrb.mxu3 %v978_v31  ;;  %v146_v49 = vld [vmem:[#allocation5 + $0x118] sm:$0xff]  ;;  %v803_v18 = vld [vmem:[#allocation5 + $0x15a0] sm:$0xff] }
  0xc1   :  { %1587 = vmatpush.msrb.mxu2 %v706_v32  ;;  %1529 = vmatpush.msrb.mxu0 %v194_v33  ;;  %v402_v50 = vld [vmem:[#allocation5 + $0x918] sm:$0xff]  ;;  %v291_v19 = vld [vmem:[#allocation5 + $0x5a0] sm:$0xff] }
  0xc2   :  { %1558 = vmatpush.msrb.mxu1 %v450_v34  ;;  %1616 = vmatpush.msrb.mxu3 %v962_v35  ;;  %v914_v51 = vld [vmem:[#allocation5 + $0x1918] sm:$0xff]  ;;  %v547_v24 = vld [vmem:[#allocation5 + $0xda0] sm:$0xff] }
  0xc3   :  { %1588 = vmatpush.msrb.mxu2 %v690_v36  ;;  %1530 = vmatpush.msrb.mxu0 %v178_v37  ;;  %v642_v52 = vld [vmem:[#allocation5 + $0x1098] sm:$0xff]  ;;  %v1059_v25 = vld [vmem:[#allocation5 + $0x1da0] sm:$0xff] }
  0xc4   :  { %1559 = vmatpush.msrb.mxu1 %v434_v38  ;;  %1617 = vmatpush.msrb.mxu3 %v946_v39  ;;  %v130_v53 = vld [vmem:[#allocation5 + $0x98] sm:$0xff]  ;;  %v787_v26 = vld [vmem:[#allocation5 + $0x1520] sm:$0xff] }
  0xc5   :  { %1428 = vmatmul.f32.gmra.mxu0 %v6327_v60  ;;  %1457 = vmatmul.f32.gmra.mxu1 %v6329_v61  ;;  %v386_v54 = vld [vmem:[#allocation5 + $0x898] sm:$0xff]  ;;  %v275_v27 = vld [vmem:[#allocation5 + $0x520] sm:$0xff] }
  0xc6   :  { %1486 = vmatmul.f32.gmra.mxu2 %v6331_v62  ;;  %1515 = vmatmul.f32.gmra.mxu3 %v6333_v63  ;;  %v898_v55 = vld [vmem:[#allocation5 + $0x1898] sm:$0xff]  ;;  %v531_v28 = vld [vmem:[#allocation5 + $0xd20] sm:$0xff] }
  0xc7   :  { %1589 = vmatpush.msrb.mxu2 %v674_v44  ;;  %1531 = vmatpush.msrb.mxu0 %v162_v45  ;;  %v626_v56 = vld [vmem:[#allocation5 + $0x1018] sm:$0xff]  ;;  %v1043_v29 = vld [vmem:[#allocation5 + $0x1d20] sm:$0xff] }
  0xc8   :  { %1560 = vmatpush.msrb.mxu1 %v418_v46  ;;  %1618 = vmatpush.msrb.mxu3 %v930_v47  ;;  %v114_v57 = vld [vmem:[#allocation5 + $0x18] sm:$0xff]  ;;  %v771_v31 = vld [vmem:[#allocation5 + $0x14a0] sm:$0xff] }
  0xc9   :  { %1590 = vmatpush.msrb.mxu2 %v658_v48  ;;  %1532 = vmatpush.msrb.mxu0 %v146_v49  ;;  %v370_v58 = vld [vmem:[#allocation5 + $0x818] sm:$0xff]  ;;  %v1027_v32 = vld [vmem:[#allocation5 + $0x1ca0] sm:$0xff] }
  0xca   :  { %1561 = vmatpush.msrb.mxu1 %v402_v50  ;;  %1619 = vmatpush.msrb.mxu3 %v914_v51  ;;  %v882_v59 = vld [vmem:[#allocation5 + $0x1818] sm:$0xff]  ;;  %v499_v35 = vld [vmem:[#allocation5 + $0xc20] sm:$0xff] }
  0xcb   :  { %1591 = vmatpush.msrb.mxu2 %v642_v52  ;;  %1533 = vmatpush.msrb.mxu0 %v130_v53  ;;  %v1011_v36 = vld [vmem:[#allocation5 + $0x1c20] sm:$0xff] }
  0xcc   :  { %1562 = vmatpush.msrb.mxu1 %v386_v54  ;;  %1620 = vmatpush.msrb.mxu3 %v898_v55  ;;  %v739_v37 = vld [vmem:[#allocation5 + $0x13a0] sm:$0xff] }
  0xcd   :  { %1592 = vmatpush.msrb.mxu2 %v626_v56  ;;  %1534 = vmatpush.msrb.mxu0 %v114_v57  ;;  %v227_v38 = vld [vmem:[#allocation5 + $0x3a0] sm:$0xff] }
  0xce   :  { %1563 = vmatpush.msrb.mxu1 %v370_v58  ;;  %1621 = vmatpush.msrb.mxu3 %v882_v59  ;;  %v483_v39 = vld [vmem:[#allocation5 + $0xba0] sm:$0xff] }
  0xcf   :  { %1535 = vmatmul.f32.vlgmr.msrb.gmra.mxu0 %v6291_v0  ;;  %1564 = vmatmul.f32.vlgmr.msrb.gmra.mxu1 %v6293_v1  ;;  %v579_v0 = vld [vmem:[#allocation5 + $0xea0] sm:$0xff] }
  0xd0   :  { %1593 = vmatmul.f32.vlgmr.msrb.gmra.mxu2 %v6295_v2  ;;  %1622 = vmatmul.f32.vlgmr.msrb.gmra.mxu3 %v6297_v3  ;;  %v1091_v1 = vld [vmem:[#allocation5 + $0x1ea0] sm:$0xff] }
  0xd1   :  { %1693 = vmatpush.msra.mxu2 %v867_v4  ;;  %1635 = vmatpush.msra.mxu0 %v355_v5  ;;  %v307_v2 = vld [vmem:[#allocation5 + $0x620] sm:$0xff] }
  0xd2   :  { %1664 = vmatpush.msra.mxu1 %v611_v6  ;;  %1722 = vmatpush.msra.mxu3 %v1123_v7  ;;  %v995_v44 = vld [vmem:[#allocation5 + $0x1ba0] sm:$0xff] }
  0xd3   :  { %1694 = vmatpush.msra.mxu2 %v851_v8  ;;  %1636 = vmatpush.msra.mxu0 %v339_v9  ;;  %v6377_v3 = vpop.f32.mrf.mxu1  ;;  %v723_v45 = vld [vmem:[#allocation5 + $0x1320] sm:$0xff] }
  0xd4   :  { %1665 = vmatpush.msra.mxu1 %v595_v10  ;;  %1723 = vmatpush.msra.mxu3 %v1107_v11  ;;  %v211_v46 = vld [vmem:[#allocation5 + $0x320] sm:$0xff] }
  0xd5   :  { %v6375_v15 = vpop.f32.mrf.mxu0  ;;  %1695 = vmatpush.msra.mxu2 %v835_v12  ;;  %1637 = vmatpush.msra.mxu0 %v323_v13  ;;  %v467_v47 = vld [vmem:[#allocation5 + $0xb20] sm:$0xff] }
  0xd6   :  { %1666 = vmatpush.msra.mxu1 %v579_v0  ;;  %1724 = vmatpush.msra.mxu3 %v1091_v1  ;;  %v979_v48 = vld [vmem:[#allocation5 + $0x1b20] sm:$0xff] }
  0xd7   :  { %1696 = vmatpush.msra.mxu2 %v819_v14  ;;  %1638 = vmatpush.msra.mxu0 %v307_v2  ;;  %v707_v50 = vld [vmem:[#allocation5 + $0x12a0] sm:$0xff]  ;;  %v868_v2 = vld [vmem:[#allocation5 + $0x17a8] sm:$0xff] }
  0xd8   :  { %1667 = vmatpush.msra.mxu1 %v563_v16  ;;  %1725 = vmatpush.msra.mxu3 %v1075_v17  ;;  %v179_v52 = vld [vmem:[#allocation5 + $0x220] sm:$0xff]  ;;  %v356_v16 = vld [vmem:[#allocation5 + $0x7a8] sm:$0xff] }
  0xd9   :  { %1538 = vmatmul.f32.gmra.mxu0 %v6303_v20  ;;  %1567 = vmatmul.f32.gmra.mxu1 %v6305_v21  ;;  %v259_v20 = vld [vmem:[#allocation5 + $0x4a0] sm:$0xff] }
  0xda   :  { %1596 = vmatmul.f32.gmra.mxu2 %v6307_v22  ;;  %1625 = vmatmul.f32.gmra.mxu3 %v6309_v23  ;;  %v6383_v30 = vpop.f32.mrf.mxu2  ;;  %v515_v21 = vld [vmem:[#allocation5 + $0xca0] sm:$0xff] }
  0xdb   :  { %1697 = vmatpush.msra.mxu2 %v803_v18  ;;  %1639 = vmatpush.msra.mxu0 %v291_v19  ;;  %v755_v22 = vld [vmem:[#allocation5 + $0x1420] sm:$0xff]  ;;  %v6395_v51 = vpop.f32.mrf.mxu3  ;;  %v6416_v18 = vld [vmem:[#allocation2 + $0x8] sm:$0xff] }
  0xdc   :  { %1668 = vmatpush.msra.mxu1 %v547_v24  ;;  %1726 = vmatpush.msra.mxu3 %v1059_v25  ;;  %v243_v23 = vld [vmem:[#allocation5 + $0x420] sm:$0xff]  ;;  %v612_v19 = vld [vmem:[#allocation5 + $0xfa8] sm:$0xff]  ;;  %v6419_v25 = vld [vmem:[#allocation2 + $0x10] sm:$0xff] }
  0xdd   :  { %1698 = vmatpush.msra.mxu2 %v787_v26  ;;  %1640 = vmatpush.msra.mxu0 %v275_v27  ;;  %v435_v55 = vld [vmem:[#allocation5 + $0xa20] sm:$0xff]  ;;  %v1124_v24 = vld [vmem:[#allocation5 + $0x1fa8] sm:$0xff]  ;;  %v6422_v26 = vld [vmem:[#allocation2 + $0x18] sm:$0xff] }
  0xde   :  { %1669 = vmatpush.msra.mxu1 %v531_v28  ;;  %1727 = vmatpush.msra.mxu3 %v1043_v29  ;;  %v6385_v33 = vpop.f32.mrf.mxu0  ;;  %v6387_v34 = vpop.f32.mrf.mxu1  ;;  %v947_v56 = vld [vmem:[#allocation5 + $0x1a20] sm:$0xff]  ;;  %v852_v27 = vld [vmem:[#allocation5 + $0x1728] sm:$0xff] }
  0xdf   :  { %1699 = vmatpush.msra.mxu2 %v771_v31  ;;  %1641 = vmatpush.msra.mxu0 %v259_v20  ;;  %v675_v57 = vld [vmem:[#allocation5 + $0x11a0] sm:$0xff]  ;;  %v340_v28 = vld [vmem:[#allocation5 + $0x728] sm:$0xff] }
  0xe0   :  { %1670 = vmatpush.msra.mxu1 %v515_v21  ;;  %1728 = vmatpush.msra.mxu3 %v1027_v32  ;;  %v163_v58 = vld [vmem:[#allocation5 + $0x1a0] sm:$0xff]  ;;  %v596_v29 = vld [vmem:[#allocation5 + $0xf28] sm:$0xff] }
  0xe1   :  { %1700 = vmatpush.msra.mxu2 %v755_v22  ;;  %1642 = vmatpush.msra.mxu0 %v243_v23  ;;  %v419_v59 = vld [vmem:[#allocation5 + $0x9a0] sm:$0xff]  ;;  %v1108_v31 = vld [vmem:[#allocation5 + $0x1f28] sm:$0xff] }
  0xe2   :  { %1671 = vmatpush.msra.mxu1 %v499_v35  ;;  %1729 = vmatpush.msra.mxu3 %v1011_v36  ;;  %v931_v4 = vld [vmem:[#allocation5 + $0x19a0] sm:$0xff]  ;;  %v836_v21 = vld [vmem:[#allocation5 + $0x16a8] sm:$0xff] }
  0xe3   :  { %1541 = vmatmul.f32.gmra.mxu0 %v6315_v40  ;;  %1570 = vmatmul.f32.gmra.mxu1 %v6317_v41  ;;  %v195_v40 = vld [vmem:[#allocation5 + $0x2a0] sm:$0xff]  ;;  %v324_v32 = vld [vmem:[#allocation5 + $0x6a8] sm:$0xff] }
  0xe4   :  { %1599 = vmatmul.f32.gmra.mxu2 %v6319_v42  ;;  %1628 = vmatmul.f32.gmra.mxu3 %v6321_v43  ;;  %v451_v41 = vld [vmem:[#allocation5 + $0xaa0] sm:$0xff]  ;;  %v580_v23 = vld [vmem:[#allocation5 + $0xea8] sm:$0xff] }
  0xe5   :  { %1701 = vmatpush.msra.mxu2 %v739_v37  ;;  %1643 = vmatpush.msra.mxu0 %v227_v38  ;;  %v6393_v49 = vpop.f32.mrf.mxu2  ;;  %v963_v42 = vld [vmem:[#allocation5 + $0x1aa0] sm:$0xff]  ;;  %v6407_v11 = vpop.f32.mrf.mxu3  ;;  %v1092_v35 = vld [vmem:[#allocation5 + $0x1ea8] sm:$0xff] }
  0xe6   :  { %1672 = vmatpush.msra.mxu1 %v483_v39  ;;  %1730 = vmatpush.msra.mxu3 %v995_v44  ;;  %v691_v43 = vld [vmem:[#allocation5 + $0x1220] sm:$0xff]  ;;  %8572 = vst [vmem:[#allocation18_spill] sm:$0xff] %v6407_v11  ;;  %v820_v36 = vld [vmem:[#allocation5 + $0x1628] sm:$0xff]  ;;  %v118_v11 = vld [vmem:[#allocation5 + $0x38] sm:$0xff] }
  0xe7   :  { %1702 = vmatpush.msra.mxu2 %v723_v45  ;;  %1644 = vmatpush.msra.mxu0 %v211_v46  ;;  %v659_v5 = vld [vmem:[#allocation5 + $0x1120] sm:$0xff]  ;;  %v308_v37 = vld [vmem:[#allocation5 + $0x628] sm:$0xff] }
  0xe8   :  { %1673 = vmatpush.msra.mxu1 %v467_v47  ;;  %1731 = vmatpush.msra.mxu3 %v979_v48  ;;  %v6397_v53 = vpop.f32.mrf.mxu0  ;;  %v6399_v54 = vpop.f32.mrf.mxu1  ;;  %v147_v6 = vld [vmem:[#allocation5 + $0x120] sm:$0xff]  ;;  %v564_v44 = vld [vmem:[#allocation5 + $0xe28] sm:$0xff] }
  0xe9   :  { %8570 = vst [vmem:[#allocation16_spill] sm:$0xff] %v6399_v54  ;;  %1703 = vmatpush.msra.mxu2 %v707_v50  ;;  %1645 = vmatpush.msra.mxu0 %v195_v40  ;;  %v403_v7 = vld [vmem:[#allocation5 + $0x920] sm:$0xff]  ;;  %v1076_v45 = vld [vmem:[#allocation5 + $0x1e28] sm:$0xff]  ;;  %v182_v54 = vld [vmem:[#allocation5 + $0x238] sm:$0xff] }
  0xea   :  { %1674 = vmatpush.msra.mxu1 %v451_v41  ;;  %1732 = vmatpush.msra.mxu3 %v963_v42  ;;  %v915_v8 = vld [vmem:[#allocation5 + $0x1920] sm:$0xff]  ;;  %v804_v46 = vld [vmem:[#allocation5 + $0x15a8] sm:$0xff]  ;;  %v6439_v42 = vld [vmem:[#allocation2 + $0x30] sm:$0xff] }
  0xeb   :  { %1704 = vmatpush.msra.mxu2 %v691_v43  ;;  %1646 = vmatpush.msra.mxu0 %v179_v52  ;;  %v643_v10 = vld [vmem:[#allocation5 + $0x10a0] sm:$0xff]  ;;  %v292_v47 = vld [vmem:[#allocation5 + $0x5a8] sm:$0xff]  ;;  %v6442_v43 = vld [vmem:[#allocation2 + $0x38] sm:$0xff] }
  0xec   :  { %1675 = vmatpush.msra.mxu1 %v435_v55  ;;  %1733 = vmatpush.msra.mxu3 %v947_v56  ;;  %v115_v12 = vld [vmem:[#allocation5 + $0x20] sm:$0xff]  ;;  %v6436_v50 = vld [vmem:[#allocation2 + $0x28] sm:$0xff] }
  0xed   :  { %1544 = vmatmul.f32.gmra.mxu0 %v6327_v60  ;;  %1573 = vmatmul.f32.gmra.mxu1 %v6329_v61  ;;  %v131_v60 = vld [vmem:[#allocation5 + $0xa0] sm:$0xff]  ;;  %v548_v40 = vld [vmem:[#allocation5 + $0xda8] sm:$0xff] }
  0xee   :  { %1602 = vmatmul.f32.gmra.mxu2 %v6331_v62  ;;  %1631 = vmatmul.f32.gmra.mxu3 %v6333_v63  ;;  %v387_v61 = vld [vmem:[#allocation5 + $0x8a0] sm:$0xff]  ;;  %v1060_v41 = vld [vmem:[#allocation5 + $0x1da8] sm:$0xff] }
  0xef   :  { %1705 = vmatpush.msra.mxu2 %v675_v57  ;;  %1647 = vmatpush.msra.mxu0 %v163_v58  ;;  %v6405_v9 = vpop.f32.mrf.mxu2  ;;  %v899_v62 = vld [vmem:[#allocation5 + $0x18a0] sm:$0xff]  ;;  %v6427_v22 = vpop.f32.mrf.mxu3  ;;  %v788_v52 = vld [vmem:[#allocation5 + $0x1528] sm:$0xff] }
  0xf0   :  { %8571 = vst [vmem:[#allocation17_spill] sm:$0xff] %v6405_v9  ;;  %1676 = vmatpush.msra.mxu1 %v419_v59  ;;  %1734 = vmatpush.msra.mxu3 %v931_v4  ;;  %v627_v63 = vld [vmem:[#allocation5 + $0x1020] sm:$0xff]  ;;  %v276_v55 = vld [vmem:[#allocation5 + $0x528] sm:$0xff]  ;;  %v246_v9 = vld [vmem:[#allocation5 + $0x438] sm:$0xff] }
  0xf1   :  { %1706 = vmatpush.msra.mxu2 %v659_v5  ;;  %1648 = vmatpush.msra.mxu0 %v147_v6  ;;  %v371_v1 = vld [vmem:[#allocation5 + $0x820] sm:$0xff]  ;;  %8576 = vst [vmem:[#allocation22_spill] sm:$0xff] %v6427_v22  ;;  %v532_v56 = vld [vmem:[#allocation5 + $0xd28] sm:$0xff]  ;;  %v629_v22 = vld [vmem:[#allocation5 + $0x1030] sm:$0xff] }
  0xf2   :  { %1677 = vmatpush.msra.mxu1 %v403_v7  ;;  %1735 = vmatpush.msra.mxu3 %v915_v8  ;;  %v6409_v13 = vpop.f32.mrf.mxu0  ;;  %v6411_v0 = vpop.f32.mrf.mxu1  ;;  %v883_v14 = vld [vmem:[#allocation5 + $0x1820] sm:$0xff]  ;;  %v1044_v57 = vld [vmem:[#allocation5 + $0x1d28] sm:$0xff] }
  0xf3   :  { %8573 = vst [vmem:[#allocation19_spill] sm:$0xff] %v6409_v13  ;;  %1707 = vmatpush.msra.mxu2 %v643_v10  ;;  %1649 = vmatpush.msra.mxu0 %v131_v60  ;;  %v6413_v17 = vld [vmem:[#allocation2] sm:$0xff]  ;;  %v772_v59 = vld [vmem:[#allocation5 + $0x14a8] sm:$0xff]  ;;  %v822_v13 = vld [vmem:[#allocation5 + $0x1638] sm:$0xff] }
  0xf4   :  { %8574 = vst [vmem:[#allocation20_spill] sm:$0xff] %v6411_v0  ;;  %1678 = vmatpush.msra.mxu1 %v387_v61  ;;  %1736 = vmatpush.msra.mxu3 %v899_v62  ;;  %v6433_v48 = vld [vmem:[#allocation2 + $0x20] sm:$0xff]  ;;  %v260_v4 = vld [vmem:[#allocation5 + $0x4a8] sm:$0xff]  ;;  %v389_v0 = vld [vmem:[#allocation5 + $0x8b0] sm:$0xff] }
  0xf5   :  { %1708 = vmatpush.msra.mxu2 %v627_v63  ;;  %1650 = vmatpush.msra.mxu0 %v115_v12  ;;  %v516_v6 = vld [vmem:[#allocation5 + $0xca8] sm:$0xff] }
  0xf6   :  { %1679 = vmatpush.msra.mxu1 %v371_v1  ;;  %1737 = vmatpush.msra.mxu3 %v883_v14  ;;  %v1028_v7 = vld [vmem:[#allocation5 + $0x1ca8] sm:$0xff]  ;;  %v6453_v14 = vld [vmem:[#allocation2 + $0x40] sm:$0xff] }
  0xf7   :  { %1651 = vmatmul.f32.vlgmr.msra.gmra.mxu0 %v6413_v17  ;;  %1680 = vmatmul.f32.vlgmr.msra.gmra.mxu1 %v6416_v18  ;;  %v756_v8 = vld [vmem:[#allocation5 + $0x1428] sm:$0xff] }
  0xf8   :  { %1709 = vmatmul.f32.vlgmr.msra.gmra.mxu2 %v6419_v25  ;;  %1738 = vmatmul.f32.vlgmr.msra.gmra.mxu3 %v6422_v26  ;;  %v244_v10 = vld [vmem:[#allocation5 + $0x428] sm:$0xff] }
  0xf9   :  { %1809 = vmatpush.msrb.mxu2 %v868_v2  ;;  %1751 = vmatpush.msrb.mxu0 %v356_v16  ;;  %v6425_v20 = vpop.f32.mrf.mxu2  ;;  %v6447_v5 = vpop.f32.mrf.mxu3  ;;  %v500_v62 = vld [vmem:[#allocation5 + $0xc28] sm:$0xff] }
  0xfa   :  { %8575 = vst [vmem:[#allocation21_spill] sm:$0xff] %v6425_v20  ;;  %1780 = vmatpush.msrb.mxu1 %v612_v19  ;;  %1838 = vmatpush.msrb.mxu3 %v1124_v24  ;;  %v1012_v63 = vld [vmem:[#allocation5 + $0x1c28] sm:$0xff]  ;;  %v6459_v24 = vld [vmem:[#allocation2 + $0x50] sm:$0xff] }
  0xfb   :  { %1810 = vmatpush.msrb.mxu2 %v852_v27  ;;  %1752 = vmatpush.msrb.mxu0 %v340_v28  ;;  %8577 = vst [vmem:[#allocation23_spill] sm:$0xff] %v6447_v5  ;;  %v740_v12 = vld [vmem:[#allocation5 + $0x13a8] sm:$0xff]  ;;  %v6462_v27 = vld [vmem:[#allocation2 + $0x58] sm:$0xff]  ;;  %v245_v5 = vld [vmem:[#allocation5 + $0x430] sm:$0xff] }
  0xfc   :  { %1781 = vmatpush.msrb.mxu1 %v596_v29  ;;  %1839 = vmatpush.msrb.mxu3 %v1108_v31  ;;  %v6429_v38 = vpop.f32.mrf.mxu0  ;;  %v6431_v39 = vpop.f32.mrf.mxu1  ;;  %v228_v1 = vld [vmem:[#allocation5 + $0x3a8] sm:$0xff]  ;;  %v693_v20 = vld [vmem:[#allocation5 + $0x1230] sm:$0xff] }
  0xfd   :  { %1811 = vmatpush.msrb.mxu2 %v836_v21  ;;  %1753 = vmatpush.msrb.mxu0 %v324_v32  ;;  %v6456_v2 = vld [vmem:[#allocation2 + $0x48] sm:$0xff] }
  0xfe   :  { %1782 = vmatpush.msrb.mxu1 %v580_v23  ;;  %1840 = vmatpush.msrb.mxu3 %v1092_v35  ;;  %v484_v16 = vld [vmem:[#allocation5 + $0xba8] sm:$0xff] }
  0xff   :  { %1812 = vmatpush.msrb.mxu2 %v820_v36  ;;  %1754 = vmatpush.msrb.mxu0 %v308_v37  ;;  %v996_v19 = vld [vmem:[#allocation5 + $0x1ba8] sm:$0xff] }
 0x100   :  { %1783 = vmatpush.msrb.mxu1 %v564_v44  ;;  %1841 = vmatpush.msrb.mxu3 %v1076_v45  ;;  %v724_v28 = vld [vmem:[#allocation5 + $0x1328] sm:$0xff] }
 0x101   :  { %1654 = vmatmul.f32.gmra.mxu0 %v6433_v48  ;;  %1683 = vmatmul.f32.gmra.mxu1 %v6436_v50  ;;  %v212_v29 = vld [vmem:[#allocation5 + $0x328] sm:$0xff] }
 0x102   :  { %1712 = vmatmul.f32.gmra.mxu2 %v6439_v42  ;;  %1741 = vmatmul.f32.gmra.mxu3 %v6442_v43  ;;  %v468_v31 = vld [vmem:[#allocation5 + $0xb28] sm:$0xff] }
 0x103   :  { %1813 = vmatpush.msrb.mxu2 %v804_v46  ;;  %1755 = vmatpush.msrb.mxu0 %v292_v47  ;;  %v6445_v58 = vpop.f32.mrf.mxu2  ;;  %v980_v21 = vld [vmem:[#allocation5 + $0x1b28] sm:$0xff]  ;;  %v6467_v36 = vpop.f32.mrf.mxu3 }
 0x104   :  { %1784 = vmatpush.msrb.mxu1 %v548_v40  ;;  %1842 = vmatpush.msrb.mxu3 %v1060_v41  ;;  %v708_v23 = vld [vmem:[#allocation5 + $0x12a8] sm:$0xff] }
 0x105   :  { %1814 = vmatpush.msrb.mxu2 %v788_v52  ;;  %1756 = vmatpush.msrb.mxu0 %v276_v55  ;;  %v196_v35 = vld [vmem:[#allocation5 + $0x2a8] sm:$0xff] }
 0x106   :  { %1785 = vmatpush.msrb.mxu1 %v532_v56  ;;  %1843 = vmatpush.msrb.mxu3 %v1044_v57  ;;  %v6449_v60 = vpop.f32.mrf.mxu0  ;;  %v6451_v61 = vpop.f32.mrf.mxu1  ;;  %v452_v37 = vld [vmem:[#allocation5 + $0xaa8] sm:$0xff]  ;;  %v6473_v57 = vld [vmem:[#allocation2 + $0x60] sm:$0xff] }
 0x107   :  { %1815 = vmatpush.msrb.mxu2 %v772_v59  ;;  %1757 = vmatpush.msrb.mxu0 %v260_v4  ;;  %v964_v44 = vld [vmem:[#allocation5 + $0x1aa8] sm:$0xff] }
 0x108   :  { %1786 = vmatpush.msrb.mxu1 %v516_v6  ;;  %1844 = vmatpush.msrb.mxu3 %v1028_v7  ;;  %v692_v45 = vld [vmem:[#allocation5 + $0x1228] sm:$0xff]  ;;  %v6479_v7 = vld [vmem:[#allocation2 + $0x70] sm:$0xff] }
 0x109   :  { %1816 = vmatpush.msrb.mxu2 %v756_v8  ;;  %1758 = vmatpush.msrb.mxu0 %v244_v10  ;;  %v180_v46 = vld [vmem:[#allocation5 + $0x228] sm:$0xff]  ;;  %v6482_v8 = vld [vmem:[#allocation2 + $0x78] sm:$0xff] }
 0x10a   :  { %1787 = vmatpush.msrb.mxu1 %v500_v62  ;;  %1845 = vmatpush.msrb.mxu3 %v1012_v63  ;;  %v436_v41 = vld [vmem:[#allocation5 + $0xa28] sm:$0xff] }
 0x10b   :  { %1657 = vmatmul.f32.gmra.mxu0 %v6453_v14  ;;  %1686 = vmatmul.f32.gmra.mxu1 %v6456_v2  ;;  %v948_v52 = vld [vmem:[#allocation5 + $0x1a28] sm:$0xff] }
 0x10c   :  { %1715 = vmatmul.f32.gmra.mxu2 %v6459_v24  ;;  %1744 = vmatmul.f32.gmra.mxu3 %v6462_v27  ;;  %v676_v55 = vld [vmem:[#allocation5 + $0x11a8] sm:$0xff] }
 0x10d   :  { %1817 = vmatpush.msrb.mxu2 %v740_v12  ;;  %1759 = vmatpush.msrb.mxu0 %v228_v1  ;;  %v6465_v32 = vpop.f32.mrf.mxu2  ;;  %v164_v56 = vld [vmem:[#allocation5 + $0x1a8] sm:$0xff] }
 0x10e   :  { %1788 = vmatpush.msrb.mxu1 %v484_v16  ;;  %1846 = vmatpush.msrb.mxu3 %v996_v19  ;;  %v6476_v59 = vld [vmem:[#allocation2 + $0x68] sm:$0xff] }
 0x10f   :  { %1818 = vmatpush.msrb.mxu2 %v724_v28  ;;  %1760 = vmatpush.msrb.mxu0 %v212_v29  ;;  %v420_v4 = vld [vmem:[#allocation5 + $0x9a8] sm:$0xff]  ;;  %v6487_v28 = vpop.f32.mrf.mxu3 }
 0x110   :  { %1789 = vmatpush.msrb.mxu1 %v468_v31  ;;  %1847 = vmatpush.msrb.mxu3 %v980_v21  ;;  %v6469_v47 = vpop.f32.mrf.mxu0  ;;  %v6471_v40 = vpop.f32.mrf.mxu1  ;;  %v932_v6 = vld [vmem:[#allocation5 + $0x19a8] sm:$0xff]  ;;  %8580 = vst [vmem:[#allocation26_spill] sm:$0xff] %v6487_v28  ;;  %v630_v28 = vld [vmem:[#allocation5 + $0x1038] sm:$0xff] }
 0x111   :  { %8578 = vst [vmem:[#allocation24_spill] sm:$0xff] %v6471_v40  ;;  %1819 = vmatpush.msrb.mxu2 %v708_v23  ;;  %1761 = vmatpush.msrb.mxu0 %v196_v35  ;;  %v660_v10 = vld [vmem:[#allocation5 + $0x1128] sm:$0xff]  ;;  %v694_v40 = vld [vmem:[#allocation5 + $0x1238] sm:$0xff] }
 0x112   :  { %1790 = vmatpush.msrb.mxu1 %v452_v37  ;;  %1848 = vmatpush.msrb.mxu3 %v964_v44  ;;  %v148_v62 = vld [vmem:[#allocation5 + $0x128] sm:$0xff] }
 0x113   :  { %1820 = vmatpush.msrb.mxu2 %v692_v45  ;;  %1762 = vmatpush.msrb.mxu0 %v180_v46  ;;  %v404_v63 = vld [vmem:[#allocation5 + $0x928] sm:$0xff]  ;;  %v869_v46 = vld [vmem:[#allocation5 + $0x17b0] sm:$0xff] }
 0x114   :  { %1791 = vmatpush.msrb.mxu1 %v436_v41  ;;  %1849 = vmatpush.msrb.mxu3 %v948_v52  ;;  %v916_v12 = vld [vmem:[#allocation5 + $0x1928] sm:$0xff]  ;;  %v357_v41 = vld [vmem:[#allocation5 + $0x7b0] sm:$0xff] }
 0x115   :  { %1660 = vmatmul.f32.gmra.mxu0 %v6473_v57  ;;  %1689 = vmatmul.f32.gmra.mxu1 %v6476_v59  ;;  %v644_v16 = vld [vmem:[#allocation5 + $0x10a8] sm:$0xff]  ;;  %v613_v52 = vld [vmem:[#allocation5 + $0xfb0] sm:$0xff] }
 0x116   :  { %1718 = vmatmul.f32.gmra.mxu2 %v6479_v7  ;;  %1747 = vmatmul.f32.gmra.mxu3 %v6482_v8  ;;  %v132_v19 = vld [vmem:[#allocation5 + $0xa8] sm:$0xff] }
 0x117   :  { %1821 = vmatpush.msrb.mxu2 %v676_v55  ;;  %1763 = vmatpush.msrb.mxu0 %v164_v56  ;;  %v6485_v1 = vpop.f32.mrf.mxu2  ;;  %v388_v29 = vld [vmem:[#allocation5 + $0x8a8] sm:$0xff]  ;;  %v1125_v55 = vld [vmem:[#allocation5 + $0x1fb0] sm:$0xff] }
 0x118   :  { %8579 = vst [vmem:[#allocation25_spill] sm:$0xff] %v6485_v1  ;;  %1792 = vmatpush.msrb.mxu1 %v420_v4  ;;  %1850 = vmatpush.msrb.mxu3 %v932_v6  ;;  %v900_v31 = vld [vmem:[#allocation5 + $0x18a8] sm:$0xff]  ;;  %v853_v56 = vld [vmem:[#allocation5 + $0x1730] sm:$0xff]  ;;  %v758_v1 = vld [vmem:[#allocation5 + $0x1438] sm:$0xff] }
 0x119   :  { %1822 = vmatpush.msrb.mxu2 %v660_v10  ;;  %1764 = vmatpush.msrb.mxu0 %v148_v62  ;;  %v628_v21 = vld [vmem:[#allocation5 + $0x1028] sm:$0xff]  ;;  %v341_v4 = vld [vmem:[#allocation5 + $0x730] sm:$0xff] }
 0x11a   :  { %1793 = vmatpush.msrb.mxu1 %v404_v63  ;;  %1851 = vmatpush.msrb.mxu3 %v916_v12  ;;  %v116_v23 = vld [vmem:[#allocation5 + $0x28] sm:$0xff]  ;;  %v6489_v35 = vpop.f32.mrf.mxu0  ;;  %v6491_v37 = vpop.f32.mrf.mxu1  ;;  %v597_v6 = vld [vmem:[#allocation5 + $0xf30] sm:$0xff] }
 0x11b   :  { %8581 = vst [vmem:[#allocation27_spill] sm:$0xff] %v6489_v35  ;;  %1823 = vmatpush.msrb.mxu2 %v644_v16  ;;  %1765 = vmatpush.msrb.mxu0 %v132_v19  ;;  %v372_v44 = vld [vmem:[#allocation5 + $0x828] sm:$0xff]  ;;  %v1109_v10 = vld [vmem:[#allocation5 + $0x1f30] sm:$0xff]  ;;  %v6499_v16 = vpop.f32.mrf.mxu3 }
 0x11c   :  { %8582 = vst [vmem:[#allocation28_spill] sm:$0xff] %v6491_v37  ;;  %v884_v45 = vld [vmem:[#allocation5 + $0x1828] sm:$0xff]  ;;  %1794 = vmatpush.msrb.mxu1 %v388_v29  ;;  %1852 = vmatpush.msrb.mxu3 %v900_v31  ;;  %v837_v63 = vld [vmem:[#allocation5 + $0x16b0] sm:$0xff] }
 0x11d   :  { %1824 = vmatpush.msrb.mxu2 %v628_v21  ;;  %1766 = vmatpush.msrb.mxu0 %v116_v23  ;;  %v325_v12 = vld [vmem:[#allocation5 + $0x6b0] sm:$0xff]  ;;  %8584 = vst [vmem:[#allocation30_spill] sm:$0xff] %v6499_v16 }
 0x11e   :  { %1795 = vmatpush.msrb.mxu1 %v372_v44  ;;  %1853 = vmatpush.msrb.mxu3 %v884_v45  ;;  %v581_v19 = vld [vmem:[#allocation5 + $0xeb0] sm:$0xff] }
 0x11f   :  { %1767 = vmatmul.f32.vlgmr.msrb.gmra.mxu0 %v6413_v17  ;;  %1796 = vmatmul.f32.vlgmr.msrb.gmra.mxu1 %v6416_v18  ;;  %v1093_v29 = vld [vmem:[#allocation5 + $0x1eb0] sm:$0xff] }
 0x120   :  { %1825 = vmatmul.f32.vlgmr.msrb.gmra.mxu2 %v6419_v25  ;;  %1854 = vmatmul.f32.vlgmr.msrb.gmra.mxu3 %v6422_v26  ;;  %v821_v31 = vld [vmem:[#allocation5 + $0x1630] sm:$0xff] }
 0x121   :  { %1925 = vmatpush.msra.mxu2 %v869_v46  ;;  %1867 = vmatpush.msra.mxu0 %v357_v41  ;;  %v6497_v62 = vpop.f32.mrf.mxu2  ;;  %v309_v21 = vld [vmem:[#allocation5 + $0x630] sm:$0xff] }
 0x122   :  { %8583 = vst [vmem:[#allocation29_spill] sm:$0xff] %v6497_v62  ;;  %1896 = vmatpush.msra.mxu1 %v613_v52  ;;  %1954 = vmatpush.msra.mxu3 %v1125_v55  ;;  %v565_v45 = vld [vmem:[#allocation5 + $0xe30] sm:$0xff] }
 0x123   :  { %1926 = vmatpush.msra.mxu2 %v853_v56  ;;  %1868 = vmatpush.msra.mxu0 %v341_v4  ;;  %v1077_v46 = vld [vmem:[#allocation5 + $0x1e30] sm:$0xff] }
 0x124   :  { %1897 = vmatpush.msra.mxu1 %v597_v6  ;;  %1955 = vmatpush.msra.mxu3 %v1109_v10  ;;  %v6501_v23 = vpop.f32.mrf.mxu0  ;;  %v6503_v44 = vpop.f32.mrf.mxu1  ;;  %v805_v41 = vld [vmem:[#allocation5 + $0x15b0] sm:$0xff] }
 0x125   :  { %1927 = vmatpush.msra.mxu2 %v837_v63  ;;  %1869 = vmatpush.msra.mxu0 %v325_v12  ;;  %v293_v52 = vld [vmem:[#allocation5 + $0x5b0] sm:$0xff] }
 0x126   :  { %1898 = vmatpush.msra.mxu1 %v581_v19  ;;  %1956 = vmatpush.msra.mxu3 %v1093_v29  ;;  %v549_v55 = vld [vmem:[#allocation5 + $0xdb0] sm:$0xff] }
 0x127   :  { %1928 = vmatpush.msra.mxu2 %v821_v31  ;;  %1870 = vmatpush.msra.mxu0 %v309_v21  ;;  %v1061_v56 = vld [vmem:[#allocation5 + $0x1db0] sm:$0xff]  ;;  %v6511_v31 = vpop.f32.mrf.mxu3 }
 0x128   :  { %1899 = vmatpush.msra.mxu1 %v565_v45  ;;  %1957 = vmatpush.msra.mxu3 %v1077_v46  ;;  %v789_v4 = vld [vmem:[#allocation5 + $0x1530] sm:$0xff]  ;;  %8585 = vst [vmem:[#allocation31_spill] sm:$0xff] %v6511_v31 }
 0x129   :  { %1770 = vmatmul.f32.gmra.mxu0 %v6433_v48  ;;  %1799 = vmatmul.f32.gmra.mxu1 %v6436_v50  ;;  %v277_v6 = vld [vmem:[#allocation5 + $0x530] sm:$0xff] }
 0x12a   :  { %1828 = vmatmul.f32.gmra.mxu2 %v6439_v42  ;;  %1857 = vmatmul.f32.gmra.mxu3 %v6442_v43  ;;  %v533_v10 = vld [vmem:[#allocation5 + $0xd30] sm:$0xff] }
 0x12b   :  { %1929 = vmatpush.msra.mxu2 %v805_v41  ;;  %1871 = vmatpush.msra.mxu0 %v293_v52  ;;  %v1045_v63 = vld [vmem:[#allocation5 + $0x1d30] sm:$0xff]  ;;  %v6509_v12 = vpop.f32.mrf.mxu2 }
 0x12c   :  { %1900 = vmatpush.msra.mxu1 %v549_v55  ;;  %1958 = vmatpush.msra.mxu3 %v1061_v56  ;;  %v773_v19 = vld [vmem:[#allocation5 + $0x14b0] sm:$0xff] }
 0x12d   :  { %v261_v29 = vld [vmem:[#allocation5 + $0x4b0] sm:$0xff]  ;;  %1930 = vmatpush.msra.mxu2 %v789_v4  ;;  %1872 = vmatpush.msra.mxu0 %v277_v6 }
 0x12e   :  { %v517_v21 = vld [vmem:[#allocation5 + $0xcb0] sm:$0xff]  ;;  %1901 = vmatpush.msra.mxu1 %v533_v10  ;;  %1959 = vmatpush.msra.mxu3 %v1045_v63  ;;  %v6513_v41 = vpop.f32.mrf.mxu0  ;;  %v6515_v52 = vpop.f32.mrf.mxu1 }
 0x12f   :  { %v1029_v45 = vld [vmem:[#allocation5 + $0x1cb0] sm:$0xff]  ;;  %1931 = vmatpush.msra.mxu2 %v773_v19  ;;  %1873 = vmatpush.msra.mxu0 %v261_v29 }
 0x130   :  { %v757_v46 = vld [vmem:[#allocation5 + $0x1430] sm:$0xff]  ;;  %1902 = vmatpush.msra.mxu1 %v517_v21  ;;  %1960 = vmatpush.msra.mxu3 %v1029_v45 }
 0x131   :  { %v501_v55 = vld [vmem:[#allocation5 + $0xc30] sm:$0xff]  ;;  %1932 = vmatpush.msra.mxu2 %v757_v46  ;;  %1874 = vmatpush.msra.mxu0 %v245_v5 }
 0x132   :  { %v1013_v56 = vld [vmem:[#allocation5 + $0x1c30] sm:$0xff]  ;;  %1903 = vmatpush.msra.mxu1 %v501_v55  ;;  %1773 = vmatmul.f32.gmra.mxu0 %v6453_v14 }
 0x133   :  { %1961 = vmatpush.msra.mxu3 %v1013_v56  ;;  %v741_v4 = vld [vmem:[#allocation5 + $0x13b0] sm:$0xff]  ;;  %1802 = vmatmul.f32.gmra.mxu1 %v6456_v2  ;;  %v6523_v56 = vpop.f32.mrf.mxu3 }
 0x134   :  { %v229_v6 = vld [vmem:[#allocation5 + $0x3b0] sm:$0xff]  ;;  %1831 = vmatmul.f32.gmra.mxu2 %v6459_v24  ;;  %1860 = vmatmul.f32.gmra.mxu3 %v6462_v27 }
 0x135   :  { %v485_v10 = vld [vmem:[#allocation5 + $0xbb0] sm:$0xff]  ;;  %1933 = vmatpush.msra.mxu2 %v741_v4  ;;  %1875 = vmatpush.msra.mxu0 %v229_v6  ;;  %v6521_v45 = vpop.f32.mrf.mxu2 }
 0x136   :  { %v997_v63 = vld [vmem:[#allocation5 + $0x1bb0] sm:$0xff]  ;;  %1904 = vmatpush.msra.mxu1 %v485_v10 }
 0x137   :  { %v725_v19 = vld [vmem:[#allocation5 + $0x1330] sm:$0xff]  ;;  %1962 = vmatpush.msra.mxu3 %v997_v63 }
 0x138   :  { %v213_v29 = vld [vmem:[#allocation5 + $0x330] sm:$0xff]  ;;  %1934 = vmatpush.msra.mxu2 %v725_v19  ;;  %v6525_v4 = vpop.f32.mrf.mxu0  ;;  %v6527_v6 = vpop.f32.mrf.mxu1 }
 0x139   :  { %v469_v21 = vld [vmem:[#allocation5 + $0xb30] sm:$0xff]  ;;  %1876 = vmatpush.msra.mxu0 %v213_v29  ;;  %8586 = vst [vmem:[#allocation32_spill] sm:$0xff] %v6527_v6  ;;  %v966_v6 = vld [vmem:[#allocation5 + $0x1ab8] sm:$0xff] }
 0x13a   :  { %v981_v5 = vld [vmem:[#allocation5 + $0x1b30] sm:$0xff]  ;;  %1905 = vmatpush.msra.mxu1 %v469_v21  ;;  %1776 = vmatmul.f32.gmra.mxu0 %v6473_v57 }
 0x13b   :  { %v709_v46 = vld [vmem:[#allocation5 + $0x12b0] sm:$0xff]  ;;  %1963 = vmatpush.msra.mxu3 %v981_v5  ;;  %1805 = vmatmul.f32.gmra.mxu1 %v6476_v59 }
 0x13c   :  { %v197_v55 = vld [vmem:[#allocation5 + $0x2b0] sm:$0xff]  ;;  %1935 = vmatpush.msra.mxu2 %v709_v46  ;;  %1863 = vmatmul.f32.gmra.mxu3 %v6482_v8 }
 0x13d   :  { %v453_v31 = vld [vmem:[#allocation5 + $0xab0] sm:$0xff]  ;;  %1877 = vmatpush.msra.mxu0 %v197_v55  ;;  %1834 = vmatmul.f32.gmra.mxu2 %v6479_v7 }
 0x13e   :  { %v965_v62 = vld [vmem:[#allocation5 + $0x1ab0] sm:$0xff]  ;;  %1906 = vmatpush.msra.mxu1 %v453_v31  ;;  %1936 = vmatpush.msra.mxu2 %v693_v20 }
 0x13f   :  { %v181_v37 = vld [vmem:[#allocation5 + $0x230] sm:$0xff]  ;;  %1964 = vmatpush.msra.mxu3 %v965_v62  ;;  %v6533_v62 = vpop.f32.mrf.mxu2 }
 0x140   :  { %v437_v10 = vld [vmem:[#allocation5 + $0xa30] sm:$0xff]  ;;  %1878 = vmatpush.msra.mxu0 %v181_v37  ;;  %8587 = vst [vmem:[#allocation33_spill] sm:$0xff] %v6533_v62  ;;  %v310_v62 = vld [vmem:[#allocation5 + $0x638] sm:$0xff] }
 0x141   :  { %v949_v63 = vld [vmem:[#allocation5 + $0x1a30] sm:$0xff]  ;;  %1907 = vmatpush.msra.mxu1 %v437_v10 }
 0x142   :  { %1965 = vmatpush.msra.mxu3 %v949_v63  ;;  %v677_v19 = vld [vmem:[#allocation5 + $0x11b0] sm:$0xff]  ;;  %v6535_v63 = vpop.f32.mrf.mxu3 }
 0x143   :  { %v165_v29 = vld [vmem:[#allocation5 + $0x1b0] sm:$0xff]  ;;  %1937 = vmatpush.msra.mxu2 %v677_v19  ;;  %8588 = vst [vmem:[#allocation34_spill] sm:$0xff] %v6535_v63  ;;  %v6537_v19 = vpop.f32.mrf.mxu0  ;;  %v902_v63 = vld [vmem:[#allocation5 + $0x18b8] sm:$0xff] }
 0x144   :  { %v421_v21 = vld [vmem:[#allocation5 + $0x9b0] sm:$0xff]  ;;  %1879 = vmatpush.msra.mxu0 %v165_v29  ;;  %8589 = vst [vmem:[#allocation35_spill] sm:$0xff] %v6537_v19  ;;  %v6539_v29 = vpop.f32.mrf.mxu1  ;;  %v1094_v19 = vld [vmem:[#allocation5 + $0x1eb8] sm:$0xff] }
 0x145   :  { %v933_v5 = vld [vmem:[#allocation5 + $0x19b0] sm:$0xff]  ;;  %1908 = vmatpush.msra.mxu1 %v421_v21  ;;  %8590 = vst [vmem:[#allocation36_spill] sm:$0xff] %v6539_v29  ;;  %v582_v29 = vld [vmem:[#allocation5 + $0xeb8] sm:$0xff] }
 0x146   :  { %v661_v46 = vld [vmem:[#allocation5 + $0x1130] sm:$0xff]  ;;  %1966 = vmatpush.msra.mxu3 %v933_v5 }
 0x147   :  { %v149_v55 = vld [vmem:[#allocation5 + $0x130] sm:$0xff]  ;;  %1938 = vmatpush.msra.mxu2 %v661_v46  ;;  %v870_v46 = vld [vmem:[#allocation5 + $0x17b8] sm:$0xff] }
 0x148   :  { %v405_v20 = vld [vmem:[#allocation5 + $0x930] sm:$0xff]  ;;  %1880 = vmatpush.msra.mxu0 %v149_v55  ;;  %v358_v55 = vld [vmem:[#allocation5 + $0x7b8] sm:$0xff] }
 0x149   :  { %v917_v37 = vld [vmem:[#allocation5 + $0x1930] sm:$0xff]  ;;  %1909 = vmatpush.msra.mxu1 %v405_v20  ;;  %v614_v20 = vld [vmem:[#allocation5 + $0xfb8] sm:$0xff] }
 0x14a   :  { %v645_v31 = vld [vmem:[#allocation5 + $0x10b0] sm:$0xff]  ;;  %1967 = vmatpush.msra.mxu3 %v917_v37  ;;  %v1126_v37 = vld [vmem:[#allocation5 + $0x1fb8] sm:$0xff] }
 0x14b   :  { %v133_v10 = vld [vmem:[#allocation5 + $0xb0] sm:$0xff]  ;;  %1939 = vmatpush.msra.mxu2 %v645_v31  ;;  %1910 = vmatpush.msra.mxu1 %v389_v0  ;;  %v854_v31 = vld [vmem:[#allocation5 + $0x1738] sm:$0xff] }
 0x14c   :  { %v901_v16 = vld [vmem:[#allocation5 + $0x18b0] sm:$0xff]  ;;  %1881 = vmatpush.msra.mxu0 %v133_v10  ;;  %v342_v10 = vld [vmem:[#allocation5 + $0x738] sm:$0xff] }
 0x14d   :  { %v117_v35 = vld [vmem:[#allocation5 + $0x30] sm:$0xff]  ;;  %1968 = vmatpush.msra.mxu3 %v901_v16  ;;  %1940 = vmatpush.msra.mxu2 %v629_v22  ;;  %v598_v0 = vld [vmem:[#allocation5 + $0xf38] sm:$0xff] }
 0x14e   :  { %v373_v21 = vld [vmem:[#allocation5 + $0x830] sm:$0xff]  ;;  %1882 = vmatpush.msra.mxu0 %v117_v35  ;;  %1941 = vmatmul.f32.vlgmr.msra.gmra.mxu2 %v6419_v25  ;;  %v1110_v22 = vld [vmem:[#allocation5 + $0x1f38] sm:$0xff]  ;;  %v6545_v35 = vpop.f32.mrf.mxu2 }
 0x14f   :  { %v885_v5 = vld [vmem:[#allocation5 + $0x1830] sm:$0xff]  ;;  %1911 = vmatpush.msra.mxu1 %v373_v21  ;;  %1883 = vmatmul.f32.vlgmr.msra.gmra.mxu0 %v6413_v17  ;;  %8591 = vst [vmem:[#allocation37_spill] sm:$0xff] %v6545_v35  ;;  %v838_v16 = vld [vmem:[#allocation5 + $0x16b8] sm:$0xff] }
 0x150   :  { %1969 = vmatpush.msra.mxu3 %v885_v5  ;;  %1912 = vmatmul.f32.vlgmr.msra.gmra.mxu1 %v6416_v18  ;;  %v326_v21 = vld [vmem:[#allocation5 + $0x6b8] sm:$0xff]  ;;  %v6547_v5 = vpop.f32.mrf.mxu3 }
 0x151   :  { %1970 = vmatmul.f32.vlgmr.msra.gmra.mxu3 %v6422_v26  ;;  %2041 = vmatpush.msrb.mxu2 %v870_v46  ;;  %8592 = vst [vmem:[#allocation38_spill] sm:$0xff] %v6547_v5  ;;  %v6549_v46 = vpop.f32.mrf.mxu0  ;;  %v518_v35 = vld [vmem:[#allocation5 + $0xcb8] sm:$0xff] }
 0x152   :  { %1983 = vmatpush.msrb.mxu0 %v358_v55  ;;  %2012 = vmatpush.msrb.mxu1 %v614_v20  ;;  %v6551_v55 = vpop.f32.mrf.mxu1  ;;  %v566_v20 = vld [vmem:[#allocation5 + $0xe38] sm:$0xff] }
 0x153   :  { %2070 = vmatpush.msrb.mxu3 %v1126_v37  ;;  %2042 = vmatpush.msrb.mxu2 %v854_v31  ;;  %v1078_v37 = vld [vmem:[#allocation5 + $0x1e38] sm:$0xff] }
 0x154   :  { %1984 = vmatpush.msrb.mxu0 %v342_v10  ;;  %2013 = vmatpush.msrb.mxu1 %v598_v0  ;;  %v806_v31 = vld [vmem:[#allocation5 + $0x15b8] sm:$0xff] }
 0x155   :  { %2071 = vmatpush.msrb.mxu3 %v1110_v22  ;;  %2043 = vmatpush.msrb.mxu2 %v838_v16  ;;  %v294_v10 = vld [vmem:[#allocation5 + $0x5b8] sm:$0xff] }
 0x156   :  { %1985 = vmatpush.msrb.mxu0 %v326_v21  ;;  %2014 = vmatpush.msrb.mxu1 %v582_v29  ;;  %v550_v0 = vld [vmem:[#allocation5 + $0xdb8] sm:$0xff] }
 0x157   :  { %2072 = vmatpush.msrb.mxu3 %v1094_v19  ;;  %2044 = vmatpush.msrb.mxu2 %v822_v13  ;;  %v1062_v22 = vld [vmem:[#allocation5 + $0x1db8] sm:$0xff]  ;;  %v6557_v19 = vpop.f32.mrf.mxu2 }
 0x158   :  { %1986 = vmatpush.msrb.mxu0 %v310_v62  ;;  %2015 = vmatpush.msrb.mxu1 %v566_v20  ;;  %v790_v16 = vld [vmem:[#allocation5 + $0x1538] sm:$0xff] }
 0x159   :  { %2073 = vmatpush.msrb.mxu3 %v1078_v37  ;;  %1886 = vmatmul.f32.gmra.mxu0 %v6433_v48  ;;  %v278_v21 = vld [vmem:[#allocation5 + $0x538] sm:$0xff]  ;;  %v6559_v37 = vpop.f32.mrf.mxu3 }
 0x15a   :  { %1915 = vmatmul.f32.gmra.mxu1 %v6436_v50  ;;  %1944 = vmatmul.f32.gmra.mxu2 %v6439_v42  ;;  %v534_v13 = vld [vmem:[#allocation5 + $0xd38] sm:$0xff]  ;;  %8593 = vst [vmem:[#allocation39_spill] sm:$0xff] %v6559_v37 }
 0x15b   :  { %1973 = vmatmul.f32.gmra.mxu3 %v6442_v43  ;;  %2045 = vmatpush.msrb.mxu2 %v806_v31  ;;  %v1046_v62 = vld [vmem:[#allocation5 + $0x1d38] sm:$0xff]  ;;  %v6561_v31 = vpop.f32.mrf.mxu0 }
 0x15c   :  { %1987 = vmatpush.msrb.mxu0 %v294_v10  ;;  %2016 = vmatpush.msrb.mxu1 %v550_v0  ;;  %v774_v29 = vld [vmem:[#allocation5 + $0x14b8] sm:$0xff]  ;;  %v6563_v10 = vpop.f32.mrf.mxu1 }
 0x15d   :  { %2074 = vmatpush.msrb.mxu3 %v1062_v22  ;;  %v262_v20 = vld [vmem:[#allocation5 + $0x4b8] sm:$0xff]  ;;  %2046 = vmatpush.msrb.mxu2 %v790_v16 }
 0x15e   :  { %1988 = vmatpush.msrb.mxu0 %v278_v21  ;;  %v1030_v5 = vld [vmem:[#allocation5 + $0x1cb8] sm:$0xff]  ;;  %2017 = vmatpush.msrb.mxu1 %v534_v13 }
 0x15f   :  { %2075 = vmatpush.msrb.mxu3 %v1046_v62  ;;  %2047 = vmatpush.msrb.mxu2 %v774_v29  ;;  %v502_v0 = vld [vmem:[#allocation5 + $0xc38] sm:$0xff] }
 0x160   :  { %1989 = vmatpush.msrb.mxu0 %v262_v20  ;;  %v1014_v22 = vld [vmem:[#allocation5 + $0x1c38] sm:$0xff]  ;;  %2018 = vmatpush.msrb.mxu1 %v518_v35  ;;  %v6569_v35 = vpop.f32.mrf.mxu2 }
 0x161   :  { %2076 = vmatpush.msrb.mxu3 %v1030_v5  ;;  %2048 = vmatpush.msrb.mxu2 %v758_v1  ;;  %v742_v16 = vld [vmem:[#allocation5 + $0x13b8] sm:$0xff] }
 0x162   :  { %1990 = vmatpush.msrb.mxu0 %v246_v9  ;;  %2019 = vmatpush.msrb.mxu1 %v502_v0  ;;  %v230_v21 = vld [vmem:[#allocation5 + $0x3b8] sm:$0xff] }
 0x163   :  { %2077 = vmatpush.msrb.mxu3 %v1014_v22  ;;  %1889 = vmatmul.f32.gmra.mxu0 %v6453_v14  ;;  %v486_v13 = vld [vmem:[#allocation5 + $0xbb8] sm:$0xff]  ;;  %v6571_v22 = vpop.f32.mrf.mxu3 }
 0x164   :  { %1918 = vmatmul.f32.gmra.mxu1 %v6456_v2  ;;  %v998_v62 = vld [vmem:[#allocation5 + $0x1bb8] sm:$0xff]  ;;  %1947 = vmatmul.f32.gmra.mxu2 %v6459_v24 }
 0x165   :  { %1976 = vmatmul.f32.gmra.mxu3 %v6462_v27  ;;  %v726_v29 = vld [vmem:[#allocation5 + $0x1338] sm:$0xff]  ;;  %2049 = vmatpush.msrb.mxu2 %v742_v16  ;;  %v6573_v16 = vpop.f32.mrf.mxu0 }
 0x166   :  { %v214_v20 = vld [vmem:[#allocation5 + $0x338] sm:$0xff]  ;;  %1991 = vmatpush.msrb.mxu0 %v230_v21  ;;  %2020 = vmatpush.msrb.mxu1 %v486_v13  ;;  %v6575_v21 = vpop.f32.mrf.mxu1 }
 0x167   :  { %v470_v1 = vld [vmem:[#allocation5 + $0xb38] sm:$0xff]  ;;  %2078 = vmatpush.msrb.mxu3 %v998_v62  ;;  %2050 = vmatpush.msrb.mxu2 %v726_v29  ;;  %8594 = vst [vmem:[#allocation40_spill] sm:$0xff] %v6575_v21 }
 0x168   :  { %v982_v9 = vld [vmem:[#allocation5 + $0x1b38] sm:$0xff]  ;;  %1992 = vmatpush.msrb.mxu0 %v214_v20  ;;  %2021 = vmatpush.msrb.mxu1 %v470_v1 }
 0x169   :  { %v710_v5 = vld [vmem:[#allocation5 + $0x12b8] sm:$0xff]  ;;  %2079 = vmatpush.msrb.mxu3 %v982_v9 }
 0x16a   :  { %v198_v0 = vld [vmem:[#allocation5 + $0x2b8] sm:$0xff]  ;;  %2051 = vmatpush.msrb.mxu2 %v710_v5 }
 0x16b   :  { %v454_v37 = vld [vmem:[#allocation5 + $0xab8] sm:$0xff]  ;;  %1993 = vmatpush.msrb.mxu0 %v198_v0  ;;  %2080 = vmatpush.msrb.mxu3 %v966_v6  ;;  %v6581_v6 = vpop.f32.mrf.mxu2 }
 0x16c   :  { %v438_v13 = vld [vmem:[#allocation5 + $0xa38] sm:$0xff]  ;;  %2022 = vmatpush.msrb.mxu1 %v454_v37  ;;  %2052 = vmatpush.msrb.mxu2 %v694_v40  ;;  %8595 = vst [vmem:[#allocation41_spill] sm:$0xff] %v6581_v6  ;;  %v632_v6 = vld [vmem:[#allocation5 + $0x1048] sm:$0xff] }
 0x16d   :  { %v950_v62 = vld [vmem:[#allocation5 + $0x1a38] sm:$0xff]  ;;  %1994 = vmatpush.msrb.mxu0 %v182_v54  ;;  %1921 = vmatmul.f32.gmra.mxu1 %v6476_v59 }
 0x16e   :  { %2023 = vmatpush.msrb.mxu1 %v438_v13  ;;  %2081 = vmatpush.msrb.mxu3 %v950_v62  ;;  %v678_v29 = vld [vmem:[#allocation5 + $0x11b8] sm:$0xff]  ;;  %v6583_v62 = vpop.f32.mrf.mxu3 }
 0x16f   :  { %v166_v20 = vld [vmem:[#allocation5 + $0x1b8] sm:$0xff]  ;;  %1892 = vmatmul.f32.gmra.mxu0 %v6473_v57  ;;  %1950 = vmatmul.f32.gmra.mxu2 %v6479_v7  ;;  %8596 = vst [vmem:[#allocation42_spill] sm:$0xff] %v6583_v62  ;;  %v120_v62 = vld [vmem:[#allocation5 + $0x48] sm:$0xff] }
 0x170   :  { %v422_v1 = vld [vmem:[#allocation5 + $0x9b8] sm:$0xff]  ;;  %1979 = vmatmul.f32.gmra.mxu3 %v6482_v8  ;;  %2053 = vmatpush.msrb.mxu2 %v678_v29  ;;  %v6585_v29 = vpop.f32.mrf.mxu0 }
 0x171   :  { %v934_v9 = vld [vmem:[#allocation5 + $0x19b8] sm:$0xff]  ;;  %1995 = vmatpush.msrb.mxu0 %v166_v20  ;;  %2024 = vmatpush.msrb.mxu1 %v422_v1  ;;  %8597 = vst [vmem:[#allocation43_spill] sm:$0xff] %v6585_v29  ;;  %v6587_v20 = vpop.f32.mrf.mxu1  ;;  %v904_v29 = vld [vmem:[#allocation5 + $0x18c8] sm:$0xff] }
 0x172   :  { %v662_v5 = vld [vmem:[#allocation5 + $0x1138] sm:$0xff]  ;;  %2082 = vmatpush.msrb.mxu3 %v934_v9  ;;  %8598 = vst [vmem:[#allocation44_spill] sm:$0xff] %v6587_v20  ;;  %v184_v20 = vld [vmem:[#allocation5 + $0x248] sm:$0xff] }
 0x173   :  { %v150_v0 = vld [vmem:[#allocation5 + $0x138] sm:$0xff]  ;;  %2054 = vmatpush.msrb.mxu2 %v662_v5  ;;  %v871_v5 = vld [vmem:[#allocation5 + $0x17c0] sm:$0xff] }
 0x174   :  { %v406_v40 = vld [vmem:[#allocation5 + $0x938] sm:$0xff]  ;;  %1996 = vmatpush.msrb.mxu0 %v150_v0  ;;  %v359_v0 = vld [vmem:[#allocation5 + $0x7c0] sm:$0xff] }
 0x175   :  { %v918_v54 = vld [vmem:[#allocation5 + $0x1938] sm:$0xff]  ;;  %2025 = vmatpush.msrb.mxu1 %v406_v40  ;;  %v615_v40 = vld [vmem:[#allocation5 + $0xfc0] sm:$0xff] }
 0x176   :  { %v646_v37 = vld [vmem:[#allocation5 + $0x10b8] sm:$0xff]  ;;  %2083 = vmatpush.msrb.mxu3 %v918_v54  ;;  %v1127_v54 = vld [vmem:[#allocation5 + $0x1fc0] sm:$0xff] }
 0x177   :  { %v134_v13 = vld [vmem:[#allocation5 + $0xb8] sm:$0xff]  ;;  %2055 = vmatpush.msrb.mxu2 %v646_v37  ;;  %v855_v37 = vld [vmem:[#allocation5 + $0x1740] sm:$0xff] }
 0x178   :  { %v390_v21 = vld [vmem:[#allocation5 + $0x8b8] sm:$0xff]  ;;  %1997 = vmatpush.msrb.mxu0 %v134_v13  ;;  %2084 = vmatpush.msrb.mxu3 %v902_v63  ;;  %v343_v13 = vld [vmem:[#allocation5 + $0x740] sm:$0xff]  ;;  %v6593_v63 = vpop.f32.mrf.mxu2 }
 0x179   :  { %v374_v1 = vld [vmem:[#allocation5 + $0x838] sm:$0xff]  ;;  %2026 = vmatpush.msrb.mxu1 %v390_v21  ;;  %2056 = vmatpush.msrb.mxu2 %v630_v28  ;;  %v599_v28 = vld [vmem:[#allocation5 + $0xf40] sm:$0xff]  ;;  %8599 = vst [vmem:[#allocation45_spill] sm:$0xff] %v6593_v63  ;;  %v696_v63 = vld [vmem:[#allocation5 + $0x1248] sm:$0xff] }
 0x17a   :  { %v886_v9 = vld [vmem:[#allocation5 + $0x1838] sm:$0xff]  ;;  %1998 = vmatpush.msrb.mxu0 %v118_v11  ;;  %2057 = vmatmul.f32.vlgmr.msrb.gmra.mxu2 %v6419_v25  ;;  %v1111_v11 = vld [vmem:[#allocation5 + $0x1f40] sm:$0xff] }
 0x17b   :  { %2027 = vmatpush.msrb.mxu1 %v374_v1  ;;  %2085 = vmatpush.msrb.mxu3 %v886_v9  ;;  %v839_v21 = vld [vmem:[#allocation5 + $0x16c0] sm:$0xff]  ;;  %v6595_v1 = vpop.f32.mrf.mxu3 }
 0x17c   :  { %1999 = vmatmul.f32.vlgmr.msrb.gmra.mxu0 %v6413_v17  ;;  %2028 = vmatmul.f32.vlgmr.msrb.gmra.mxu1 %v6416_v18  ;;  %v327_v17 = vld [vmem:[#allocation5 + $0x6c0] sm:$0xff]  ;;  %8600 = vst [vmem:[#allocation46_spill] sm:$0xff] %v6595_v1  ;;  %v392_v1 = vld [vmem:[#allocation5 + $0x8c8] sm:$0xff] }
 0x17d   :  { %2086 = vmatmul.f32.vlgmr.msrb.gmra.mxu3 %v6422_v26  ;;  %2157 = vmatpush.msra.mxu2 %v871_v5  ;;  %v583_v18 = vld [vmem:[#allocation5 + $0xec0] sm:$0xff]  ;;  %v6597_v5 = vpop.f32.mrf.mxu0 }
 0x17e   :  { %2099 = vmatpush.msra.mxu0 %v359_v0  ;;  %2128 = vmatpush.msra.mxu1 %v615_v40  ;;  %v1095_v25 = vld [vmem:[#allocation5 + $0x1ec0] sm:$0xff]  ;;  %8601 = vst [vmem:[#allocation47_spill] sm:$0xff] %v6597_v5  ;;  %v6599_v0 = vpop.f32.mrf.mxu1  ;;  %v968_v5 = vld [vmem:[#allocation5 + $0x1ac8] sm:$0xff] }
 0x17f   :  { %2186 = vmatpush.msra.mxu3 %v1127_v54  ;;  %2158 = vmatpush.msra.mxu2 %v855_v37  ;;  %v823_v26 = vld [vmem:[#allocation5 + $0x1640] sm:$0xff]  ;;  %8602 = vst [vmem:[#allocation48_spill] sm:$0xff] %v6599_v0  ;;  %v760_v0 = vld [vmem:[#allocation5 + $0x1448] sm:$0xff] }
 0x180   :  { %2100 = vmatpush.msra.mxu0 %v343_v13  ;;  %2129 = vmatpush.msra.mxu1 %v599_v28  ;;  %v311_v9 = vld [vmem:[#allocation5 + $0x640] sm:$0xff] }
 0x181   :  { %2187 = vmatpush.msra.mxu3 %v1111_v11  ;;  %2159 = vmatpush.msra.mxu2 %v839_v21  ;;  %v567_v40 = vld [vmem:[#allocation5 + $0xe40] sm:$0xff] }
 0x182   :  { %2101 = vmatpush.msra.mxu0 %v327_v17  ;;  %v1079_v54 = vld [vmem:[#allocation5 + $0x1e40] sm:$0xff]  ;;  %2130 = vmatpush.msra.mxu1 %v583_v18 }
 0x183   :  { %2188 = vmatpush.msra.mxu3 %v1095_v25  ;;  %2160 = vmatpush.msra.mxu2 %v823_v26  ;;  %v807_v37 = vld [vmem:[#allocation5 + $0x15c0] sm:$0xff]  ;;  %v6605_v26 = vpop.f32.mrf.mxu2 }
 0x184   :  { %2102 = vmatpush.msra.mxu0 %v311_v9  ;;  %2131 = vmatpush.msra.mxu1 %v567_v40  ;;  %v295_v13 = vld [vmem:[#allocation5 + $0x5c0] sm:$0xff]  ;;  %8603 = vst [vmem:[#allocation49_spill] sm:$0xff] %v6605_v26  ;;  %v6607_v40 = vpop.f32.mrf.mxu3  ;;  %v520_v26 = vld [vmem:[#allocation5 + $0xcc8] sm:$0xff] }
 0x185   :  { %2189 = vmatpush.msra.mxu3 %v1079_v54  ;;  %2002 = vmatmul.f32.gmra.mxu0 %v6433_v48  ;;  %v551_v28 = vld [vmem:[#allocation5 + $0xdc0] sm:$0xff]  ;;  %8604 = vst [vmem:[#allocation50_spill] sm:$0xff] %v6607_v40  ;;  %v248_v40 = vld [vmem:[#allocation5 + $0x448] sm:$0xff] }
 0x186   :  { %2031 = vmatmul.f32.gmra.mxu1 %v6436_v50  ;;  %v1063_v11 = vld [vmem:[#allocation5 + $0x1dc0] sm:$0xff]  ;;  %2060 = vmatmul.f32.gmra.mxu2 %v6439_v42 }
 0x187   :  { %2089 = vmatmul.f32.gmra.mxu3 %v6442_v43  ;;  %v791_v21 = vld [vmem:[#allocation5 + $0x1540] sm:$0xff]  ;;  %2161 = vmatpush.msra.mxu2 %v807_v37  ;;  %v6609_v37 = vpop.f32.mrf.mxu0 }
 0x188   :  { %v279_v17 = vld [vmem:[#allocation5 + $0x540] sm:$0xff]  ;;  %2103 = vmatpush.msra.mxu0 %v295_v13  ;;  %2132 = vmatpush.msra.mxu1 %v551_v28  ;;  %8605 = vst [vmem:[#allocation51_spill] sm:$0xff] %v6609_v37  ;;  %v6611_v13 = vpop.f32.mrf.mxu1 }
 0x189   :  { %v535_v18 = vld [vmem:[#allocation5 + $0xd40] sm:$0xff]  ;;  %2190 = vmatpush.msra.mxu3 %v1063_v11  ;;  %2162 = vmatpush.msra.mxu2 %v791_v21  ;;  %8606 = vst [vmem:[#allocation52_spill] sm:$0xff] %v6611_v13  ;;  %v312_v13 = vld [vmem:[#allocation5 + $0x648] sm:$0xff] }
 0x18a   :  { %v1047_v25 = vld [vmem:[#allocation5 + $0x1d40] sm:$0xff]  ;;  %2104 = vmatpush.msra.mxu0 %v279_v17  ;;  %2133 = vmatpush.msra.mxu1 %v535_v18 }
 0x18b   :  { %v775_v9 = vld [vmem:[#allocation5 + $0x14c0] sm:$0xff]  ;;  %2191 = vmatpush.msra.mxu3 %v1047_v25 }
 0x18c   :  { %v263_v48 = vld [vmem:[#allocation5 + $0x4c0] sm:$0xff]  ;;  %2163 = vmatpush.msra.mxu2 %v775_v9 }
 0x18d   :  { %v519_v50 = vld [vmem:[#allocation5 + $0xcc0] sm:$0xff]  ;;  %2105 = vmatpush.msra.mxu0 %v263_v48 }
 0x18e   :  { %v1031_v42 = vld [vmem:[#allocation5 + $0x1cc0] sm:$0xff]  ;;  %2134 = vmatpush.msra.mxu1 %v519_v50  ;;  %2005 = vmatmul.f32.gmra.mxu0 %v6453_v14 }
 0x18f   :  { %v759_v43 = vld [vmem:[#allocation5 + $0x1440] sm:$0xff]  ;;  %2192 = vmatpush.msra.mxu3 %v1031_v42  ;;  %2034 = vmatmul.f32.gmra.mxu1 %v6456_v2 }
 0x190   :  { %v247_v54 = vld [vmem:[#allocation5 + $0x440] sm:$0xff]  ;;  %2164 = vmatpush.msra.mxu2 %v759_v43  ;;  %2092 = vmatmul.f32.gmra.mxu3 %v6462_v27  ;;  %v6617_v43 = vpop.f32.mrf.mxu2 }
 0x191   :  { %v503_v28 = vld [vmem:[#allocation5 + $0xc40] sm:$0xff]  ;;  %2106 = vmatpush.msra.mxu0 %v247_v54  ;;  %2063 = vmatmul.f32.gmra.mxu2 %v6459_v24  ;;  %8607 = vst [vmem:[#allocation53_spill] sm:$0xff] %v6617_v43  ;;  %v824_v43 = vld [vmem:[#allocation5 + $0x1648] sm:$0xff] }
 0x192   :  { %v1015_v11 = vld [vmem:[#allocation5 + $0x1c40] sm:$0xff]  ;;  %2135 = vmatpush.msra.mxu1 %v503_v28  ;;  %v6619_v28 = vpop.f32.mrf.mxu3 }
 0x193   :  { %2193 = vmatpush.msra.mxu3 %v1015_v11  ;;  %v743_v21 = vld [vmem:[#allocation5 + $0x13c0] sm:$0xff]  ;;  %8608 = vst [vmem:[#allocation54_spill] sm:$0xff] %v6619_v28  ;;  %v264_v28 = vld [vmem:[#allocation5 + $0x4c8] sm:$0xff] }
 0x194   :  { %v231_v17 = vld [vmem:[#allocation5 + $0x3c0] sm:$0xff]  ;;  %2165 = vmatpush.msra.mxu2 %v743_v21  ;;  %v6621_v21 = vpop.f32.mrf.mxu0 }
 0x195   :  { %v487_v18 = vld [vmem:[#allocation5 + $0xbc0] sm:$0xff]  ;;  %2107 = vmatpush.msra.mxu0 %v231_v17  ;;  %8609 = vst [vmem:[#allocation55_spill] sm:$0xff] %v6621_v21  ;;  %v6623_v17 = vpop.f32.mrf.mxu1  ;;  %v1096_v21 = vld [vmem:[#allocation5 + $0x1ec8] sm:$0xff] }
 0x196   :  { %v999_v25 = vld [vmem:[#allocation5 + $0x1bc0] sm:$0xff]  ;;  %2136 = vmatpush.msra.mxu1 %v487_v18  ;;  %8610 = vst [vmem:[#allocation56_spill] sm:$0xff] %v6623_v17  ;;  %2008 = vmatmul.f32.gmra.mxu0 %v6473_v57 }
 0x197   :  { %v727_v9 = vld [vmem:[#allocation5 + $0x1340] sm:$0xff]  ;;  %2194 = vmatpush.msra.mxu3 %v999_v25  ;;  %2037 = vmatmul.f32.gmra.mxu1 %v6476_v59 }
 0x198   :  { %v215_v48 = vld [vmem:[#allocation5 + $0x340] sm:$0xff]  ;;  %2166 = vmatpush.msra.mxu2 %v727_v9  ;;  %2095 = vmatmul.f32.gmra.mxu3 %v6482_v8 }
 0x199   :  { %v471_v50 = vld [vmem:[#allocation5 + $0xb40] sm:$0xff]  ;;  %2108 = vmatpush.msra.mxu0 %v215_v48  ;;  %2066 = vmatmul.f32.gmra.mxu2 %v6479_v7 }
 0x19a   :  { %v983_v42 = vld [vmem:[#allocation5 + $0x1b40] sm:$0xff]  ;;  %2137 = vmatpush.msra.mxu1 %v471_v50 }
 0x19b   :  { %v711_v54 = vld [vmem:[#allocation5 + $0x12c0] sm:$0xff]  ;;  %2195 = vmatpush.msra.mxu3 %v983_v42 }
 0x19c   :  { %v199_v14 = vld [vmem:[#allocation5 + $0x2c0] sm:$0xff]  ;;  %2167 = vmatpush.msra.mxu2 %v711_v54 }
 0x19d   :  { %v455_v2 = vld [vmem:[#allocation5 + $0xac0] sm:$0xff]  ;;  %2109 = vmatpush.msra.mxu0 %v199_v14 }
 0x19e   :  { %v967_v24 = vld [vmem:[#allocation5 + $0x1ac0] sm:$0xff]  ;;  %2138 = vmatpush.msra.mxu1 %v455_v2 }
 0x19f   :  { %v695_v27 = vld [vmem:[#allocation5 + $0x1240] sm:$0xff]  ;;  %2196 = vmatpush.msra.mxu3 %v967_v24 }
 0x1a0   :  { %v183_v11 = vld [vmem:[#allocation5 + $0x240] sm:$0xff]  ;;  %2168 = vmatpush.msra.mxu2 %v695_v27  ;;  %v6629_v27 = vpop.f32.mrf.mxu2 }
 0x1a1   :  { %v439_v18 = vld [vmem:[#allocation5 + $0xa40] sm:$0xff]  ;;  %2110 = vmatpush.msra.mxu0 %v183_v11  ;;  %8611 = vst [vmem:[#allocation57_spill] sm:$0xff] %v6629_v27  ;;  %v328_v27 = vld [vmem:[#allocation5 + $0x6c8] sm:$0xff] }
 0x1a2   :  { %v951_v25 = vld [vmem:[#allocation5 + $0x1a40] sm:$0xff]  ;;  %2139 = vmatpush.msra.mxu1 %v439_v18  ;;  %v6631_v18 = vpop.f32.mrf.mxu3 }
 0x1a3   :  { %2197 = vmatpush.msra.mxu3 %v951_v25  ;;  %v679_v9 = vld [vmem:[#allocation5 + $0x11c0] sm:$0xff]  ;;  %8612 = vst [vmem:[#allocation58_spill] sm:$0xff] %v6631_v18  ;;  %v584_v18 = vld [vmem:[#allocation5 + $0xec8] sm:$0xff] }
 0x1a4   :  { %v167_v48 = vld [vmem:[#allocation5 + $0x1c0] sm:$0xff]  ;;  %2169 = vmatpush.msra.mxu2 %v679_v9  ;;  %v6633_v9 = vpop.f32.mrf.mxu0 }
 0x1a5   :  { %v423_v50 = vld [vmem:[#allocation5 + $0x9c0] sm:$0xff]  ;;  %2111 = vmatpush.msra.mxu0 %v167_v48  ;;  %8613 = vst [vmem:[#allocation59_spill] sm:$0xff] %v6633_v9  ;;  %v6635_v48 = vpop.f32.mrf.mxu1  ;;  %v840_v9 = vld [vmem:[#allocation5 + $0x16c8] sm:$0xff] }
 0x1a6   :  { %v935_v42 = vld [vmem:[#allocation5 + $0x19c0] sm:$0xff]  ;;  %2140 = vmatpush.msra.mxu1 %v423_v50  ;;  %8614 = vst [vmem:[#allocation60_spill] sm:$0xff] %v6635_v48  ;;  %v6643_v48 = vld [vmem:[#allocation2 + $0x10] sm:$0xff] }
 0x1a7   :  { %v663_v54 = vld [vmem:[#allocation5 + $0x1140] sm:$0xff]  ;;  %2198 = vmatpush.msra.mxu3 %v935_v42 }
 0x1a8   :  { %v151_v14 = vld [vmem:[#allocation5 + $0x140] sm:$0xff]  ;;  %2170 = vmatpush.msra.mxu2 %v663_v54  ;;  %v872_v54 = vld [vmem:[#allocation5 + $0x17c8] sm:$0xff] }
 0x1a9   :  { %v407_v2 = vld [vmem:[#allocation5 + $0x940] sm:$0xff]  ;;  %2112 = vmatpush.msra.mxu0 %v151_v14  ;;  %v360_v14 = vld [vmem:[#allocation5 + $0x7c8] sm:$0xff] }
 0x1aa   :  { %v919_v24 = vld [vmem:[#allocation5 + $0x1940] sm:$0xff]  ;;  %2141 = vmatpush.msra.mxu1 %v407_v2  ;;  %v6651_v17 = vpop.f32.mrf.mxu3 }
 0x1ab   :  { %v647_v11 = vld [vmem:[#allocation5 + $0x10c0] sm:$0xff]  ;;  %2199 = vmatpush.msra.mxu3 %v919_v24  ;;  %v6640_v24 = vld [vmem:[#allocation2 + $0x8] sm:$0xff]  ;;  %8616 = vst [vmem:[#allocation62_spill] sm:$0xff] %v6651_v17 }
 0x1ac   :  { %v135_v57 = vld [vmem:[#allocation5 + $0xc0] sm:$0xff]  ;;  %2171 = vmatpush.msra.mxu2 %v647_v11  ;;  %v616_v11 = vld [vmem:[#allocation5 + $0xfc8] sm:$0xff] }
 0x1ad   :  { %v391_v59 = vld [vmem:[#allocation5 + $0x8c0] sm:$0xff]  ;;  %2113 = vmatpush.msra.mxu0 %v135_v57  ;;  %v1128_v57 = vld [vmem:[#allocation5 + $0x1fc8] sm:$0xff] }
 0x1ae   :  { %v903_v7 = vld [vmem:[#allocation5 + $0x18c0] sm:$0xff]  ;;  %2142 = vmatpush.msra.mxu1 %v391_v59  ;;  %v6646_v59 = vld [vmem:[#allocation2 + $0x18] sm:$0xff]  ;;  %v776_v17 = vld [vmem:[#allocation5 + $0x14c8] sm:$0xff] }
 0x1af   :  { %v631_v8 = vld [vmem:[#allocation5 + $0x1040] sm:$0xff]  ;;  %2200 = vmatpush.msra.mxu3 %v903_v7  ;;  %v856_v7 = vld [vmem:[#allocation5 + $0x1748] sm:$0xff] }
 0x1b0   :  { %v119_v25 = vld [vmem:[#allocation5 + $0x40] sm:$0xff]  ;;  %2172 = vmatpush.msra.mxu2 %v631_v8  ;;  %v344_v8 = vld [vmem:[#allocation5 + $0x748] sm:$0xff] }
 0x1b1   :  { %v375_v50 = vld [vmem:[#allocation5 + $0x840] sm:$0xff]  ;;  %2114 = vmatpush.msra.mxu0 %v119_v25  ;;  %2173 = vmatmul.f32.vlgmr.msra.gmra.mxu2 %v6643_v48  ;;  %v600_v25 = vld [vmem:[#allocation5 + $0xf48] sm:$0xff] }
 0x1b2   :  { %v887_v42 = vld [vmem:[#allocation5 + $0x1840] sm:$0xff]  ;;  %2143 = vmatpush.msra.mxu1 %v375_v50  ;;  %2273 = vmatpush.msrb.mxu2 %v872_v54  ;;  %v1112_v50 = vld [vmem:[#allocation5 + $0x1f48] sm:$0xff]  ;;  %v6653_v54 = vpop.f32.mrf.mxu0  ;;  %v6671_v37 = vpop.f32.mrf.mxu3 }
 0x1b3   :  { %2201 = vmatpush.msra.mxu3 %v887_v42  ;;  %v6637_v2 = vld [vmem:[#allocation2] sm:$0xff]  ;;  %2144 = vmatmul.f32.vlgmr.msra.gmra.mxu1 %v6640_v24  ;;  %v6649_v42 = vpop.f32.mrf.mxu2  ;;  %8617 = vst [vmem:[#allocation63_spill] sm:$0xff] %v6653_v54  ;;  %v456_v54 = vld [vmem:[#allocation5 + $0xac8] sm:$0xff] }
 0x1b4   :  { %2115 = vmatmul.f32.vlgmr.msra.gmra.mxu0 %v6637_v2  ;;  %2202 = vmatmul.f32.vlgmr.msra.gmra.mxu3 %v6646_v59  ;;  %8615 = vst [vmem:[#allocation61_spill] sm:$0xff] %v6649_v42  ;;  %v6663_v42 = vld [vmem:[#allocation2 + $0x30] sm:$0xff] }
 0x1b5   :  { %2215 = vmatpush.msrb.mxu0 %v360_v14  ;;  %2244 = vmatpush.msrb.mxu1 %v616_v11  ;;  %v6655_v14 = vpop.f32.mrf.mxu1  ;;  %v568_v11 = vld [vmem:[#allocation5 + $0xe48] sm:$0xff]  ;;  %8620 = vst [vmem:[#allocation66_spill] sm:$0xff] %v6671_v37  ;;  %v6683_v37 = vld [vmem:[#allocation2 + $0x50] sm:$0xff] }
 0x1b6   :  { %2302 = vmatpush.msrb.mxu3 %v1128_v57  ;;  %2274 = vmatpush.msrb.mxu2 %v856_v7  ;;  %8618 = vst [vmem:[#allocation64_spill] sm:$0xff] %v6655_v14  ;;  %v1080_v57 = vld [vmem:[#allocation5 + $0x1e48] sm:$0xff] }
 0x1b7   :  { %2216 = vmatpush.msrb.mxu0 %v344_v8  ;;  %2245 = vmatpush.msrb.mxu1 %v600_v25  ;;  %v808_v7 = vld [vmem:[#allocation5 + $0x15c8] sm:$0xff]  ;;  %v6657_v25 = vld [vmem:[#allocation2 + $0x20] sm:$0xff] }
 0x1b8   :  { %2303 = vmatpush.msrb.mxu3 %v1112_v50  ;;  %2275 = vmatpush.msrb.mxu2 %v840_v9  ;;  %v296_v8 = vld [vmem:[#allocation5 + $0x5c8] sm:$0xff] }
 0x1b9   :  { %2217 = vmatpush.msrb.mxu0 %v328_v27  ;;  %2246 = vmatpush.msrb.mxu1 %v584_v18  ;;  %v6660_v50 = vld [vmem:[#allocation2 + $0x28] sm:$0xff] }
 0x1ba   :  { %2304 = vmatpush.msrb.mxu3 %v1096_v21  ;;  %2276 = vmatpush.msrb.mxu2 %v824_v43  ;;  %v552_v9 = vld [vmem:[#allocation5 + $0xdc8] sm:$0xff]  ;;  %v6666_v43 = vld [vmem:[#allocation2 + $0x38] sm:$0xff] }
 0x1bb   :  { %2218 = vmatpush.msrb.mxu0 %v312_v13  ;;  %2247 = vmatpush.msrb.mxu1 %v568_v11  ;;  %v1064_v27 = vld [vmem:[#allocation5 + $0x1dc8] sm:$0xff] }
 0x1bc   :  { %2305 = vmatpush.msrb.mxu3 %v1080_v57  ;;  %2118 = vmatmul.f32.gmra.mxu0 %v6657_v25  ;;  %v792_v13 = vld [vmem:[#allocation5 + $0x1548] sm:$0xff]  ;;  %v6669_v57 = vpop.f32.mrf.mxu2 }
 0x1bd   :  { %2147 = vmatmul.f32.gmra.mxu1 %v6660_v50  ;;  %2176 = vmatmul.f32.gmra.mxu2 %v6663_v42  ;;  %v280_v21 = vld [vmem:[#allocation5 + $0x548] sm:$0xff]  ;;  %8619 = vst [vmem:[#allocation65_spill] sm:$0xff] %v6669_v57  ;;  %v6691_v57 = vpop.f32.mrf.mxu3 }
 0x1be   :  { %2205 = vmatmul.f32.gmra.mxu3 %v6666_v43  ;;  %2277 = vmatpush.msrb.mxu2 %v808_v7  ;;  %v536_v18 = vld [vmem:[#allocation5 + $0xd48] sm:$0xff]  ;;  %v6673_v7 = vpop.f32.mrf.mxu0  ;;  %8624 = vst [vmem:[#allocation70_spill] sm:$0xff] %v6691_v57 }
 0x1bf   :  { %2219 = vmatpush.msrb.mxu0 %v296_v8  ;;  %v1048_v11 = vld [vmem:[#allocation5 + $0x1d48] sm:$0xff]  ;;  %2248 = vmatpush.msrb.mxu1 %v552_v9  ;;  %8621 = vst [vmem:[#allocation67_spill] sm:$0xff] %v6673_v7  ;;  %v6675_v8 = vpop.f32.mrf.mxu1 }
 0x1c0   :  { %2306 = vmatpush.msrb.mxu3 %v1064_v27  ;;  %2278 = vmatpush.msrb.mxu2 %v792_v13  ;;  %v1032_v14 = vld [vmem:[#allocation5 + $0x1cc8] sm:$0xff]  ;;  %8622 = vst [vmem:[#allocation68_spill] sm:$0xff] %v6675_v8 }
 0x1c1   :  { %2220 = vmatpush.msrb.mxu0 %v280_v21  ;;  %2249 = vmatpush.msrb.mxu1 %v536_v18  ;;  %v504_v9 = vld [vmem:[#allocation5 + $0xc48] sm:$0xff]  ;;  %v6677_v18 = vld [vmem:[#allocation2 + $0x40] sm:$0xff] }
 0x1c2   :  { %2307 = vmatpush.msrb.mxu3 %v1048_v11  ;;  %2279 = vmatpush.msrb.mxu2 %v776_v17  ;;  %v1016_v27 = vld [vmem:[#allocation5 + $0x1c48] sm:$0xff] }
 0x1c3   :  { %2221 = vmatpush.msrb.mxu0 %v264_v28  ;;  %2250 = vmatpush.msrb.mxu1 %v520_v26  ;;  %v744_v13 = vld [vmem:[#allocation5 + $0x13c8] sm:$0xff] }
 0x1c4   :  { %2308 = vmatpush.msrb.mxu3 %v1032_v14  ;;  %2280 = vmatpush.msrb.mxu2 %v760_v0  ;;  %v232_v21 = vld [vmem:[#allocation5 + $0x3c8] sm:$0xff]  ;;  %v6686_v0 = vld [vmem:[#allocation2 + $0x58] sm:$0xff] }
 0x1c5   :  { %2222 = vmatpush.msrb.mxu0 %v248_v40  ;;  %2251 = vmatpush.msrb.mxu1 %v504_v9  ;;  %v6680_v11 = vld [vmem:[#allocation2 + $0x48] sm:$0xff]  ;;  %v6711_v57 = vpop.f32.mrf.mxu3 }
 0x1c6   :  { %2309 = vmatpush.msrb.mxu3 %v1016_v27  ;;  %2121 = vmatmul.f32.gmra.mxu0 %v6677_v18  ;;  %v488_v17 = vld [vmem:[#allocation5 + $0xbc8] sm:$0xff]  ;;  %v6689_v27 = vpop.f32.mrf.mxu2  ;;  %8628 = vst [vmem:[#allocation74_spill] sm:$0xff] %v6711_v57  ;;  %v313_v57 = vld [vmem:[#allocation5 + $0x650] sm:$0xff] }
 0x1c7   :  { %2150 = vmatmul.f32.gmra.mxu1 %v6680_v11  ;;  %v1000_v28 = vld [vmem:[#allocation5 + $0x1bc8] sm:$0xff]  ;;  %2179 = vmatmul.f32.gmra.mxu2 %v6683_v37  ;;  %8623 = vst [vmem:[#allocation69_spill] sm:$0xff] %v6689_v27 }
 0x1c8   :  { %2208 = vmatmul.f32.gmra.mxu3 %v6686_v0  ;;  %v728_v26 = vld [vmem:[#allocation5 + $0x1348] sm:$0xff]  ;;  %2281 = vmatpush.msrb.mxu2 %v744_v13  ;;  %v6693_v13 = vpop.f32.mrf.mxu0 }
 0x1c9   :  { %v216_v40 = vld [vmem:[#allocation5 + $0x348] sm:$0xff]  ;;  %2223 = vmatpush.msrb.mxu0 %v232_v21  ;;  %2252 = vmatpush.msrb.mxu1 %v488_v17  ;;  %8625 = vst [vmem:[#allocation71_spill] sm:$0xff] %v6693_v13  ;;  %v6695_v21 = vpop.f32.mrf.mxu1 }
 0x1ca   :  { %v472_v14 = vld [vmem:[#allocation5 + $0xb48] sm:$0xff]  ;;  %2310 = vmatpush.msrb.mxu3 %v1000_v28  ;;  %2282 = vmatpush.msrb.mxu2 %v728_v26  ;;  %8626 = vst [vmem:[#allocation72_spill] sm:$0xff] %v6695_v21  ;;  %v6703_v21 = vld [vmem:[#allocation2 + $0x70] sm:$0xff] }
 0x1cb   :  { %v984_v9 = vld [vmem:[#allocation5 + $0x1b48] sm:$0xff]  ;;  %2224 = vmatpush.msrb.mxu0 %v216_v40  ;;  %2253 = vmatpush.msrb.mxu1 %v472_v14  ;;  %v6697_v14 = vld [vmem:[#allocation2 + $0x60] sm:$0xff] }
 0x1cc   :  { %v712_v8 = vld [vmem:[#allocation5 + $0x12c8] sm:$0xff]  ;;  %2311 = vmatpush.msrb.mxu3 %v984_v9 }
 0x1cd   :  { %v200_v7 = vld [vmem:[#allocation5 + $0x2c8] sm:$0xff]  ;;  %2283 = vmatpush.msrb.mxu2 %v712_v8  ;;  %2254 = vmatpush.msrb.mxu1 %v456_v54 }
 0x1ce   :  { %2225 = vmatpush.msrb.mxu0 %v200_v7  ;;  %v440_v17 = vld [vmem:[#allocation5 + $0xa48] sm:$0xff]  ;;  %2312 = vmatpush.msrb.mxu3 %v968_v5 }
 0x1cf   :  { %v952_v28 = vld [vmem:[#allocation5 + $0x1a48] sm:$0xff]  ;;  %2284 = vmatpush.msrb.mxu2 %v696_v63  ;;  %2255 = vmatpush.msrb.mxu1 %v440_v17  ;;  %v6706_v63 = vld [vmem:[#allocation2 + $0x78] sm:$0xff] }
 0x1d0   :  { %2226 = vmatpush.msrb.mxu0 %v184_v20  ;;  %2313 = vmatpush.msrb.mxu3 %v952_v28  ;;  %v680_v26 = vld [vmem:[#allocation5 + $0x11c8] sm:$0xff]  ;;  %v6709_v28 = vpop.f32.mrf.mxu2 }
 0x1d1   :  { %v168_v40 = vld [vmem:[#allocation5 + $0x1c8] sm:$0xff]  ;;  %2124 = vmatmul.f32.gmra.mxu0 %v6697_v14  ;;  %2182 = vmatmul.f32.gmra.mxu2 %v6703_v21  ;;  %8627 = vst [vmem:[#allocation73_spill] sm:$0xff] %v6709_v28  ;;  %v825_v28 = vld [vmem:[#allocation5 + $0x1650] sm:$0xff] }
 0x1d2   :  { %v6700_v9 = vld [vmem:[#allocation2 + $0x68] sm:$0xff]  ;;  %2211 = vmatmul.f32.gmra.mxu3 %v6706_v63  ;;  %2285 = vmatpush.msrb.mxu2 %v680_v26  ;;  %v6713_v26 = vpop.f32.mrf.mxu0 }
 0x1d3   :  { %2153 = vmatmul.f32.gmra.mxu1 %v6700_v9  ;;  %v424_v8 = vld [vmem:[#allocation5 + $0x9c8] sm:$0xff]  ;;  %2227 = vmatpush.msrb.mxu0 %v168_v40  ;;  %8629 = vst [vmem:[#allocation75_spill] sm:$0xff] %v6713_v26  ;;  %v6715_v40 = vpop.f32.mrf.mxu1  ;;  %v1097_v26 = vld [vmem:[#allocation5 + $0x1ed0] sm:$0xff] }
 0x1d4   :  { %v936_v7 = vld [vmem:[#allocation5 + $0x19c8] sm:$0xff]  ;;  %2256 = vmatpush.msrb.mxu1 %v424_v8  ;;  %8630 = vst [vmem:[#allocation76_spill] sm:$0xff] %v6715_v40  ;;  %v585_v40 = vld [vmem:[#allocation5 + $0xed0] sm:$0xff] }
 0x1d5   :  { %v664_v20 = vld [vmem:[#allocation5 + $0x1148] sm:$0xff]  ;;  %2314 = vmatpush.msrb.mxu3 %v936_v7 }
 0x1d6   :  { %v152_v5 = vld [vmem:[#allocation5 + $0x148] sm:$0xff]  ;;  %2286 = vmatpush.msrb.mxu2 %v664_v20  ;;  %v873_v20 = vld [vmem:[#allocation5 + $0x17d0] sm:$0xff] }
 0x1d7   :  { %v408_v54 = vld [vmem:[#allocation5 + $0x948] sm:$0xff]  ;;  %2228 = vmatpush.msrb.mxu0 %v152_v5  ;;  %v361_v5 = vld [vmem:[#allocation5 + $0x7d0] sm:$0xff] }
 0x1d8   :  { %v920_v17 = vld [vmem:[#allocation5 + $0x1948] sm:$0xff]  ;;  %2257 = vmatpush.msrb.mxu1 %v408_v54  ;;  %v617_v54 = vld [vmem:[#allocation5 + $0xfd0] sm:$0xff] }
 0x1d9   :  { %v648_v13 = vld [vmem:[#allocation5 + $0x10c8] sm:$0xff]  ;;  %2315 = vmatpush.msrb.mxu3 %v920_v17  ;;  %v1129_v17 = vld [vmem:[#allocation5 + $0x1fd0] sm:$0xff] }
 0x1da   :  { %v136_v27 = vld [vmem:[#allocation5 + $0xc8] sm:$0xff]  ;;  %2287 = vmatpush.msrb.mxu2 %v648_v13  ;;  %2258 = vmatpush.msrb.mxu1 %v392_v1  ;;  %v345_v13 = vld [vmem:[#allocation5 + $0x750] sm:$0xff] }
 0x1db   :  { %2229 = vmatpush.msrb.mxu0 %v136_v27  ;;  %v376_v8 = vld [vmem:[#allocation5 + $0x848] sm:$0xff]  ;;  %2316 = vmatpush.msrb.mxu3 %v904_v29  ;;  %v857_v27 = vld [vmem:[#allocation5 + $0x1750] sm:$0xff]  ;;  %v6721_v29 = vpop.f32.mrf.mxu2 }
 0x1dc   :  { %v888_v7 = vld [vmem:[#allocation5 + $0x1848] sm:$0xff]  ;;  %2288 = vmatpush.msrb.mxu2 %v632_v6  ;;  %2259 = vmatpush.msrb.mxu1 %v376_v8  ;;  %v601_v6 = vld [vmem:[#allocation5 + $0xf50] sm:$0xff]  ;;  %8631 = vst [vmem:[#allocation77_spill] sm:$0xff] %v6721_v29 }
 0x1dd   :  { %2230 = vmatpush.msrb.mxu0 %v120_v62  ;;  %2317 = vmatpush.msrb.mxu3 %v888_v7  ;;  %v1113_v62 = vld [vmem:[#allocation5 + $0x1f50] sm:$0xff]  ;;  %v6723_v7 = vpop.f32.mrf.mxu3 }
 0x1de   :  { %2231 = vmatmul.f32.vlgmr.msrb.gmra.mxu0 %v6637_v2  ;;  %2260 = vmatmul.f32.vlgmr.msrb.gmra.mxu1 %v6640_v24  ;;  %v841_v1 = vld [vmem:[#allocation5 + $0x16d0] sm:$0xff]  ;;  %8632 = vst [vmem:[#allocation78_spill] sm:$0xff] %v6723_v7 }
 0x1df   :  { %2289 = vmatmul.f32.vlgmr.msrb.gmra.mxu2 %v6643_v48  ;;  %2318 = vmatmul.f32.vlgmr.msrb.gmra.mxu3 %v6646_v59  ;;  %v329_v8 = vld [vmem:[#allocation5 + $0x6d0] sm:$0xff] }
 0x1e0   :  { %2389 = vmatpush.msra.mxu2 %v873_v20  ;;  %2331 = vmatpush.msra.mxu0 %v361_v5  ;;  %v6725_v20 = vpop.f32.mrf.mxu0  ;;  %v6727_v5 = vpop.f32.mrf.mxu1  ;;  %v521_v29 = vld [vmem:[#allocation5 + $0xcd0] sm:$0xff] }
 0x1e1   :  { %2360 = vmatpush.msra.mxu1 %v617_v54  ;;  %2418 = vmatpush.msra.mxu3 %v1129_v17  ;;  %8633 = vst [vmem:[#allocation79_spill] sm:$0xff] %v6725_v20  ;;  %v569_v54 = vld [vmem:[#allocation5 + $0xe50] sm:$0xff] }
 0x1e2   :  { %2390 = vmatpush.msra.mxu2 %v857_v27  ;;  %2332 = vmatpush.msra.mxu0 %v345_v13  ;;  %8634 = vst [vmem:[#allocation80_spill] sm:$0xff] %v6727_v5  ;;  %v1081_v17 = vld [vmem:[#allocation5 + $0x1e50] sm:$0xff] }
 0x1e3   :  { %2361 = vmatpush.msra.mxu1 %v601_v6  ;;  %2419 = vmatpush.msra.mxu3 %v1113_v62  ;;  %v809_v27 = vld [vmem:[#allocation5 + $0x15d0] sm:$0xff] }
 0x1e4   :  { %2391 = vmatpush.msra.mxu2 %v841_v1  ;;  %2333 = vmatpush.msra.mxu0 %v329_v8  ;;  %v297_v13 = vld [vmem:[#allocation5 + $0x5d0] sm:$0xff] }
 0x1e5   :  { %2362 = vmatpush.msra.mxu1 %v585_v40  ;;  %2420 = vmatpush.msra.mxu3 %v1097_v26  ;;  %v553_v6 = vld [vmem:[#allocation5 + $0xdd0] sm:$0xff]  ;;  %v6733_v26 = vpop.f32.mrf.mxu2 }
 0x1e6   :  { %2392 = vmatpush.msra.mxu2 %v825_v28  ;;  %2334 = vmatpush.msra.mxu0 %v313_v57  ;;  %v1065_v62 = vld [vmem:[#allocation5 + $0x1dd0] sm:$0xff]  ;;  %8635 = vst [vmem:[#allocation81_spill] sm:$0xff] %v6733_v26 }
 0x1e7   :  { %2363 = vmatpush.msra.mxu1 %v569_v54  ;;  %2421 = vmatpush.msra.mxu3 %v1081_v17  ;;  %v793_v1 = vld [vmem:[#allocation5 + $0x1550] sm:$0xff]  ;;  %v6735_v17 = vpop.f32.mrf.mxu3 }
 0x1e8   :  { %2234 = vmatmul.f32.gmra.mxu0 %v6657_v25  ;;  %2263 = vmatmul.f32.gmra.mxu1 %v6660_v50  ;;  %v281_v8 = vld [vmem:[#allocation5 + $0x550] sm:$0xff]  ;;  %8636 = vst [vmem:[#allocation82_spill] sm:$0xff] %v6735_v17 }
 0x1e9   :  { %2292 = vmatmul.f32.gmra.mxu2 %v6663_v42  ;;  %2321 = vmatmul.f32.gmra.mxu3 %v6666_v43  ;;  %v537_v28 = vld [vmem:[#allocation5 + $0xd50] sm:$0xff] }
 0x1ea   :  { %2393 = vmatpush.msra.mxu2 %v809_v27  ;;  %2335 = vmatpush.msra.mxu0 %v297_v13  ;;  %v1049_v57 = vld [vmem:[#allocation5 + $0x1d50] sm:$0xff]  ;;  %v6737_v27 = vpop.f32.mrf.mxu0  ;;  %v6739_v13 = vpop.f32.mrf.mxu1 }
 0x1eb   :  { %2364 = vmatpush.msra.mxu1 %v553_v6  ;;  %2422 = vmatpush.msra.mxu3 %v1065_v62  ;;  %v777_v40 = vld [vmem:[#allocation5 + $0x14d0] sm:$0xff]  ;;  %8637 = vst [vmem:[#allocation83_spill] sm:$0xff] %v6737_v27 }
 0x1ec   :  { %v265_v54 = vld [vmem:[#allocation5 + $0x4d0] sm:$0xff]  ;;  %2394 = vmatpush.msra.mxu2 %v793_v1  ;;  %2336 = vmatpush.msra.mxu0 %v281_v8  ;;  %8638 = vst [vmem:[#allocation84_spill] sm:$0xff] %v6739_v13 }
 0x1ed   :  { %v1033_v7 = vld [vmem:[#allocation5 + $0x1cd0] sm:$0xff]  ;;  %2365 = vmatpush.msra.mxu1 %v537_v28  ;;  %2423 = vmatpush.msra.mxu3 %v1049_v57 }
 0x1ee   :  { %v761_v5 = vld [vmem:[#allocation5 + $0x1450] sm:$0xff]  ;;  %2395 = vmatpush.msra.mxu2 %v777_v40  ;;  %2337 = vmatpush.msra.mxu0 %v265_v54 }
 0x1ef   :  { %v249_v20 = vld [vmem:[#allocation5 + $0x450] sm:$0xff]  ;;  %2366 = vmatpush.msra.mxu1 %v521_v29  ;;  %2424 = vmatpush.msra.mxu3 %v1033_v7 }
 0x1f0   :  { %v505_v6 = vld [vmem:[#allocation5 + $0xc50] sm:$0xff]  ;;  %2396 = vmatpush.msra.mxu2 %v761_v5  ;;  %2338 = vmatpush.msra.mxu0 %v249_v20  ;;  %v6745_v20 = vpop.f32.mrf.mxu2 }
 0x1f1   :  { %v1017_v62 = vld [vmem:[#allocation5 + $0x1c50] sm:$0xff]  ;;  %2367 = vmatpush.msra.mxu1 %v505_v6  ;;  %2237 = vmatmul.f32.gmra.mxu0 %v6677_v18  ;;  %8639 = vst [vmem:[#allocation85_spill] sm:$0xff] %v6745_v20 }
 0x1f2   :  { %2425 = vmatpush.msra.mxu3 %v1017_v62  ;;  %v745_v1 = vld [vmem:[#allocation5 + $0x13d0] sm:$0xff]  ;;  %2266 = vmatmul.f32.gmra.mxu1 %v6680_v11  ;;  %v6747_v62 = vpop.f32.mrf.mxu3 }
 0x1f3   :  { %v233_v8 = vld [vmem:[#allocation5 + $0x3d0] sm:$0xff]  ;;  %2295 = vmatmul.f32.gmra.mxu2 %v6683_v37  ;;  %2324 = vmatmul.f32.gmra.mxu3 %v6686_v0  ;;  %8640 = vst [vmem:[#allocation86_spill] sm:$0xff] %v6747_v62 }
 0x1f4   :  { %v489_v28 = vld [vmem:[#allocation5 + $0xbd0] sm:$0xff]  ;;  %2397 = vmatpush.msra.mxu2 %v745_v1  ;;  %2339 = vmatpush.msra.mxu0 %v233_v8  ;;  %v6749_v1 = vpop.f32.mrf.mxu0  ;;  %v6751_v8 = vpop.f32.mrf.mxu1 }
 0x1f5   :  { %v1001_v57 = vld [vmem:[#allocation5 + $0x1bd0] sm:$0xff]  ;;  %2368 = vmatpush.msra.mxu1 %v489_v28  ;;  %8641 = vst [vmem:[#allocation87_spill] sm:$0xff] %v6749_v1 }
 0x1f6   :  { %v729_v40 = vld [vmem:[#allocation5 + $0x1350] sm:$0xff]  ;;  %2426 = vmatpush.msra.mxu3 %v1001_v57  ;;  %8642 = vst [vmem:[#allocation88_spill] sm:$0xff] %v6751_v8 }
 0x1f7   :  { %v217_v54 = vld [vmem:[#allocation5 + $0x350] sm:$0xff]  ;;  %2398 = vmatpush.msra.mxu2 %v729_v40 }
 0x1f8   :  { %v473_v29 = vld [vmem:[#allocation5 + $0xb50] sm:$0xff]  ;;  %2340 = vmatpush.msra.mxu0 %v217_v54 }
 0x1f9   :  { %v985_v7 = vld [vmem:[#allocation5 + $0x1b50] sm:$0xff]  ;;  %2369 = vmatpush.msra.mxu1 %v473_v29  ;;  %2240 = vmatmul.f32.gmra.mxu0 %v6697_v14 }
 0x1fa   :  { %v713_v5 = vld [vmem:[#allocation5 + $0x12d0] sm:$0xff]  ;;  %2427 = vmatpush.msra.mxu3 %v985_v7  ;;  %2269 = vmatmul.f32.gmra.mxu1 %v6700_v9 }
 0x1fb   :  { %v201_v6 = vld [vmem:[#allocation5 + $0x2d0] sm:$0xff]  ;;  %2399 = vmatpush.msra.mxu2 %v713_v5  ;;  %2327 = vmatmul.f32.gmra.mxu3 %v6706_v63 }
 0x1fc   :  { %v457_v17 = vld [vmem:[#allocation5 + $0xad0] sm:$0xff]  ;;  %2341 = vmatpush.msra.mxu0 %v201_v6  ;;  %2298 = vmatmul.f32.gmra.mxu2 %v6703_v21 }
 0x1fd   :  { %v969_v13 = vld [vmem:[#allocation5 + $0x1ad0] sm:$0xff]  ;;  %2370 = vmatpush.msra.mxu1 %v457_v17 }
 0x1fe   :  { %v697_v27 = vld [vmem:[#allocation5 + $0x1250] sm:$0xff]  ;;  %2428 = vmatpush.msra.mxu3 %v969_v13 }
 0x1ff   :  { %v185_v26 = vld [vmem:[#allocation5 + $0x250] sm:$0xff]  ;;  %2400 = vmatpush.msra.mxu2 %v697_v27  ;;  %v6757_v27 = vpop.f32.mrf.mxu2 }
 0x200   :  { %v441_v28 = vld [vmem:[#allocation5 + $0xa50] sm:$0xff]  ;;  %2342 = vmatpush.msra.mxu0 %v185_v26  ;;  %8643 = vst [vmem:[#allocation89_spill] sm:$0xff] %v6757_v27  ;;  %v826_v27 = vld [vmem:[#allocation5 + $0x1658] sm:$0xff] }
 0x201   :  { %v953_v57 = vld [vmem:[#allocation5 + $0x1a50] sm:$0xff]  ;;  %2371 = vmatpush.msra.mxu1 %v441_v28 }
 0x202   :  { %2429 = vmatpush.msra.mxu3 %v953_v57  ;;  %v681_v40 = vld [vmem:[#allocation5 + $0x11d0] sm:$0xff]  ;;  %v6759_v57 = vpop.f32.mrf.mxu3 }
 0x203   :  { %v169_v54 = vld [vmem:[#allocation5 + $0x1d0] sm:$0xff]  ;;  %2401 = vmatpush.msra.mxu2 %v681_v40  ;;  %8644 = vst [vmem:[#allocation90_spill] sm:$0xff] %v6759_v57  ;;  %v6761_v40 = vpop.f32.mrf.mxu0  ;;  %v314_v57 = vld [vmem:[#allocation5 + $0x658] sm:$0xff] }
 0x204   :  { %v425_v29 = vld [vmem:[#allocation5 + $0x9d0] sm:$0xff]  ;;  %2343 = vmatpush.msra.mxu0 %v169_v54  ;;  %8645 = vst [vmem:[#allocation91_spill] sm:$0xff] %v6761_v40  ;;  %v6763_v54 = vpop.f32.mrf.mxu1  ;;  %v1098_v40 = vld [vmem:[#allocation5 + $0x1ed8] sm:$0xff] }
 0x205   :  { %v937_v7 = vld [vmem:[#allocation5 + $0x19d0] sm:$0xff]  ;;  %2372 = vmatpush.msra.mxu1 %v425_v29  ;;  %8646 = vst [vmem:[#allocation92_spill] sm:$0xff] %v6763_v54  ;;  %v586_v54 = vld [vmem:[#allocation5 + $0xed8] sm:$0xff] }
 0x206   :  { %v665_v5 = vld [vmem:[#allocation5 + $0x1150] sm:$0xff]  ;;  %2430 = vmatpush.msra.mxu3 %v937_v7 }
 0x207   :  { %v153_v6 = vld [vmem:[#allocation5 + $0x150] sm:$0xff]  ;;  %2402 = vmatpush.msra.mxu2 %v665_v5  ;;  %v874_v5 = vld [vmem:[#allocation5 + $0x17d8] sm:$0xff] }
 0x208   :  { %v409_v17 = vld [vmem:[#allocation5 + $0x950] sm:$0xff]  ;;  %2344 = vmatpush.msra.mxu0 %v153_v6  ;;  %v362_v6 = vld [vmem:[#allocation5 + $0x7d8] sm:$0xff] }
 0x209   :  { %v921_v26 = vld [vmem:[#allocation5 + $0x1950] sm:$0xff]  ;;  %2373 = vmatpush.msra.mxu1 %v409_v17  ;;  %v618_v17 = vld [vmem:[#allocation5 + $0xfd8] sm:$0xff] }
 0x20a   :  { %v649_v13 = vld [vmem:[#allocation5 + $0x10d0] sm:$0xff]  ;;  %2431 = vmatpush.msra.mxu3 %v921_v26  ;;  %v1130_v26 = vld [vmem:[#allocation5 + $0x1fd8] sm:$0xff] }
 0x20b   :  { %v137_v28 = vld [vmem:[#allocation5 + $0xd0] sm:$0xff]  ;;  %2403 = vmatpush.msra.mxu2 %v649_v13  ;;  %v858_v13 = vld [vmem:[#allocation5 + $0x1758] sm:$0xff] }
 0x20c   :  { %v393_v8 = vld [vmem:[#allocation5 + $0x8d0] sm:$0xff]  ;;  %2345 = vmatpush.msra.mxu0 %v137_v28  ;;  %v346_v28 = vld [vmem:[#allocation5 + $0x758] sm:$0xff] }
 0x20d   :  { %v905_v1 = vld [vmem:[#allocation5 + $0x18d0] sm:$0xff]  ;;  %2374 = vmatpush.msra.mxu1 %v393_v8  ;;  %v842_v8 = vld [vmem:[#allocation5 + $0x16d8] sm:$0xff] }
 0x20e   :  { %v633_v20 = vld [vmem:[#allocation5 + $0x1050] sm:$0xff]  ;;  %2432 = vmatpush.msra.mxu3 %v905_v1  ;;  %v6769_v1 = vpop.f32.mrf.mxu2 }
 0x20f   :  { %v121_v62 = vld [vmem:[#allocation5 + $0x50] sm:$0xff]  ;;  %2404 = vmatpush.msra.mxu2 %v633_v20  ;;  %v602_v20 = vld [vmem:[#allocation5 + $0xf58] sm:$0xff]  ;;  %8647 = vst [vmem:[#allocation93_spill] sm:$0xff] %v6769_v1 }
 0x210   :  { %v377_v29 = vld [vmem:[#allocation5 + $0x850] sm:$0xff]  ;;  %2346 = vmatpush.msra.mxu0 %v121_v62  ;;  %2405 = vmatmul.f32.vlgmr.msra.gmra.mxu2 %v6643_v48  ;;  %v1114_v62 = vld [vmem:[#allocation5 + $0x1f58] sm:$0xff] }
 0x211   :  { %v889_v7 = vld [vmem:[#allocation5 + $0x1850] sm:$0xff]  ;;  %2375 = vmatpush.msra.mxu1 %v377_v29  ;;  %2347 = vmatmul.f32.vlgmr.msra.gmra.mxu0 %v6637_v2  ;;  %v330_v29 = vld [vmem:[#allocation5 + $0x6d8] sm:$0xff] }
 0x212   :  { %2433 = vmatpush.msra.mxu3 %v889_v7  ;;  %2376 = vmatmul.f32.vlgmr.msra.gmra.mxu1 %v6640_v24  ;;  %v6771_v7 = vpop.f32.mrf.mxu3  ;;  %v522_v1 = vld [vmem:[#allocation5 + $0xcd8] sm:$0xff] }
 0x213   :  { %2434 = vmatmul.f32.vlgmr.msra.gmra.mxu3 %v6646_v59  ;;  %2505 = vmatpush.msrb.mxu2 %v874_v5  ;;  %8648 = vst [vmem:[#allocation94_spill] sm:$0xff] %v6771_v7  ;;  %v6773_v5 = vpop.f32.mrf.mxu0  ;;  %v1034_v7 = vld [vmem:[#allocation5 + $0x1cd8] sm:$0xff] }
 0x214   :  { %2447 = vmatpush.msrb.mxu0 %v362_v6  ;;  %2476 = vmatpush.msrb.mxu1 %v618_v17  ;;  %8649 = vst [vmem:[#allocation95_spill] sm:$0xff] %v6773_v5  ;;  %v6775_v6 = vpop.f32.mrf.mxu1  ;;  %v570_v17 = vld [vmem:[#allocation5 + $0xe58] sm:$0xff] }
 0x215   :  { %2534 = vmatpush.msrb.mxu3 %v1130_v26  ;;  %2506 = vmatpush.msrb.mxu2 %v858_v13  ;;  %8650 = vst [vmem:[#allocation96_spill] sm:$0xff] %v6775_v6  ;;  %v1082_v26 = vld [vmem:[#allocation5 + $0x1e58] sm:$0xff] }
 0x216   :  { %2448 = vmatpush.msrb.mxu0 %v346_v28  ;;  %2477 = vmatpush.msrb.mxu1 %v602_v20  ;;  %v810_v13 = vld [vmem:[#allocation5 + $0x15d8] sm:$0xff] }
 0x217   :  { %2535 = vmatpush.msrb.mxu3 %v1114_v62  ;;  %2507 = vmatpush.msrb.mxu2 %v842_v8  ;;  %v298_v28 = vld [vmem:[#allocation5 + $0x5d8] sm:$0xff] }
 0x218   :  { %2449 = vmatpush.msrb.mxu0 %v330_v29  ;;  %2478 = vmatpush.msrb.mxu1 %v586_v54  ;;  %v554_v20 = vld [vmem:[#allocation5 + $0xdd8] sm:$0xff] }
 0x219   :  { %2536 = vmatpush.msrb.mxu3 %v1098_v40  ;;  %2508 = vmatpush.msrb.mxu2 %v826_v27  ;;  %v1066_v62 = vld [vmem:[#allocation5 + $0x1dd8] sm:$0xff]  ;;  %v6781_v40 = vpop.f32.mrf.mxu2 }
 0x21a   :  { %2450 = vmatpush.msrb.mxu0 %v314_v57  ;;  %2479 = vmatpush.msrb.mxu1 %v570_v17  ;;  %v794_v8 = vld [vmem:[#allocation5 + $0x1558] sm:$0xff]  ;;  %8651 = vst [vmem:[#allocation97_spill] sm:$0xff] %v6781_v40 }
 0x21b   :  { %2537 = vmatpush.msrb.mxu3 %v1082_v26  ;;  %2350 = vmatmul.f32.gmra.mxu0 %v6657_v25  ;;  %v282_v29 = vld [vmem:[#allocation5 + $0x558] sm:$0xff]  ;;  %v6783_v26 = vpop.f32.mrf.mxu3 }
 0x21c   :  { %2379 = vmatmul.f32.gmra.mxu1 %v6660_v50  ;;  %2408 = vmatmul.f32.gmra.mxu2 %v6663_v42  ;;  %v538_v27 = vld [vmem:[#allocation5 + $0xd58] sm:$0xff]  ;;  %8652 = vst [vmem:[#allocation98_spill] sm:$0xff] %v6783_v26 }
 0x21d   :  { %2437 = vmatmul.f32.gmra.mxu3 %v6666_v43  ;;  %2509 = vmatpush.msrb.mxu2 %v810_v13  ;;  %v1050_v57 = vld [vmem:[#allocation5 + $0x1d58] sm:$0xff]  ;;  %v6785_v13 = vpop.f32.mrf.mxu0 }
 0x21e   :  { %2451 = vmatpush.msrb.mxu0 %v298_v28  ;;  %2480 = vmatpush.msrb.mxu1 %v554_v20  ;;  %v778_v54 = vld [vmem:[#allocation5 + $0x14d8] sm:$0xff]  ;;  %8653 = vst [vmem:[#allocation99_spill] sm:$0xff] %v6785_v13  ;;  %v6787_v28 = vpop.f32.mrf.mxu1 }
 0x21f   :  { %2538 = vmatpush.msrb.mxu3 %v1066_v62  ;;  %v266_v17 = vld [vmem:[#allocation5 + $0x4d8] sm:$0xff]  ;;  %2510 = vmatpush.msrb.mxu2 %v794_v8  ;;  %8654 = vst [vmem:[#allocation100_spill] sm:$0xff] %v6787_v28 }
 0x220   :  { %2452 = vmatpush.msrb.mxu0 %v282_v29  ;;  %2481 = vmatpush.msrb.mxu1 %v538_v27  ;;  %v762_v6 = vld [vmem:[#allocation5 + $0x1458] sm:$0xff] }
 0x221   :  { %2539 = vmatpush.msrb.mxu3 %v1050_v57  ;;  %v250_v5 = vld [vmem:[#allocation5 + $0x458] sm:$0xff]  ;;  %2511 = vmatpush.msrb.mxu2 %v778_v54 }
 0x222   :  { %2453 = vmatpush.msrb.mxu0 %v266_v17  ;;  %v506_v20 = vld [vmem:[#allocation5 + $0xc58] sm:$0xff]  ;;  %2482 = vmatpush.msrb.mxu1 %v522_v1 }
 0x223   :  { %v1018_v62 = vld [vmem:[#allocation5 + $0x1c58] sm:$0xff]  ;;  %2540 = vmatpush.msrb.mxu3 %v1034_v7  ;;  %2512 = vmatpush.msrb.mxu2 %v762_v6 }
 0x224   :  { %2454 = vmatpush.msrb.mxu0 %v250_v5  ;;  %2483 = vmatpush.msrb.mxu1 %v506_v20  ;;  %v746_v8 = vld [vmem:[#allocation5 + $0x13d8] sm:$0xff]  ;;  %v6793_v5 = vpop.f32.mrf.mxu2 }
 0x225   :  { %2541 = vmatpush.msrb.mxu3 %v1018_v62  ;;  %v234_v29 = vld [vmem:[#allocation5 + $0x3d8] sm:$0xff]  ;;  %2353 = vmatmul.f32.gmra.mxu0 %v6677_v18  ;;  %8655 = vst [vmem:[#allocation101_spill] sm:$0xff] %v6793_v5  ;;  %v6795_v62 = vpop.f32.mrf.mxu3 }
 0x226   :  { %2382 = vmatmul.f32.gmra.mxu1 %v6680_v11  ;;  %v490_v27 = vld [vmem:[#allocation5 + $0xbd8] sm:$0xff]  ;;  %2411 = vmatmul.f32.gmra.mxu2 %v6683_v37  ;;  %8656 = vst [vmem:[#allocation102_spill] sm:$0xff] %v6795_v62 }
 0x227   :  { %v1002_v57 = vld [vmem:[#allocation5 + $0x1bd8] sm:$0xff]  ;;  %2440 = vmatmul.f32.gmra.mxu3 %v6686_v0  ;;  %2513 = vmatpush.msrb.mxu2 %v746_v8  ;;  %v6797_v8 = vpop.f32.mrf.mxu0 }
 0x228   :  { %v730_v54 = vld [vmem:[#allocation5 + $0x1358] sm:$0xff]  ;;  %2455 = vmatpush.msrb.mxu0 %v234_v29  ;;  %2484 = vmatpush.msrb.mxu1 %v490_v27  ;;  %8657 = vst [vmem:[#allocation103_spill] sm:$0xff] %v6797_v8  ;;  %v6799_v29 = vpop.f32.mrf.mxu1 }
 0x229   :  { %v218_v17 = vld [vmem:[#allocation5 + $0x358] sm:$0xff]  ;;  %2542 = vmatpush.msrb.mxu3 %v1002_v57  ;;  %2514 = vmatpush.msrb.mxu2 %v730_v54  ;;  %8658 = vst [vmem:[#allocation104_spill] sm:$0xff] %v6799_v29 }
 0x22a   :  { %v474_v1 = vld [vmem:[#allocation5 + $0xb58] sm:$0xff]  ;;  %2456 = vmatpush.msrb.mxu0 %v218_v17 }
 0x22b   :  { %v986_v7 = vld [vmem:[#allocation5 + $0x1b58] sm:$0xff]  ;;  %2485 = vmatpush.msrb.mxu1 %v474_v1 }
 0x22c   :  { %v714_v6 = vld [vmem:[#allocation5 + $0x12d8] sm:$0xff]  ;;  %2543 = vmatpush.msrb.mxu3 %v986_v7 }
 0x22d   :  { %v202_v20 = vld [vmem:[#allocation5 + $0x2d8] sm:$0xff]  ;;  %2515 = vmatpush.msrb.mxu2 %v714_v6  ;;  %2356 = vmatmul.f32.gmra.mxu0 %v6697_v14 }
 0x22e   :  { %v458_v26 = vld [vmem:[#allocation5 + $0xad8] sm:$0xff]  ;;  %2457 = vmatpush.msrb.mxu0 %v202_v20  ;;  %2385 = vmatmul.f32.gmra.mxu1 %v6700_v9 }
 0x22f   :  { %v970_v28 = vld [vmem:[#allocation5 + $0x1ad8] sm:$0xff]  ;;  %2486 = vmatpush.msrb.mxu1 %v458_v26  ;;  %2414 = vmatmul.f32.gmra.mxu2 %v6703_v21 }
 0x230   :  { %v698_v13 = vld [vmem:[#allocation5 + $0x1258] sm:$0xff]  ;;  %2544 = vmatpush.msrb.mxu3 %v970_v28 }
 0x231   :  { %v186_v40 = vld [vmem:[#allocation5 + $0x258] sm:$0xff]  ;;  %2516 = vmatpush.msrb.mxu2 %v698_v13  ;;  %2443 = vmatmul.f32.gmra.mxu3 %v6706_v63  ;;  %v6805_v13 = vpop.f32.mrf.mxu2 }
 0x232   :  { %v442_v27 = vld [vmem:[#allocation5 + $0xa58] sm:$0xff]  ;;  %2458 = vmatpush.msrb.mxu0 %v186_v40  ;;  %8659 = vst [vmem:[#allocation105_spill] sm:$0xff] %v6805_v13  ;;  %v636_v13 = vld [vmem:[#allocation5 + $0x1068] sm:$0xff] }
 0x233   :  { %v954_v57 = vld [vmem:[#allocation5 + $0x1a58] sm:$0xff]  ;;  %2487 = vmatpush.msrb.mxu1 %v442_v27 }
 0x234   :  { %2545 = vmatpush.msrb.mxu3 %v954_v57  ;;  %v682_v54 = vld [vmem:[#allocation5 + $0x11d8] sm:$0xff]  ;;  %v6807_v57 = vpop.f32.mrf.mxu3 }
 0x235   :  { %v170_v17 = vld [vmem:[#allocation5 + $0x1d8] sm:$0xff]  ;;  %2517 = vmatpush.msrb.mxu2 %v682_v54  ;;  %8660 = vst [vmem:[#allocation106_spill] sm:$0xff] %v6807_v57  ;;  %v6809_v54 = vpop.f32.mrf.mxu0  ;;  %v124_v57 = vld [vmem:[#allocation5 + $0x68] sm:$0xff] }
 0x236   :  { %v426_v1 = vld [vmem:[#allocation5 + $0x9d8] sm:$0xff]  ;;  %2459 = vmatpush.msrb.mxu0 %v170_v17  ;;  %8661 = vst [vmem:[#allocation107_spill] sm:$0xff] %v6809_v54  ;;  %v6811_v17 = vpop.f32.mrf.mxu1  ;;  %v908_v54 = vld [vmem:[#allocation5 + $0x18e8] sm:$0xff] }
 0x237   :  { %v938_v7 = vld [vmem:[#allocation5 + $0x19d8] sm:$0xff]  ;;  %2488 = vmatpush.msrb.mxu1 %v426_v1  ;;  %8662 = vst [vmem:[#allocation108_spill] sm:$0xff] %v6811_v17  ;;  %v188_v17 = vld [vmem:[#allocation5 + $0x268] sm:$0xff] }
 0x238   :  { %v666_v6 = vld [vmem:[#allocation5 + $0x1158] sm:$0xff]  ;;  %2546 = vmatpush.msrb.mxu3 %v938_v7 }
 0x239   :  { %v154_v20 = vld [vmem:[#allocation5 + $0x158] sm:$0xff]  ;;  %2518 = vmatpush.msrb.mxu2 %v666_v6  ;;  %v875_v6 = vld [vmem:[#allocation5 + $0x17e0] sm:$0xff] }
 0x23a   :  { %v410_v26 = vld [vmem:[#allocation5 + $0x958] sm:$0xff]  ;;  %2460 = vmatpush.msrb.mxu0 %v154_v20  ;;  %v363_v20 = vld [vmem:[#allocation5 + $0x7e0] sm:$0xff] }
 0x23b   :  { %v922_v40 = vld [vmem:[#allocation5 + $0x1958] sm:$0xff]  ;;  %2489 = vmatpush.msrb.mxu1 %v410_v26  ;;  %v619_v26 = vld [vmem:[#allocation5 + $0xfe0] sm:$0xff] }
 0x23c   :  { %v650_v28 = vld [vmem:[#allocation5 + $0x10d8] sm:$0xff]  ;;  %2547 = vmatpush.msrb.mxu3 %v922_v40  ;;  %v1131_v40 = vld [vmem:[#allocation5 + $0x1fe0] sm:$0xff] }
 0x23d   :  { %v138_v27 = vld [vmem:[#allocation5 + $0xd8] sm:$0xff]  ;;  %2519 = vmatpush.msrb.mxu2 %v650_v28  ;;  %v859_v28 = vld [vmem:[#allocation5 + $0x1760] sm:$0xff] }
 0x23e   :  { %v394_v29 = vld [vmem:[#allocation5 + $0x8d8] sm:$0xff]  ;;  %2461 = vmatpush.msrb.mxu0 %v138_v27  ;;  %v347_v27 = vld [vmem:[#allocation5 + $0x760] sm:$0xff] }
 0x23f   :  { %v906_v8 = vld [vmem:[#allocation5 + $0x18d8] sm:$0xff]  ;;  %2490 = vmatpush.msrb.mxu1 %v394_v29  ;;  %v843_v29 = vld [vmem:[#allocation5 + $0x16e0] sm:$0xff] }
 0x240   :  { %v634_v5 = vld [vmem:[#allocation5 + $0x1058] sm:$0xff]  ;;  %2548 = vmatpush.msrb.mxu3 %v906_v8  ;;  %v6817_v8 = vpop.f32.mrf.mxu2 }
 0x241   :  { %v122_v62 = vld [vmem:[#allocation5 + $0x58] sm:$0xff]  ;;  %2520 = vmatpush.msrb.mxu2 %v634_v5  ;;  %v603_v5 = vld [vmem:[#allocation5 + $0xf60] sm:$0xff]  ;;  %8663 = vst [vmem:[#allocation109_spill] sm:$0xff] %v6817_v8  ;;  %v700_v8 = vld [vmem:[#allocation5 + $0x1268] sm:$0xff] }
 0x242   :  { %v378_v1 = vld [vmem:[#allocation5 + $0x858] sm:$0xff]  ;;  %2462 = vmatpush.msrb.mxu0 %v122_v62  ;;  %2521 = vmatmul.f32.vlgmr.msrb.gmra.mxu2 %v6643_v48  ;;  %v1115_v62 = vld [vmem:[#allocation5 + $0x1f60] sm:$0xff] }
 0x243   :  { %v890_v7 = vld [vmem:[#allocation5 + $0x1858] sm:$0xff]  ;;  %2491 = vmatpush.msrb.mxu1 %v378_v1  ;;  %2463 = vmatmul.f32.vlgmr.msrb.gmra.mxu0 %v6637_v2  ;;  %v331_v2 = vld [vmem:[#allocation5 + $0x6e0] sm:$0xff]  ;;  %v6819_v1 = vpop.f32.mrf.mxu3 }
 0x244   :  { %2549 = vmatpush.msrb.mxu3 %v890_v7  ;;  %2492 = vmatmul.f32.vlgmr.msrb.gmra.mxu1 %v6640_v24  ;;  %8664 = vst [vmem:[#allocation110_spill] sm:$0xff] %v6819_v1  ;;  %v587_v24 = vld [vmem:[#allocation5 + $0xee0] sm:$0xff]  ;;  %v396_v1 = vld [vmem:[#allocation5 + $0x8e8] sm:$0xff] }
 0x245   :  { %2550 = vmatmul.f32.vlgmr.msrb.gmra.mxu3 %v6646_v59  ;;  %2621 = vmatpush.msra.mxu2 %v875_v6  ;;  %v1099_v48 = vld [vmem:[#allocation5 + $0x1ee0] sm:$0xff]  ;;  %v6821_v6 = vpop.f32.mrf.mxu0 }
 0x246   :  { %2563 = vmatpush.msra.mxu0 %v363_v20  ;;  %2592 = vmatpush.msra.mxu1 %v619_v26  ;;  %v827_v59 = vld [vmem:[#allocation5 + $0x1660] sm:$0xff]  ;;  %8665 = vst [vmem:[#allocation111_spill] sm:$0xff] %v6821_v6  ;;  %v6823_v20 = vpop.f32.mrf.mxu1  ;;  %v972_v6 = vld [vmem:[#allocation5 + $0x1ae8] sm:$0xff] }
 0x247   :  { %2650 = vmatpush.msra.mxu3 %v1131_v40  ;;  %2622 = vmatpush.msra.mxu2 %v859_v28  ;;  %v315_v7 = vld [vmem:[#allocation5 + $0x660] sm:$0xff]  ;;  %8666 = vst [vmem:[#allocation112_spill] sm:$0xff] %v6823_v20  ;;  %v764_v20 = vld [vmem:[#allocation5 + $0x1468] sm:$0xff] }
 0x248   :  { %2564 = vmatpush.msra.mxu0 %v347_v27  ;;  %2593 = vmatpush.msra.mxu1 %v603_v5  ;;  %v571_v26 = vld [vmem:[#allocation5 + $0xe60] sm:$0xff] }
 0x249   :  { %2651 = vmatpush.msra.mxu3 %v1115_v62  ;;  %2623 = vmatpush.msra.mxu2 %v843_v29  ;;  %v1083_v40 = vld [vmem:[#allocation5 + $0x1e60] sm:$0xff] }
 0x24a   :  { %2565 = vmatpush.msra.mxu0 %v331_v2  ;;  %2594 = vmatpush.msra.mxu1 %v587_v24  ;;  %v811_v28 = vld [vmem:[#allocation5 + $0x15e0] sm:$0xff] }
 0x24b   :  { %2652 = vmatpush.msra.mxu3 %v1099_v48  ;;  %2624 = vmatpush.msra.mxu2 %v827_v59  ;;  %v299_v27 = vld [vmem:[#allocation5 + $0x5e0] sm:$0xff]  ;;  %v6829_v59 = vpop.f32.mrf.mxu2 }
 0x24c   :  { %2566 = vmatpush.msra.mxu0 %v315_v7  ;;  %2595 = vmatpush.msra.mxu1 %v571_v26  ;;  %v555_v5 = vld [vmem:[#allocation5 + $0xde0] sm:$0xff]  ;;  %8667 = vst [vmem:[#allocation113_spill] sm:$0xff] %v6829_v59  ;;  %v6831_v26 = vpop.f32.mrf.mxu3  ;;  %v524_v59 = vld [vmem:[#allocation5 + $0xce8] sm:$0xff] }
 0x24d   :  { %2653 = vmatpush.msra.mxu3 %v1083_v40  ;;  %2466 = vmatmul.f32.gmra.mxu0 %v6657_v25  ;;  %v1067_v62 = vld [vmem:[#allocation5 + $0x1de0] sm:$0xff]  ;;  %8668 = vst [vmem:[#allocation114_spill] sm:$0xff] %v6831_v26  ;;  %v252_v26 = vld [vmem:[#allocation5 + $0x468] sm:$0xff] }
 0x24e   :  { %2495 = vmatmul.f32.gmra.mxu1 %v6660_v50  ;;  %2524 = vmatmul.f32.gmra.mxu2 %v6663_v42  ;;  %v795_v29 = vld [vmem:[#allocation5 + $0x1560] sm:$0xff] }
 0x24f   :  { %2553 = vmatmul.f32.gmra.mxu3 %v6666_v43  ;;  %v283_v2 = vld [vmem:[#allocation5 + $0x560] sm:$0xff]  ;;  %2625 = vmatpush.msra.mxu2 %v811_v28  ;;  %v6833_v28 = vpop.f32.mrf.mxu0 }
 0x250   :  { %2567 = vmatpush.msra.mxu0 %v299_v27  ;;  %v539_v24 = vld [vmem:[#allocation5 + $0xd60] sm:$0xff]  ;;  %2596 = vmatpush.msra.mxu1 %v555_v5  ;;  %8669 = vst [vmem:[#allocation115_spill] sm:$0xff] %v6833_v28  ;;  %v6835_v27 = vpop.f32.mrf.mxu1 }
 0x251   :  { %v1051_v48 = vld [vmem:[#allocation5 + $0x1d60] sm:$0xff]  ;;  %2654 = vmatpush.msra.mxu3 %v1067_v62  ;;  %2626 = vmatpush.msra.mxu2 %v795_v29  ;;  %8670 = vst [vmem:[#allocation116_spill] sm:$0xff] %v6835_v27  ;;  %v316_v27 = vld [vmem:[#allocation5 + $0x668] sm:$0xff] }
 0x252   :  { %v779_v7 = vld [vmem:[#allocation5 + $0x14e0] sm:$0xff]  ;;  %2568 = vmatpush.msra.mxu0 %v283_v2  ;;  %2597 = vmatpush.msra.mxu1 %v539_v24 }
 0x253   :  { %v267_v25 = vld [vmem:[#allocation5 + $0x4e0] sm:$0xff]  ;;  %2655 = vmatpush.msra.mxu3 %v1051_v48  ;;  %2627 = vmatpush.msra.mxu2 %v779_v7 }
 0x254   :  { %v523_v50 = vld [vmem:[#allocation5 + $0xce0] sm:$0xff]  ;;  %2569 = vmatpush.msra.mxu0 %v267_v25 }
 0x255   :  { %v1035_v42 = vld [vmem:[#allocation5 + $0x1ce0] sm:$0xff]  ;;  %2598 = vmatpush.msra.mxu1 %v523_v50  ;;  %2469 = vmatmul.f32.gmra.mxu0 %v6677_v18 }
 0x256   :  { %v763_v43 = vld [vmem:[#allocation5 + $0x1460] sm:$0xff]  ;;  %2656 = vmatpush.msra.mxu3 %v1035_v42  ;;  %2498 = vmatmul.f32.gmra.mxu1 %v6680_v11 }
 0x257   :  { %v251_v40 = vld [vmem:[#allocation5 + $0x460] sm:$0xff]  ;;  %2628 = vmatpush.msra.mxu2 %v763_v43  ;;  %2556 = vmatmul.f32.gmra.mxu3 %v6686_v0  ;;  %v6841_v43 = vpop.f32.mrf.mxu2 }
 0x258   :  { %v507_v5 = vld [vmem:[#allocation5 + $0xc60] sm:$0xff]  ;;  %2570 = vmatpush.msra.mxu0 %v251_v40  ;;  %2527 = vmatmul.f32.gmra.mxu2 %v6683_v37  ;;  %8671 = vst [vmem:[#allocation117_spill] sm:$0xff] %v6841_v43  ;;  %v828_v43 = vld [vmem:[#allocation5 + $0x1668] sm:$0xff] }
 0x259   :  { %v1019_v62 = vld [vmem:[#allocation5 + $0x1c60] sm:$0xff]  ;;  %2599 = vmatpush.msra.mxu1 %v507_v5  ;;  %v6843_v5 = vpop.f32.mrf.mxu3 }
 0x25a   :  { %2657 = vmatpush.msra.mxu3 %v1019_v62  ;;  %v747_v29 = vld [vmem:[#allocation5 + $0x13e0] sm:$0xff]  ;;  %8672 = vst [vmem:[#allocation118_spill] sm:$0xff] %v6843_v5  ;;  %v268_v5 = vld [vmem:[#allocation5 + $0x4e8] sm:$0xff] }
 0x25b   :  { %v235_v2 = vld [vmem:[#allocation5 + $0x3e0] sm:$0xff]  ;;  %2629 = vmatpush.msra.mxu2 %v747_v29  ;;  %v6845_v29 = vpop.f32.mrf.mxu0 }
 0x25c   :  { %v491_v24 = vld [vmem:[#allocation5 + $0xbe0] sm:$0xff]  ;;  %2571 = vmatpush.msra.mxu0 %v235_v2  ;;  %8673 = vst [vmem:[#allocation119_spill] sm:$0xff] %v6845_v29  ;;  %v6847_v2 = vpop.f32.mrf.mxu1  ;;  %v1100_v29 = vld [vmem:[#allocation5 + $0x1ee8] sm:$0xff] }
 0x25d   :  { %v1003_v48 = vld [vmem:[#allocation5 + $0x1be0] sm:$0xff]  ;;  %2600 = vmatpush.msra.mxu1 %v491_v24  ;;  %8674 = vst [vmem:[#allocation120_spill] sm:$0xff] %v6847_v2  ;;  %2472 = vmatmul.f32.gmra.mxu0 %v6697_v14 }
 0x25e   :  { %v731_v7 = vld [vmem:[#allocation5 + $0x1360] sm:$0xff]  ;;  %2658 = vmatpush.msra.mxu3 %v1003_v48  ;;  %2501 = vmatmul.f32.gmra.mxu1 %v6700_v9 }
 0x25f   :  { %v219_v25 = vld [vmem:[#allocation5 + $0x360] sm:$0xff]  ;;  %2630 = vmatpush.msra.mxu2 %v731_v7  ;;  %2559 = vmatmul.f32.gmra.mxu3 %v6706_v63 }
 0x260   :  { %v475_v50 = vld [vmem:[#allocation5 + $0xb60] sm:$0xff]  ;;  %2572 = vmatpush.msra.mxu0 %v219_v25  ;;  %2530 = vmatmul.f32.gmra.mxu2 %v6703_v21 }
 0x261   :  { %v987_v42 = vld [vmem:[#allocation5 + $0x1b60] sm:$0xff]  ;;  %2601 = vmatpush.msra.mxu1 %v475_v50 }
 0x262   :  { %v715_v40 = vld [vmem:[#allocation5 + $0x12e0] sm:$0xff]  ;;  %2659 = vmatpush.msra.mxu3 %v987_v42 }
 0x263   :  { %v203_v18 = vld [vmem:[#allocation5 + $0x2e0] sm:$0xff]  ;;  %2631 = vmatpush.msra.mxu2 %v715_v40 }
 0x264   :  { %v459_v11 = vld [vmem:[#allocation5 + $0xae0] sm:$0xff]  ;;  %2573 = vmatpush.msra.mxu0 %v203_v18 }
 0x265   :  { %v971_v37 = vld [vmem:[#allocation5 + $0x1ae0] sm:$0xff]  ;;  %2602 = vmatpush.msra.mxu1 %v459_v11 }
 0x266   :  { %v699_v0 = vld [vmem:[#allocation5 + $0x1260] sm:$0xff]  ;;  %2660 = vmatpush.msra.mxu3 %v971_v37 }
 0x267   :  { %v187_v62 = vld [vmem:[#allocation5 + $0x260] sm:$0xff]  ;;  %2632 = vmatpush.msra.mxu2 %v699_v0  ;;  %v6853_v0 = vpop.f32.mrf.mxu2 }
 0x268   :  { %v443_v24 = vld [vmem:[#allocation5 + $0xa60] sm:$0xff]  ;;  %2574 = vmatpush.msra.mxu0 %v187_v62  ;;  %8675 = vst [vmem:[#allocation121_spill] sm:$0xff] %v6853_v0  ;;  %v332_v0 = vld [vmem:[#allocation5 + $0x6e8] sm:$0xff] }
 0x269   :  { %v955_v48 = vld [vmem:[#allocation5 + $0x1a60] sm:$0xff]  ;;  %2603 = vmatpush.msra.mxu1 %v443_v24  ;;  %v6855_v24 = vpop.f32.mrf.mxu3 }
 0x26a   :  { %2661 = vmatpush.msra.mxu3 %v955_v48  ;;  %v683_v7 = vld [vmem:[#allocation5 + $0x11e0] sm:$0xff]  ;;  %8676 = vst [vmem:[#allocation122_spill] sm:$0xff] %v6855_v24  ;;  %v588_v24 = vld [vmem:[#allocation5 + $0xee8] sm:$0xff] }
 0x26b   :  { %v171_v25 = vld [vmem:[#allocation5 + $0x1e0] sm:$0xff]  ;;  %2633 = vmatpush.msra.mxu2 %v683_v7  ;;  %v6857_v7 = vpop.f32.mrf.mxu0 }
 0x26c   :  { %v427_v50 = vld [vmem:[#allocation5 + $0x9e0] sm:$0xff]  ;;  %2575 = vmatpush.msra.mxu0 %v171_v25  ;;  %8677 = vst [vmem:[#allocation123_spill] sm:$0xff] %v6857_v7  ;;  %v6859_v25 = vpop.f32.mrf.mxu1  ;;  %v844_v7 = vld [vmem:[#allocation5 + $0x16e8] sm:$0xff] }
 0x26d   :  { %v939_v42 = vld [vmem:[#allocation5 + $0x19e0] sm:$0xff]  ;;  %2604 = vmatpush.msra.mxu1 %v427_v50  ;;  %8678 = vst [vmem:[#allocation124_spill] sm:$0xff] %v6859_v25  ;;  %v6867_v25 = vld [vmem:[#allocation2 + $0x10] sm:$0xff] }
 0x26e   :  { %v667_v40 = vld [vmem:[#allocation5 + $0x1160] sm:$0xff]  ;;  %2662 = vmatpush.msra.mxu3 %v939_v42 }
 0x26f   :  { %v155_v18 = vld [vmem:[#allocation5 + $0x160] sm:$0xff]  ;;  %2634 = vmatpush.msra.mxu2 %v667_v40  ;;  %v876_v40 = vld [vmem:[#allocation5 + $0x17e8] sm:$0xff] }
 0x270   :  { %v411_v11 = vld [vmem:[#allocation5 + $0x960] sm:$0xff]  ;;  %2576 = vmatpush.msra.mxu0 %v155_v18  ;;  %v364_v18 = vld [vmem:[#allocation5 + $0x7e8] sm:$0xff] }
 0x271   :  { %v923_v37 = vld [vmem:[#allocation5 + $0x1960] sm:$0xff]  ;;  %2605 = vmatpush.msra.mxu1 %v411_v11  ;;  %v6875_v2 = vpop.f32.mrf.mxu3 }
 0x272   :  { %v651_v62 = vld [vmem:[#allocation5 + $0x10e0] sm:$0xff]  ;;  %2663 = vmatpush.msra.mxu3 %v923_v37  ;;  %v6864_v37 = vld [vmem:[#allocation2 + $0x8] sm:$0xff]  ;;  %8680 = vst [vmem:[#allocation126_spill] sm:$0xff] %v6875_v2 }
 0x273   :  { %v139_v14 = vld [vmem:[#allocation5 + $0xe0] sm:$0xff]  ;;  %2635 = vmatpush.msra.mxu2 %v651_v62  ;;  %v620_v62 = vld [vmem:[#allocation5 + $0xfe8] sm:$0xff] }
 0x274   :  { %v395_v9 = vld [vmem:[#allocation5 + $0x8e0] sm:$0xff]  ;;  %2577 = vmatpush.msra.mxu0 %v139_v14  ;;  %v1132_v14 = vld [vmem:[#allocation5 + $0x1fe8] sm:$0xff] }
 0x275   :  { %v907_v21 = vld [vmem:[#allocation5 + $0x18e0] sm:$0xff]  ;;  %2606 = vmatpush.msra.mxu1 %v395_v9  ;;  %v6870_v9 = vld [vmem:[#allocation2 + $0x18] sm:$0xff]  ;;  %v780_v2 = vld [vmem:[#allocation5 + $0x14e8] sm:$0xff] }
 0x276   :  { %v635_v63 = vld [vmem:[#allocation5 + $0x1060] sm:$0xff]  ;;  %2664 = vmatpush.msra.mxu3 %v907_v21  ;;  %v860_v21 = vld [vmem:[#allocation5 + $0x1768] sm:$0xff] }
 0x277   :  { %v123_v48 = vld [vmem:[#allocation5 + $0x60] sm:$0xff]  ;;  %2636 = vmatpush.msra.mxu2 %v635_v63  ;;  %v348_v63 = vld [vmem:[#allocation5 + $0x768] sm:$0xff] }
 0x278   :  { %v379_v50 = vld [vmem:[#allocation5 + $0x860] sm:$0xff]  ;;  %2578 = vmatpush.msra.mxu0 %v123_v48  ;;  %2637 = vmatmul.f32.vlgmr.msra.gmra.mxu2 %v6867_v25  ;;  %v604_v48 = vld [vmem:[#allocation5 + $0xf68] sm:$0xff] }
 0x279   :  { %v891_v42 = vld [vmem:[#allocation5 + $0x1860] sm:$0xff]  ;;  %2607 = vmatpush.msra.mxu1 %v379_v50  ;;  %2737 = vmatpush.msrb.mxu2 %v876_v40  ;;  %v1116_v50 = vld [vmem:[#allocation5 + $0x1f68] sm:$0xff]  ;;  %v6877_v40 = vpop.f32.mrf.mxu0  ;;  %v6895_v28 = vpop.f32.mrf.mxu3 }
 0x27a   :  { %2665 = vmatpush.msra.mxu3 %v891_v42  ;;  %v6861_v11 = vld [vmem:[#allocation2] sm:$0xff]  ;;  %2608 = vmatmul.f32.vlgmr.msra.gmra.mxu1 %v6864_v37  ;;  %v6873_v42 = vpop.f32.mrf.mxu2  ;;  %8681 = vst [vmem:[#allocation127_spill] sm:$0xff] %v6877_v40  ;;  %v460_v40 = vld [vmem:[#allocation5 + $0xae8] sm:$0xff] }
 0x27b   :  { %2579 = vmatmul.f32.vlgmr.msra.gmra.mxu0 %v6861_v11  ;;  %2666 = vmatmul.f32.vlgmr.msra.gmra.mxu3 %v6870_v9  ;;  %8679 = vst [vmem:[#allocation125_spill] sm:$0xff] %v6873_v42  ;;  %v6887_v42 = vld [vmem:[#allocation2 + $0x30] sm:$0xff] }
 0x27c   :  { %2679 = vmatpush.msrb.mxu0 %v364_v18  ;;  %2708 = vmatpush.msrb.mxu1 %v620_v62  ;;  %v6879_v18 = vpop.f32.mrf.mxu1  ;;  %v572_v62 = vld [vmem:[#allocation5 + $0xe68] sm:$0xff]  ;;  %8684 = vst [vmem:[#allocation130_spill] sm:$0xff] %v6895_v28  ;;  %v6907_v28 = vld [vmem:[#allocation2 + $0x50] sm:$0xff] }
 0x27d   :  { %2766 = vmatpush.msrb.mxu3 %v1132_v14  ;;  %2738 = vmatpush.msrb.mxu2 %v860_v21  ;;  %8682 = vst [vmem:[#allocation128_spill] sm:$0xff] %v6879_v18  ;;  %v1084_v14 = vld [vmem:[#allocation5 + $0x1e68] sm:$0xff] }
 0x27e   :  { %2680 = vmatpush.msrb.mxu0 %v348_v63  ;;  %2709 = vmatpush.msrb.mxu1 %v604_v48  ;;  %v812_v21 = vld [vmem:[#allocation5 + $0x15e8] sm:$0xff]  ;;  %v6881_v48 = vld [vmem:[#allocation2 + $0x20] sm:$0xff] }
 0x27f   :  { %2767 = vmatpush.msrb.mxu3 %v1116_v50  ;;  %2739 = vmatpush.msrb.mxu2 %v844_v7  ;;  %v300_v63 = vld [vmem:[#allocation5 + $0x5e8] sm:$0xff] }
 0x280   :  { %2681 = vmatpush.msrb.mxu0 %v332_v0  ;;  %2710 = vmatpush.msrb.mxu1 %v588_v24  ;;  %v6884_v50 = vld [vmem:[#allocation2 + $0x28] sm:$0xff] }
 0x281   :  { %2768 = vmatpush.msrb.mxu3 %v1100_v29  ;;  %2740 = vmatpush.msrb.mxu2 %v828_v43  ;;  %v556_v7 = vld [vmem:[#allocation5 + $0xde8] sm:$0xff]  ;;  %v6890_v43 = vld [vmem:[#allocation2 + $0x38] sm:$0xff] }
 0x282   :  { %2682 = vmatpush.msrb.mxu0 %v316_v27  ;;  %2711 = vmatpush.msrb.mxu1 %v572_v62  ;;  %v1068_v0 = vld [vmem:[#allocation5 + $0x1de8] sm:$0xff] }
 0x283   :  { %2769 = vmatpush.msrb.mxu3 %v1084_v14  ;;  %2582 = vmatmul.f32.gmra.mxu0 %v6881_v48  ;;  %v796_v27 = vld [vmem:[#allocation5 + $0x1568] sm:$0xff]  ;;  %v6893_v14 = vpop.f32.mrf.mxu2 }
 0x284   :  { %2611 = vmatmul.f32.gmra.mxu1 %v6884_v50  ;;  %2640 = vmatmul.f32.gmra.mxu2 %v6887_v42  ;;  %v284_v29 = vld [vmem:[#allocation5 + $0x568] sm:$0xff]  ;;  %8683 = vst [vmem:[#allocation129_spill] sm:$0xff] %v6893_v14  ;;  %v6915_v14 = vpop.f32.mrf.mxu3 }
 0x285   :  { %2669 = vmatmul.f32.gmra.mxu3 %v6890_v43  ;;  %2741 = vmatpush.msrb.mxu2 %v812_v21  ;;  %v540_v24 = vld [vmem:[#allocation5 + $0xd68] sm:$0xff]  ;;  %v6897_v21 = vpop.f32.mrf.mxu0  ;;  %8688 = vst [vmem:[#allocation134_spill] sm:$0xff] %v6915_v14 }
 0x286   :  { %2683 = vmatpush.msrb.mxu0 %v300_v63  ;;  %v1052_v62 = vld [vmem:[#allocation5 + $0x1d68] sm:$0xff]  ;;  %2712 = vmatpush.msrb.mxu1 %v556_v7  ;;  %8685 = vst [vmem:[#allocation131_spill] sm:$0xff] %v6897_v21  ;;  %v6899_v63 = vpop.f32.mrf.mxu1 }
 0x287   :  { %2770 = vmatpush.msrb.mxu3 %v1068_v0  ;;  %2742 = vmatpush.msrb.mxu2 %v796_v27  ;;  %v1036_v18 = vld [vmem:[#allocation5 + $0x1ce8] sm:$0xff]  ;;  %8686 = vst [vmem:[#allocation132_spill] sm:$0xff] %v6899_v63 }
 0x288   :  { %2684 = vmatpush.msrb.mxu0 %v284_v29  ;;  %2713 = vmatpush.msrb.mxu1 %v540_v24  ;;  %v508_v7 = vld [vmem:[#allocation5 + $0xc68] sm:$0xff]  ;;  %v6901_v24 = vld [vmem:[#allocation2 + $0x40] sm:$0xff] }
 0x289   :  { %2771 = vmatpush.msrb.mxu3 %v1052_v62  ;;  %2743 = vmatpush.msrb.mxu2 %v780_v2  ;;  %v1020_v0 = vld [vmem:[#allocation5 + $0x1c68] sm:$0xff] }
 0x28a   :  { %2685 = vmatpush.msrb.mxu0 %v268_v5  ;;  %2714 = vmatpush.msrb.mxu1 %v524_v59  ;;  %v748_v27 = vld [vmem:[#allocation5 + $0x13e8] sm:$0xff] }
 0x28b   :  { %2772 = vmatpush.msrb.mxu3 %v1036_v18  ;;  %2744 = vmatpush.msrb.mxu2 %v764_v20  ;;  %v236_v29 = vld [vmem:[#allocation5 + $0x3e8] sm:$0xff]  ;;  %v6910_v20 = vld [vmem:[#allocation2 + $0x58] sm:$0xff] }
 0x28c   :  { %2686 = vmatpush.msrb.mxu0 %v252_v26  ;;  %2715 = vmatpush.msrb.mxu1 %v508_v7  ;;  %v6904_v62 = vld [vmem:[#allocation2 + $0x48] sm:$0xff]  ;;  %v6935_v14 = vpop.f32.mrf.mxu3 }
 0x28d   :  { %2773 = vmatpush.msrb.mxu3 %v1020_v0  ;;  %2585 = vmatmul.f32.gmra.mxu0 %v6901_v24  ;;  %v492_v2 = vld [vmem:[#allocation5 + $0xbe8] sm:$0xff]  ;;  %v6913_v0 = vpop.f32.mrf.mxu2  ;;  %8692 = vst [vmem:[#allocation138_spill] sm:$0xff] %v6935_v14  ;;  %v317_v14 = vld [vmem:[#allocation5 + $0x670] sm:$0xff] }
 0x28e   :  { %2614 = vmatmul.f32.gmra.mxu1 %v6904_v62  ;;  %v1004_v5 = vld [vmem:[#allocation5 + $0x1be8] sm:$0xff]  ;;  %2643 = vmatmul.f32.gmra.mxu2 %v6907_v28  ;;  %8687 = vst [vmem:[#allocation133_spill] sm:$0xff] %v6913_v0 }
 0x28f   :  { %2672 = vmatmul.f32.gmra.mxu3 %v6910_v20  ;;  %v732_v59 = vld [vmem:[#allocation5 + $0x1368] sm:$0xff]  ;;  %2745 = vmatpush.msrb.mxu2 %v748_v27  ;;  %v6917_v27 = vpop.f32.mrf.mxu0 }
 0x290   :  { %v220_v26 = vld [vmem:[#allocation5 + $0x368] sm:$0xff]  ;;  %2687 = vmatpush.msrb.mxu0 %v236_v29  ;;  %2716 = vmatpush.msrb.mxu1 %v492_v2  ;;  %8689 = vst [vmem:[#allocation135_spill] sm:$0xff] %v6917_v27  ;;  %v6919_v29 = vpop.f32.mrf.mxu1 }
 0x291   :  { %v476_v18 = vld [vmem:[#allocation5 + $0xb68] sm:$0xff]  ;;  %2774 = vmatpush.msrb.mxu3 %v1004_v5  ;;  %2746 = vmatpush.msrb.mxu2 %v732_v59  ;;  %8690 = vst [vmem:[#allocation136_spill] sm:$0xff] %v6919_v29  ;;  %v6927_v29 = vld [vmem:[#allocation2 + $0x70] sm:$0xff] }
 0x292   :  { %v988_v7 = vld [vmem:[#allocation5 + $0x1b68] sm:$0xff]  ;;  %2688 = vmatpush.msrb.mxu0 %v220_v26  ;;  %2717 = vmatpush.msrb.mxu1 %v476_v18  ;;  %v6921_v18 = vld [vmem:[#allocation2 + $0x60] sm:$0xff] }
 0x293   :  { %v716_v63 = vld [vmem:[#allocation5 + $0x12e8] sm:$0xff]  ;;  %2775 = vmatpush.msrb.mxu3 %v988_v7 }
 0x294   :  { %v204_v21 = vld [vmem:[#allocation5 + $0x2e8] sm:$0xff]  ;;  %2747 = vmatpush.msrb.mxu2 %v716_v63  ;;  %2718 = vmatpush.msrb.mxu1 %v460_v40 }
 0x295   :  { %2689 = vmatpush.msrb.mxu0 %v204_v21  ;;  %v444_v2 = vld [vmem:[#allocation5 + $0xa68] sm:$0xff]  ;;  %2776 = vmatpush.msrb.mxu3 %v972_v6 }
 0x296   :  { %v956_v5 = vld [vmem:[#allocation5 + $0x1a68] sm:$0xff]  ;;  %2748 = vmatpush.msrb.mxu2 %v700_v8  ;;  %2719 = vmatpush.msrb.mxu1 %v444_v2  ;;  %v6930_v8 = vld [vmem:[#allocation2 + $0x78] sm:$0xff] }
 0x297   :  { %2690 = vmatpush.msrb.mxu0 %v188_v17  ;;  %2777 = vmatpush.msrb.mxu3 %v956_v5  ;;  %v684_v59 = vld [vmem:[#allocation5 + $0x11e8] sm:$0xff]  ;;  %v6933_v5 = vpop.f32.mrf.mxu2 }
 0x298   :  { %v172_v26 = vld [vmem:[#allocation5 + $0x1e8] sm:$0xff]  ;;  %2588 = vmatmul.f32.gmra.mxu0 %v6921_v18  ;;  %2646 = vmatmul.f32.gmra.mxu2 %v6927_v29  ;;  %8691 = vst [vmem:[#allocation137_spill] sm:$0xff] %v6933_v5  ;;  %v829_v5 = vld [vmem:[#allocation5 + $0x1670] sm:$0xff] }
 0x299   :  { %v6924_v7 = vld [vmem:[#allocation2 + $0x68] sm:$0xff]  ;;  %2675 = vmatmul.f32.gmra.mxu3 %v6930_v8  ;;  %2749 = vmatpush.msrb.mxu2 %v684_v59  ;;  %v6937_v59 = vpop.f32.mrf.mxu0 }
 0x29a   :  { %2617 = vmatmul.f32.gmra.mxu1 %v6924_v7  ;;  %v428_v63 = vld [vmem:[#allocation5 + $0x9e8] sm:$0xff]  ;;  %2691 = vmatpush.msrb.mxu0 %v172_v26  ;;  %8693 = vst [vmem:[#allocation139_spill] sm:$0xff] %v6937_v59  ;;  %v6939_v26 = vpop.f32.mrf.mxu1  ;;  %v1101_v59 = vld [vmem:[#allocation5 + $0x1ef0] sm:$0xff] }
 0x29b   :  { %v940_v21 = vld [vmem:[#allocation5 + $0x19e8] sm:$0xff]  ;;  %2720 = vmatpush.msrb.mxu1 %v428_v63  ;;  %8694 = vst [vmem:[#allocation140_spill] sm:$0xff] %v6939_v26  ;;  %v589_v26 = vld [vmem:[#allocation5 + $0xef0] sm:$0xff] }
 0x29c   :  { %v668_v17 = vld [vmem:[#allocation5 + $0x1168] sm:$0xff]  ;;  %2778 = vmatpush.msrb.mxu3 %v940_v21 }
 0x29d   :  { %v156_v6 = vld [vmem:[#allocation5 + $0x168] sm:$0xff]  ;;  %2750 = vmatpush.msrb.mxu2 %v668_v17  ;;  %v877_v17 = vld [vmem:[#allocation5 + $0x17f0] sm:$0xff] }
 0x29e   :  { %v412_v40 = vld [vmem:[#allocation5 + $0x968] sm:$0xff]  ;;  %2692 = vmatpush.msrb.mxu0 %v156_v6  ;;  %v365_v6 = vld [vmem:[#allocation5 + $0x7f0] sm:$0xff] }
 0x29f   :  { %v924_v2 = vld [vmem:[#allocation5 + $0x1968] sm:$0xff]  ;;  %2721 = vmatpush.msrb.mxu1 %v412_v40  ;;  %v621_v40 = vld [vmem:[#allocation5 + $0xff0] sm:$0xff] }
 0x2a0   :  { %v652_v27 = vld [vmem:[#allocation5 + $0x10e8] sm:$0xff]  ;;  %2779 = vmatpush.msrb.mxu3 %v924_v2  ;;  %v1133_v2 = vld [vmem:[#allocation5 + $0x1ff0] sm:$0xff] }
 0x2a1   :  { %v140_v0 = vld [vmem:[#allocation5 + $0xe8] sm:$0xff]  ;;  %2751 = vmatpush.msrb.mxu2 %v652_v27  ;;  %2722 = vmatpush.msrb.mxu1 %v396_v1  ;;  %v349_v27 = vld [vmem:[#allocation5 + $0x770] sm:$0xff] }
 0x2a2   :  { %2693 = vmatpush.msrb.mxu0 %v140_v0  ;;  %v380_v63 = vld [vmem:[#allocation5 + $0x868] sm:$0xff]  ;;  %2780 = vmatpush.msrb.mxu3 %v908_v54  ;;  %v861_v0 = vld [vmem:[#allocation5 + $0x1770] sm:$0xff]  ;;  %v6945_v54 = vpop.f32.mrf.mxu2 }
 0x2a3   :  { %v892_v21 = vld [vmem:[#allocation5 + $0x1868] sm:$0xff]  ;;  %2752 = vmatpush.msrb.mxu2 %v636_v13  ;;  %2723 = vmatpush.msrb.mxu1 %v380_v63  ;;  %v605_v13 = vld [vmem:[#allocation5 + $0xf70] sm:$0xff]  ;;  %8695 = vst [vmem:[#allocation141_spill] sm:$0xff] %v6945_v54 }
 0x2a4   :  { %2694 = vmatpush.msrb.mxu0 %v124_v57  ;;  %2781 = vmatpush.msrb.mxu3 %v892_v21  ;;  %v1117_v57 = vld [vmem:[#allocation5 + $0x1f70] sm:$0xff]  ;;  %v6947_v21 = vpop.f32.mrf.mxu3 }
 0x2a5   :  { %2695 = vmatmul.f32.vlgmr.msrb.gmra.mxu0 %v6861_v11  ;;  %2724 = vmatmul.f32.vlgmr.msrb.gmra.mxu1 %v6864_v37  ;;  %v845_v1 = vld [vmem:[#allocation5 + $0x16f0] sm:$0xff]  ;;  %8696 = vst [vmem:[#allocation142_spill] sm:$0xff] %v6947_v21 }
 0x2a6   :  { %2753 = vmatmul.f32.vlgmr.msrb.gmra.mxu2 %v6867_v25  ;;  %2782 = vmatmul.f32.vlgmr.msrb.gmra.mxu3 %v6870_v9  ;;  %v333_v63 = vld [vmem:[#allocation5 + $0x6f0] sm:$0xff] }
 0x2a7   :  { %2853 = vmatpush.msra.mxu2 %v877_v17  ;;  %2795 = vmatpush.msra.mxu0 %v365_v6  ;;  %v6949_v17 = vpop.f32.mrf.mxu0  ;;  %v6951_v6 = vpop.f32.mrf.mxu1  ;;  %v525_v54 = vld [vmem:[#allocation5 + $0xcf0] sm:$0xff] }
 0x2a8   :  { %2824 = vmatpush.msra.mxu1 %v621_v40  ;;  %2882 = vmatpush.msra.mxu3 %v1133_v2  ;;  %8697 = vst [vmem:[#allocation143_spill] sm:$0xff] %v6949_v17  ;;  %v573_v40 = vld [vmem:[#allocation5 + $0xe70] sm:$0xff] }
 0x2a9   :  { %2854 = vmatpush.msra.mxu2 %v861_v0  ;;  %2796 = vmatpush.msra.mxu0 %v349_v27  ;;  %8698 = vst [vmem:[#allocation144_spill] sm:$0xff] %v6951_v6  ;;  %v1085_v2 = vld [vmem:[#allocation5 + $0x1e70] sm:$0xff] }
 0x2aa   :  { %2825 = vmatpush.msra.mxu1 %v605_v13  ;;  %2883 = vmatpush.msra.mxu3 %v1117_v57  ;;  %v813_v0 = vld [vmem:[#allocation5 + $0x15f0] sm:$0xff] }
 0x2ab   :  { %2855 = vmatpush.msra.mxu2 %v845_v1  ;;  %2797 = vmatpush.msra.mxu0 %v333_v63  ;;  %v301_v27 = vld [vmem:[#allocation5 + $0x5f0] sm:$0xff] }
 0x2ac   :  { %2826 = vmatpush.msra.mxu1 %v589_v26  ;;  %2884 = vmatpush.msra.mxu3 %v1101_v59  ;;  %v557_v13 = vld [vmem:[#allocation5 + $0xdf0] sm:$0xff]  ;;  %v6957_v59 = vpop.f32.mrf.mxu2 }
 0x2ad   :  { %2856 = vmatpush.msra.mxu2 %v829_v5  ;;  %2798 = vmatpush.msra.mxu0 %v317_v14  ;;  %v1069_v57 = vld [vmem:[#allocation5 + $0x1df0] sm:$0xff]  ;;  %8699 = vst [vmem:[#allocation145_spill] sm:$0xff] %v6957_v59 }
 0x2ae   :  { %2827 = vmatpush.msra.mxu1 %v573_v40  ;;  %2885 = vmatpush.msra.mxu3 %v1085_v2  ;;  %v797_v1 = vld [vmem:[#allocation5 + $0x1570] sm:$0xff]  ;;  %v6959_v2 = vpop.f32.mrf.mxu3 }
 0x2af   :  { %2698 = vmatmul.f32.gmra.mxu0 %v6881_v48  ;;  %2727 = vmatmul.f32.gmra.mxu1 %v6884_v50  ;;  %v285_v63 = vld [vmem:[#allocation5 + $0x570] sm:$0xff]  ;;  %8700 = vst [vmem:[#allocation146_spill] sm:$0xff] %v6959_v2 }
 0x2b0   :  { %2756 = vmatmul.f32.gmra.mxu2 %v6887_v42  ;;  %2785 = vmatmul.f32.gmra.mxu3 %v6890_v43  ;;  %v541_v5 = vld [vmem:[#allocation5 + $0xd70] sm:$0xff] }
 0x2b1   :  { %2857 = vmatpush.msra.mxu2 %v813_v0  ;;  %2799 = vmatpush.msra.mxu0 %v301_v27  ;;  %v1053_v14 = vld [vmem:[#allocation5 + $0x1d70] sm:$0xff]  ;;  %v6961_v0 = vpop.f32.mrf.mxu0  ;;  %v6963_v27 = vpop.f32.mrf.mxu1 }
 0x2b2   :  { %2828 = vmatpush.msra.mxu1 %v557_v13  ;;  %2886 = vmatpush.msra.mxu3 %v1069_v57  ;;  %v781_v26 = vld [vmem:[#allocation5 + $0x14f0] sm:$0xff]  ;;  %8701 = vst [vmem:[#allocation147_spill] sm:$0xff] %v6961_v0 }
 0x2b3   :  { %v269_v40 = vld [vmem:[#allocation5 + $0x4f0] sm:$0xff]  ;;  %2858 = vmatpush.msra.mxu2 %v797_v1  ;;  %2800 = vmatpush.msra.mxu0 %v285_v63  ;;  %8702 = vst [vmem:[#allocation148_spill] sm:$0xff] %v6963_v27 }
 0x2b4   :  { %v1037_v21 = vld [vmem:[#allocation5 + $0x1cf0] sm:$0xff]  ;;  %2829 = vmatpush.msra.mxu1 %v541_v5  ;;  %2887 = vmatpush.msra.mxu3 %v1053_v14 }
 0x2b5   :  { %v765_v6 = vld [vmem:[#allocation5 + $0x1470] sm:$0xff]  ;;  %2859 = vmatpush.msra.mxu2 %v781_v26  ;;  %2801 = vmatpush.msra.mxu0 %v269_v40 }
 0x2b6   :  { %v253_v17 = vld [vmem:[#allocation5 + $0x470] sm:$0xff]  ;;  %2830 = vmatpush.msra.mxu1 %v525_v54  ;;  %2888 = vmatpush.msra.mxu3 %v1037_v21 }
 0x2b7   :  { %v509_v13 = vld [vmem:[#allocation5 + $0xc70] sm:$0xff]  ;;  %2860 = vmatpush.msra.mxu2 %v765_v6  ;;  %2802 = vmatpush.msra.mxu0 %v253_v17  ;;  %v6969_v17 = vpop.f32.mrf.mxu2 }
 0x2b8   :  { %v1021_v57 = vld [vmem:[#allocation5 + $0x1c70] sm:$0xff]  ;;  %2831 = vmatpush.msra.mxu1 %v509_v13  ;;  %2701 = vmatmul.f32.gmra.mxu0 %v6901_v24  ;;  %8703 = vst [vmem:[#allocation149_spill] sm:$0xff] %v6969_v17 }
 0x2b9   :  { %2889 = vmatpush.msra.mxu3 %v1021_v57  ;;  %v749_v1 = vld [vmem:[#allocation5 + $0x13f0] sm:$0xff]  ;;  %2730 = vmatmul.f32.gmra.mxu1 %v6904_v62  ;;  %v6971_v57 = vpop.f32.mrf.mxu3 }
 0x2ba   :  { %v237_v63 = vld [vmem:[#allocation5 + $0x3f0] sm:$0xff]  ;;  %2759 = vmatmul.f32.gmra.mxu2 %v6907_v28  ;;  %2788 = vmatmul.f32.gmra.mxu3 %v6910_v20  ;;  %8704 = vst [vmem:[#allocation150_spill] sm:$0xff] %v6971_v57 }
 0x2bb   :  { %v493_v5 = vld [vmem:[#allocation5 + $0xbf0] sm:$0xff]  ;;  %2861 = vmatpush.msra.mxu2 %v749_v1  ;;  %2803 = vmatpush.msra.mxu0 %v237_v63  ;;  %v6973_v1 = vpop.f32.mrf.mxu0  ;;  %v6975_v63 = vpop.f32.mrf.mxu1 }
 0x2bc   :  { %v1005_v14 = vld [vmem:[#allocation5 + $0x1bf0] sm:$0xff]  ;;  %2832 = vmatpush.msra.mxu1 %v493_v5  ;;  %8705 = vst [vmem:[#allocation151_spill] sm:$0xff] %v6973_v1 }
 0x2bd   :  { %v733_v26 = vld [vmem:[#allocation5 + $0x1370] sm:$0xff]  ;;  %2890 = vmatpush.msra.mxu3 %v1005_v14  ;;  %8706 = vst [vmem:[#allocation152_spill] sm:$0xff] %v6975_v63 }
 0x2be   :  { %v221_v40 = vld [vmem:[#allocation5 + $0x370] sm:$0xff]  ;;  %2862 = vmatpush.msra.mxu2 %v733_v26 }
 0x2bf   :  { %v477_v54 = vld [vmem:[#allocation5 + $0xb70] sm:$0xff]  ;;  %2804 = vmatpush.msra.mxu0 %v221_v40 }
 0x2c0   :  { %v989_v21 = vld [vmem:[#allocation5 + $0x1b70] sm:$0xff]  ;;  %2833 = vmatpush.msra.mxu1 %v477_v54  ;;  %2704 = vmatmul.f32.gmra.mxu0 %v6921_v18 }
 0x2c1   :  { %v717_v6 = vld [vmem:[#allocation5 + $0x12f0] sm:$0xff]  ;;  %2891 = vmatpush.msra.mxu3 %v989_v21  ;;  %2733 = vmatmul.f32.gmra.mxu1 %v6924_v7 }
 0x2c2   :  { %v205_v13 = vld [vmem:[#allocation5 + $0x2f0] sm:$0xff]  ;;  %2863 = vmatpush.msra.mxu2 %v717_v6  ;;  %2791 = vmatmul.f32.gmra.mxu3 %v6930_v8 }
 0x2c3   :  { %v461_v2 = vld [vmem:[#allocation5 + $0xaf0] sm:$0xff]  ;;  %2805 = vmatpush.msra.mxu0 %v205_v13  ;;  %2762 = vmatmul.f32.gmra.mxu2 %v6927_v29 }
 0x2c4   :  { %v973_v27 = vld [vmem:[#allocation5 + $0x1af0] sm:$0xff]  ;;  %2834 = vmatpush.msra.mxu1 %v461_v2 }
 0x2c5   :  { %v701_v0 = vld [vmem:[#allocation5 + $0x1270] sm:$0xff]  ;;  %2892 = vmatpush.msra.mxu3 %v973_v27 }
 0x2c6   :  { %v189_v59 = vld [vmem:[#allocation5 + $0x270] sm:$0xff]  ;;  %2864 = vmatpush.msra.mxu2 %v701_v0  ;;  %v6981_v0 = vpop.f32.mrf.mxu2 }
 0x2c7   :  { %v445_v5 = vld [vmem:[#allocation5 + $0xa70] sm:$0xff]  ;;  %2806 = vmatpush.msra.mxu0 %v189_v59  ;;  %8707 = vst [vmem:[#allocation153_spill] sm:$0xff] %v6981_v0  ;;  %v830_v0 = vld [vmem:[#allocation5 + $0x1678] sm:$0xff] }
 0x2c8   :  { %v957_v14 = vld [vmem:[#allocation5 + $0x1a70] sm:$0xff]  ;;  %2835 = vmatpush.msra.mxu1 %v445_v5 }
 0x2c9   :  { %2893 = vmatpush.msra.mxu3 %v957_v14  ;;  %v685_v26 = vld [vmem:[#allocation5 + $0x11f0] sm:$0xff]  ;;  %v6983_v14 = vpop.f32.mrf.mxu3 }
 0x2ca   :  { %v173_v40 = vld [vmem:[#allocation5 + $0x1f0] sm:$0xff]  ;;  %2865 = vmatpush.msra.mxu2 %v685_v26  ;;  %8708 = vst [vmem:[#allocation154_spill] sm:$0xff] %v6983_v14  ;;  %v6985_v26 = vpop.f32.mrf.mxu0  ;;  %v318_v14 = vld [vmem:[#allocation5 + $0x678] sm:$0xff] }
 0x2cb   :  { %v429_v54 = vld [vmem:[#allocation5 + $0x9f0] sm:$0xff]  ;;  %2807 = vmatpush.msra.mxu0 %v173_v40  ;;  %8709 = vst [vmem:[#allocation155_spill] sm:$0xff] %v6985_v26  ;;  %v6987_v40 = vpop.f32.mrf.mxu1  ;;  %v1102_v26 = vld [vmem:[#allocation5 + $0x1ef8] sm:$0xff] }
 0x2cc   :  { %v941_v21 = vld [vmem:[#allocation5 + $0x19f0] sm:$0xff]  ;;  %2836 = vmatpush.msra.mxu1 %v429_v54  ;;  %8710 = vst [vmem:[#allocation156_spill] sm:$0xff] %v6987_v40  ;;  %v590_v40 = vld [vmem:[#allocation5 + $0xef8] sm:$0xff] }
 0x2cd   :  { %v669_v6 = vld [vmem:[#allocation5 + $0x1170] sm:$0xff]  ;;  %2894 = vmatpush.msra.mxu3 %v941_v21 }
 0x2ce   :  { %v157_v13 = vld [vmem:[#allocation5 + $0x170] sm:$0xff]  ;;  %2866 = vmatpush.msra.mxu2 %v669_v6  ;;  %v878_v6 = vld [vmem:[#allocation5 + $0x17f8] sm:$0xff] }
 0x2cf   :  { %v413_v2 = vld [vmem:[#allocation5 + $0x970] sm:$0xff]  ;;  %2808 = vmatpush.msra.mxu0 %v157_v13  ;;  %v366_v13 = vld [vmem:[#allocation5 + $0x7f8] sm:$0xff] }
 0x2d0   :  { %v925_v59 = vld [vmem:[#allocation5 + $0x1970] sm:$0xff]  ;;  %2837 = vmatpush.msra.mxu1 %v413_v2  ;;  %v622_v2 = vld [vmem:[#allocation5 + $0xff8] sm:$0xff] }
 0x2d1   :  { %v653_v27 = vld [vmem:[#allocation5 + $0x10f0] sm:$0xff]  ;;  %2895 = vmatpush.msra.mxu3 %v925_v59  ;;  %v1134_v59 = vld [vmem:[#allocation5 + $0x1ff8] sm:$0xff] }
 0x2d2   :  { %v141_v5 = vld [vmem:[#allocation5 + $0xf0] sm:$0xff]  ;;  %2867 = vmatpush.msra.mxu2 %v653_v27  ;;  %v862_v27 = vld [vmem:[#allocation5 + $0x1778] sm:$0xff] }
 0x2d3   :  { %v397_v63 = vld [vmem:[#allocation5 + $0x8f0] sm:$0xff]  ;;  %2809 = vmatpush.msra.mxu0 %v141_v5  ;;  %v350_v5 = vld [vmem:[#allocation5 + $0x778] sm:$0xff] }
 0x2d4   :  { %v909_v1 = vld [vmem:[#allocation5 + $0x18f0] sm:$0xff]  ;;  %2838 = vmatpush.msra.mxu1 %v397_v63  ;;  %v846_v63 = vld [vmem:[#allocation5 + $0x16f8] sm:$0xff] }
 0x2d5   :  { %v637_v17 = vld [vmem:[#allocation5 + $0x1070] sm:$0xff]  ;;  %2896 = vmatpush.msra.mxu3 %v909_v1  ;;  %v6993_v1 = vpop.f32.mrf.mxu2 }
 0x2d6   :  { %v125_v57 = vld [vmem:[#allocation5 + $0x70] sm:$0xff]  ;;  %2868 = vmatpush.msra.mxu2 %v637_v17  ;;  %v606_v17 = vld [vmem:[#allocation5 + $0xf78] sm:$0xff]  ;;  %8711 = vst [vmem:[#allocation157_spill] sm:$0xff] %v6993_v1 }
 0x2d7   :  { %v381_v54 = vld [vmem:[#allocation5 + $0x870] sm:$0xff]  ;;  %2810 = vmatpush.msra.mxu0 %v125_v57  ;;  %2869 = vmatmul.f32.vlgmr.msra.gmra.mxu2 %v6867_v25  ;;  %v1118_v57 = vld [vmem:[#allocation5 + $0x1f78] sm:$0xff] }
 0x2d8   :  { %v893_v21 = vld [vmem:[#allocation5 + $0x1870] sm:$0xff]  ;;  %2839 = vmatpush.msra.mxu1 %v381_v54  ;;  %2811 = vmatmul.f32.vlgmr.msra.gmra.mxu0 %v6861_v11  ;;  %v334_v54 = vld [vmem:[#allocation5 + $0x6f8] sm:$0xff] }
 0x2d9   :  { %2897 = vmatpush.msra.mxu3 %v893_v21  ;;  %2840 = vmatmul.f32.vlgmr.msra.gmra.mxu1 %v6864_v37  ;;  %v6995_v21 = vpop.f32.mrf.mxu3  ;;  %v526_v1 = vld [vmem:[#allocation5 + $0xcf8] sm:$0xff] }
 0x2da   :  { %2898 = vmatmul.f32.vlgmr.msra.gmra.mxu3 %v6870_v9  ;;  %2969 = vmatpush.msrb.mxu2 %v878_v6  ;;  %8712 = vst [vmem:[#allocation158_spill] sm:$0xff] %v6995_v21  ;;  %v6997_v6 = vpop.f32.mrf.mxu0  ;;  %v1038_v21 = vld [vmem:[#allocation5 + $0x1cf8] sm:$0xff] }
 0x2db   :  { %2911 = vmatpush.msrb.mxu0 %v366_v13  ;;  %2940 = vmatpush.msrb.mxu1 %v622_v2  ;;  %8713 = vst [vmem:[#allocation159_spill] sm:$0xff] %v6997_v6  ;;  %v6999_v13 = vpop.f32.mrf.mxu1  ;;  %v574_v2 = vld [vmem:[#allocation5 + $0xe78] sm:$0xff] }
 0x2dc   :  { %2998 = vmatpush.msrb.mxu3 %v1134_v59  ;;  %2970 = vmatpush.msrb.mxu2 %v862_v27  ;;  %8714 = vst [vmem:[#allocation160_spill] sm:$0xff] %v6999_v13  ;;  %v1086_v59 = vld [vmem:[#allocation5 + $0x1e78] sm:$0xff] }
 0x2dd   :  { %2912 = vmatpush.msrb.mxu0 %v350_v5  ;;  %2941 = vmatpush.msrb.mxu1 %v606_v17  ;;  %v814_v27 = vld [vmem:[#allocation5 + $0x15f8] sm:$0xff] }
 0x2de   :  { %2999 = vmatpush.msrb.mxu3 %v1118_v57  ;;  %2971 = vmatpush.msrb.mxu2 %v846_v63  ;;  %v302_v5 = vld [vmem:[#allocation5 + $0x5f8] sm:$0xff] }
 0x2df   :  { %2913 = vmatpush.msrb.mxu0 %v334_v54  ;;  %2942 = vmatpush.msrb.mxu1 %v590_v40  ;;  %v558_v17 = vld [vmem:[#allocation5 + $0xdf8] sm:$0xff] }
 0x2e0   :  { %3000 = vmatpush.msrb.mxu3 %v1102_v26  ;;  %2972 = vmatpush.msrb.mxu2 %v830_v0  ;;  %v1070_v57 = vld [vmem:[#allocation5 + $0x1df8] sm:$0xff]  ;;  %v7005_v26 = vpop.f32.mrf.mxu2 }
 0x2e1   :  { %2914 = vmatpush.msrb.mxu0 %v318_v14  ;;  %2943 = vmatpush.msrb.mxu1 %v574_v2  ;;  %v798_v63 = vld [vmem:[#allocation5 + $0x1578] sm:$0xff]  ;;  %8715 = vst [vmem:[#allocation161_spill] sm:$0xff] %v7005_v26 }
 0x2e2   :  { %3001 = vmatpush.msrb.mxu3 %v1086_v59  ;;  %2814 = vmatmul.f32.gmra.mxu0 %v6881_v48  ;;  %v286_v54 = vld [vmem:[#allocation5 + $0x578] sm:$0xff]  ;;  %v7007_v59 = vpop.f32.mrf.mxu3 }
 0x2e3   :  { %2843 = vmatmul.f32.gmra.mxu1 %v6884_v50  ;;  %2872 = vmatmul.f32.gmra.mxu2 %v6887_v42  ;;  %v542_v0 = vld [vmem:[#allocation5 + $0xd78] sm:$0xff]  ;;  %8716 = vst [vmem:[#allocation162_spill] sm:$0xff] %v7007_v59 }
 0x2e4   :  { %2901 = vmatmul.f32.gmra.mxu3 %v6890_v43  ;;  %2973 = vmatpush.msrb.mxu2 %v814_v27  ;;  %v1054_v14 = vld [vmem:[#allocation5 + $0x1d78] sm:$0xff]  ;;  %v7009_v27 = vpop.f32.mrf.mxu0 }
 0x2e5   :  { %2915 = vmatpush.msrb.mxu0 %v302_v5  ;;  %2944 = vmatpush.msrb.mxu1 %v558_v17  ;;  %v782_v40 = vld [vmem:[#allocation5 + $0x14f8] sm:$0xff]  ;;  %8717 = vst [vmem:[#allocation163_spill] sm:$0xff] %v7009_v27  ;;  %v7011_v5 = vpop.f32.mrf.mxu1 }
 0x2e6   :  { %3002 = vmatpush.msrb.mxu3 %v1070_v57  ;;  %v270_v2 = vld [vmem:[#allocation5 + $0x4f8] sm:$0xff]  ;;  %2974 = vmatpush.msrb.mxu2 %v798_v63  ;;  %8718 = vst [vmem:[#allocation164_spill] sm:$0xff] %v7011_v5 }
 0x2e7   :  { %2916 = vmatpush.msrb.mxu0 %v286_v54  ;;  %2945 = vmatpush.msrb.mxu1 %v542_v0  ;;  %v766_v13 = vld [vmem:[#allocation5 + $0x1478] sm:$0xff] }
 0x2e8   :  { %3003 = vmatpush.msrb.mxu3 %v1054_v14  ;;  %v254_v6 = vld [vmem:[#allocation5 + $0x478] sm:$0xff]  ;;  %2975 = vmatpush.msrb.mxu2 %v782_v40 }
 0x2e9   :  { %2917 = vmatpush.msrb.mxu0 %v270_v2  ;;  %v510_v17 = vld [vmem:[#allocation5 + $0xc78] sm:$0xff]  ;;  %2946 = vmatpush.msrb.mxu1 %v526_v1 }
 0x2ea   :  { %v1022_v57 = vld [vmem:[#allocation5 + $0x1c78] sm:$0xff]  ;;  %3004 = vmatpush.msrb.mxu3 %v1038_v21  ;;  %2976 = vmatpush.msrb.mxu2 %v766_v13 }
 0x2eb   :  { %2918 = vmatpush.msrb.mxu0 %v254_v6  ;;  %2947 = vmatpush.msrb.mxu1 %v510_v17  ;;  %v750_v63 = vld [vmem:[#allocation5 + $0x13f8] sm:$0xff]  ;;  %v7017_v6 = vpop.f32.mrf.mxu2 }
 0x2ec   :  { %3005 = vmatpush.msrb.mxu3 %v1022_v57  ;;  %v238_v54 = vld [vmem:[#allocation5 + $0x3f8] sm:$0xff]  ;;  %2817 = vmatmul.f32.gmra.mxu0 %v6901_v24  ;;  %8719 = vst [vmem:[#allocation165_spill] sm:$0xff] %v7017_v6  ;;  %v7019_v57 = vpop.f32.mrf.mxu3 }
 0x2ed   :  { %2846 = vmatmul.f32.gmra.mxu1 %v6904_v62  ;;  %v494_v0 = vld [vmem:[#allocation5 + $0xbf8] sm:$0xff]  ;;  %2875 = vmatmul.f32.gmra.mxu2 %v6907_v28  ;;  %8720 = vst [vmem:[#allocation166_spill] sm:$0xff] %v7019_v57 }
 0x2ee   :  { %v1006_v14 = vld [vmem:[#allocation5 + $0x1bf8] sm:$0xff]  ;;  %2904 = vmatmul.f32.gmra.mxu3 %v6910_v20  ;;  %2977 = vmatpush.msrb.mxu2 %v750_v63  ;;  %v7021_v63 = vpop.f32.mrf.mxu0 }
 0x2ef   :  { %v734_v40 = vld [vmem:[#allocation5 + $0x1378] sm:$0xff]  ;;  %2919 = vmatpush.msrb.mxu0 %v238_v54  ;;  %2948 = vmatpush.msrb.mxu1 %v494_v0  ;;  %8721 = vst [vmem:[#allocation167_spill] sm:$0xff] %v7021_v63  ;;  %v7023_v54 = vpop.f32.mrf.mxu1 }
 0x2f0   :  { %v222_v2 = vld [vmem:[#allocation5 + $0x378] sm:$0xff]  ;;  %3006 = vmatpush.msrb.mxu3 %v1006_v14  ;;  %2978 = vmatpush.msrb.mxu2 %v734_v40  ;;  %8722 = vst [vmem:[#allocation168_spill] sm:$0xff] %v7023_v54 }
 0x2f1   :  { %v478_v1 = vld [vmem:[#allocation5 + $0xb78] sm:$0xff]  ;;  %2920 = vmatpush.msrb.mxu0 %v222_v2 }
 0x2f2   :  { %v990_v21 = vld [vmem:[#allocation5 + $0x1b78] sm:$0xff]  ;;  %2949 = vmatpush.msrb.mxu1 %v478_v1 }
 0x2f3   :  { %v718_v13 = vld [vmem:[#allocation5 + $0x12f8] sm:$0xff]  ;;  %3007 = vmatpush.msrb.mxu3 %v990_v21 }
 0x2f4   :  { %v206_v17 = vld [vmem:[#allocation5 + $0x2f8] sm:$0xff]  ;;  %2979 = vmatpush.msrb.mxu2 %v718_v13  ;;  %2820 = vmatmul.f32.gmra.mxu0 %v6921_v18 }
 0x2f5   :  { %v462_v59 = vld [vmem:[#allocation5 + $0xaf8] sm:$0xff]  ;;  %2921 = vmatpush.msrb.mxu0 %v206_v17  ;;  %2849 = vmatmul.f32.gmra.mxu1 %v6924_v7 }
 0x2f6   :  { %v974_v5 = vld [vmem:[#allocation5 + $0x1af8] sm:$0xff]  ;;  %2950 = vmatpush.msrb.mxu1 %v462_v59  ;;  %2878 = vmatmul.f32.gmra.mxu2 %v6927_v29 }
 0x2f7   :  { %v702_v27 = vld [vmem:[#allocation5 + $0x1278] sm:$0xff]  ;;  %3008 = vmatpush.msrb.mxu3 %v974_v5 }
 0x2f8   :  { %v190_v26 = vld [vmem:[#allocation5 + $0x278] sm:$0xff]  ;;  %2980 = vmatpush.msrb.mxu2 %v702_v27  ;;  %2907 = vmatmul.f32.gmra.mxu3 %v6930_v8  ;;  %v7029_v27 = vpop.f32.mrf.mxu2 }
 0x2f9   :  { %v446_v0 = vld [vmem:[#allocation5 + $0xa78] sm:$0xff]  ;;  %2922 = vmatpush.msrb.mxu0 %v190_v26 }
 0x2fa   :  { %v958_v14 = vld [vmem:[#allocation5 + $0x1a78] sm:$0xff]  ;;  %2951 = vmatpush.msrb.mxu1 %v446_v0 }
 0x2fb   :  { %3009 = vmatpush.msrb.mxu3 %v958_v14  ;;  %v686_v40 = vld [vmem:[#allocation5 + $0x11f8] sm:$0xff]  ;;  %v7031_v14 = vpop.f32.mrf.mxu3 }
 0x2fc   :  { %v174_v2 = vld [vmem:[#allocation5 + $0x1f8] sm:$0xff]  ;;  %2981 = vmatpush.msrb.mxu2 %v686_v40  ;;  %v7033_v40 = vpop.f32.mrf.mxu0 }
 0x2fd   :  { %v430_v1 = vld [vmem:[#allocation5 + $0x9f8] sm:$0xff]  ;;  %2923 = vmatpush.msrb.mxu0 %v174_v2  ;;  %v7035_v2 = vpop.f32.mrf.mxu1 }
 0x2fe   :  { %v942_v21 = vld [vmem:[#allocation5 + $0x19f8] sm:$0xff]  ;;  %2952 = vmatpush.msrb.mxu1 %v430_v1 }
 0x2ff   :  { %v670_v13 = vld [vmem:[#allocation5 + $0x1178] sm:$0xff]  ;;  %3010 = vmatpush.msrb.mxu3 %v942_v21 }
 0x300   :  { %v158_v17 = vld [vmem:[#allocation5 + $0x178] sm:$0xff]  ;;  %2982 = vmatpush.msrb.mxu2 %v670_v13  ;;  %v3151_v13 = vld [vmem:[#allocation8 + $0x1e0] sm:$0xff] }
 0x301   :  { %v414_v59 = vld [vmem:[#allocation5 + $0x978] sm:$0xff]  ;;  %2924 = vmatpush.msrb.mxu0 %v158_v17  ;;  %v3215_v17 = vld [vmem:[#allocation8 + $0x3e0] sm:$0xff] }
 0x302   :  { %v926_v26 = vld [vmem:[#allocation5 + $0x1978] sm:$0xff]  ;;  %2953 = vmatpush.msrb.mxu1 %v414_v59  ;;  %v3279_v59 = vld [vmem:[#allocation8 + $0x5e0] sm:$0xff] }
 0x303   :  { %v654_v5 = vld [vmem:[#allocation5 + $0x10f8] sm:$0xff]  ;;  %3011 = vmatpush.msrb.mxu3 %v926_v26  ;;  %v3343_v26 = vld [vmem:[#allocation8 + $0x7e0] sm:$0xff] }
 0x304   :  { %v142_v0 = vld [vmem:[#allocation5 + $0xf8] sm:$0xff]  ;;  %2983 = vmatpush.msrb.mxu2 %v654_v5  ;;  %v3147_v5 = vld [vmem:[#allocation8 + $0x1c0] sm:$0xff] }
 0x305   :  { %v398_v54 = vld [vmem:[#allocation5 + $0x8f8] sm:$0xff]  ;;  %2925 = vmatpush.msrb.mxu0 %v142_v0  ;;  %v3211_v0 = vld [vmem:[#allocation8 + $0x3c0] sm:$0xff] }
 0x306   :  { %v910_v63 = vld [vmem:[#allocation5 + $0x18f8] sm:$0xff]  ;;  %2954 = vmatpush.msrb.mxu1 %v398_v54  ;;  %v3143_v54 = vld [vmem:[#allocation8 + $0x1a0] sm:$0xff] }
 0x307   :  { %v638_v6 = vld [vmem:[#allocation5 + $0x1078] sm:$0xff]  ;;  %3012 = vmatpush.msrb.mxu3 %v910_v63  ;;  %v7041_v63 = vpop.f32.mrf.mxu2 }
 0x308   :  { %v126_v57 = vld [vmem:[#allocation5 + $0x78] sm:$0xff]  ;;  %2984 = vmatpush.msrb.mxu2 %v638_v6  ;;  %v3275_v6 = vld [vmem:[#allocation8 + $0x5c0] sm:$0xff] }
 0x309   :  { %v382_v1 = vld [vmem:[#allocation5 + $0x878] sm:$0xff]  ;;  %2926 = vmatpush.msrb.mxu0 %v126_v57  ;;  %2985 = vmatmul.f32.vlgmr.msrb.gmra.mxu2 %v6867_v25  ;;  %v3339_v57 = vld [vmem:[#allocation8 + $0x7c0] sm:$0xff] }
 0x30a   :  { %v894_v21 = vld [vmem:[#allocation5 + $0x1878] sm:$0xff]  ;;  %2955 = vmatpush.msrb.mxu1 %v382_v1  ;;  %2927 = vmatmul.f32.vlgmr.msrb.gmra.mxu0 %v6861_v11  ;;  %v3207_v11 = vld [vmem:[#allocation8 + $0x3a0] sm:$0xff]  ;;  %v7043_v1 = vpop.f32.mrf.mxu3 }
 0x30b   :  { %3013 = vmatpush.msrb.mxu3 %v894_v21  ;;  %2956 = vmatmul.f32.vlgmr.msrb.gmra.mxu1 %v6864_v37  ;;  %v3271_v37 = vld [vmem:[#allocation8 + $0x5a0] sm:$0xff] }
 0x30c   :  { %3014 = vmatmul.f32.vlgmr.msrb.gmra.mxu3 %v6870_v9  ;;  %4125 = vmatpush.msra.mxu0 %v3151_v13  ;;  %v3335_v25 = vld [vmem:[#allocation8 + $0x7a0] sm:$0xff]  ;;  %v7045_v13 = vpop.f32.mrf.mxu0 }
 0x30d   :  { %4154 = vmatpush.msra.mxu1 %v3215_v17  ;;  %4183 = vmatpush.msra.mxu2 %v3279_v59  ;;  %v3139_v9 = vld [vmem:[#allocation8 + $0x180] sm:$0xff]  ;;  %v7047_v17 = vpop.f32.mrf.mxu1 }
 0x30e   :  { %4212 = vmatpush.msra.mxu3 %v3343_v26  ;;  %4126 = vmatpush.msra.mxu0 %v3147_v5  ;;  %v3203_v21 = vld [vmem:[#allocation8 + $0x380] sm:$0xff]  ;;  %8723 = vst [vmem:[#allocation169_spill] sm:$0xff] %v7047_v17 }
 0x30f   :  { %4155 = vmatpush.msra.mxu1 %v3211_v0  ;;  %4184 = vmatpush.msra.mxu2 %v3275_v6  ;;  %v3267_v59 = vld [vmem:[#allocation8 + $0x580] sm:$0xff] }
 0x310   :  { %4213 = vmatpush.msra.mxu3 %v3339_v57  ;;  %4127 = vmatpush.msra.mxu0 %v3143_v54  ;;  %v3331_v26 = vld [vmem:[#allocation8 + $0x780] sm:$0xff] }
 0x311   :  { %4156 = vmatpush.msra.mxu1 %v3207_v11  ;;  %4185 = vmatpush.msra.mxu2 %v3271_v37  ;;  %v3135_v5 = vld [vmem:[#allocation8 + $0x160] sm:$0xff] }
 0x312   :  { %4214 = vmatpush.msra.mxu3 %v3335_v25  ;;  %4128 = vmatpush.msra.mxu0 %v3139_v9  ;;  %v3199_v0 = vld [vmem:[#allocation8 + $0x360] sm:$0xff]  ;;  %v7053_v9 = vpop.f32.mrf.mxu2 }
 0x313   :  { %4157 = vmatpush.msra.mxu1 %v3203_v21  ;;  %4186 = vmatpush.msra.mxu2 %v3267_v59  ;;  %v3263_v6 = vld [vmem:[#allocation8 + $0x560] sm:$0xff]  ;;  %8724 = vst [vmem:[#allocation170_spill] sm:$0xff] %v7053_v9  ;;  %v7055_v59 = vpop.f32.mrf.mxu3 }
 0x314   :  { %4215 = vmatpush.msra.mxu3 %v3331_v26  ;;  %2930 = vmatmul.f32.gmra.mxu0 %v6881_v48  ;;  %v3327_v57 = vld [vmem:[#allocation8 + $0x760] sm:$0xff]  ;;  %8725 = vst [vmem:[#allocation171_spill] sm:$0xff] %v7055_v59  ;;  %v7057_v26 = vld [vmem:[#allocation7] sm:$0xff] }
 0x315   :  { %2959 = vmatmul.f32.gmra.mxu1 %v6884_v50  ;;  %2988 = vmatmul.f32.gmra.mxu2 %v6887_v42  ;;  %v3131_v54 = vld [vmem:[#allocation8 + $0x140] sm:$0xff]  ;;  %v7061_v17 = vpop.f32.mrf.mxu1 }
 0x316   :  { %3017 = vmatmul.f32.gmra.mxu3 %v6890_v43  ;;  %v3195_v11 = vld [vmem:[#allocation8 + $0x340] sm:$0xff]  ;;  %4129 = vmatpush.msra.mxu0 %v3135_v5  ;;  %8727 = vst [vmem:[#allocation173_spill] sm:$0xff] %v7061_v17 }
 0x317   :  { %4158 = vmatpush.msra.mxu1 %v3199_v0  ;;  %v3259_v37 = vld [vmem:[#allocation8 + $0x540] sm:$0xff]  ;;  %4187 = vmatpush.msra.mxu2 %v3263_v6  ;;  %v7059_v0 = vpop.f32.mrf.mxu0 }
 0x318   :  { %v3323_v25 = vld [vmem:[#allocation8 + $0x740] sm:$0xff]  ;;  %4216 = vmatpush.msra.mxu3 %v3327_v57  ;;  %4130 = vmatpush.msra.mxu0 %v3131_v54  ;;  %8726 = vst [vmem:[#allocation172_spill] sm:$0xff] %v7059_v0  ;;  %v7064_v54 = vperm.slane %v7057_v26, 0 }
 0x319   :  { %v3127_v21 = vld [vmem:[#allocation8 + $0x120] sm:$0xff]  ;;  %4159 = vmatpush.msra.mxu1 %v3195_v11  ;;  %4188 = vmatpush.msra.mxu2 %v3259_v37  ;;  %v7067_v11 = vperm.slane %v7057_v26, 1  ;;  %v7070_v37 = vperm.slane %v7057_v26, 2 }
 0x31a   :  { %v3191_v48 = vld [vmem:[#allocation8 + $0x320] sm:$0xff]  ;;  %4217 = vmatpush.msra.mxu3 %v3323_v25  ;;  %4131 = vmatpush.msra.mxu0 %v3127_v21  ;;  %v7073_v25 = vperm.slane %v7057_v26, 3  ;;  %v1189_v17 = vadd.f32 %v6375_v15, %v7064_v54  ;;  %v7083_v0 = vpop.f32.mrf.mxu2 }
 0x31b   :  { %v3255_v50 = vld [vmem:[#allocation8 + $0x520] sm:$0xff]  ;;  %4160 = vmatpush.msra.mxu1 %v3191_v48  ;;  %8728 = vst [vmem:[#allocation174_spill] sm:$0xff] %v7083_v0  ;;  %v7089_v15 = vpop.f32.mrf.mxu3 }
 0x31c   :  { %v3319_v42 = vld [vmem:[#allocation8 + $0x720] sm:$0xff]  ;;  %4189 = vmatpush.msra.mxu2 %v3255_v50  ;;  %2933 = vmatmul.f32.gmra.mxu0 %v6901_v24  ;;  %8729 = vst [vmem:[#allocation175_spill] sm:$0xff] %v7089_v15 }
 0x31d   :  { %v3123_v43 = vld [vmem:[#allocation8 + $0x100] sm:$0xff]  ;;  %4218 = vmatpush.msra.mxu3 %v3319_v42  ;;  %2962 = vmatmul.f32.gmra.mxu1 %v6904_v62  ;;  %v1421_v62 = vadd.f32 %v6501_v23, %v7070_v37  ;;  %v7093_v23 = vpop.f32.mrf.mxu1 }
 0x31e   :  { %v3187_v5 = vld [vmem:[#allocation8 + $0x300] sm:$0xff]  ;;  %4132 = vmatpush.msra.mxu0 %v3123_v43  ;;  %2991 = vmatmul.f32.gmra.mxu2 %v6907_v28  ;;  %v1537_v28 = vadd.f32 %v6549_v46, %v7073_v25  ;;  %v1218_v46 = vadd.f32 %v6377_v3, %v1189_v17 }
 0x31f   :  { %v3251_v6 = vld [vmem:[#allocation8 + $0x500] sm:$0xff]  ;;  %4161 = vmatpush.msra.mxu1 %v3187_v5  ;;  %3020 = vmatmul.f32.gmra.mxu3 %v6910_v20  ;;  %v7091_v59 = vpop.f32.mrf.mxu0 }
 0x320   :  { %v3315_v57 = vld [vmem:[#allocation8 + $0x700] sm:$0xff]  ;;  %4190 = vmatpush.msra.mxu2 %v3251_v6  ;;  %v1305_v6 = vadd.f32 %v6429_v38, %v7067_v11  ;;  %v1247_v3 = vadd.f32 %v6383_v30, %v1218_v46  ;;  %v1192_v30 = vadd.f32 %v6385_v33, %v7064_v54 }
 0x321   :  { %4219 = vmatpush.msra.mxu3 %v3315_v57  ;;  %v3119_v21 = vld [vmem:[#allocation8 + $0xe0] sm:$0xff] }
 0x322   :  { %v3183_v48 = vld [vmem:[#allocation8 + $0x2e0] sm:$0xff]  ;;  %4133 = vmatpush.msra.mxu0 %v3119_v21 }
 0x323   :  { %v3247_v50 = vld [vmem:[#allocation8 + $0x4e0] sm:$0xff]  ;;  %4162 = vmatpush.msra.mxu1 %v3183_v48  ;;  %v7117_v33 = vpop.f32.mrf.mxu3 }
 0x324   :  { %v3311_v42 = vld [vmem:[#allocation8 + $0x6e0] sm:$0xff]  ;;  %4191 = vmatpush.msra.mxu2 %v3247_v50  ;;  %v1334_v50 = vadd.f32 %v6431_v39, %v1305_v6  ;;  %2936 = vmatmul.f32.gmra.mxu0 %v6921_v18 }
 0x325   :  { %v3115_v43 = vld [vmem:[#allocation8 + $0xc0] sm:$0xff]  ;;  %4220 = vmatpush.msra.mxu3 %v3311_v42  ;;  %2965 = vmatmul.f32.gmra.mxu1 %v6924_v7  ;;  %v7125_v46 = vpop.f32.mrf.mxu1 }
 0x326   :  { %v3179_v5 = vld [vmem:[#allocation8 + $0x2c0] sm:$0xff]  ;;  %4134 = vmatpush.msra.mxu0 %v3115_v43  ;;  %v1450_v43 = vadd.f32 %v6503_v44, %v1421_v62  ;;  %v1363_v39 = vadd.f32 %v6445_v58, %v1334_v50  ;;  %2994 = vmatmul.f32.gmra.mxu2 %v6927_v29  ;;  %v1308_v58 = vadd.f32 %v6449_v60, %v7067_v11  ;;  %v7111_v62 = vpop.f32.mrf.mxu2 }
 0x327   :  { %v3243_v57 = vld [vmem:[#allocation8 + $0x4c0] sm:$0xff]  ;;  %4163 = vmatpush.msra.mxu1 %v3179_v5  ;;  %v1566_v5 = vadd.f32 %v6551_v55, %v1537_v28  ;;  %3023 = vmatmul.f32.gmra.mxu3 %v6930_v8  ;;  %8730 = vst [vmem:[#allocation176_spill] sm:$0xff] %v7111_v62  ;;  %v1276_v60 = vadd.f32 %v6395_v51, %v1247_v3 }
 0x328   :  { %v3307_v24 = vld [vmem:[#allocation8 + $0x6c0] sm:$0xff]  ;;  %4192 = vmatpush.msra.mxu2 %v3243_v57  ;;  %v1479_v55 = vadd.f32 %v6509_v12, %v1450_v43  ;;  %v1424_v12 = vadd.f32 %v6513_v41, %v7070_v37  ;;  %v1392_v28 = vadd.f32 %v6467_v36, %v1363_v39  ;;  %8732 = vst [vmem:[#allocation178_spill] sm:$0xff] %v7125_v46 }
 0x329   :  { %v3111_v20 = vld [vmem:[#allocation8 + $0xa0] sm:$0xff]  ;;  %4221 = vmatpush.msra.mxu3 %v3307_v24  ;;  %v1221_v51 = vadd.f32 %v6387_v34, %v1192_v30  ;;  %v1337_v36 = vadd.f32 %v6451_v61, %v1308_v58  ;;  %v7131_v43 = vmax.f32 %v1276_v60, 0.0  ;;  %v8741_v60 = vld [vmem:[#allocation34_spill] sm:$0xff] }
 0x32a   :  { %v3175_v9 = vld [vmem:[#allocation8 + $0x2a0] sm:$0xff]  ;;  %4135 = vmatpush.msra.mxu0 %v3111_v20 }
 0x32b   :  { %v3239_v38 = vld [vmem:[#allocation8 + $0x4a0] sm:$0xff]  ;;  %4164 = vmatpush.msra.mxu1 %v3175_v9  ;;  %v1595_v9 = vadd.f32 %v6557_v19, %v1566_v5  ;;  %v1540_v19 = vadd.f32 %v6561_v31, %v7073_v25  ;;  %8733 = vst [vmem:[#allocation179_spill] sm:$0xff] %v7131_v43  ;;  %v7133_v5 = vmax.f32 %v1392_v28, 0.0 }
 0x32c   :  { %v3303_v21 = vld [vmem:[#allocation8 + $0x6a0] sm:$0xff]  ;;  %4193 = vmatpush.msra.mxu2 %v3239_v38  ;;  %v1508_v38 = vadd.f32 %v6523_v56, %v1479_v55  ;;  %v1453_v56 = vadd.f32 %v6515_v52, %v1424_v12  ;;  %v1250_v52 = vadd.f32 %v6393_v49, %v1221_v51  ;;  %v1195_v49 = vadd.f32 %v6397_v53, %v7064_v54  ;;  %v7157_v53 = vpop.f32.mrf.mxu3  ;;  %v8740_v12 = vld [vmem:[#allocation26_spill] sm:$0xff] }
 0x32d   :  { %v3107_v48 = vld [vmem:[#allocation8 + $0x80] sm:$0xff]  ;;  %4222 = vmatpush.msra.mxu3 %v3303_v21  ;;  %v1624_v41 = vadd.f32 %v6571_v22, %v1595_v9  ;;  %v1569_v22 = vadd.f32 %v6563_v10, %v1540_v19  ;;  %8734 = vst [vmem:[#allocation180_spill] sm:$0xff] %v7133_v5  ;;  %v1366_v10 = vadd.f32 %v6465_v32, %v1337_v36 }
 0x32e   :  { %v3171_v0 = vld [vmem:[#allocation8 + $0x280] sm:$0xff]  ;;  %4136 = vmatpush.msra.mxu0 %v3107_v48  ;;  %v7123_v48 = vpop.f32.mrf.mxu0  ;;  %v1311_v32 = vadd.f32 %v6469_v47, %v7067_v11  ;;  %v7151_v30 = vpop.f32.mrf.mxu2  ;;  %8738 = vst [vmem:[#allocation184_spill] sm:$0xff] %v7157_v53 }
 0x32f   :  { %v3235_v42 = vld [vmem:[#allocation8 + $0x480] sm:$0xff]  ;;  %4165 = vmatpush.msra.mxu1 %v3171_v0  ;;  %8731 = vst [vmem:[#allocation177_spill] sm:$0xff] %v7123_v48  ;;  %v7137_v34 = vmax.f32 %v1624_v41, 0.0  ;;  %v1395_v19 = vadd.f32 %v8740_v12, %v1366_v10  ;;  %v7165_v41 = vpop.f32.mrf.mxu1  ;;  %v8891_v48 = vld [vmem:[#allocation150_spill] sm:$0xff] }
 0x330   :  { %v3299_v15 = vld [vmem:[#allocation8 + $0x680] sm:$0xff]  ;;  %4194 = vmatpush.msra.mxu2 %v3235_v42  ;;  %8737 = vst [vmem:[#allocation183_spill] sm:$0xff] %v7151_v30 }
 0x331   :  { %4223 = vmatpush.msra.mxu3 %v3299_v15  ;;  %v3103_v57 = vld [vmem:[#allocation8 + $0x60] sm:$0xff]  ;;  %8736 = vst [vmem:[#allocation182_spill] sm:$0xff] %v7137_v34  ;;  %v7173_v10 = vmax.f32 %v1395_v19, 0.0 }
 0x332   :  { %v3167_v24 = vld [vmem:[#allocation8 + $0x260] sm:$0xff]  ;;  %4137 = vmatpush.msra.mxu0 %v3103_v57  ;;  %v7135_v57 = vmax.f32 %v1508_v38, 0.0 }
 0x333   :  { %v3231_v17 = vld [vmem:[#allocation8 + $0x460] sm:$0xff]  ;;  %4166 = vmatpush.msra.mxu1 %v3167_v24  ;;  %8748 = vst [vmem:[#allocation26_spill] sm:$0xff] %v7173_v10 }
 0x334   :  { %v3295_v44 = vld [vmem:[#allocation8 + $0x660] sm:$0xff]  ;;  %4195 = vmatpush.msra.mxu2 %v3231_v17  ;;  %8735 = vst [vmem:[#allocation181_spill] sm:$0xff] %v7135_v57  ;;  %v1482_v17 = vadd.f32 %v6521_v45, %v1453_v56  ;;  %v1427_v45 = vadd.f32 %v6525_v4, %v7070_v37  ;;  %v8742_v4 = vld [vmem:[#allocation42_spill] sm:$0xff] }
 0x335   :  { %v3099_v0 = vld [vmem:[#allocation8 + $0x40] sm:$0xff]  ;;  %4224 = vmatpush.msra.mxu3 %v3295_v44  ;;  %v1598_v44 = vadd.f32 %v6569_v35, %v1569_v22  ;;  %v1543_v35 = vadd.f32 %v6573_v16, %v7073_v25 }
 0x336   :  { %v3163_v6 = vld [vmem:[#allocation8 + $0x240] sm:$0xff]  ;;  %4138 = vmatpush.msra.mxu0 %v3099_v0  ;;  %v1511_v28 = vadd.f32 %v8741_v60, %v1482_v17  ;;  %v7163_v38 = vpop.f32.mrf.mxu0 }
 0x337   :  { %v3227_v18 = vld [vmem:[#allocation8 + $0x440] sm:$0xff]  ;;  %4167 = vmatpush.msra.mxu1 %v3163_v6 }
 0x338   :  { %v3291_v7 = vld [vmem:[#allocation8 + $0x640] sm:$0xff]  ;;  %4196 = vmatpush.msra.mxu2 %v3227_v18 }
 0x339   :  { %v3095_v29 = vld [vmem:[#allocation8 + $0x20] sm:$0xff]  ;;  %4225 = vmatpush.msra.mxu3 %v3291_v7  ;;  %v8739_v7 = vld [vmem:[#allocation18_spill] sm:$0xff] }
 0x33a   :  { %v3159_v8 = vld [vmem:[#allocation8 + $0x220] sm:$0xff]  ;;  %4139 = vmatpush.msra.mxu0 %v3095_v29  ;;  %v1279_v47 = vadd.f32 %v8739_v7, %v1250_v52 }
 0x33b   :  { %v3223_v20 = vld [vmem:[#allocation8 + $0x420] sm:$0xff]  ;;  %4168 = vmatpush.msra.mxu1 %v3159_v8 }
 0x33c   :  { %v3287_v15 = vld [vmem:[#allocation8 + $0x620] sm:$0xff]  ;;  %4197 = vmatpush.msra.mxu2 %v3223_v20  ;;  %v1627_v20 = vadd.f32 %v8742_v4, %v1598_v44  ;;  %v7171_v52 = vmax.f32 %v1279_v47, 0.0  ;;  %v7191_v4 = vpop.f32.mrf.mxu2 }
 0x33d   :  { %v3091_v31 = vld [vmem:[#allocation8] sm:$0xff]  ;;  %4226 = vmatpush.msra.mxu3 %v3287_v15 }
 0x33e   :  { %v3155_v21 = vld [vmem:[#allocation8 + $0x200] sm:$0xff]  ;;  %4140 = vmatpush.msra.mxu0 %v3091_v31  ;;  %8747 = vst [vmem:[#allocation18_spill] sm:$0xff] %v7171_v52 }
 0x33f   :  { %v3219_v50 = vld [vmem:[#allocation8 + $0x400] sm:$0xff]  ;;  %4169 = vmatpush.msra.mxu1 %v3155_v21  ;;  %4141 = vmatmul.f32.vlgmr.msra.gmra.mxu0 %v7131_v43 }
 0x340   :  { %v3283_v42 = vld [vmem:[#allocation8 + $0x600] sm:$0xff]  ;;  %4198 = vmatpush.msra.mxu2 %v3219_v50  ;;  %4170 = vmatmul.f32.vlgmr.msra.gmra.mxu1 %v7133_v5 }
 0x341   :  { %4227 = vmatpush.msra.mxu3 %v3283_v42  ;;  %v3407_v61 = vld [vmem:[#allocation8 + $0x9e0] sm:$0xff]  ;;  %4199 = vmatmul.f32.vlgmr.msra.gmra.mxu2 %v7135_v57 }
 0x342   :  { %v3471_v24 = vld [vmem:[#allocation8 + $0xbe0] sm:$0xff]  ;;  %4228 = vmatmul.f32.vlgmr.msra.gmra.mxu3 %v7137_v34  ;;  %4241 = vmatpush.msrb.mxu0 %v3407_v61 }
 0x343   :  { %v3535_v3 = vld [vmem:[#allocation8 + $0xde0] sm:$0xff]  ;;  %4270 = vmatpush.msrb.mxu1 %v3471_v24 }
 0x344   :  { %v3599_v39 = vld [vmem:[#allocation8 + $0xfe0] sm:$0xff]  ;;  %4299 = vmatpush.msrb.mxu2 %v3535_v3  ;;  %v7175_v3 = vmax.f32 %v1511_v28, 0.0 }
 0x345   :  { %v3403_v55 = vld [vmem:[#allocation8 + $0x9c0] sm:$0xff]  ;;  %4328 = vmatpush.msrb.mxu3 %v3599_v39  ;;  %v7177_v39 = vmax.f32 %v1627_v20, 0.0 }
 0x346   :  { %v3467_v9 = vld [vmem:[#allocation8 + $0xbc0] sm:$0xff]  ;;  %4242 = vmatpush.msrb.mxu0 %v3403_v55  ;;  %8749 = vst [vmem:[#allocation34_spill] sm:$0xff] %v7175_v3  ;;  %v8751_v55 = vld [vmem:[#allocation17_spill] sm:$0xff] }
 0x347   :  { %v3531_v0 = vld [vmem:[#allocation8 + $0xdc0] sm:$0xff]  ;;  %4271 = vmatpush.msrb.mxu1 %v3467_v9  ;;  %8750 = vst [vmem:[#allocation42_spill] sm:$0xff] %v7177_v39  ;;  %4144 = vmatmul.f32.gmra.mxu0 %v7171_v52 }
 0x348   :  { %v3595_v6 = vld [vmem:[#allocation8 + $0xfc0] sm:$0xff]  ;;  %4300 = vmatpush.msrb.mxu2 %v3531_v0  ;;  %4173 = vmatmul.f32.gmra.mxu1 %v7173_v10 }
 0x349   :  { %v3399_v58 = vld [vmem:[#allocation8 + $0x9a0] sm:$0xff]  ;;  %4329 = vmatpush.msrb.mxu3 %v3595_v6  ;;  %4202 = vmatmul.f32.gmra.mxu2 %v7175_v3 }
 0x34a   :  { %v3463_v18 = vld [vmem:[#allocation8 + $0xba0] sm:$0xff]  ;;  %4243 = vmatpush.msrb.mxu0 %v3399_v58  ;;  %v8754_v58 = vld [vmem:[#allocation41_spill] sm:$0xff]  ;;  %4231 = vmatmul.f32.gmra.mxu3 %v7177_v39 }
 0x34b   :  { %v3527_v29 = vld [vmem:[#allocation8 + $0xda0] sm:$0xff]  ;;  %4272 = vmatpush.msrb.mxu1 %v3463_v18 }
 0x34c   :  { %v3591_v8 = vld [vmem:[#allocation8 + $0xfa0] sm:$0xff]  ;;  %4301 = vmatpush.msrb.mxu2 %v3527_v29 }
 0x34d   :  { %v3395_v16 = vld [vmem:[#allocation8 + $0x980] sm:$0xff]  ;;  %4330 = vmatpush.msrb.mxu3 %v3591_v8 }
 0x34e   :  { %v3459_v15 = vld [vmem:[#allocation8 + $0xb80] sm:$0xff]  ;;  %4244 = vmatpush.msrb.mxu0 %v3395_v16 }
 0x34f   :  { %v8743_v31 = vld [vmem:[#allocation16_spill] sm:$0xff]  ;;  %4273 = vmatpush.msrb.mxu1 %v3459_v15  ;;  %v8755_v12 = vld [vmem:[#allocation19_spill] sm:$0xff] }
 0x350   :  { %v1224_v21 = vadd.f32 %v8743_v31, %v1195_v49  ;;  %v8744_v51 = vld [vmem:[#allocation24_spill] sm:$0xff]  ;;  %v8752_v49 = vld [vmem:[#allocation25_spill] sm:$0xff]  ;;  %v1198_v19 = vadd.f32 %v8755_v12, %v7064_v54  ;;  %v8756_v29 = vld [vmem:[#allocation27_spill] sm:$0xff]  ;;  %v7197_v54 = vpop.f32.mrf.mxu3 }
 0x351   :  { %v1340_v36 = vadd.f32 %v8744_v51, %v1311_v32  ;;  %v3523_v50 = vld [vmem:[#allocation8 + $0xd80] sm:$0xff]  ;;  %v1314_v8 = vadd.f32 %v8756_v29, %v7067_v11  ;;  %8759 = vst [vmem:[#allocation16_spill] sm:$0xff] %v7197_v54  ;;  %v8866_v54 = vld [vmem:[#allocation66_spill] sm:$0xff] }
 0x352   :  { %v3587_v42 = vld [vmem:[#allocation8 + $0xf80] sm:$0xff]  ;;  %4302 = vmatpush.msrb.mxu2 %v3523_v50  ;;  %v1253_v9 = vadd.f32 %v8751_v55, %v1224_v21  ;;  %v8761_v50 = vld [vmem:[#allocation30_spill] sm:$0xff]  ;;  %v7203_v55 = vpop.f32.mrf.mxu0 }
 0x353   :  { %v8745_v56 = vld [vmem:[#allocation32_spill] sm:$0xff]  ;;  %4331 = vmatpush.msrb.mxu3 %v3587_v42  ;;  %v1369_v32 = vadd.f32 %v8752_v49, %v1340_v36  ;;  %v8757_v20 = vld [vmem:[#allocation35_spill] sm:$0xff]  ;;  %v8760_v36 = vld [vmem:[#allocation22_spill] sm:$0xff]  ;;  %v7205_v49 = vpop.f32.mrf.mxu1 }
 0x354   :  { %v1456_v22 = vadd.f32 %v8745_v56, %v1427_v45  ;;  %v8746_v61 = vld [vmem:[#allocation40_spill] sm:$0xff]  ;;  %v8753_v45 = vld [vmem:[#allocation33_spill] sm:$0xff]  ;;  %v1430_v16 = vadd.f32 %v8757_v20, %v7070_v37  ;;  %v8758_v15 = vld [vmem:[#allocation43_spill] sm:$0xff]  ;;  %v1282_v11 = vadd.f32 %v8760_v36, %v1253_v9  ;;  %v7226_v20 = vperm.slane %v7057_v26, 6 }
 0x355   :  { %v1572_v24 = vadd.f32 %v8746_v61, %v1543_v35  ;;  %v3391_v17 = vld [vmem:[#allocation8 + $0x960] sm:$0xff]  ;;  %v1546_v31 = vadd.f32 %v8758_v15, %v7073_v25  ;;  %v1398_v42 = vadd.f32 %v8761_v50, %v1369_v32  ;;  %v8762_v61 = vld [vmem:[#allocation38_spill] sm:$0xff]  ;;  %v8773_v36 = vld [vmem:[#allocation29_spill] sm:$0xff] }
 0x356   :  { %v3455_v44 = vld [vmem:[#allocation8 + $0xb60] sm:$0xff]  ;;  %v1485_v35 = vadd.f32 %v8753_v45, %v1456_v22  ;;  %4245 = vmatpush.msrb.mxu0 %v3391_v17  ;;  %v8763_v37 = vld [vmem:[#allocation46_spill] sm:$0xff]  ;;  %v7211_v12 = vmax.f32 %v1282_v11, 0.0 }
 0x357   :  { %v3519_v0 = vld [vmem:[#allocation8 + $0xd60] sm:$0xff]  ;;  %v1601_v18 = vadd.f32 %v8754_v58, %v1572_v24  ;;  %4274 = vmatpush.msrb.mxu1 %v3455_v44  ;;  %v7213_v29 = vmax.f32 %v1398_v42, 0.0 }
 0x358   :  { %v3583_v6 = vld [vmem:[#allocation8 + $0xf60] sm:$0xff]  ;;  %4303 = vmatpush.msrb.mxu2 %v3519_v0  ;;  %v1514_v24 = vadd.f32 %v8762_v61, %v1485_v35  ;;  %8768 = vst [vmem:[#allocation24_spill] sm:$0xff] %v7211_v12  ;;  %4147 = vmatmul.f32.gmra.mxu0 %v7211_v12  ;;  %v8775_v61 = vld [vmem:[#allocation45_spill] sm:$0xff] }
 0x359   :  { %v3387_v7 = vld [vmem:[#allocation8 + $0x940] sm:$0xff]  ;;  %4332 = vmatpush.msrb.mxu3 %v3583_v6  ;;  %v1630_v17 = vadd.f32 %v8763_v37, %v1601_v18  ;;  %8769 = vst [vmem:[#allocation32_spill] sm:$0xff] %v7213_v29  ;;  %4176 = vmatmul.f32.gmra.mxu1 %v7213_v29 }
 0x35a   :  { %v3451_v47 = vld [vmem:[#allocation8 + $0xb40] sm:$0xff]  ;;  %4246 = vmatpush.msrb.mxu0 %v3387_v7 }
 0x35b   :  { %v3515_v60 = vld [vmem:[#allocation8 + $0xd40] sm:$0xff]  ;;  %4275 = vmatpush.msrb.mxu1 %v3451_v47 }
 0x35c   :  { %v3579_v28 = vld [vmem:[#allocation8 + $0xf40] sm:$0xff]  ;;  %4304 = vmatpush.msrb.mxu2 %v3515_v60  ;;  %v7216_v60 = vperm.slane %v7057_v26, 4 }
 0x35d   :  { %v3383_v21 = vld [vmem:[#allocation8 + $0x920] sm:$0xff]  ;;  %4333 = vmatpush.msrb.mxu3 %v3579_v28  ;;  %v7223_v28 = vmax.f32 %v1630_v17, 0.0 }
 0x35e   :  { %v3447_v51 = vld [vmem:[#allocation8 + $0xb20] sm:$0xff]  ;;  %4247 = vmatpush.msrb.mxu0 %v3383_v21  ;;  %v8772_v21 = vld [vmem:[#allocation21_spill] sm:$0xff] }
 0x35f   :  { %v3511_v56 = vld [vmem:[#allocation8 + $0xd20] sm:$0xff]  ;;  %4276 = vmatpush.msrb.mxu1 %v3447_v51  ;;  %8771 = vst [vmem:[#allocation17_spill] sm:$0xff] %v7223_v28  ;;  %4234 = vmatmul.f32.gmra.mxu3 %v7223_v28 }
 0x360   :  { %v3575_v22 = vld [vmem:[#allocation8 + $0xf20] sm:$0xff]  ;;  %4305 = vmatpush.msrb.mxu2 %v3511_v56  ;;  %v8774_v56 = vld [vmem:[#allocation37_spill] sm:$0xff] }
 0x361   :  { %v3379_v25 = vld [vmem:[#allocation8 + $0x900] sm:$0xff]  ;;  %4334 = vmatpush.msrb.mxu3 %v3575_v22 }
 0x362   :  { %v3443_v44 = vld [vmem:[#allocation8 + $0xb00] sm:$0xff]  ;;  %4248 = vmatpush.msrb.mxu0 %v3379_v25 }
 0x363   :  { %v8764_v0 = vld [vmem:[#allocation20_spill] sm:$0xff]  ;;  %4277 = vmatpush.msrb.mxu1 %v3443_v44  ;;  %v8776_v17 = vld [vmem:[#allocation47_spill] sm:$0xff] }
 0x364   :  { %v1227_v9 = vadd.f32 %v8764_v0, %v1198_v19  ;;  %v8765_v6 = vld [vmem:[#allocation28_spill] sm:$0xff]  ;;  %v7219_v19 = vperm.slane %v7057_v26, 5  ;;  %v1653_v25 = vadd.f32 %v8776_v17, %v7216_v60  ;;  %v8777_v44 = vld [vmem:[#allocation63_spill] sm:$0xff] }
 0x365   :  { %v1343_v32 = vadd.f32 %v8765_v6, %v1314_v8  ;;  %v3507_v45 = vld [vmem:[#allocation8 + $0xd00] sm:$0xff]  ;;  %v7221_v8 = vmax.f32 %v1514_v24, 0.0 }
 0x366   :  { %v3571_v58 = vld [vmem:[#allocation8 + $0xf00] sm:$0xff]  ;;  %4306 = vmatpush.msrb.mxu2 %v3507_v45  ;;  %v1256_v51 = vadd.f32 %v8772_v21, %v1227_v9  ;;  %v1769_v0 = vadd.f32 %v8777_v44, %v7219_v19  ;;  %v7249_v21 = vpop.f32.mrf.mxu3 }
 0x367   :  { %v8766_v7 = vld [vmem:[#allocation36_spill] sm:$0xff]  ;;  %8770 = vst [vmem:[#allocation40_spill] sm:$0xff] %v7221_v8  ;;  %4335 = vmatpush.msrb.mxu3 %v3571_v58  ;;  %v1372_v11 = vadd.f32 %v8773_v36, %v1343_v32  ;;  %4205 = vmatmul.f32.gmra.mxu2 %v7221_v8  ;;  %v7243_v32 = vpop.f32.mrf.mxu2  ;;  %v8778_v45 = vld [vmem:[#allocation79_spill] sm:$0xff]  ;;  %v7257_v8 = vpop.f32.mrf.mxu1 }
 0x368   :  { %v1459_v35 = vadd.f32 %v8766_v7, %v1430_v16  ;;  %v8767_v47 = vld [vmem:[#allocation44_spill] sm:$0xff]  ;;  %v7229_v16 = vperm.slane %v7057_v26, 7  ;;  %v1885_v58 = vadd.f32 %v8778_v45, %v7226_v20  ;;  %v8779_v7 = vld [vmem:[#allocation95_spill] sm:$0xff]  ;;  %v8783_v45 = vld [vmem:[#allocation50_spill] sm:$0xff] }
 0x369   :  { %v1575_v18 = vadd.f32 %v8767_v47, %v1546_v31  ;;  %v3375_v15 = vld [vmem:[#allocation8 + $0x8e0] sm:$0xff] }
 0x36a   :  { %v3439_v31 = vld [vmem:[#allocation8 + $0xae0] sm:$0xff]  ;;  %v1488_v22 = vadd.f32 %v8774_v56, %v1459_v35  ;;  %4249 = vmatpush.msrb.mxu0 %v3375_v15  ;;  %v2001_v35 = vadd.f32 %v8779_v7, %v7229_v16  ;;  %v7255_v7 = vpop.f32.mrf.mxu0 }
 0x36b   :  { %v3503_v50 = vld [vmem:[#allocation8 + $0xce0] sm:$0xff]  ;;  %v1604_v24 = vadd.f32 %v8775_v61, %v1575_v18  ;;  %4278 = vmatpush.msrb.mxu1 %v3439_v31 }
 0x36c   :  { %v3567_v42 = vld [vmem:[#allocation8 + $0xee0] sm:$0xff]  ;;  %4307 = vmatpush.msrb.mxu2 %v3503_v50 }
 0x36d   :  { %v3371_v26 = vld [vmem:[#allocation8 + $0x8c0] sm:$0xff]  ;;  %4336 = vmatpush.msrb.mxu3 %v3567_v42  ;;  %v1633_v39 = vadd.f32 %v8783_v45, %v1604_v24 }
 0x36e   :  { %v3435_v37 = vld [vmem:[#allocation8 + $0xac0] sm:$0xff]  ;;  %4250 = vmatpush.msrb.mxu0 %v3371_v26 }
 0x36f   :  { %v3499_v9 = vld [vmem:[#allocation8 + $0xcc0] sm:$0xff]  ;;  %4279 = vmatpush.msrb.mxu1 %v3435_v37  ;;  %v7297_v3 = vpop.f32.mrf.mxu1 }
 0x370   :  { %v3563_v6 = vld [vmem:[#allocation8 + $0xec0] sm:$0xff]  ;;  %4308 = vmatpush.msrb.mxu2 %v3499_v9  ;;  %8806 = vst [vmem:[#allocation43_spill] sm:$0xff] %v7297_v3  ;;  %v8868_v3 = vld [vmem:[#allocation98_spill] sm:$0xff] }
 0x371   :  { %v3367_v47 = vld [vmem:[#allocation8 + $0x8a0] sm:$0xff]  ;;  %4337 = vmatpush.msrb.mxu3 %v3563_v6 }
 0x372   :  { %v3431_v18 = vld [vmem:[#allocation8 + $0xaa0] sm:$0xff]  ;;  %4251 = vmatpush.msrb.mxu0 %v3367_v47  ;;  %v8792_v47 = vld [vmem:[#allocation49_spill] sm:$0xff] }
 0x373   :  { %v8780_v36 = vld [vmem:[#allocation23_spill] sm:$0xff]  ;;  %v8784_v29 = vld [vmem:[#allocation48_spill] sm:$0xff]  ;;  %4280 = vmatpush.msrb.mxu1 %v3431_v18  ;;  %v8793_v18 = vld [vmem:[#allocation65_spill] sm:$0xff] }
 0x374   :  { %v1285_v56 = vadd.f32 %v8780_v36, %v1256_v51  ;;  %v8781_v15 = vld [vmem:[#allocation31_spill] sm:$0xff]  ;;  %v1682_v51 = vadd.f32 %v8784_v29, %v1653_v25  ;;  %v8785_v36 = vld [vmem:[#allocation64_spill] sm:$0xff]  ;;  %v7269_v29 = vmax.f32 %v1633_v39, 0.0 }
 0x375   :  { %v1401_v31 = vadd.f32 %v8781_v15, %v1372_v11  ;;  %v3495_v61 = vld [vmem:[#allocation8 + $0xca0] sm:$0xff]  ;;  %v1798_v11 = vadd.f32 %v8785_v36, %v1769_v0 }
 0x376   :  { %v3559_v17 = vld [vmem:[#allocation8 + $0xea0] sm:$0xff]  ;;  %4309 = vmatpush.msrb.mxu2 %v3495_v61  ;;  %v7263_v9 = vmax.f32 %v1285_v56, 0.0  ;;  %8791 = vst [vmem:[#allocation19_spill] sm:$0xff] %v7269_v29  ;;  %v8794_v61 = vld [vmem:[#allocation81_spill] sm:$0xff]  ;;  %4237 = vmatmul.f32.gmra.mxu3 %v7269_v29  ;;  %v8801_v29 = vld [vmem:[#allocation54_spill] sm:$0xff] }
 0x377   :  { %v8782_v44 = vld [vmem:[#allocation39_spill] sm:$0xff]  ;;  %v8786_v15 = vld [vmem:[#allocation80_spill] sm:$0xff]  ;;  %4338 = vmatpush.msrb.mxu3 %v3559_v17  ;;  %v7265_v6 = vmax.f32 %v1401_v31, 0.0  ;;  %v7337_v5 = vpop.f32.mrf.mxu1 }
 0x378   :  { %v1517_v28 = vadd.f32 %v8782_v44, %v1488_v22  ;;  %v3363_v50 = vld [vmem:[#allocation8 + $0x880] sm:$0xff]  ;;  %v1914_v22 = vadd.f32 %v8786_v15, %v1885_v58  ;;  %8788 = vst [vmem:[#allocation25_spill] sm:$0xff] %v7263_v9  ;;  %v1711_v58 = vadd.f32 %v8792_v47, %v1682_v51  ;;  %4150 = vmatmul.f32.gmra.mxu0 %v7263_v9  ;;  %v8803_v9 = vld [vmem:[#allocation86_spill] sm:$0xff] }
 0x379   :  { %v3427_v42 = vld [vmem:[#allocation8 + $0xa80] sm:$0xff]  ;;  %8789 = vst [vmem:[#allocation33_spill] sm:$0xff] %v7265_v6  ;;  %4252 = vmatpush.msrb.mxu0 %v3363_v50  ;;  %4179 = vmatmul.f32.gmra.mxu1 %v7265_v6 }
 0x37a   :  { %v3491_v26 = vld [vmem:[#allocation8 + $0xc80] sm:$0xff]  ;;  %4281 = vmatpush.msrb.mxu1 %v3427_v42  ;;  %v7267_v45 = vmax.f32 %v1517_v28, 0.0  ;;  %v1943_v17 = vadd.f32 %v8794_v61, %v1914_v22  ;;  %v8795_v28 = vld [vmem:[#allocation97_spill] sm:$0xff] }
 0x37b   :  { %v3555_v37 = vld [vmem:[#allocation8 + $0xe80] sm:$0xff]  ;;  %4310 = vmatpush.msrb.mxu2 %v3491_v26 }
 0x37c   :  { %v8787_v44 = vld [vmem:[#allocation96_spill] sm:$0xff]  ;;  %8790 = vst [vmem:[#allocation41_spill] sm:$0xff] %v7267_v45  ;;  %4339 = vmatpush.msrb.mxu3 %v3555_v37  ;;  %4208 = vmatmul.f32.gmra.mxu2 %v7267_v45  ;;  %v8796_v51 = vld [vmem:[#allocation51_spill] sm:$0xff]  ;;  %v1972_v12 = vadd.f32 %v8803_v9, %v1943_v17 }
 0x37d   :  { %v2030_v24 = vadd.f32 %v8787_v44, %v2001_v35  ;;  %v3359_v25 = vld [vmem:[#allocation8 + $0x860] sm:$0xff]  ;;  %v1827_v35 = vadd.f32 %v8793_v18, %v1798_v11  ;;  %v1656_v36 = vadd.f32 %v8796_v51, %v7216_v60  ;;  %v7283_v44 = vpop.f32.mrf.mxu2  ;;  %v7289_v51 = vpop.f32.mrf.mxu3 }
 0x37e   :  { %v3423_v0 = vld [vmem:[#allocation8 + $0xa60] sm:$0xff]  ;;  %4253 = vmatpush.msrb.mxu0 %v3359_v25  ;;  %8798 = vst [vmem:[#allocation27_spill] sm:$0xff] %v7283_v44  ;;  %v8802_v25 = vld [vmem:[#allocation70_spill] sm:$0xff] }
 0x37f   :  { %v3487_v56 = vld [vmem:[#allocation8 + $0xc60] sm:$0xff]  ;;  %v2059_v50 = vadd.f32 %v8795_v28, %v2030_v24  ;;  %4282 = vmatpush.msrb.mxu1 %v3423_v0  ;;  %v1856_v0 = vadd.f32 %v8802_v25, %v1827_v35  ;;  %v8892_v44 = vld [vmem:[#allocation166_spill] sm:$0xff] }
 0x380   :  { %v3551_v31 = vld [vmem:[#allocation8 + $0xe60] sm:$0xff]  ;;  %4311 = vmatpush.msrb.mxu2 %v3487_v56 }
 0x381   :  { %v3355_v39 = vld [vmem:[#allocation8 + $0x840] sm:$0xff]  ;;  %4340 = vmatpush.msrb.mxu3 %v3551_v31 }
 0x382   :  { %v3419_v42 = vld [vmem:[#allocation8 + $0xa40] sm:$0xff]  ;;  %4254 = vmatpush.msrb.mxu0 %v3355_v39 }
 0x383   :  { %v8797_v11 = vld [vmem:[#allocation67_spill] sm:$0xff]  ;;  %4283 = vmatpush.msrb.mxu1 %v3419_v42  ;;  %v8807_v10 = vld [vmem:[#allocation52_spill] sm:$0xff] }
 0x384   :  { %v1772_v26 = vadd.f32 %v8797_v11, %v7219_v19  ;;  %v3483_v37 = vld [vmem:[#allocation8 + $0xc40] sm:$0xff]  ;;  %v1740_v11 = vadd.f32 %v8801_v29, %v1711_v58  ;;  %v1685_v29 = vadd.f32 %v8807_v10, %v1656_v36 }
 0x385   :  { %v3547_v15 = vld [vmem:[#allocation8 + $0xe40] sm:$0xff]  ;;  %4312 = vmatpush.msrb.mxu2 %v3483_v37 }
 0x386   :  { %v8799_v22 = vld [vmem:[#allocation83_spill] sm:$0xff]  ;;  %4341 = vmatpush.msrb.mxu3 %v3547_v15  ;;  %v8808_v58 = vld [vmem:[#allocation68_spill] sm:$0xff]  ;;  %v7303_v37 = vmax.f32 %v1740_v11, 0.0  ;;  %v7305_v15 = vmax.f32 %v1856_v0, 0.0  ;;  %v8817_v11 = vld [vmem:[#allocation85_spill] sm:$0xff] }
 0x387   :  { %v1888_v24 = vadd.f32 %v8799_v22, %v7226_v20  ;;  %v8800_v47 = vld [vmem:[#allocation99_spill] sm:$0xff]  ;;  %v8804_v22 = vld [vmem:[#allocation102_spill] sm:$0xff]  ;;  %v1801_v35 = vadd.f32 %v8808_v58, %v1772_v26  ;;  %v8809_v25 = vld [vmem:[#allocation84_spill] sm:$0xff] }
 0x388   :  { %v2004_v18 = vadd.f32 %v8800_v47, %v7229_v16  ;;  %v3351_v61 = vld [vmem:[#allocation8 + $0x820] sm:$0xff]  ;;  %v2088_v34 = vadd.f32 %v8804_v22, %v2059_v50  ;;  %v7295_v47 = vpop.f32.mrf.mxu0  ;;  %8811 = vst [vmem:[#allocation22_spill] sm:$0xff] %v7303_v37  ;;  %v7307_v22 = vmax.f32 %v1972_v12, 0.0  ;;  %v8818_v12 = vld [vmem:[#allocation101_spill] sm:$0xff] }
 0x389   :  { %v3415_v28 = vld [vmem:[#allocation8 + $0xa20] sm:$0xff]  ;;  %8805 = vst [vmem:[#allocation35_spill] sm:$0xff] %v7295_v47  ;;  %4255 = vmatpush.msrb.mxu0 %v3351_v61  ;;  %v1917_v9 = vadd.f32 %v8809_v25, %v1888_v24  ;;  %v8815_v61 = vld [vmem:[#allocation53_spill] sm:$0xff] }
 0x38a   :  { %v3479_v45 = vld [vmem:[#allocation8 + $0xc20] sm:$0xff]  ;;  %4284 = vmatpush.msrb.mxu1 %v3415_v28  ;;  %8812 = vst [vmem:[#allocation30_spill] sm:$0xff] %v7305_v15  ;;  %v7309_v10 = vmax.f32 %v2088_v34, 0.0  ;;  %v1714_v24 = vadd.f32 %v8815_v61, %v1685_v29  ;;  %v8816_v28 = vld [vmem:[#allocation69_spill] sm:$0xff] }
 0x38b   :  { %v3543_v6 = vld [vmem:[#allocation8 + $0xe20] sm:$0xff]  ;;  %4313 = vmatpush.msrb.mxu2 %v3479_v45  ;;  %8813 = vst [vmem:[#allocation38_spill] sm:$0xff] %v7307_v22  ;;  %v1946_v0 = vadd.f32 %v8817_v11, %v1917_v9 }
 0x38c   :  { %v3347_v56 = vld [vmem:[#allocation8 + $0x800] sm:$0xff]  ;;  %4342 = vmatpush.msrb.mxu3 %v3543_v6  ;;  %8814 = vst [vmem:[#allocation46_spill] sm:$0xff] %v7309_v10 }
 0x38d   :  { %v3411_v31 = vld [vmem:[#allocation8 + $0xa00] sm:$0xff]  ;;  %4256 = vmatpush.msrb.mxu0 %v3347_v56 }
 0x38e   :  { %v3475_v39 = vld [vmem:[#allocation8 + $0xc00] sm:$0xff]  ;;  %4285 = vmatpush.msrb.mxu1 %v3411_v31  ;;  %4257 = vmatmul.f32.vlgmr.msrb.gmra.mxu0 %v7303_v37  ;;  %v8827_v37 = vld [vmem:[#allocation90_spill] sm:$0xff] }
 0x38f   :  { %v3539_v42 = vld [vmem:[#allocation8 + $0xe00] sm:$0xff]  ;;  %4314 = vmatpush.msrb.mxu2 %v3475_v39  ;;  %4286 = vmatmul.f32.vlgmr.msrb.gmra.mxu1 %v7305_v15  ;;  %v1975_v52 = vadd.f32 %v8827_v37, %v1946_v0 }
 0x390   :  { %v8810_v17 = vld [vmem:[#allocation100_spill] sm:$0xff]  ;;  %4343 = vmatpush.msrb.mxu3 %v3539_v42  ;;  %4315 = vmatmul.f32.vlgmr.msrb.gmra.mxu2 %v7307_v22  ;;  %v8819_v29 = vld [vmem:[#allocation55_spill] sm:$0xff] }
 0x391   :  { %v2033_v50 = vadd.f32 %v8810_v17, %v2004_v18  ;;  %v3663_v36 = vld [vmem:[#allocation8 + $0x11e0] sm:$0xff]  ;;  %v1830_v18 = vadd.f32 %v8816_v28, %v1801_v35  ;;  %4344 = vmatmul.f32.vlgmr.msrb.gmra.mxu3 %v7309_v10  ;;  %v1659_v58 = vadd.f32 %v8819_v29, %v7216_v60  ;;  %v7323_v17 = vpop.f32.mrf.mxu2  ;;  %v7329_v29 = vpop.f32.mrf.mxu3  ;;  %v8825_v10 = vld [vmem:[#allocation58_spill] sm:$0xff] }
 0x392   :  { %v3727_v26 = vld [vmem:[#allocation8 + $0x13e0] sm:$0xff]  ;;  %4357 = vmatpush.msra.mxu0 %v3663_v36  ;;  %8821 = vst [vmem:[#allocation20_spill] sm:$0xff] %v7323_v17  ;;  %v8826_v36 = vld [vmem:[#allocation74_spill] sm:$0xff] }
 0x393   :  { %v3791_v6 = vld [vmem:[#allocation8 + $0x15e0] sm:$0xff]  ;;  %v2062_v56 = vadd.f32 %v8818_v12, %v2033_v50  ;;  %4386 = vmatpush.msra.mxu1 %v3727_v26  ;;  %8824 = vst [vmem:[#allocation28_spill] sm:$0xff] %v7329_v29  ;;  %v1859_v26 = vadd.f32 %v8826_v36, %v1830_v18 }
 0x394   :  { %v3855_v45 = vld [vmem:[#allocation8 + $0x17e0] sm:$0xff]  ;;  %4415 = vmatpush.msra.mxu2 %v3791_v6 }
 0x395   :  { %v3659_v34 = vld [vmem:[#allocation8 + $0x11c0] sm:$0xff]  ;;  %4444 = vmatpush.msra.mxu3 %v3855_v45 }
 0x396   :  { %v3723_v31 = vld [vmem:[#allocation8 + $0x13c0] sm:$0xff]  ;;  %4358 = vmatpush.msra.mxu0 %v3659_v34 }
 0x397   :  { %v8820_v35 = vld [vmem:[#allocation71_spill] sm:$0xff]  ;;  %4387 = vmatpush.msra.mxu1 %v3723_v31  ;;  %v8829_v43 = vld [vmem:[#allocation56_spill] sm:$0xff] }
 0x398   :  { %v1775_v39 = vadd.f32 %v8820_v35, %v7219_v19  ;;  %v3787_v42 = vld [vmem:[#allocation8 + $0x15c0] sm:$0xff]  ;;  %v1743_v35 = vadd.f32 %v8825_v10, %v1714_v24  ;;  %v1688_v10 = vadd.f32 %v8829_v43, %v1659_v58 }
 0x399   :  { %v3851_v25 = vld [vmem:[#allocation8 + $0x17c0] sm:$0xff]  ;;  %4416 = vmatpush.msra.mxu2 %v3787_v42 }
 0x39a   :  { %v8822_v9 = vld [vmem:[#allocation87_spill] sm:$0xff]  ;;  %4445 = vmatpush.msra.mxu3 %v3851_v25  ;;  %v8830_v24 = vld [vmem:[#allocation72_spill] sm:$0xff]  ;;  %v7343_v42 = vmax.f32 %v1743_v35, 0.0  ;;  %v7345_v25 = vmax.f32 %v1859_v26, 0.0  ;;  %v8839_v35 = vld [vmem:[#allocation89_spill] sm:$0xff] }
 0x39b   :  { %v1891_v50 = vadd.f32 %v8822_v9, %v7226_v20  ;;  %v8823_v61 = vld [vmem:[#allocation103_spill] sm:$0xff]  ;;  %v8828_v9 = vld [vmem:[#allocation106_spill] sm:$0xff]  ;;  %v1804_v18 = vadd.f32 %v8830_v24, %v1775_v39  ;;  %v8831_v36 = vld [vmem:[#allocation88_spill] sm:$0xff] }
 0x39c   :  { %v2007_v28 = vadd.f32 %v8823_v61, %v7229_v16  ;;  %v3655_v11 = vld [vmem:[#allocation8 + $0x11a0] sm:$0xff]  ;;  %v2091_v57 = vadd.f32 %v8828_v9, %v2062_v56  ;;  %v7335_v61 = vpop.f32.mrf.mxu0  ;;  %8833 = vst [vmem:[#allocation36_spill] sm:$0xff] %v7343_v42  ;;  %v7347_v9 = vmax.f32 %v1975_v52, 0.0  ;;  %4260 = vmatmul.f32.gmra.mxu0 %v7343_v42  ;;  %4289 = vmatmul.f32.gmra.mxu1 %v7345_v25  ;;  %v8840_v52 = vld [vmem:[#allocation105_spill] sm:$0xff]  ;;  %v7375_v42 = vld [vmem:[#allocation7 + $0x8] sm:$0xff] }
 0x39d   :  { %v3719_v12 = vld [vmem:[#allocation8 + $0x13a0] sm:$0xff]  ;;  %4359 = vmatpush.msra.mxu0 %v3655_v11  ;;  %v1920_v37 = vadd.f32 %v8831_v36, %v1891_v50  ;;  %8834 = vst [vmem:[#allocation44_spill] sm:$0xff] %v7345_v25  ;;  %v8837_v11 = vld [vmem:[#allocation57_spill] sm:$0xff] }
 0x39e   :  { %v3783_v22 = vld [vmem:[#allocation8 + $0x15a0] sm:$0xff]  ;;  %4388 = vmatpush.msra.mxu1 %v3719_v12  ;;  %8835 = vst [vmem:[#allocation21_spill] sm:$0xff] %v7347_v9  ;;  %v7349_v43 = vmax.f32 %v2091_v57, 0.0  ;;  %v1717_v50 = vadd.f32 %v8837_v11, %v1688_v10  ;;  %v8838_v12 = vld [vmem:[#allocation73_spill] sm:$0xff]  ;;  %4318 = vmatmul.f32.gmra.mxu2 %v7347_v9  ;;  %v8848_v9 = vld [vmem:[#allocation94_spill] sm:$0xff] }
 0x39f   :  { %v3847_v15 = vld [vmem:[#allocation8 + $0x17a0] sm:$0xff]  ;;  %4417 = vmatpush.msra.mxu2 %v3783_v22  ;;  %v1949_v26 = vadd.f32 %v8839_v35, %v1920_v37 }
 0x3a0   :  { %v3651_v6 = vld [vmem:[#allocation8 + $0x1180] sm:$0xff]  ;;  %4446 = vmatpush.msra.mxu3 %v3847_v15  ;;  %8836 = vst [vmem:[#allocation29_spill] sm:$0xff] %v7349_v43 }
 0x3a1   :  { %v3715_v45 = vld [vmem:[#allocation8 + $0x1380] sm:$0xff]  ;;  %4360 = vmatpush.msra.mxu0 %v3651_v6  ;;  %4347 = vmatmul.f32.gmra.mxu3 %v7349_v43  ;;  %v1978_v25 = vadd.f32 %v8848_v9, %v1949_v26 }
 0x3a2   :  { %v3779_v34 = vld [vmem:[#allocation8 + $0x1580] sm:$0xff]  ;;  %4389 = vmatpush.msra.mxu1 %v3715_v45 }
 0x3a3   :  { %v3843_v31 = vld [vmem:[#allocation8 + $0x1780] sm:$0xff]  ;;  %4418 = vmatpush.msra.mxu2 %v3779_v34 }
 0x3a4   :  { %v8832_v0 = vld [vmem:[#allocation104_spill] sm:$0xff]  ;;  %4447 = vmatpush.msra.mxu3 %v3843_v31  ;;  %v8841_v10 = vld [vmem:[#allocation59_spill] sm:$0xff] }
 0x3a5   :  { %v2036_v56 = vadd.f32 %v8832_v0, %v2007_v28  ;;  %v3647_v58 = vld [vmem:[#allocation8 + $0x1160] sm:$0xff]  ;;  %v1833_v28 = vadd.f32 %v8838_v12, %v1804_v18  ;;  %v1662_v24 = vadd.f32 %v8841_v10, %v7216_v60  ;;  %v7363_v0 = vpop.f32.mrf.mxu2  ;;  %v7369_v60 = vpop.f32.mrf.mxu3  ;;  %v8846_v10 = vld [vmem:[#allocation62_spill] sm:$0xff] }
 0x3a6   :  { %v3711_v39 = vld [vmem:[#allocation8 + $0x1360] sm:$0xff]  ;;  %4361 = vmatpush.msra.mxu0 %v3647_v58  ;;  %8845 = vst [vmem:[#allocation37_spill] sm:$0xff] %v7369_v60  ;;  %v8847_v58 = vld [vmem:[#allocation78_spill] sm:$0xff]  ;;  %v7390_v60 = vperm.slane %v7375_v42, 0 }
 0x3a7   :  { %v3775_v15 = vld [vmem:[#allocation8 + $0x1560] sm:$0xff]  ;;  %v2065_v6 = vadd.f32 %v8840_v52, %v2036_v56  ;;  %4390 = vmatpush.msra.mxu1 %v3711_v39  ;;  %v1862_v39 = vadd.f32 %v8847_v58, %v1833_v28 }
 0x3a8   :  { %v3839_v22 = vld [vmem:[#allocation8 + $0x1760] sm:$0xff]  ;;  %4419 = vmatpush.msra.mxu2 %v3775_v15 }
 0x3a9   :  { %v3643_v57 = vld [vmem:[#allocation8 + $0x1140] sm:$0xff]  ;;  %4448 = vmatpush.msra.mxu3 %v3839_v22  ;;  %v7377_v22 = vpop.f32.mrf.mxu0 }
 0x3aa   :  { %v3707_v45 = vld [vmem:[#allocation8 + $0x1340] sm:$0xff]  ;;  %4362 = vmatpush.msra.mxu0 %v3643_v57 }
 0x3ab   :  { %v8842_v18 = vld [vmem:[#allocation75_spill] sm:$0xff]  ;;  %4391 = vmatpush.msra.mxu1 %v3707_v45  ;;  %v8851_v57 = vld [vmem:[#allocation76_spill] sm:$0xff] }
 0x3ac   :  { %v1778_v34 = vadd.f32 %v8842_v18, %v7219_v19  ;;  %v3771_v31 = vld [vmem:[#allocation8 + $0x1540] sm:$0xff]  ;;  %v1746_v19 = vadd.f32 %v8846_v10, %v1717_v50 }
 0x3ad   :  { %v3835_v36 = vld [vmem:[#allocation8 + $0x1740] sm:$0xff]  ;;  %4420 = vmatpush.msra.mxu2 %v3771_v31 }
 0x3ae   :  { %v8843_v37 = vld [vmem:[#allocation91_spill] sm:$0xff]  ;;  %4449 = vmatpush.msra.mxu3 %v3835_v36  ;;  %v8850_v50 = vld [vmem:[#allocation60_spill] sm:$0xff]  ;;  %v1807_v45 = vadd.f32 %v8851_v57, %v1778_v34  ;;  %v7385_v31 = vmax.f32 %v1746_v19, 0.0  ;;  %v7387_v36 = vmax.f32 %v1862_v39, 0.0  ;;  %v7395_v34 = vmax.f32 %v1978_v25, 0.0  ;;  %v8858_v19 = vld [vmem:[#allocation61_spill] sm:$0xff] }
 0x3af   :  { %v1894_v56 = vadd.f32 %v8843_v37, %v7226_v20  ;;  %v8844_v11 = vld [vmem:[#allocation107_spill] sm:$0xff]  ;;  %v8849_v20 = vld [vmem:[#allocation110_spill] sm:$0xff]  ;;  %v1691_v28 = vadd.f32 %v8850_v50, %v1662_v24  ;;  %v8852_v26 = vld [vmem:[#allocation92_spill] sm:$0xff]  ;;  %v7393_v24 = vperm.slane %v7375_v42, 1 }
 0x3b0   :  { %v2010_v12 = vadd.f32 %v8844_v11, %v7229_v16  ;;  %v3639_v35 = vld [vmem:[#allocation8 + $0x1120] sm:$0xff]  ;;  %v2094_v37 = vadd.f32 %v8849_v20, %v2065_v6  ;;  %v7379_v11 = vpop.f32.mrf.mxu1  ;;  %8854 = vst [vmem:[#allocation45_spill] sm:$0xff] %v7385_v31  ;;  %4263 = vmatmul.f32.gmra.mxu0 %v7385_v31  ;;  %4292 = vmatmul.f32.gmra.mxu1 %v7387_v36  ;;  %v8861_v57 = vld [vmem:[#allocation109_spill] sm:$0xff]  ;;  %v7417_v31 = vpop.f32.mrf.mxu2 }
 0x3b1   :  { %v3703_v52 = vld [vmem:[#allocation8 + $0x1320] sm:$0xff]  ;;  %4363 = vmatpush.msra.mxu0 %v3639_v35  ;;  %v1923_v6 = vadd.f32 %v8852_v26, %v1894_v56  ;;  %8855 = vst [vmem:[#allocation47_spill] sm:$0xff] %v7387_v36  ;;  %v7400_v56 = vperm.slane %v7375_v42, 2  ;;  %v1720_v39 = vadd.f32 %v8858_v19, %v1691_v28  ;;  %4321 = vmatmul.f32.gmra.mxu2 %v7395_v34 }
 0x3b2   :  { %v3767_v18 = vld [vmem:[#allocation8 + $0x1520] sm:$0xff]  ;;  %4392 = vmatpush.msra.mxu1 %v3703_v52  ;;  %8856 = vst [vmem:[#allocation63_spill] sm:$0xff] %v7395_v34  ;;  %v7397_v35 = vmax.f32 %v2094_v37, 0.0 }
 0x3b3   :  { %v3831_v43 = vld [vmem:[#allocation8 + $0x1720] sm:$0xff]  ;;  %4421 = vmatpush.msra.mxu2 %v3767_v18  ;;  %v8859_v18 = vld [vmem:[#allocation77_spill] sm:$0xff] }
 0x3b4   :  { %v3635_v16 = vld [vmem:[#allocation8 + $0x1100] sm:$0xff]  ;;  %4450 = vmatpush.msra.mxu3 %v3831_v43  ;;  %8857 = vst [vmem:[#allocation79_spill] sm:$0xff] %v7397_v35  ;;  %v7403_v43 = vperm.slane %v7375_v42, 3  ;;  %v1836_v50 = vadd.f32 %v8859_v18, %v1807_v45 }
 0x3b5   :  { %v3699_v15 = vld [vmem:[#allocation8 + $0x1300] sm:$0xff]  ;;  %4364 = vmatpush.msra.mxu0 %v3635_v16  ;;  %v8860_v16 = vld [vmem:[#allocation93_spill] sm:$0xff]  ;;  %4350 = vmatmul.f32.gmra.mxu3 %v7397_v35 }
 0x3b6   :  { %v3763_v10 = vld [vmem:[#allocation8 + $0x1500] sm:$0xff]  ;;  %4393 = vmatpush.msra.mxu1 %v3699_v15  ;;  %v1952_v15 = vadd.f32 %v8860_v16, %v1923_v6 }
 0x3b7   :  { %v3827_v9 = vld [vmem:[#allocation8 + $0x1700] sm:$0xff]  ;;  %4422 = vmatpush.msra.mxu2 %v3763_v10 }
 0x3b8   :  { %v8853_v58 = vld [vmem:[#allocation108_spill] sm:$0xff]  ;;  %4451 = vmatpush.msra.mxu3 %v3827_v9  ;;  %v8862_v28 = vld [vmem:[#allocation111_spill] sm:$0xff]  ;;  %v1981_v46 = vadd.f32 %v8868_v3, %v1952_v15  ;;  %v7431_v53 = vpop.f32.mrf.mxu1 }
 0x3b9   :  { %v2039_v20 = vadd.f32 %v8853_v58, %v2010_v12  ;;  %v3631_v12 = vld [vmem:[#allocation8 + $0x10e0] sm:$0xff]  ;;  %v2117_v58 = vadd.f32 %v8862_v28, %v7390_v60  ;;  %v7423_v28 = vpop.f32.mrf.mxu3  ;;  %8870 = vst [vmem:[#allocation95_spill] sm:$0xff] %v7431_v53 }
 0x3ba   :  { %v3695_v52 = vld [vmem:[#allocation8 + $0x12e0] sm:$0xff]  ;;  %4365 = vmatpush.msra.mxu0 %v3631_v12  ;;  %v8867_v12 = vld [vmem:[#allocation82_spill] sm:$0xff] }
 0x3bb   :  { %v3759_v25 = vld [vmem:[#allocation8 + $0x14e0] sm:$0xff]  ;;  %v2068_v26 = vadd.f32 %v8861_v57, %v2039_v20  ;;  %4394 = vmatpush.msra.mxu1 %v3695_v52  ;;  %v1865_v52 = vadd.f32 %v8867_v12, %v1836_v50 }
 0x3bc   :  { %v3823_v37 = vld [vmem:[#allocation8 + $0x16e0] sm:$0xff]  ;;  %4423 = vmatpush.msra.mxu2 %v3759_v25 }
 0x3bd   :  { %v3627_v10 = vld [vmem:[#allocation8 + $0x10c0] sm:$0xff]  ;;  %4452 = vmatpush.msra.mxu3 %v3823_v37 }
 0x3be   :  { %v3691_v9 = vld [vmem:[#allocation8 + $0x12c0] sm:$0xff]  ;;  %4366 = vmatpush.msra.mxu0 %v3627_v10 }
 0x3bf   :  { %v8863_v45 = vld [vmem:[#allocation127_spill] sm:$0xff]  ;;  %4395 = vmatpush.msra.mxu1 %v3691_v9  ;;  %v8871_v47 = vld [vmem:[#allocation112_spill] sm:$0xff] }
 0x3c0   :  { %v2233_v19 = vadd.f32 %v8863_v45, %v7393_v24  ;;  %v3755_v18 = vld [vmem:[#allocation8 + $0x14c0] sm:$0xff]  ;;  %v1749_v45 = vadd.f32 %v8866_v54, %v1720_v39  ;;  %v2146_v54 = vadd.f32 %v8871_v47, %v2117_v58  ;;  %v8879_v58 = vld [vmem:[#allocation113_spill] sm:$0xff]  ;;  %v7472_v53 = vpop.f32.mrf.mxu1 }
 0x3c1   :  { %v3819_v36 = vld [vmem:[#allocation8 + $0x16c0] sm:$0xff]  ;;  %4424 = vmatpush.msra.mxu2 %v3755_v18  ;;  %v7439_v18 = vmax.f32 %v1865_v52, 0.0  ;;  %v8882_v52 = vld [vmem:[#allocation145_spill] sm:$0xff]  ;;  %8893 = vst [vmem:[#allocation64_spill] sm:$0xff] %v7472_v53 }
 0x3c2   :  { %v8864_v6 = vld [vmem:[#allocation143_spill] sm:$0xff]  ;;  %4453 = vmatpush.msra.mxu3 %v3819_v36  ;;  %v8872_v39 = vld [vmem:[#allocation128_spill] sm:$0xff]  ;;  %v7437_v36 = vmax.f32 %v1749_v45, 0.0 }
 0x3c3   :  { %v2349_v20 = vadd.f32 %v8864_v6, %v7400_v56  ;;  %v8865_v16 = vld [vmem:[#allocation159_spill] sm:$0xff]  ;;  %v8869_v6 = vld [vmem:[#allocation114_spill] sm:$0xff]  ;;  %v2262_v50 = vadd.f32 %v8872_v39, %v2233_v19  ;;  %v8873_v12 = vld [vmem:[#allocation144_spill] sm:$0xff]  ;;  %8876 = vst [vmem:[#allocation31_spill] sm:$0xff] %v7439_v18  ;;  %v2175_v19 = vadd.f32 %v8879_v58, %v2146_v54  ;;  %4295 = vmatmul.f32.gmra.mxu1 %v7439_v18 }
 0x3c4   :  { %v2465_v57 = vadd.f32 %v8865_v16, %v7403_v43  ;;  %v3623_v35 = vld [vmem:[#allocation8 + $0x10a0] sm:$0xff]  ;;  %v2097_v29 = vadd.f32 %v8869_v6, %v2068_v26  ;;  %v7429_v16 = vpop.f32.mrf.mxu0  ;;  %8875 = vst [vmem:[#allocation23_spill] sm:$0xff] %v7437_v36  ;;  %v7441_v6 = vmax.f32 %v1981_v46, 0.0  ;;  %4266 = vmatmul.f32.gmra.mxu0 %v7437_v36 }
 0x3c5   :  { %v3687_v34 = vld [vmem:[#allocation8 + $0x12a0] sm:$0xff]  ;;  %4367 = vmatpush.msra.mxu0 %v3623_v35  ;;  %v2378_v3 = vadd.f32 %v8873_v12, %v2349_v20  ;;  %v8880_v20 = vld [vmem:[#allocation129_spill] sm:$0xff] }
 0x3c6   :  { %v3751_v17 = vld [vmem:[#allocation8 + $0x14a0] sm:$0xff]  ;;  %4396 = vmatpush.msra.mxu1 %v3687_v34  ;;  %8877 = vst [vmem:[#allocation39_spill] sm:$0xff] %v7441_v6  ;;  %v7443_v47 = vmax.f32 %v2097_v29, 0.0  ;;  %4324 = vmatmul.f32.gmra.mxu2 %v7441_v6  ;;  %v8889_v6 = vld [vmem:[#allocation134_spill] sm:$0xff] }
 0x3c7   :  { %v3815_v30 = vld [vmem:[#allocation8 + $0x16a0] sm:$0xff]  ;;  %4425 = vmatpush.msra.mxu2 %v3751_v17  ;;  %v2407_v29 = vadd.f32 %v8882_v52, %v2378_v3 }
 0x3c8   :  { %v3619_v25 = vld [vmem:[#allocation8 + $0x1080] sm:$0xff]  ;;  %4454 = vmatpush.msra.mxu3 %v3815_v30  ;;  %8878 = vst [vmem:[#allocation50_spill] sm:$0xff] %v7443_v47 }
 0x3c9   :  { %v3683_v37 = vld [vmem:[#allocation8 + $0x1280] sm:$0xff]  ;;  %4368 = vmatpush.msra.mxu0 %v3619_v25  ;;  %v8883_v25 = vld [vmem:[#allocation161_spill] sm:$0xff]  ;;  %4353 = vmatmul.f32.gmra.mxu3 %v7443_v47  ;;  %v8888_v47 = vld [vmem:[#allocation118_spill] sm:$0xff] }
 0x3ca   :  { %v3747_v10 = vld [vmem:[#allocation8 + $0x1480] sm:$0xff]  ;;  %4397 = vmatpush.msra.mxu1 %v3683_v37 }
 0x3cb   :  { %v3811_v9 = vld [vmem:[#allocation8 + $0x1680] sm:$0xff]  ;;  %4426 = vmatpush.msra.mxu2 %v3747_v10 }
 0x3cc   :  { %v8874_v15 = vld [vmem:[#allocation160_spill] sm:$0xff]  ;;  %4455 = vmatpush.msra.mxu3 %v3811_v9  ;;  %v8881_v45 = vld [vmem:[#allocation115_spill] sm:$0xff]  ;;  %v7470_v62 = vpop.f32.mrf.mxu0 }
 0x3cd   :  { %v2494_v26 = vadd.f32 %v8874_v15, %v2465_v57  ;;  %v3615_v34 = vld [vmem:[#allocation8 + $0x1060] sm:$0xff]  ;;  %v2291_v57 = vadd.f32 %v8880_v20, %v2262_v50  ;;  %v2120_v46 = vadd.f32 %v8881_v45, %v7390_v60  ;;  %v7459_v20 = vpop.f32.mrf.mxu2 }
 0x3ce   :  { %v3679_v35 = vld [vmem:[#allocation8 + $0x1260] sm:$0xff]  ;;  %4369 = vmatpush.msra.mxu0 %v3615_v34  ;;  %8886 = vst [vmem:[#allocation48_spill] sm:$0xff] %v7459_v20  ;;  %v2436_v20 = vadd.f32 %v8891_v48, %v2407_v29 }
 0x3cf   :  { %v3743_v30 = vld [vmem:[#allocation8 + $0x1460] sm:$0xff]  ;;  %v2523_v37 = vadd.f32 %v8883_v25, %v2494_v26  ;;  %4398 = vmatpush.msra.mxu1 %v3679_v35  ;;  %v7463_v25 = vpop.f32.mrf.mxu3  ;;  %v2320_v18 = vadd.f32 %v8889_v6, %v2291_v57 }
 0x3d0   :  { %v3807_v17 = vld [vmem:[#allocation8 + $0x1660] sm:$0xff]  ;;  %4427 = vmatpush.msra.mxu2 %v3743_v30 }
 0x3d1   :  { %v3611_v54 = vld [vmem:[#allocation8 + $0x1040] sm:$0xff]  ;;  %4456 = vmatpush.msra.mxu3 %v3807_v17  ;;  %v7479_v29 = vmax.f32 %v2320_v18, 0.0 }
 0x3d2   :  { %v3675_v39 = vld [vmem:[#allocation8 + $0x1240] sm:$0xff]  ;;  %4370 = vmatpush.msra.mxu0 %v3611_v54 }
 0x3d3   :  { %v8884_v50 = vld [vmem:[#allocation131_spill] sm:$0xff]  ;;  %4399 = vmatpush.msra.mxu1 %v3675_v39  ;;  %v8896_v39 = vld [vmem:[#allocation164_spill] sm:$0xff]  ;;  %8898 = vst [vmem:[#allocation96_spill] sm:$0xff] %v7479_v29 }
 0x3d4   :  { %v2236_v10 = vadd.f32 %v8884_v50, %v7393_v24  ;;  %v8885_v9 = vld [vmem:[#allocation147_spill] sm:$0xff]  ;;  %v2204_v50 = vadd.f32 %v8888_v47, %v2175_v19  ;;  %v8894_v47 = vld [vmem:[#allocation132_spill] sm:$0xff] }
 0x3d5   :  { %v2352_v12 = vadd.f32 %v8885_v9, %v7400_v56  ;;  %v3739_v15 = vld [vmem:[#allocation8 + $0x1440] sm:$0xff] }
 0x3d6   :  { %v3803_v58 = vld [vmem:[#allocation8 + $0x1640] sm:$0xff]  ;;  %4428 = vmatpush.msra.mxu2 %v3739_v15  ;;  %v2265_v6 = vadd.f32 %v8894_v47, %v2236_v10 }
 0x3d7   :  { %v8887_v3 = vld [vmem:[#allocation163_spill] sm:$0xff]  ;;  %v8890_v9 = vld [vmem:[#allocation116_spill] sm:$0xff]  ;;  %4457 = vmatpush.msra.mxu3 %v3803_v58  ;;  %v7482_v58 = vmax.f32 %v2436_v20, 0.0 }
 0x3d8   :  { %v2468_v26 = vadd.f32 %v8887_v3, %v7403_v43  ;;  %v3607_v45 = vld [vmem:[#allocation8 + $0x1020] sm:$0xff]  ;;  %v2149_v36 = vadd.f32 %v8890_v9, %v2120_v46  ;;  %v2552_v3 = vadd.f32 %v8892_v44, %v2523_v37  ;;  %v7477_v44 = vmax.f32 %v2204_v50, 0.0  ;;  %v8899_v37 = vld [vmem:[#allocation117_spill] sm:$0xff] }
 0x3d9   :  { %v3671_v52 = vld [vmem:[#allocation8 + $0x1220] sm:$0xff]  ;;  %4371 = vmatpush.msra.mxu0 %v3607_v45  ;;  %8900 = vst [vmem:[#allocation49_spill] sm:$0xff] %v7482_v58 }
 0x3da   :  { %v3735_v34 = vld [vmem:[#allocation8 + $0x1420] sm:$0xff]  ;;  %4400 = vmatpush.msra.mxu1 %v3671_v52  ;;  %v2497_v48 = vadd.f32 %v8896_v39, %v2468_v26  ;;  %8897 = vst [vmem:[#allocation80_spill] sm:$0xff] %v7477_v44  ;;  %v2178_v15 = vadd.f32 %v8899_v37, %v2149_v36  ;;  %v7484_v10 = vmax.f32 %v2552_v3, 0.0  ;;  %v8902_v52 = vld [vmem:[#allocation133_spill] sm:$0xff] }
 0x3db   :  { %v3799_v35 = vld [vmem:[#allocation8 + $0x1620] sm:$0xff]  ;;  %4429 = vmatpush.msra.mxu2 %v3735_v34  ;;  %v2294_v26 = vadd.f32 %v8902_v52, %v2265_v6  ;;  %v8903_v34 = vld [vmem:[#allocation149_spill] sm:$0xff]  ;;  %v7501_v52 = vpop.f32.mrf.mxu2 }
 0x3dc   :  { %v3603_v30 = vld [vmem:[#allocation8 + $0x1000] sm:$0xff]  ;;  %4458 = vmatpush.msra.mxu3 %v3799_v35  ;;  %8901 = vst [vmem:[#allocation65_spill] sm:$0xff] %v7484_v10 }
 0x3dd   :  { %v3667_v17 = vld [vmem:[#allocation8 + $0x1200] sm:$0xff]  ;;  %4372 = vmatpush.msra.mxu0 %v3603_v30  ;;  %v8906_v30 = vld [vmem:[#allocation165_spill] sm:$0xff]  ;;  %8909 = vst [vmem:[#allocation81_spill] sm:$0xff] %v7501_v52 }
 0x3de   :  { %v8895_v19 = vld [vmem:[#allocation148_spill] sm:$0xff]  ;;  %4401 = vmatpush.msra.mxu1 %v3667_v17  ;;  %4373 = vmatmul.f32.vlgmr.msra.gmra.mxu0 %v7477_v44  ;;  %v8904_v36 = vld [vmem:[#allocation119_spill] sm:$0xff]  ;;  %v2526_v17 = vadd.f32 %v8906_v30, %v2497_v48  ;;  %v7504_v30 = vpop.f32.mrf.mxu3 }
 0x3df   :  { %v2381_v57 = vadd.f32 %v8895_v19, %v2352_v12  ;;  %v3731_v54 = vld [vmem:[#allocation8 + $0x1400] sm:$0xff]  ;;  %4402 = vmatmul.f32.vlgmr.msra.gmra.mxu1 %v7479_v29  ;;  %v2123_v20 = vadd.f32 %v8904_v36, %v7390_v60  ;;  %8911 = vst [vmem:[#allocation97_spill] sm:$0xff] %v7504_v30  ;;  %v7513_v30 = vpop.f32.mrf.mxu1 }
 0x3e0   :  { %v3795_v46 = vld [vmem:[#allocation8 + $0x1600] sm:$0xff]  ;;  %4430 = vmatpush.msra.mxu2 %v3731_v54 }
 0x3e1   :  { %4459 = vmatpush.msra.mxu3 %v3795_v46  ;;  %v3919_v12 = vld [vmem:[#allocation8 + $0x19e0] sm:$0xff]  ;;  %v2410_v35 = vadd.f32 %v8903_v34, %v2381_v57  ;;  %4431 = vmatmul.f32.vlgmr.msra.gmra.mxu2 %v7482_v58  ;;  %v8910_v34 = vld [vmem:[#allocation122_spill] sm:$0xff] }
 0x3e2   :  { %v3983_v45 = vld [vmem:[#allocation8 + $0x1be0] sm:$0xff]  ;;  %4460 = vmatmul.f32.vlgmr.msra.gmra.mxu3 %v7484_v10  ;;  %4473 = vmatpush.msrb.mxu0 %v3919_v12  ;;  %v2207_v48 = vadd.f32 %v8910_v34, %v2178_v15  ;;  %v8912_v10 = vld [vmem:[#allocation138_spill] sm:$0xff]  ;;  %v2555_v15 = vadd.f32 %v7031_v14, %v2526_v17  ;;  %v8918_v17 = vld [vmem:[#allocation121_spill] sm:$0xff] }
 0x3e3   :  { %v4047_v18 = vld [vmem:[#allocation8 + $0x1de0] sm:$0xff]  ;;  %4502 = vmatpush.msrb.mxu1 %v3983_v45  ;;  %v2323_v58 = vadd.f32 %v8912_v10, %v2294_v26 }
 0x3e4   :  { %v4111_v50 = vld [vmem:[#allocation8 + $0x1fe0] sm:$0xff]  ;;  %4531 = vmatpush.msrb.mxu2 %v4047_v18 }
 0x3e5   :  { %v8905_v9 = vld [vmem:[#allocation135_spill] sm:$0xff]  ;;  %4560 = vmatpush.msrb.mxu3 %v4111_v50  ;;  %v8915_v53 = vld [vmem:[#allocation136_spill] sm:$0xff]  ;;  %v7511_v50 = vpop.f32.mrf.mxu0  ;;  %v7519_v14 = vmax.f32 %v2323_v58, 0.0 }
 0x3e6   :  { %v2239_v3 = vadd.f32 %v8905_v9, %v7393_v24  ;;  %v3915_v47 = vld [vmem:[#allocation8 + $0x19c0] sm:$0xff] }
 0x3e7   :  { %v3979_v6 = vld [vmem:[#allocation8 + $0x1bc0] sm:$0xff]  ;;  %4474 = vmatpush.msrb.mxu0 %v3915_v47  ;;  %4405 = vmatmul.f32.gmra.mxu1 %v7519_v14 }
 0x3e8   :  { %v8907_v19 = vld [vmem:[#allocation151_spill] sm:$0xff]  ;;  %4503 = vmatpush.msrb.mxu1 %v3979_v6  ;;  %v2268_v52 = vadd.f32 %v8915_v53, %v2239_v3  ;;  %v8916_v10 = vld [vmem:[#allocation152_spill] sm:$0xff] }
 0x3e9   :  { %v2355_v57 = vadd.f32 %v8907_v19, %v7400_v56  ;;  %v8908_v54 = vld [vmem:[#allocation167_spill] sm:$0xff]  ;;  %v8913_v19 = vld [vmem:[#allocation154_spill] sm:$0xff] }
 0x3ea   :  { %v2471_v46 = vadd.f32 %v8908_v54, %v7403_v43  ;;  %v4043_v39 = vld [vmem:[#allocation8 + $0x1dc0] sm:$0xff]  ;;  %v2439_v29 = vadd.f32 %v8913_v19, %v2410_v35  ;;  %v7525_v19 = vmax.f32 %v2555_v15, 0.0 }
 0x3eb   :  { %v4107_v37 = vld [vmem:[#allocation8 + $0x1fc0] sm:$0xff]  ;;  %4532 = vmatpush.msrb.mxu2 %v4043_v39  ;;  %v2384_v26 = vadd.f32 %v8916_v10, %v2355_v57 }
 0x3ec   :  { %v3911_v36 = vld [vmem:[#allocation8 + $0x19a0] sm:$0xff]  ;;  %4561 = vmatpush.msrb.mxu3 %v4107_v37  ;;  %v7521_v53 = vmax.f32 %v2439_v29, 0.0  ;;  %v8919_v37 = vld [vmem:[#allocation137_spill] sm:$0xff]  ;;  %8920 = vst [vmem:[#allocation51_spill] sm:$0xff] %v7525_v19 }
 0x3ed   :  { %v3975_v9 = vld [vmem:[#allocation8 + $0x1ba0] sm:$0xff]  ;;  %4475 = vmatpush.msrb.mxu0 %v3911_v36  ;;  %v2297_v57 = vadd.f32 %v8919_v37, %v2268_v52  ;;  %4463 = vmatmul.f32.gmra.mxu3 %v7525_v19  ;;  %v7554_v19 = vpop.f32.mrf.mxu1 }
 0x3ee   :  { %v4039_v12 = vld [vmem:[#allocation8 + $0x1da0] sm:$0xff]  ;;  %4504 = vmatpush.msrb.mxu1 %v3975_v9  ;;  %v8922_v9 = vld [vmem:[#allocation153_spill] sm:$0xff]  ;;  %4434 = vmatmul.f32.gmra.mxu2 %v7521_v53 }
 0x3ef   :  { %v4103_v45 = vld [vmem:[#allocation8 + $0x1fa0] sm:$0xff]  ;;  %4533 = vmatpush.msrb.mxu2 %v4039_v12  ;;  %v2413_v29 = vadd.f32 %v8922_v9, %v2384_v26 }
 0x3f0   :  { %v8914_v54 = vld [vmem:[#allocation120_spill] sm:$0xff]  ;;  %4562 = vmatpush.msrb.mxu3 %v4103_v45  ;;  %v8921_v36 = vld [vmem:[#allocation123_spill] sm:$0xff] }
 0x3f1   :  { %v2152_v44 = vadd.f32 %v8914_v54, %v2123_v20  ;;  %v3907_v18 = vld [vmem:[#allocation8 + $0x1980] sm:$0xff]  ;;  %v7517_v20 = vmax.f32 %v2207_v48, 0.0  ;;  %v2126_v58 = vadd.f32 %v8921_v36, %v7390_v60 }
 0x3f2   :  { %v3971_v34 = vld [vmem:[#allocation8 + $0x1b80] sm:$0xff]  ;;  %4476 = vmatpush.msrb.mxu0 %v3907_v18 }
 0x3f3   :  { %v8917_v35 = vld [vmem:[#allocation168_spill] sm:$0xff]  ;;  %4505 = vmatpush.msrb.mxu1 %v3971_v34  ;;  %v2181_v39 = vadd.f32 %v8918_v17, %v2152_v44  ;;  %4376 = vmatmul.f32.gmra.mxu0 %v7517_v20  ;;  %v8923_v45 = vld [vmem:[#allocation139_spill] sm:$0xff] }
 0x3f4   :  { %v2500_v47 = vadd.f32 %v8917_v35, %v2471_v46  ;;  %v4035_v6 = vld [vmem:[#allocation8 + $0x1d80] sm:$0xff]  ;;  %v2242_v54 = vadd.f32 %v8923_v45, %v7393_v24  ;;  %v7541_v35 = vpop.f32.mrf.mxu2  ;;  %v8926_v24 = vld [vmem:[#allocation142_spill] sm:$0xff] }
 0x3f5   :  { %v3903_v3 = vld [vmem:[#allocation8 + $0x1960] sm:$0xff]  ;;  %4534 = vmatpush.msrb.mxu2 %v4035_v6  ;;  %v2326_v17 = vadd.f32 %v8926_v24, %v2297_v57  ;;  %v8928_v45 = vld [vmem:[#allocation158_spill] sm:$0xff] }
 0x3f6   :  { %v3967_v46 = vld [vmem:[#allocation8 + $0x1b60] sm:$0xff]  ;;  %v2529_v12 = vadd.f32 %v7029_v27, %v2500_v47  ;;  %4477 = vmatpush.msrb.mxu0 %v3903_v3  ;;  %v2474_v27 = vadd.f32 %v7033_v40, %v7403_v43  ;;  %v8925_v47 = vld [vmem:[#allocation126_spill] sm:$0xff]  ;;  %v7545_v3 = vpop.f32.mrf.mxu3  ;;  %v2442_v40 = vadd.f32 %v8928_v45, %v2413_v29  ;;  %v7561_v29 = vperm.slane %v7375_v42, 5 }
 0x3f7   :  { %v4031_v48 = vld [vmem:[#allocation8 + $0x1d60] sm:$0xff]  ;;  %4506 = vmatpush.msrb.mxu1 %v3967_v46  ;;  %v2210_v6 = vadd.f32 %v8925_v47, %v2181_v39 }
 0x3f8   :  { %v3899_v44 = vld [vmem:[#allocation8 + $0x1940] sm:$0xff]  ;;  %4535 = vmatpush.msrb.mxu2 %v4031_v48  ;;  %v2558_v43 = vadd.f32 %v7043_v1, %v2529_v12  ;;  %v7558_v1 = vperm.slane %v7375_v42, 4 }
 0x3f9   :  { %v4099_v52 = vld [vmem:[#allocation8 + $0x1f80] sm:$0xff]  ;;  %4478 = vmatpush.msrb.mxu0 %v3899_v44  ;;  %v7563_v12 = vmax.f32 %v2210_v6, 0.0 }
 0x3fa   :  { %v8924_v15 = vld [vmem:[#allocation155_spill] sm:$0xff]  ;;  %4563 = vmatpush.msrb.mxu3 %v4099_v52  ;;  %v8927_v36 = vld [vmem:[#allocation124_spill] sm:$0xff]  ;;  %v7552_v52 = vpop.f32.mrf.mxu0 }
 0x3fb   :  { %v2358_v18 = vadd.f32 %v8924_v15, %v7400_v56  ;;  %v3963_v60 = vld [vmem:[#allocation8 + $0x1b40] sm:$0xff]  ;;  %v2155_v9 = vadd.f32 %v8927_v36, %v2126_v58  ;;  %v2503_v58 = vadd.f32 %v7035_v2, %v2474_v27  ;;  %v7571_v2 = vmax.f32 %v2442_v40, 0.0  ;;  %4379 = vmatmul.f32.gmra.mxu0 %v7563_v12 }
 0x3fc   :  { %v4027_v34 = vld [vmem:[#allocation8 + $0x1d40] sm:$0xff]  ;;  %4507 = vmatpush.msrb.mxu1 %v3963_v60  ;;  %v8931_v60 = vld [vmem:[#allocation125_spill] sm:$0xff]  ;;  %v7573_v27 = vmax.f32 %v2558_v43, 0.0  ;;  %v2581_v40 = vadd.f32 %v7045_v13, %v7558_v1  ;;  %v2697_v43 = vadd.f32 %v7163_v38, %v7561_v29  ;;  %v7589_v38 = vpop.f32.mrf.mxu2 }
 0x3fd   :  { %v3895_v10 = vld [vmem:[#allocation8 + $0x1920] sm:$0xff]  ;;  %4536 = vmatpush.msrb.mxu2 %v4027_v34  ;;  %v2184_v34 = vadd.f32 %v8931_v60, %v2155_v9  ;;  %8932 = vst [vmem:[#allocation67_spill] sm:$0xff] %v7571_v2  ;;  %v2532_v9 = vadd.f32 %v7041_v63, %v2503_v58  ;;  %v8936_v63 = vld [vmem:[#allocation130_spill] sm:$0xff] }
 0x3fe   :  { %v4095_v26 = vld [vmem:[#allocation8 + $0x1f60] sm:$0xff]  ;;  %4479 = vmatpush.msrb.mxu0 %v3895_v10  ;;  %8933 = vst [vmem:[#allocation83_spill] sm:$0xff] %v7573_v27  ;;  %4437 = vmatmul.f32.gmra.mxu2 %v7571_v2  ;;  %v8938_v60 = vld [vmem:[#allocation162_spill] sm:$0xff]  ;;  %v8940_v2 = vld [vmem:[#allocation169_spill] sm:$0xff] }
 0x3ff   :  { %v3959_v56 = vld [vmem:[#allocation8 + $0x1b20] sm:$0xff]  ;;  %4564 = vmatpush.msrb.mxu3 %v4095_v26 }
 0x400   :  { %v4023_v37 = vld [vmem:[#allocation8 + $0x1d20] sm:$0xff]  ;;  %4508 = vmatpush.msrb.mxu1 %v3959_v56  ;;  %v8934_v56 = vld [vmem:[#allocation141_spill] sm:$0xff]  ;;  %4466 = vmatmul.f32.gmra.mxu3 %v7573_v27 }
 0x401   :  { %v3891_v46 = vld [vmem:[#allocation8 + $0x1900] sm:$0xff]  ;;  %4537 = vmatpush.msrb.mxu2 %v4023_v37  ;;  %v8935_v37 = vld [vmem:[#allocation157_spill] sm:$0xff] }
 0x402   :  { %v4091_v48 = vld [vmem:[#allocation8 + $0x1f40] sm:$0xff]  ;;  %4480 = vmatpush.msrb.mxu0 %v3891_v46 }
 0x403   :  { %v8929_v15 = vld [vmem:[#allocation140_spill] sm:$0xff]  ;;  %4565 = vmatpush.msrb.mxu3 %v4091_v48 }
 0x404   :  { %v2271_v39 = vadd.f32 %v8929_v15, %v2242_v54  ;;  %v8930_v47 = vld [vmem:[#allocation156_spill] sm:$0xff]  ;;  %v7565_v54 = vmax.f32 %v2326_v17, 0.0 }
 0x405   :  { %v2387_v57 = vadd.f32 %v8930_v47, %v2358_v18  ;;  %v3955_v44 = vld [vmem:[#allocation8 + $0x1b00] sm:$0xff]  ;;  %v7568_v18 = vperm.slane %v7375_v42, 6 }
 0x406   :  { %v4019_v24 = vld [vmem:[#allocation8 + $0x1d00] sm:$0xff]  ;;  %4509 = vmatpush.msrb.mxu1 %v3955_v44  ;;  %v2300_v6 = vadd.f32 %v8934_v56, %v2271_v39 }
 0x407   :  { %4538 = vmatpush.msrb.mxu2 %v4019_v24  ;;  %v3887_v10 = vld [vmem:[#allocation8 + $0x18e0] sm:$0xff]  ;;  %v2416_v17 = vadd.f32 %v8935_v37, %v2387_v57  ;;  %4408 = vmatmul.f32.gmra.mxu1 %v7565_v54  ;;  %v2813_v15 = vadd.f32 %v7335_v61, %v7568_v18  ;;  %v2213_v57 = vadd.f32 %v8936_v63, %v2184_v34  ;;  %v8937_v24 = vld [vmem:[#allocation146_spill] sm:$0xff] }
 0x408   :  { %v3951_v26 = vld [vmem:[#allocation8 + $0x1ae0] sm:$0xff]  ;;  %4481 = vmatpush.msrb.mxu0 %v3887_v10  ;;  %v2329_v58 = vadd.f32 %v8937_v24, %v2300_v6  ;;  %v7593_v10 = vpop.f32.mrf.mxu3  ;;  %v2610_v34 = vadd.f32 %v8940_v2, %v2581_v40  ;;  %v7606_v2 = vperm.slane %v7375_v42, 7 }
 0x409   :  { %v4015_v36 = vld [vmem:[#allocation8 + $0x1ce0] sm:$0xff]  ;;  %4510 = vmatpush.msrb.mxu1 %v3951_v26  ;;  %v2445_v56 = vadd.f32 %v8938_v60, %v2416_v17  ;;  %v2842_v6 = vadd.f32 %v7337_v5, %v2813_v15  ;;  %v7603_v24 = vmax.f32 %v2213_v57, 0.0 }
 0x40a   :  { %v4087_v45 = vld [vmem:[#allocation8 + $0x1f20] sm:$0xff]  ;;  %4539 = vmatpush.msrb.mxu2 %v4015_v36  ;;  %v2726_v36 = vadd.f32 %v7165_v41, %v2697_v43  ;;  %v7608_v41 = vmax.f32 %v2329_v58, 0.0  ;;  %v8945_v43 = vld [vmem:[#allocation170_spill] sm:$0xff] }
 0x40b   :  { %v3883_v46 = vld [vmem:[#allocation8 + $0x18c0] sm:$0xff]  ;;  %4566 = vmatpush.msrb.mxu3 %v4087_v45  ;;  %8941 = vst [vmem:[#allocation99_spill] sm:$0xff] %v7603_v24  ;;  %v2639_v15 = vadd.f32 %v8945_v43, %v2610_v34  ;;  %4382 = vmatmul.f32.gmra.mxu0 %v7603_v24  ;;  %v2871_v58 = vadd.f32 %v7363_v0, %v2842_v6  ;;  %v8948_v6 = vld [vmem:[#allocation173_spill] sm:$0xff] }
 0x40c   :  { %v3947_v48 = vld [vmem:[#allocation8 + $0x1ac0] sm:$0xff]  ;;  %4482 = vmatpush.msrb.mxu0 %v3883_v46  ;;  %v7599_v46 = vpop.f32.mrf.mxu0  ;;  %8942 = vst [vmem:[#allocation54_spill] sm:$0xff] %v7608_v41 }
 0x40d   :  { %v4011_v39 = vld [vmem:[#allocation8 + $0x1cc0] sm:$0xff]  ;;  %4511 = vmatpush.msrb.mxu1 %v3947_v48  ;;  %v7601_v48 = vpop.f32.mrf.mxu1 }
 0x40e   :  { %v4083_v47 = vld [vmem:[#allocation8 + $0x1f00] sm:$0xff]  ;;  %4540 = vmatpush.msrb.mxu2 %v4011_v39  ;;  %v2755_v39 = vadd.f32 %v7191_v4, %v2726_v36  ;;  %v2816_v4 = vadd.f32 %v7377_v22, %v7568_v18 }
 0x40f   :  { %v3879_v13 = vld [vmem:[#allocation8 + $0x18a0] sm:$0xff]  ;;  %4567 = vmatpush.msrb.mxu3 %v4083_v47  ;;  %4411 = vmatmul.f32.gmra.mxu1 %v7608_v41 }
 0x410   :  { %v3943_v44 = vld [vmem:[#allocation8 + $0x1aa0] sm:$0xff]  ;;  %4483 = vmatpush.msrb.mxu0 %v3879_v13  ;;  %v2784_v36 = vadd.f32 %v7249_v21, %v2755_v39  ;;  %v2845_v21 = vadd.f32 %v7379_v11, %v2816_v4  ;;  %v8951_v11 = vld [vmem:[#allocation174_spill] sm:$0xff]  ;;  %v3216_v4 = vld [vmem:[#allocation8 + $0x3e8] sm:$0xff] }
 0x411   :  { %v4007_v37 = vld [vmem:[#allocation8 + $0x1ca0] sm:$0xff]  ;;  %4512 = vmatpush.msrb.mxu1 %v3943_v44  ;;  %v2700_v44 = vadd.f32 %v7203_v55, %v7561_v29 }
 0x412   :  { %v4079_v61 = vld [vmem:[#allocation8 + $0x1ee0] sm:$0xff]  ;;  %4541 = vmatpush.msrb.mxu2 %v4007_v37 }
 0x413   :  { %v8939_v26 = vld [vmem:[#allocation171_spill] sm:$0xff]  ;;  %4568 = vmatpush.msrb.mxu3 %v4079_v61  ;;  %v8946_v42 = vld [vmem:[#allocation172_spill] sm:$0xff]  ;;  %v2929_v61 = vadd.f32 %v7511_v50, %v7606_v2  ;;  %v2900_v50 = vadd.f32 %v7423_v28, %v2871_v58 }
 0x414   :  { %v2561_v27 = vadd.f32 %v8939_v26, %v2532_v9  ;;  %v3875_v45 = vld [vmem:[#allocation8 + $0x1880] sm:$0xff]  ;;  %v7610_v9 = vmax.f32 %v2445_v56, 0.0  ;;  %v2584_v13 = vadd.f32 %v8946_v42, %v7558_v1  ;;  %v3152_v58 = vld [vmem:[#allocation8 + $0x1e8] sm:$0xff] }
 0x415   :  { %v3939_v63 = vld [vmem:[#allocation8 + $0x1a80] sm:$0xff]  ;;  %4484 = vmatpush.msrb.mxu0 %v3875_v45 }
 0x416   :  { %v4003_v17 = vld [vmem:[#allocation8 + $0x1c80] sm:$0xff]  ;;  %8943 = vst [vmem:[#allocation70_spill] sm:$0xff] %v7610_v9  ;;  %4513 = vmatpush.msrb.mxu1 %v3939_v63  ;;  %v7612_v40 = vmax.f32 %v2561_v27, 0.0  ;;  %4440 = vmatmul.f32.gmra.mxu2 %v7610_v9  ;;  %v7631_v63 = vpop.f32.mrf.mxu2 }
 0x417   :  { %v3871_v5 = vld [vmem:[#allocation8 + $0x1860] sm:$0xff]  ;;  %4542 = vmatpush.msrb.mxu2 %v4003_v17  ;;  %v2613_v17 = vadd.f32 %v8948_v6, %v2584_v13  ;;  %v7640_v13 = vpop.f32.mrf.mxu0 }
 0x418   :  { %8944 = vst [vmem:[#allocation86_spill] sm:$0xff] %v7612_v40  ;;  %v3935_v47 = vld [vmem:[#allocation8 + $0x1a60] sm:$0xff]  ;;  %4469 = vmatmul.f32.gmra.mxu3 %v7612_v40  ;;  %4485 = vmatpush.msrb.mxu0 %v3871_v5  ;;  %v2729_v5 = vadd.f32 %v7205_v49, %v2700_v44  ;;  %v7642_v49 = vpop.f32.mrf.mxu1  ;;  %v7646_v44 = vmax.f32 %v2784_v36, 0.0  ;;  %v3276_v36 = vld [vmem:[#allocation8 + $0x5c8] sm:$0xff] }
 0x419   :  { %v3999_v57 = vld [vmem:[#allocation8 + $0x1c60] sm:$0xff]  ;;  %4514 = vmatpush.msrb.mxu1 %v3935_v47  ;;  %v3752_v40 = vld [vmem:[#allocation8 + $0x14a8] sm:$0xff] }
 0x41a   :  { %v3867_v27 = vld [vmem:[#allocation8 + $0x1840] sm:$0xff]  ;;  %4543 = vmatpush.msrb.mxu2 %v3999_v57  ;;  %v7636_v57 = vpop.f32.mrf.mxu3  ;;  %8950 = vst [vmem:[#allocation52_spill] sm:$0xff] %v7646_v44 }
 0x41b   :  { %v4075_v60 = vld [vmem:[#allocation8 + $0x1ec0] sm:$0xff]  ;;  %4486 = vmatpush.msrb.mxu0 %v3867_v27  ;;  %v2642_v27 = vadd.f32 %v8951_v11, %v2613_v17  ;;  %v3272_v17 = vld [vmem:[#allocation8 + $0x5a8] sm:$0xff] }
 0x41c   :  { %v3931_v56 = vld [vmem:[#allocation8 + $0x1a40] sm:$0xff]  ;;  %4569 = vmatpush.msrb.mxu3 %v4075_v60  ;;  %v7650_v60 = vmax.f32 %v2900_v50, 0.0 }
 0x41d   :  { %v3995_v37 = vld [vmem:[#allocation8 + $0x1c40] sm:$0xff]  ;;  %4515 = vmatpush.msrb.mxu1 %v3931_v56  ;;  %v3280_v56 = vld [vmem:[#allocation8 + $0x5e8] sm:$0xff] }
 0x41e   :  { %v3863_v55 = vld [vmem:[#allocation8 + $0x1820] sm:$0xff]  ;;  %4544 = vmatpush.msrb.mxu2 %v3995_v37  ;;  %8952 = vst [vmem:[#allocation68_spill] sm:$0xff] %v7650_v60  ;;  %v2874_v37 = vadd.f32 %v7417_v31, %v2845_v21  ;;  %v2819_v31 = vadd.f32 %v7429_v16, %v7568_v18  ;;  %v3268_v21 = vld [vmem:[#allocation8 + $0x588] sm:$0xff] }
 0x41f   :  { %v4071_v0 = vld [vmem:[#allocation8 + $0x1ea0] sm:$0xff]  ;;  %4487 = vmatpush.msrb.mxu0 %v3863_v55 }
 0x420   :  { %v8947_v26 = vld [vmem:[#allocation175_spill] sm:$0xff]  ;;  %4570 = vmatpush.msrb.mxu3 %v4071_v0  ;;  %v3148_v0 = vld [vmem:[#allocation8 + $0x1c8] sm:$0xff]  ;;  %v7683_v11 = vpop.f32.mrf.mxu1 }
 0x421   :  { %v2668_v34 = vadd.f32 %v8947_v26, %v2639_v15  ;;  %v3927_v45 = vld [vmem:[#allocation8 + $0x1a20] sm:$0xff]  ;;  %v2958_v15 = vadd.f32 %v7513_v30, %v2929_v61  ;;  %v2758_v30 = vadd.f32 %v7243_v32, %v2729_v5  ;;  %v2587_v26 = vadd.f32 %v7091_v59, %v7558_v1 }
 0x422   :  { %v3991_v22 = vld [vmem:[#allocation8 + $0x1c20] sm:$0xff]  ;;  %4516 = vmatpush.msrb.mxu1 %v3927_v45  ;;  %v2703_v32 = vadd.f32 %v7255_v7, %v7561_v29  ;;  %v2671_v59 = vadd.f32 %v7117_v33, %v2642_v27  ;;  %v3208_v7 = vld [vmem:[#allocation8 + $0x3a8] sm:$0xff]  ;;  %v2903_v5 = vadd.f32 %v7463_v25, %v2874_v37 }
 0x423   :  { %v3859_v43 = vld [vmem:[#allocation8 + $0x1800] sm:$0xff]  ;;  %4545 = vmatpush.msrb.mxu2 %v3991_v22  ;;  %v7644_v28 = vmax.f32 %v2668_v34, 0.0  ;;  %v2987_v55 = vadd.f32 %v7541_v35, %v2958_v15  ;;  %v3212_v34 = vld [vmem:[#allocation8 + $0x3c8] sm:$0xff]  ;;  %v2932_v35 = vadd.f32 %v7552_v52, %v7606_v2  ;;  %v2787_v6 = vadd.f32 %v7289_v51, %v2758_v30  ;;  %v7673_v15 = vpop.f32.mrf.mxu3 }
 0x424   :  { %v4067_v47 = vld [vmem:[#allocation8 + $0x1e80] sm:$0xff]  ;;  %4488 = vmatpush.msrb.mxu0 %v3859_v43  ;;  %v3144_v22 = vld [vmem:[#allocation8 + $0x1a8] sm:$0xff]  ;;  %v2616_v52 = vadd.f32 %v7093_v23, %v2587_v26  ;;  %v2732_v33 = vadd.f32 %v7257_v8, %v2703_v32  ;;  %v7681_v8 = vpop.f32.mrf.mxu0  ;;  %v7685_v27 = vmax.f32 %v2903_v5, 0.0 }
 0x425   :  { %v3923_v39 = vld [vmem:[#allocation8 + $0x1a00] sm:$0xff]  ;;  %8949 = vst [vmem:[#allocation102_spill] sm:$0xff] %v7644_v28  ;;  %4571 = vmatpush.msrb.mxu3 %v4067_v47  ;;  %4489 = vmatmul.f32.vlgmr.msrb.gmra.mxu0 %v7644_v28  ;;  %v3016_v50 = vadd.f32 %v7593_v10, %v2987_v55  ;;  %v3140_v43 = vld [vmem:[#allocation8 + $0x188] sm:$0xff]  ;;  %v7669_v47 = vpop.f32.mrf.mxu2  ;;  %v2961_v10 = vadd.f32 %v7554_v19, %v2932_v35 }
 0x426   :  { %v3987_v42 = vld [vmem:[#allocation8 + $0x1c00] sm:$0xff]  ;;  %4517 = vmatpush.msrb.mxu1 %v3923_v39  ;;  %4589 = vmatpush.msra.mxu0 %v3152_v58  ;;  %v3204_v51 = vld [vmem:[#allocation8 + $0x388] sm:$0xff]  ;;  %v7679_v58 = vmax.f32 %v2787_v6, 0.0  ;;  %8956 = vst [vmem:[#allocation53_spill] sm:$0xff] %v7685_v27 }
 0x427   :  { %4546 = vmatpush.msrb.mxu2 %v3987_v42  ;;  %4518 = vmatmul.f32.vlgmr.msrb.gmra.mxu1 %v7646_v44  ;;  %v4063_v61 = vld [vmem:[#allocation8 + $0x1e60] sm:$0xff]  ;;  %v7677_v42 = vmax.f32 %v2671_v59, 0.0  ;;  %v7687_v30 = vmax.f32 %v3016_v50, 0.0  ;;  %v3136_v19 = vld [vmem:[#allocation8 + $0x168] sm:$0xff] }
 0x428   :  { %4547 = vmatmul.f32.vlgmr.msrb.gmra.mxu2 %v7650_v60  ;;  %4618 = vmatpush.msra.mxu1 %v3216_v4  ;;  %v4059_v45 = vld [vmem:[#allocation8 + $0x1e40] sm:$0xff]  ;;  %8955 = vst [vmem:[#allocation100_spill] sm:$0xff] %v7679_v58  ;;  %v3200_v4 = vld [vmem:[#allocation8 + $0x368] sm:$0xff] }
 0x429   :  { %4647 = vmatpush.msra.mxu2 %v3280_v56  ;;  %4572 = vmatpush.msrb.mxu3 %v4063_v61  ;;  %v4055_v16 = vld [vmem:[#allocation8 + $0x1e20] sm:$0xff]  ;;  %8954 = vst [vmem:[#allocation84_spill] sm:$0xff] %v7677_v42  ;;  %v3196_v6 = vld [vmem:[#allocation8 + $0x348] sm:$0xff] }
 0x42a   :  { %4590 = vmatpush.msra.mxu0 %v3148_v0  ;;  %4619 = vmatpush.msra.mxu1 %v3212_v34  ;;  %v8953_v39 = vld [vmem:[#allocation95_spill] sm:$0xff]  ;;  %8957 = vst [vmem:[#allocation69_spill] sm:$0xff] %v7687_v30  ;;  %v8958_v56 = vld [vmem:[#allocation176_spill] sm:$0xff] }
 0x42b   :  { %4648 = vmatpush.msra.mxu2 %v3276_v36  ;;  %4573 = vmatpush.msrb.mxu3 %v4059_v45  ;;  %v2848_v25 = vadd.f32 %v8953_v39, %v2819_v31  ;;  %v4051_v23 = vld [vmem:[#allocation8 + $0x1e00] sm:$0xff]  ;;  %v2645_v37 = vadd.f32 %v8958_v56, %v2616_v52  ;;  %v3264_v0 = vld [vmem:[#allocation8 + $0x568] sm:$0xff]  ;;  %v2990_v36 = vadd.f32 %v7589_v38, %v2961_v10 }
 0x42c   :  { %4591 = vmatpush.msra.mxu0 %v3144_v22  ;;  %4620 = vmatpush.msra.mxu1 %v3208_v7  ;;  %v8959_v61 = vld [vmem:[#allocation27_spill] sm:$0xff]  ;;  %v8960_v26 = vld [vmem:[#allocation48_spill] sm:$0xff]  ;;  %v8961_v45 = vld [vmem:[#allocation177_spill] sm:$0xff]  ;;  %v2935_v38 = vadd.f32 %v7599_v46, %v7606_v2 }
 0x42d   :  { %4649 = vmatpush.msra.mxu2 %v3272_v17  ;;  %4574 = vmatpush.msrb.mxu3 %v4055_v16  ;;  %v2761_v55 = vadd.f32 %v8959_v61, %v2732_v33  ;;  %v2877_v32 = vadd.f32 %v8960_v26, %v2848_v25  ;;  %v3344_v34 = vld [vmem:[#allocation8 + $0x7e8] sm:$0xff]  ;;  %v2590_v35 = vadd.f32 %v8961_v45, %v7558_v1  ;;  %v8962_v22 = vld [vmem:[#allocation35_spill] sm:$0xff]  ;;  %v7709_v25 = vpop.f32.mrf.mxu2  ;;  %v8966_v46 = vld [vmem:[#allocation178_spill] sm:$0xff] }
 0x42e   :  { %4592 = vmatpush.msra.mxu0 %v3140_v43  ;;  %4621 = vmatpush.msra.mxu1 %v3204_v51  ;;  %v3132_v31 = vld [vmem:[#allocation8 + $0x148] sm:$0xff]  ;;  %v2706_v59 = vadd.f32 %v8962_v22, %v7561_v29  ;;  %v2822_v17 = vadd.f32 %v7470_v62, %v7568_v18  ;;  %v3019_v62 = vadd.f32 %v7636_v57, %v2990_v36  ;;  %v7723_v36 = vpop.f32.mrf.mxu1  ;;  %v8973_v22 = vld [vmem:[#allocation183_spill] sm:$0xff] }
 0x42f   :  { %4650 = vmatpush.msra.mxu2 %v3268_v21  ;;  %4492 = vmatmul.f32.gmra.mxu0 %v7677_v42  ;;  %v3260_v7 = vld [vmem:[#allocation8 + $0x548] sm:$0xff]  ;;  %v2619_v10 = vadd.f32 %v8966_v46, %v2590_v35  ;;  %v2964_v57 = vadd.f32 %v7601_v48, %v2935_v38 }
 0x430   :  { %4521 = vmatmul.f32.gmra.mxu1 %v7679_v58  ;;  %4550 = vmatmul.f32.gmra.mxu2 %v7685_v27  ;;  %v3340_v5 = vld [vmem:[#allocation8 + $0x7c8] sm:$0xff]  ;;  %v7727_v45 = vmax.f32 %v3019_v62, 0.0  ;;  %v9007_v27 = vld [vmem:[#allocation47_spill] sm:$0xff] }
 0x431   :  { %4575 = vmatpush.msrb.mxu3 %v4051_v23  ;;  %4593 = vmatpush.msra.mxu0 %v3136_v19  ;;  %v3128_v50 = vld [vmem:[#allocation8 + $0x128] sm:$0xff]  ;;  %v8967_v23 = vld [vmem:[#allocation43_spill] sm:$0xff] }
 0x432   :  { %4622 = vmatpush.msra.mxu1 %v3200_v4  ;;  %4651 = vmatpush.msra.mxu2 %v3264_v0  ;;  %v8963_v16 = vld [vmem:[#allocation184_spill] sm:$0xff]  ;;  %v8965_v51 = vld [vmem:[#allocation97_spill] sm:$0xff]  ;;  %v2735_v19 = vadd.f32 %v8967_v23, %v2706_v59  ;;  %8972 = vst [vmem:[#allocation71_spill] sm:$0xff] %v7727_v45  ;;  %v2648_v59 = vadd.f32 %v8973_v22, %v2619_v10 }
 0x433   :  { %4576 = vmatmul.f32.vlgmr.msrb.gmra.mxu3 %v7687_v30  ;;  %v2674_v1 = vadd.f32 %v8963_v16, %v2645_v37  ;;  %v8964_v43 = vld [vmem:[#allocation28_spill] sm:$0xff]  ;;  %4594 = vmatpush.msra.mxu0 %v3132_v31  ;;  %v2906_v21 = vadd.f32 %v8965_v51, %v2877_v32  ;;  %v7713_v37 = vpop.f32.mrf.mxu3  ;;  %v2993_v16 = vadd.f32 %v7631_v63, %v2964_v57 }
 0x434   :  { %v2790_v52 = vadd.f32 %v8964_v43, %v2761_v55  ;;  %4676 = vmatpush.msra.mxu3 %v3344_v34  ;;  %v3192_v29 = vld [vmem:[#allocation8 + $0x328] sm:$0xff]  ;;  %4623 = vmatpush.msra.mxu1 %v3196_v6  ;;  %v7721_v34 = vpop.f32.mrf.mxu0 }
 0x435   :  { %v3256_v33 = vld [vmem:[#allocation8 + $0x528] sm:$0xff]  ;;  %4652 = vmatpush.msra.mxu2 %v3260_v7  ;;  %4595 = vmatpush.msra.mxu0 %v3128_v50  ;;  %v7717_v0 = vmax.f32 %v2674_v1, 0.0  ;;  %v7725_v31 = vmax.f32 %v2906_v21, 0.0  ;;  %v3022_v23 = vadd.f32 %v7673_v15, %v2993_v16 }
 0x436   :  { %v3336_v18 = vld [vmem:[#allocation8 + $0x7a8] sm:$0xff]  ;;  %4677 = vmatpush.msra.mxu3 %v3340_v5  ;;  %4624 = vmatpush.msra.mxu1 %v3192_v29  ;;  %v7719_v26 = vmax.f32 %v2790_v52, 0.0 }
 0x437   :  { %v3124_v39 = vld [vmem:[#allocation8 + $0x108] sm:$0xff]  ;;  %4653 = vmatpush.msra.mxu2 %v3256_v33  ;;  %8969 = vst [vmem:[#allocation85_spill] sm:$0xff] %v7717_v0  ;;  %4495 = vmatmul.f32.gmra.mxu0 %v7717_v0  ;;  %v2938_v33 = vadd.f32 %v7640_v13, %v7606_v2  ;;  %v7758_v22 = vmax.f32 %v3022_v23, 0.0  ;;  %v4115_v0 = vld [vmem:[#allocation10] sm:$0xf] }
 0x438   :  { %v3188_v4 = vld [vmem:[#allocation8 + $0x308] sm:$0xff]  ;;  %8970 = vst [vmem:[#allocation101_spill] sm:$0xff] %v7719_v26  ;;  %4678 = vmatpush.msra.mxu3 %v3336_v18  ;;  %4596 = vmatpush.msra.mxu0 %v3124_v39 }
 0x439   :  { %v3252_v56 = vld [vmem:[#allocation8 + $0x508] sm:$0xff]  ;;  %8971 = vst [vmem:[#allocation55_spill] sm:$0xff] %v7725_v31  ;;  %4625 = vmatpush.msra.mxu1 %v3188_v4  ;;  %4553 = vmatmul.f32.gmra.mxu2 %v7725_v31 }
 0x43a   :  { %v8968_v61 = vld [vmem:[#allocation64_spill] sm:$0xff]  ;;  %4654 = vmatpush.msra.mxu2 %v3252_v56  ;;  %4524 = vmatmul.f32.gmra.mxu1 %v7719_v26  ;;  %v8975_v5 = vld [vmem:[#allocation81_spill] sm:$0xff]  ;;  %v7743_v56 = vpop.f32.mrf.mxu2  ;;  %8981 = vst [vmem:[#allocation74_spill] sm:$0xff] %v7758_v22  ;;  %v9005_v26 = vld [vmem:[#allocation46_spill] sm:$0xff] }
 0x43b   :  { %v2851_v55 = vadd.f32 %v8968_v61, %v2822_v17  ;;  %v3332_v32 = vld [vmem:[#allocation8 + $0x788] sm:$0xff]  ;;  %4579 = vmatmul.f32.gmra.mxu3 %v7727_v45  ;;  %v7745_v61 = vpop.f32.mrf.mxu3 }
 0x43c   :  { %v3120_v48 = vld [vmem:[#allocation8 + $0xe8] sm:$0xff]  ;;  %4679 = vmatpush.msra.mxu3 %v3332_v32  ;;  %v7752_v32 = vpop.f32.mrf.mxu0 }
 0x43d   :  { %v3184_v35 = vld [vmem:[#allocation8 + $0x2e8] sm:$0xff]  ;;  %v2880_v38 = vadd.f32 %v8975_v5, %v2851_v55  ;;  %4597 = vmatpush.msra.mxu0 %v3120_v48  ;;  %v2967_v55 = vadd.f32 %v7642_v49, %v2938_v33  ;;  %v7754_v48 = vpop.f32.mrf.mxu1 }
 0x43e   :  { %v8974_v6 = vld [vmem:[#allocation20_spill] sm:$0xff]  ;;  %4626 = vmatpush.msra.mxu1 %v3184_v35  ;;  %v8977_v18 = vld [vmem:[#allocation37_spill] sm:$0xff] }
 0x43f   :  { %v2764_v7 = vadd.f32 %v8974_v6, %v2735_v19  ;;  %v3248_v17 = vld [vmem:[#allocation8 + $0x4e8] sm:$0xff]  ;;  %v2909_v10 = vadd.f32 %v7545_v3, %v2880_v38 }
 0x440   :  { %v3328_v50 = vld [vmem:[#allocation8 + $0x768] sm:$0xff]  ;;  %4655 = vmatpush.msra.mxu2 %v3248_v17  ;;  %v2996_v17 = vadd.f32 %v7669_v47, %v2967_v55 }
 0x441   :  { %v3116_v1 = vld [vmem:[#allocation8 + $0xc8] sm:$0xff]  ;;  %v2793_v39 = vadd.f32 %v8977_v18, %v2764_v7  ;;  %4680 = vmatpush.msra.mxu3 %v3328_v50  ;;  %v7756_v35 = vmax.f32 %v2909_v10, 0.0 }
 0x442   :  { %v3180_v43 = vld [vmem:[#allocation8 + $0x2c8] sm:$0xff]  ;;  %4598 = vmatpush.msra.mxu0 %v3116_v1 }
 0x443   :  { %v3244_v52 = vld [vmem:[#allocation8 + $0x4c8] sm:$0xff]  ;;  %4627 = vmatpush.msra.mxu1 %v3180_v43  ;;  %v7750_v3 = vmax.f32 %v2793_v39, 0.0  ;;  %8980 = vst [vmem:[#allocation58_spill] sm:$0xff] %v7756_v35  ;;  %4556 = vmatmul.f32.gmra.mxu2 %v7756_v35  ;;  %v7768_v18 = vpop.f32.mrf.mxu3  ;;  %v9000_v35 = vld [vmem:[#allocation38_spill] sm:$0xff] }
 0x444   :  { %v3324_v29 = vld [vmem:[#allocation8 + $0x748] sm:$0xff]  ;;  %4656 = vmatpush.msra.mxu2 %v3244_v52  ;;  %4582 = vmatmul.f32.gmra.mxu3 %v7758_v22 }
 0x445   :  { %v3112_v51 = vld [vmem:[#allocation8 + $0xa8] sm:$0xff]  ;;  %4681 = vmatpush.msra.mxu3 %v3324_v29  ;;  %8979 = vst [vmem:[#allocation103_spill] sm:$0xff] %v7750_v3  ;;  %4527 = vmatmul.f32.gmra.mxu1 %v7750_v3  ;;  %v3025_v29 = vadd.f32 %v7713_v37, %v2996_v17  ;;  %v7772_v37 = vpop.f32.mrf.mxu1  ;;  %v9001_v3 = vld [vmem:[#allocation19_spill] sm:$0xff] }
 0x446   :  { %v8976_v21 = vld [vmem:[#allocation16_spill] sm:$0xff]  ;;  %4599 = vmatpush.msra.mxu0 %v3112_v51  ;;  %v7766_v51 = vpop.f32.mrf.mxu2  ;;  %v9004_v31 = vld [vmem:[#allocation21_spill] sm:$0xff] }
 0x447   :  { %v2677_v62 = vadd.f32 %v8976_v21, %v2648_v59  ;;  %v3176_v63 = vld [vmem:[#allocation8 + $0x2a8] sm:$0xff] }
 0x448   :  { %v3240_v46 = vld [vmem:[#allocation8 + $0x4a8] sm:$0xff]  ;;  %4628 = vmatpush.msra.mxu1 %v3176_v63  ;;  %v7770_v63 = vpop.f32.mrf.mxu0 }
 0x449   :  { %v3320_v19 = vld [vmem:[#allocation8 + $0x728] sm:$0xff]  ;;  %4657 = vmatpush.msra.mxu2 %v3240_v46  ;;  %v7748_v57 = vmax.f32 %v2677_v62, 0.0  ;;  %v7774_v46 = vmax.f32 %v3025_v29, 0.0 }
 0x44a   :  { %v3108_v4 = vld [vmem:[#allocation8 + $0x88] sm:$0xff]  ;;  %4682 = vmatpush.msra.mxu3 %v3320_v19  ;;  %v8983_v19 = vld [vmem:[#allocation179_spill] sm:$0xff] }
 0x44b   :  { %v3172_v2 = vld [vmem:[#allocation8 + $0x288] sm:$0xff]  ;;  %8978 = vst [vmem:[#allocation87_spill] sm:$0xff] %v7748_v57  ;;  %4600 = vmatpush.msra.mxu0 %v3108_v4 }
 0x44c   :  { %v3236_v13 = vld [vmem:[#allocation8 + $0x488] sm:$0xff]  ;;  %4629 = vmatpush.msra.mxu1 %v3172_v2  ;;  %4498 = vmatmul.f32.gmra.mxu0 %v7748_v57  ;;  %8982 = vst [vmem:[#allocation90_spill] sm:$0xff] %v7774_v46 }
 0x44d   :  { %v3316_v15 = vld [vmem:[#allocation8 + $0x708] sm:$0xff]  ;;  %4658 = vmatpush.msra.mxu2 %v3236_v13  ;;  %4585 = vmatmul.f32.gmra.mxu3 %v7774_v46 }
 0x44e   :  { %v3104_v49 = vld [vmem:[#allocation8 + $0x68] sm:$0xff]  ;;  %4683 = vmatpush.msra.mxu3 %v3316_v15 }
 0x44f   :  { %v3168_v59 = vld [vmem:[#allocation8 + $0x268] sm:$0xff]  ;;  %4601 = vmatpush.msra.mxu0 %v3104_v49 }
 0x450   :  { %v3232_v6 = vld [vmem:[#allocation8 + $0x468] sm:$0xff]  ;;  %4630 = vmatpush.msra.mxu1 %v3168_v59 }
 0x451   :  { %v3312_v7 = vld [vmem:[#allocation8 + $0x6e8] sm:$0xff]  ;;  %4659 = vmatpush.msra.mxu2 %v3232_v6 }
 0x452   :  { %v3100_v5 = vld [vmem:[#allocation8 + $0x48] sm:$0xff]  ;;  %4684 = vmatpush.msra.mxu3 %v3312_v7 }
 0x453   :  { %v3164_v38 = vld [vmem:[#allocation8 + $0x248] sm:$0xff]  ;;  %4602 = vmatpush.msra.mxu0 %v3100_v5 }
 0x454   :  { %v3228_v50 = vld [vmem:[#allocation8 + $0x448] sm:$0xff]  ;;  %4631 = vmatpush.msra.mxu1 %v3164_v38 }
 0x455   :  { %v3308_v16 = vld [vmem:[#allocation8 + $0x6c8] sm:$0xff]  ;;  %4660 = vmatpush.msra.mxu2 %v3228_v50 }
 0x456   :  { %v3096_v1 = vld [vmem:[#allocation8 + $0x28] sm:$0xff]  ;;  %4685 = vmatpush.msra.mxu3 %v3308_v16  ;;  %v7780_v16 = vpop.f32.mrf.mxu2 }
 0x457   :  { %v3160_v43 = vld [vmem:[#allocation8 + $0x228] sm:$0xff]  ;;  %4603 = vmatpush.msra.mxu0 %v3096_v1 }
 0x458   :  { %v3224_v52 = vld [vmem:[#allocation8 + $0x428] sm:$0xff]  ;;  %4632 = vmatpush.msra.mxu1 %v3160_v43 }
 0x459   :  { %v3304_v33 = vld [vmem:[#allocation8 + $0x6a8] sm:$0xff]  ;;  %4661 = vmatpush.msra.mxu2 %v3224_v52  ;;  %v7782_v52 = vpop.f32.mrf.mxu3 }
 0x45a   :  { %v3092_v47 = vld [vmem:[#allocation8 + $0x8] sm:$0xff]  ;;  %4686 = vmatpush.msra.mxu3 %v3304_v33  ;;  %v7784_v33 = vpop.f32.mrf.mxu0 }
 0x45b   :  { %v3156_v21 = vld [vmem:[#allocation8 + $0x208] sm:$0xff]  ;;  %4604 = vmatpush.msra.mxu0 %v3092_v47  ;;  %v7786_v47 = vpop.f32.mrf.mxu1 }
 0x45c   :  { %v3220_v62 = vld [vmem:[#allocation8 + $0x408] sm:$0xff]  ;;  %4633 = vmatpush.msra.mxu1 %v3156_v21  ;;  %4605 = vmatmul.f32.vlgmr.msra.gmra.mxu0 %v8983_v19 }
 0x45d   :  { %v3300_v39 = vld [vmem:[#allocation8 + $0x688] sm:$0xff]  ;;  %4662 = vmatpush.msra.mxu2 %v3220_v62 }
 0x45e   :  { %v3408_v10 = vld [vmem:[#allocation8 + $0x9e8] sm:$0xff]  ;;  %4687 = vmatpush.msra.mxu3 %v3300_v39  ;;  %v8986_v39 = vld [vmem:[#allocation18_spill] sm:$0xff] }
 0x45f   :  { %v3472_v23 = vld [vmem:[#allocation8 + $0xbe8] sm:$0xff]  ;;  %4705 = vmatpush.msrb.mxu0 %v3408_v10  ;;  %v8987_v10 = vld [vmem:[#allocation26_spill] sm:$0xff] }
 0x460   :  { %v8984_v4 = vld [vmem:[#allocation180_spill] sm:$0xff]  ;;  %v8985_v13 = vld [vmem:[#allocation181_spill] sm:$0xff]  ;;  %4734 = vmatpush.msrb.mxu1 %v3472_v23 }
 0x461   :  { %4634 = vmatmul.f32.vlgmr.msra.gmra.mxu1 %v8984_v4  ;;  %v3536_v2 = vld [vmem:[#allocation8 + $0xde8] sm:$0xff]  ;;  %4663 = vmatmul.f32.vlgmr.msra.gmra.mxu2 %v8985_v13 }
 0x462   :  { %v3296_v55 = vld [vmem:[#allocation8 + $0x668] sm:$0xff]  ;;  %4763 = vmatpush.msrb.mxu2 %v3536_v2  ;;  %v8988_v2 = vld [vmem:[#allocation34_spill] sm:$0xff] }
 0x463   :  { %v3404_v15 = vld [vmem:[#allocation8 + $0x9c8] sm:$0xff]  ;;  %4688 = vmatpush.msra.mxu3 %v3296_v55 }
 0x464   :  { %v3468_v49 = vld [vmem:[#allocation8 + $0xbc8] sm:$0xff]  ;;  %4706 = vmatpush.msrb.mxu0 %v3404_v15 }
 0x465   :  { %v3532_v59 = vld [vmem:[#allocation8 + $0xdc8] sm:$0xff]  ;;  %4735 = vmatpush.msrb.mxu1 %v3468_v49  ;;  %4608 = vmatmul.f32.gmra.mxu0 %v8986_v39 }
 0x466   :  { %v3292_v6 = vld [vmem:[#allocation8 + $0x648] sm:$0xff]  ;;  %4764 = vmatpush.msrb.mxu2 %v3532_v59 }
 0x467   :  { %v3400_v7 = vld [vmem:[#allocation8 + $0x9a8] sm:$0xff]  ;;  %4689 = vmatpush.msra.mxu3 %v3292_v6  ;;  %v8989_v6 = vld [vmem:[#allocation182_spill] sm:$0xff] }
 0x468   :  { %v3464_v17 = vld [vmem:[#allocation8 + $0xba8] sm:$0xff]  ;;  %4707 = vmatpush.msrb.mxu0 %v3400_v7 }
 0x469   :  { %v3528_v5 = vld [vmem:[#allocation8 + $0xda8] sm:$0xff]  ;;  %4736 = vmatpush.msrb.mxu1 %v3464_v17  ;;  %4666 = vmatmul.f32.gmra.mxu2 %v8988_v2 }
 0x46a   :  { %v3288_v38 = vld [vmem:[#allocation8 + $0x628] sm:$0xff]  ;;  %4765 = vmatpush.msrb.mxu2 %v3528_v5  ;;  %4637 = vmatmul.f32.gmra.mxu1 %v8987_v10  ;;  %v8993_v10 = vld [vmem:[#allocation42_spill] sm:$0xff] }
 0x46b   :  { %v3396_v50 = vld [vmem:[#allocation8 + $0x988] sm:$0xff]  ;;  %4690 = vmatpush.msra.mxu3 %v3288_v38 }
 0x46c   :  { %v3460_v1 = vld [vmem:[#allocation8 + $0xb88] sm:$0xff]  ;;  %4708 = vmatpush.msrb.mxu0 %v3396_v50 }
 0x46d   :  { %v3524_v43 = vld [vmem:[#allocation8 + $0xd88] sm:$0xff]  ;;  %4737 = vmatpush.msrb.mxu1 %v3460_v1 }
 0x46e   :  { %v3284_v29 = vld [vmem:[#allocation8 + $0x608] sm:$0xff]  ;;  %4766 = vmatpush.msrb.mxu2 %v3524_v43  ;;  %v7792_v43 = vpop.f32.mrf.mxu2 }
 0x46f   :  { %v3392_v21 = vld [vmem:[#allocation8 + $0x968] sm:$0xff]  ;;  %4691 = vmatpush.msra.mxu3 %v3284_v29 }
 0x470   :  { %v3456_v62 = vld [vmem:[#allocation8 + $0xb68] sm:$0xff]  ;;  %4709 = vmatpush.msrb.mxu0 %v3392_v21  ;;  %4692 = vmatmul.f32.vlgmr.msra.gmra.mxu3 %v8989_v6 }
 0x471   :  { %v3520_v23 = vld [vmem:[#allocation8 + $0xd68] sm:$0xff]  ;;  %4738 = vmatpush.msrb.mxu1 %v3456_v62  ;;  %v7794_v62 = vpop.f32.mrf.mxu3 }
 0x472   :  { %v3600_v55 = vld [vmem:[#allocation8 + $0xfe8] sm:$0xff]  ;;  %4767 = vmatpush.msrb.mxu2 %v3520_v23 }
 0x473   :  { %v3388_v15 = vld [vmem:[#allocation8 + $0x948] sm:$0xff]  ;;  %4792 = vmatpush.msrb.mxu3 %v3600_v55  ;;  %v7796_v55 = vpop.f32.mrf.mxu0 }
 0x474   :  { %v3452_v49 = vld [vmem:[#allocation8 + $0xb48] sm:$0xff]  ;;  %4710 = vmatpush.msrb.mxu0 %v3388_v15  ;;  %v7798_v15 = vpop.f32.mrf.mxu1 }
 0x475   :  { %v3516_v59 = vld [vmem:[#allocation8 + $0xd48] sm:$0xff]  ;;  %4739 = vmatpush.msrb.mxu1 %v3452_v49 }
 0x476   :  { %v3596_v7 = vld [vmem:[#allocation8 + $0xfc8] sm:$0xff]  ;;  %4768 = vmatpush.msrb.mxu2 %v3516_v59 }
 0x477   :  { %v3384_v17 = vld [vmem:[#allocation8 + $0x928] sm:$0xff]  ;;  %4793 = vmatpush.msrb.mxu3 %v3596_v7 }
 0x478   :  { %v3448_v5 = vld [vmem:[#allocation8 + $0xb28] sm:$0xff]  ;;  %4711 = vmatpush.msrb.mxu0 %v3384_v17  ;;  %4695 = vmatmul.f32.gmra.mxu3 %v8993_v10 }
 0x479   :  { %v3512_v38 = vld [vmem:[#allocation8 + $0xd28] sm:$0xff]  ;;  %4740 = vmatpush.msrb.mxu1 %v3448_v5  ;;  %v7806_v46 = vpop.f32.mrf.mxu3 }
 0x47a   :  { %v3592_v50 = vld [vmem:[#allocation8 + $0xfa8] sm:$0xff]  ;;  %4769 = vmatpush.msrb.mxu2 %v3512_v38 }
 0x47b   :  { %v3380_v1 = vld [vmem:[#allocation8 + $0x908] sm:$0xff]  ;;  %4794 = vmatpush.msrb.mxu3 %v3592_v50 }
 0x47c   :  { %v3444_v29 = vld [vmem:[#allocation8 + $0xb08] sm:$0xff]  ;;  %4712 = vmatpush.msrb.mxu0 %v3380_v1 }
 0x47d   :  { %v3508_v21 = vld [vmem:[#allocation8 + $0xd08] sm:$0xff]  ;;  %4741 = vmatpush.msrb.mxu1 %v3444_v29 }
 0x47e   :  { %v3588_v23 = vld [vmem:[#allocation8 + $0xf88] sm:$0xff]  ;;  %4770 = vmatpush.msrb.mxu2 %v3508_v21 }
 0x47f   :  { %v3376_v49 = vld [vmem:[#allocation8 + $0x8e8] sm:$0xff]  ;;  %4795 = vmatpush.msrb.mxu3 %v3588_v23  ;;  %v7804_v23 = vpop.f32.mrf.mxu2 }
 0x480   :  { %v3440_v59 = vld [vmem:[#allocation8 + $0xae8] sm:$0xff]  ;;  %4713 = vmatpush.msrb.mxu0 %v3376_v49 }
 0x481   :  { %v8990_v6 = vld [vmem:[#allocation24_spill] sm:$0xff]  ;;  %4742 = vmatpush.msrb.mxu1 %v3440_v59  ;;  %v8994_v10 = vld [vmem:[#allocation25_spill] sm:$0xff]  ;;  %v7818_v22 = vpop.f32.mrf.mxu3 }
 0x482   :  { %4611 = vmatmul.f32.gmra.mxu0 %v8990_v6  ;;  %v8991_v7 = vld [vmem:[#allocation32_spill] sm:$0xff]  ;;  %v8996_v13 = vld [vmem:[#allocation41_spill] sm:$0xff] }
 0x483   :  { %4640 = vmatmul.f32.gmra.mxu1 %v8991_v7  ;;  %v3504_v17 = vld [vmem:[#allocation8 + $0xce8] sm:$0xff] }
 0x484   :  { %v8992_v2 = vld [vmem:[#allocation40_spill] sm:$0xff]  ;;  %4771 = vmatpush.msrb.mxu2 %v3504_v17  ;;  %v8997_v4 = vld [vmem:[#allocation17_spill] sm:$0xff] }
 0x485   :  { %4669 = vmatmul.f32.gmra.mxu2 %v8992_v2  ;;  %v3584_v5 = vld [vmem:[#allocation8 + $0xf68] sm:$0xff]  ;;  %4698 = vmatmul.f32.gmra.mxu3 %v8997_v4  ;;  %v8998_v4 = vld [vmem:[#allocation22_spill] sm:$0xff] }
 0x486   :  { %v3372_v38 = vld [vmem:[#allocation8 + $0x8c8] sm:$0xff]  ;;  %4796 = vmatpush.msrb.mxu3 %v3584_v5  ;;  %v7808_v5 = vpop.f32.mrf.mxu0 }
 0x487   :  { %v3436_v50 = vld [vmem:[#allocation8 + $0xac8] sm:$0xff]  ;;  %4714 = vmatpush.msrb.mxu0 %v3372_v38  ;;  %v7810_v38 = vpop.f32.mrf.mxu1 }
 0x488   :  { %v3500_v1 = vld [vmem:[#allocation8 + $0xcc8] sm:$0xff]  ;;  %4743 = vmatpush.msrb.mxu1 %v3436_v50 }
 0x489   :  { %v3580_v29 = vld [vmem:[#allocation8 + $0xf48] sm:$0xff]  ;;  %4772 = vmatpush.msrb.mxu2 %v3500_v1  ;;  %v7830_v45 = vpop.f32.mrf.mxu3 }
 0x48a   :  { %v3368_v21 = vld [vmem:[#allocation8 + $0x8a8] sm:$0xff]  ;;  %4797 = vmatpush.msrb.mxu3 %v3580_v29  ;;  %4614 = vmatmul.f32.gmra.mxu0 %v8994_v10 }
 0x48b   :  { %v3432_v6 = vld [vmem:[#allocation8 + $0xaa8] sm:$0xff]  ;;  %4715 = vmatpush.msrb.mxu0 %v3368_v21 }
 0x48c   :  { %v3496_v39 = vld [vmem:[#allocation8 + $0xca8] sm:$0xff]  ;;  %4744 = vmatpush.msrb.mxu1 %v3432_v6 }
 0x48d   :  { %v3576_v7 = vld [vmem:[#allocation8 + $0xf28] sm:$0xff]  ;;  %4773 = vmatpush.msrb.mxu2 %v3496_v39  ;;  %4701 = vmatmul.f32.gmra.mxu3 %v9001_v3 }
 0x48e   :  { %v3364_v2 = vld [vmem:[#allocation8 + $0x888] sm:$0xff]  ;;  %4798 = vmatpush.msrb.mxu3 %v3576_v7  ;;  %4672 = vmatmul.f32.gmra.mxu2 %v8996_v13 }
 0x48f   :  { %v3428_v49 = vld [vmem:[#allocation8 + $0xa88] sm:$0xff]  ;;  %4716 = vmatpush.msrb.mxu0 %v3364_v2 }
 0x490   :  { %v3492_v59 = vld [vmem:[#allocation8 + $0xc88] sm:$0xff]  ;;  %4745 = vmatpush.msrb.mxu1 %v3428_v49 }
 0x491   :  { %v3572_v17 = vld [vmem:[#allocation8 + $0xf08] sm:$0xff]  ;;  %4774 = vmatpush.msrb.mxu2 %v3492_v59 }
 0x492   :  { %v3360_v50 = vld [vmem:[#allocation8 + $0x868] sm:$0xff]  ;;  %4799 = vmatpush.msrb.mxu3 %v3572_v17  ;;  %v7816_v17 = vpop.f32.mrf.mxu2 }
 0x493   :  { %v3424_v1 = vld [vmem:[#allocation8 + $0xa68] sm:$0xff]  ;;  %4717 = vmatpush.msrb.mxu0 %v3360_v50 }
 0x494   :  { %v8995_v29 = vld [vmem:[#allocation33_spill] sm:$0xff]  ;;  %4746 = vmatpush.msrb.mxu1 %v3424_v1  ;;  %v9002_v3 = vld [vmem:[#allocation36_spill] sm:$0xff] }
 0x495   :  { %4643 = vmatmul.f32.gmra.mxu1 %v8995_v29  ;;  %v3488_v21 = vld [vmem:[#allocation8 + $0xc68] sm:$0xff] }
 0x496   :  { %v3568_v39 = vld [vmem:[#allocation8 + $0xee8] sm:$0xff]  ;;  %4775 = vmatpush.msrb.mxu2 %v3488_v21 }
 0x497   :  { %v3356_v6 = vld [vmem:[#allocation8 + $0x848] sm:$0xff]  ;;  %4800 = vmatpush.msrb.mxu3 %v3568_v39  ;;  %v7820_v39 = vpop.f32.mrf.mxu0 }
 0x498   :  { %v3420_v2 = vld [vmem:[#allocation8 + $0xa48] sm:$0xff]  ;;  %4718 = vmatpush.msrb.mxu0 %v3356_v6  ;;  %v7822_v6 = vpop.f32.mrf.mxu1 }
 0x499   :  { %v3484_v7 = vld [vmem:[#allocation8 + $0xc48] sm:$0xff]  ;;  %4747 = vmatpush.msrb.mxu1 %v3420_v2 }
 0x49a   :  { %v3564_v49 = vld [vmem:[#allocation8 + $0xec8] sm:$0xff]  ;;  %4776 = vmatpush.msrb.mxu2 %v3484_v7 }
 0x49b   :  { %v3352_v59 = vld [vmem:[#allocation8 + $0x828] sm:$0xff]  ;;  %4801 = vmatpush.msrb.mxu3 %v3564_v49  ;;  %v8999_v49 = vld [vmem:[#allocation30_spill] sm:$0xff] }
 0x49c   :  { %v3416_v10 = vld [vmem:[#allocation8 + $0xa28] sm:$0xff]  ;;  %4719 = vmatpush.msrb.mxu0 %v3352_v59 }
 0x49d   :  { %v3480_v19 = vld [vmem:[#allocation8 + $0xc28] sm:$0xff]  ;;  %4748 = vmatpush.msrb.mxu1 %v3416_v10 }
 0x49e   :  { %v3560_v29 = vld [vmem:[#allocation8 + $0xea8] sm:$0xff]  ;;  %4777 = vmatpush.msrb.mxu2 %v3480_v19 }
 0x49f   :  { %v3348_v13 = vld [vmem:[#allocation8 + $0x808] sm:$0xff]  ;;  %4802 = vmatpush.msrb.mxu3 %v3560_v29 }
 0x4a0   :  { %v3412_v50 = vld [vmem:[#allocation8 + $0xa08] sm:$0xff]  ;;  %4720 = vmatpush.msrb.mxu0 %v3348_v13 }
 0x4a1   :  { %v3476_v1 = vld [vmem:[#allocation8 + $0xc08] sm:$0xff]  ;;  %4749 = vmatpush.msrb.mxu1 %v3412_v50  ;;  %4721 = vmatmul.f32.vlgmr.msrb.gmra.mxu0 %v8998_v4 }
 0x4a2   :  { %v3556_v21 = vld [vmem:[#allocation8 + $0xe88] sm:$0xff]  ;;  %4778 = vmatpush.msrb.mxu2 %v3476_v1  ;;  %4750 = vmatmul.f32.vlgmr.msrb.gmra.mxu1 %v8999_v49 }
 0x4a3   :  { %v3664_v2 = vld [vmem:[#allocation8 + $0x11e8] sm:$0xff]  ;;  %4779 = vmatmul.f32.vlgmr.msrb.gmra.mxu2 %v9000_v35  ;;  %4803 = vmatpush.msrb.mxu3 %v3556_v21  ;;  %v7828_v21 = vpop.f32.mrf.mxu2 }
 0x4a4   :  { %v3728_v7 = vld [vmem:[#allocation8 + $0x13e8] sm:$0xff]  ;;  %4821 = vmatpush.msra.mxu0 %v3664_v2 }
 0x4a5   :  { %v3792_v59 = vld [vmem:[#allocation8 + $0x15e8] sm:$0xff]  ;;  %4850 = vmatpush.msra.mxu1 %v3728_v7 }
 0x4a6   :  { %v3552_v19 = vld [vmem:[#allocation8 + $0xe68] sm:$0xff]  ;;  %4879 = vmatpush.msra.mxu2 %v3792_v59 }
 0x4a7   :  { %v3660_v10 = vld [vmem:[#allocation8 + $0x11c8] sm:$0xff]  ;;  %4804 = vmatpush.msrb.mxu3 %v3552_v19  ;;  %v7832_v19 = vpop.f32.mrf.mxu0 }
 0x4a8   :  { %v3724_v13 = vld [vmem:[#allocation8 + $0x13c8] sm:$0xff]  ;;  %4822 = vmatpush.msra.mxu0 %v3660_v10  ;;  %v7834_v10 = vpop.f32.mrf.mxu1 }
 0x4a9   :  { %v3788_v29 = vld [vmem:[#allocation8 + $0x15c8] sm:$0xff]  ;;  %4851 = vmatpush.msra.mxu1 %v3724_v13  ;;  %4724 = vmatmul.f32.gmra.mxu0 %v9002_v3 }
 0x4aa   :  { %v3548_v50 = vld [vmem:[#allocation8 + $0xe48] sm:$0xff]  ;;  %4880 = vmatpush.msra.mxu2 %v3788_v29 }
 0x4ab   :  { %v3656_v1 = vld [vmem:[#allocation8 + $0x11a8] sm:$0xff]  ;;  %4805 = vmatpush.msrb.mxu3 %v3548_v50  ;;  %4782 = vmatmul.f32.gmra.mxu2 %v9004_v31  ;;  %v7840_v30 = vpop.f32.mrf.mxu2 }
 0x4ac   :  { %v3720_v4 = vld [vmem:[#allocation8 + $0x13a8] sm:$0xff]  ;;  %4823 = vmatpush.msra.mxu0 %v3656_v1 }
 0x4ad   :  { %v3784_v57 = vld [vmem:[#allocation8 + $0x15a8] sm:$0xff]  ;;  %4852 = vmatpush.msra.mxu1 %v3720_v4 }
 0x4ae   :  { %v3544_v49 = vld [vmem:[#allocation8 + $0xe28] sm:$0xff]  ;;  %4881 = vmatpush.msra.mxu2 %v3784_v57 }
 0x4af   :  { %v3652_v35 = vld [vmem:[#allocation8 + $0x1188] sm:$0xff]  ;;  %4806 = vmatpush.msrb.mxu3 %v3544_v49 }
 0x4b0   :  { %v3716_v2 = vld [vmem:[#allocation8 + $0x1388] sm:$0xff]  ;;  %4824 = vmatpush.msra.mxu0 %v3652_v35 }
 0x4b1   :  { %v3780_v7 = vld [vmem:[#allocation8 + $0x1588] sm:$0xff]  ;;  %4853 = vmatpush.msra.mxu1 %v3716_v2 }
 0x4b2   :  { %v3540_v59 = vld [vmem:[#allocation8 + $0xe08] sm:$0xff]  ;;  %4882 = vmatpush.msra.mxu2 %v3780_v7 }
 0x4b3   :  { %v3648_v13 = vld [vmem:[#allocation8 + $0x1168] sm:$0xff]  ;;  %4807 = vmatpush.msrb.mxu3 %v3540_v59  ;;  %v7856_v60 = vpop.f32.mrf.mxu2 }
 0x4b4   :  { %v3712_v29 = vld [vmem:[#allocation8 + $0x1368] sm:$0xff]  ;;  %4825 = vmatpush.msra.mxu0 %v3648_v13  ;;  %4808 = vmatmul.f32.vlgmr.msrb.gmra.mxu3 %v9005_v26  ;;  %v7844_v26 = vperm.slane %v4115_v0, 0 }
 0x4b5   :  { %v9003_v50 = vld [vmem:[#allocation44_spill] sm:$0xff]  ;;  %4854 = vmatpush.msra.mxu1 %v3712_v29 }
 0x4b6   :  { %4753 = vmatmul.f32.gmra.mxu1 %v9003_v50  ;;  %v3776_v1 = vld [vmem:[#allocation8 + $0x1568] sm:$0xff]  ;;  %v4143_v0 = vadd.f32 %v7681_v8, %v7844_v26 }
 0x4b7   :  { %v3856_v57 = vld [vmem:[#allocation8 + $0x17e8] sm:$0xff]  ;;  %4883 = vmatpush.msra.mxu2 %v3776_v1  ;;  %v7842_v1 = vpop.f32.mrf.mxu3 }
 0x4b8   :  { %v3644_v4 = vld [vmem:[#allocation8 + $0x1148] sm:$0xff]  ;;  %4908 = vmatpush.msra.mxu3 %v3856_v57  ;;  %v7846_v57 = vpop.f32.mrf.mxu0  ;;  %v4172_v8 = vadd.f32 %v7683_v11, %v4143_v0 }
 0x4b9   :  { %v3708_v35 = vld [vmem:[#allocation8 + $0x1348] sm:$0xff]  ;;  %4826 = vmatpush.msra.mxu0 %v3644_v4 }
 0x4ba   :  { %v3772_v49 = vld [vmem:[#allocation8 + $0x1548] sm:$0xff]  ;;  %4855 = vmatpush.msra.mxu1 %v3708_v35  ;;  %v7848_v35 = vpop.f32.mrf.mxu1 }
 0x4bb   :  { %v3852_v2 = vld [vmem:[#allocation8 + $0x17c8] sm:$0xff]  ;;  %4884 = vmatpush.msra.mxu2 %v3772_v49 }
 0x4bc   :  { %v3640_v7 = vld [vmem:[#allocation8 + $0x1128] sm:$0xff]  ;;  %4909 = vmatpush.msra.mxu3 %v3852_v2 }
 0x4bd   :  { %v3704_v3 = vld [vmem:[#allocation8 + $0x1328] sm:$0xff]  ;;  %4827 = vmatpush.msra.mxu0 %v3640_v7 }
 0x4be   :  { %v3768_v50 = vld [vmem:[#allocation8 + $0x1528] sm:$0xff]  ;;  %4856 = vmatpush.msra.mxu1 %v3704_v3  ;;  %v9008_v3 = vld [vmem:[#allocation63_spill] sm:$0xff] }
 0x4bf   :  { %v3848_v31 = vld [vmem:[#allocation8 + $0x17a8] sm:$0xff]  ;;  %4885 = vmatpush.msra.mxu2 %v3768_v50  ;;  %4756 = vmatmul.f32.gmra.mxu1 %v9007_v27 }
 0x4c0   :  { %v3636_v59 = vld [vmem:[#allocation8 + $0x1108] sm:$0xff]  ;;  %4910 = vmatpush.msra.mxu3 %v3848_v31  ;;  %4785 = vmatmul.f32.gmra.mxu2 %v9008_v3  ;;  %v7859_v3 = vpop.f32.mrf.mxu3 }
 0x4c1   :  { %v3700_v13 = vld [vmem:[#allocation8 + $0x1308] sm:$0xff]  ;;  %4828 = vmatpush.msra.mxu0 %v3636_v59 }
 0x4c2   :  { %v3764_v29 = vld [vmem:[#allocation8 + $0x1508] sm:$0xff]  ;;  %4857 = vmatpush.msra.mxu1 %v3700_v13 }
 0x4c3   :  { %v3844_v4 = vld [vmem:[#allocation8 + $0x1788] sm:$0xff]  ;;  %4886 = vmatpush.msra.mxu2 %v3764_v29 }
 0x4c4   :  { %v3632_v49 = vld [vmem:[#allocation8 + $0x10e8] sm:$0xff]  ;;  %4911 = vmatpush.msra.mxu3 %v3844_v4 }
 0x4c5   :  { %v3696_v2 = vld [vmem:[#allocation8 + $0x12e8] sm:$0xff]  ;;  %4829 = vmatpush.msra.mxu0 %v3632_v49 }
 0x4c6   :  { %v9006_v7 = vld [vmem:[#allocation45_spill] sm:$0xff]  ;;  %4858 = vmatpush.msra.mxu1 %v3696_v2 }
 0x4c7   :  { %4727 = vmatmul.f32.gmra.mxu0 %v9006_v7  ;;  %v3760_v58 = vld [vmem:[#allocation8 + $0x14e8] sm:$0xff] }
 0x4c8   :  { %v3840_v31 = vld [vmem:[#allocation8 + $0x1768] sm:$0xff]  ;;  %4887 = vmatpush.msra.mxu2 %v3760_v58 }
 0x4c9   :  { %v3628_v50 = vld [vmem:[#allocation8 + $0x10c8] sm:$0xff]  ;;  %4912 = vmatpush.msra.mxu3 %v3840_v31  ;;  %v7862_v31 = vpop.f32.mrf.mxu0 }
 0x4ca   :  { %v3692_v59 = vld [vmem:[#allocation8 + $0x12c8] sm:$0xff]  ;;  %4830 = vmatpush.msra.mxu0 %v3628_v50  ;;  %v7864_v50 = vpop.f32.mrf.mxu1 }
 0x4cb   :  { %v3756_v13 = vld [vmem:[#allocation8 + $0x14c8] sm:$0xff]  ;;  %4859 = vmatpush.msra.mxu1 %v3692_v59  ;;  %v9011_v59 = vld [vmem:[#allocation31_spill] sm:$0xff] }
 0x4cc   :  { %v9009_v29 = vld [vmem:[#allocation29_spill] sm:$0xff]  ;;  %4888 = vmatpush.msra.mxu2 %v3756_v13  ;;  %4759 = vmatmul.f32.gmra.mxu1 %v9011_v59 }
 0x4cd   :  { %4811 = vmatmul.f32.gmra.mxu3 %v9009_v29  ;;  %v3836_v42 = vld [vmem:[#allocation8 + $0x1748] sm:$0xff]  ;;  %v4201_v29 = vadd.f32 %v7709_v25, %v4172_v8 }
 0x4ce   :  { %v3624_v7 = vld [vmem:[#allocation8 + $0x10a8] sm:$0xff]  ;;  %4913 = vmatpush.msra.mxu3 %v3836_v42  ;;  %4889 = vmatpush.msra.mxu2 %v3752_v40  ;;  %v4146_v40 = vadd.f32 %v7721_v34, %v7844_v26 }
 0x4cf   :  { %v3688_v27 = vld [vmem:[#allocation8 + $0x12a8] sm:$0xff]  ;;  %4831 = vmatpush.msra.mxu0 %v3624_v7  ;;  %v9010_v7 = vld [vmem:[#allocation23_spill] sm:$0xff]  ;;  %v4230_v25 = vadd.f32 %v7745_v61, %v4201_v29  ;;  %v7874_v29 = vpop.f32.mrf.mxu2 }
 0x4d0   :  { %v3832_v4 = vld [vmem:[#allocation8 + $0x1728] sm:$0xff]  ;;  %4860 = vmatpush.msra.mxu1 %v3688_v27  ;;  %4730 = vmatmul.f32.gmra.mxu0 %v9010_v7  ;;  %v9012_v27 = vld [vmem:[#allocation39_spill] sm:$0xff] }
 0x4d1   :  { %v3620_v49 = vld [vmem:[#allocation8 + $0x1088] sm:$0xff]  ;;  %4914 = vmatpush.msra.mxu3 %v3832_v4  ;;  %4788 = vmatmul.f32.gmra.mxu2 %v9012_v27  ;;  %v9013_v7 = vld [vmem:[#allocation79_spill] sm:$0xff] }
 0x4d2   :  { %v3684_v2 = vld [vmem:[#allocation8 + $0x1288] sm:$0xff]  ;;  %4832 = vmatpush.msra.mxu0 %v3620_v49  ;;  %v7883_v27 = vpop.f32.mrf.mxu1 }
 0x4d3   :  { %v3748_v58 = vld [vmem:[#allocation8 + $0x1488] sm:$0xff]  ;;  %4861 = vmatpush.msra.mxu1 %v3684_v2 }
 0x4d4   :  { %v3828_v11 = vld [vmem:[#allocation8 + $0x1708] sm:$0xff]  ;;  %4890 = vmatpush.msra.mxu2 %v3748_v58  ;;  %v4259_v58 = vadd.f32 %v7784_v33, %v4230_v25  ;;  %v7877_v25 = vpop.f32.mrf.mxu3 }
 0x4d5   :  { %v3616_v0 = vld [vmem:[#allocation8 + $0x1068] sm:$0xff]  ;;  %4915 = vmatpush.msra.mxu3 %v3828_v11  ;;  %v4175_v11 = vadd.f32 %v7723_v36, %v4146_v40 }
 0x4d6   :  { %v3680_v42 = vld [vmem:[#allocation8 + $0x1268] sm:$0xff]  ;;  %4833 = vmatpush.msra.mxu0 %v3616_v0  ;;  %4814 = vmatmul.f32.gmra.mxu3 %v9013_v7  ;;  %v7879_v7 = vpop.f32.mrf.mxu0 }
 0x4d7   :  { %v3744_v13 = vld [vmem:[#allocation8 + $0x1468] sm:$0xff]  ;;  %4862 = vmatpush.msra.mxu1 %v3680_v42 }
 0x4d8   :  { %v3824_v8 = vld [vmem:[#allocation8 + $0x16e8] sm:$0xff]  ;;  %4891 = vmatpush.msra.mxu2 %v3744_v13 }
 0x4d9   :  { %v3612_v4 = vld [vmem:[#allocation8 + $0x1048] sm:$0xff]  ;;  %4916 = vmatpush.msra.mxu3 %v3824_v8  ;;  %v4204_v8 = vadd.f32 %v7743_v56, %v4175_v11 }
 0x4da   :  { %v3676_v49 = vld [vmem:[#allocation8 + $0x1248] sm:$0xff]  ;;  %4834 = vmatpush.msra.mxu0 %v3612_v4  ;;  %v4288_v4 = vadd.f32 %v7786_v47, %v4259_v58  ;;  %v4149_v58 = vadd.f32 %v7752_v32, %v7844_v26 }
 0x4db   :  { %v3740_v2 = vld [vmem:[#allocation8 + $0x1448] sm:$0xff]  ;;  %4863 = vmatpush.msra.mxu1 %v3676_v49  ;;  %v4233_v47 = vadd.f32 %v7768_v18, %v4204_v8 }
 0x4dc   :  { %v3820_v59 = vld [vmem:[#allocation8 + $0x16c8] sm:$0xff]  ;;  %4892 = vmatpush.msra.mxu2 %v3740_v2 }
 0x4dd   :  { %v3608_v44 = vld [vmem:[#allocation8 + $0x1028] sm:$0xff]  ;;  %4917 = vmatpush.msra.mxu3 %v3820_v59  ;;  %v4317_v59 = vadd.f32 %v7792_v43, %v4288_v4  ;;  %v7895_v4 = vpop.f32.mrf.mxu2 }
 0x4de   :  { %v3672_v61 = vld [vmem:[#allocation8 + $0x1228] sm:$0xff]  ;;  %4835 = vmatpush.msra.mxu0 %v3608_v44 }
 0x4df   :  { %v3736_v34 = vld [vmem:[#allocation8 + $0x1428] sm:$0xff]  ;;  %4864 = vmatpush.msra.mxu1 %v3672_v61 }
 0x4e0   :  { %v3816_v0 = vld [vmem:[#allocation8 + $0x16a8] sm:$0xff]  ;;  %4893 = vmatpush.msra.mxu2 %v3736_v34 }
 0x4e1   :  { %v3604_v42 = vld [vmem:[#allocation8 + $0x1008] sm:$0xff]  ;;  %4918 = vmatpush.msra.mxu3 %v3816_v0 }
 0x4e2   :  { %v3668_v33 = vld [vmem:[#allocation8 + $0x1208] sm:$0xff]  ;;  %4836 = vmatpush.msra.mxu0 %v3604_v42  ;;  %v4346_v42 = vadd.f32 %v7806_v46, %v4317_v59 }
 0x4e3   :  { %v3732_v13 = vld [vmem:[#allocation8 + $0x1408] sm:$0xff]  ;;  %4865 = vmatpush.msra.mxu1 %v3668_v33  ;;  %v4262_v33 = vadd.f32 %v7796_v55, %v4233_v47  ;;  %v7899_v47 = vpop.f32.mrf.mxu3 }
 0x4e4   :  { %v3812_v36 = vld [vmem:[#allocation8 + $0x1688] sm:$0xff]  ;;  %4894 = vmatpush.msra.mxu2 %v3732_v13  ;;  %v9017_v13 = vld [vmem:[#allocation50_spill] sm:$0xff] }
 0x4e5   :  { %v3920_v44 = vld [vmem:[#allocation8 + $0x19e8] sm:$0xff]  ;;  %4919 = vmatpush.msra.mxu3 %v3812_v36 }
 0x4e6   :  { %v3984_v40 = vld [vmem:[#allocation8 + $0x1be8] sm:$0xff]  ;;  %4937 = vmatpush.msrb.mxu0 %v3920_v44  ;;  %4817 = vmatmul.f32.gmra.mxu3 %v9017_v13  ;;  %v4178_v44 = vadd.f32 %v7754_v48, %v4149_v58  ;;  %v4490_v13 = vpop.f32.mrf.mxu0  ;;  %v7903_v48 = vpop.f32.mrf.mxu1 }
 0x4e7   :  { %v9014_v49 = vld [vmem:[#allocation80_spill] sm:$0xff]  ;;  %v9016_v61 = vld [vmem:[#allocation49_spill] sm:$0xff]  ;;  %4966 = vmatpush.msrb.mxu1 %v3984_v40  ;;  %v4375_v40 = vadd.f32 %v7832_v19, %v4346_v42 }
 0x4e8   :  { %4837 = vmatmul.f32.vlgmr.msra.gmra.mxu0 %v9014_v49  ;;  %v9015_v2 = vld [vmem:[#allocation96_spill] sm:$0xff]  ;;  %4895 = vmatmul.f32.vlgmr.msra.gmra.mxu2 %v9016_v61 }
 0x4e9   :  { %4866 = vmatmul.f32.vlgmr.msra.gmra.mxu1 %v9015_v2  ;;  %v4048_v56 = vld [vmem:[#allocation8 + $0x1de8] sm:$0xff] }
 0x4ea   :  { %v3808_v34 = vld [vmem:[#allocation8 + $0x1668] sm:$0xff]  ;;  %4995 = vmatpush.msrb.mxu2 %v4048_v56 }
 0x4eb   :  { %v3916_v11 = vld [vmem:[#allocation8 + $0x19c8] sm:$0xff]  ;;  %4920 = vmatpush.msra.mxu3 %v3808_v34  ;;  %v4207_v34 = vadd.f32 %v7766_v51, %v4178_v44 }
 0x4ec   :  { %v3980_v43 = vld [vmem:[#allocation8 + $0x1bc8] sm:$0xff]  ;;  %4938 = vmatpush.msrb.mxu0 %v3916_v11  ;;  %v4291_v11 = vadd.f32 %v7798_v15, %v4262_v33  ;;  %v4152_v33 = vadd.f32 %v7770_v63, %v7844_v26  ;;  %v4548_v63 = vpop.f32.mrf.mxu2 }
 0x4ed   :  { %v4044_v0 = vld [vmem:[#allocation8 + $0x1dc8] sm:$0xff]  ;;  %4967 = vmatpush.msrb.mxu1 %v3980_v43  ;;  %v4404_v43 = vadd.f32 %v7834_v10, %v4375_v40  ;;  %v4236_v15 = vadd.f32 %v7782_v52, %v4207_v34 }
 0x4ee   :  { %v3804_v18 = vld [vmem:[#allocation8 + $0x1648] sm:$0xff]  ;;  %4996 = vmatpush.msrb.mxu2 %v4044_v0  ;;  %v4320_v58 = vadd.f32 %v7804_v23, %v4291_v11  ;;  %v7920_v34 = vpop.f32.mrf.mxu0 }
 0x4ef   :  { %v3912_v8 = vld [vmem:[#allocation8 + $0x19a8] sm:$0xff]  ;;  %4921 = vmatpush.msra.mxu3 %v3804_v18  ;;  %v4433_v18 = vadd.f32 %v7840_v30, %v4404_v43  ;;  %v4265_v44 = vadd.f32 %v7808_v5, %v4236_v15 }
 0x4f0   :  { %v3976_v32 = vld [vmem:[#allocation8 + $0x1ba8] sm:$0xff]  ;;  %4939 = vmatpush.msrb.mxu0 %v3912_v8  ;;  %4898 = vmatmul.f32.gmra.mxu2 %v7521_v53 }
 0x4f1   :  { %v4040_v36 = vld [vmem:[#allocation8 + $0x1da8] sm:$0xff]  ;;  %4968 = vmatpush.msrb.mxu1 %v3976_v32  ;;  %4840 = vmatmul.f32.gmra.mxu0 %v7517_v20 }
 0x4f2   :  { %v3800_v46 = vld [vmem:[#allocation8 + $0x1628] sm:$0xff]  ;;  %4997 = vmatpush.msrb.mxu2 %v4040_v36  ;;  %4869 = vmatmul.f32.gmra.mxu1 %v7519_v14  ;;  %v4349_v36 = vadd.f32 %v7818_v22, %v4320_v58  ;;  %v7922_v58 = vpop.f32.mrf.mxu3 }
 0x4f3   :  { %v3908_v59 = vld [vmem:[#allocation8 + $0x1988] sm:$0xff]  ;;  %4922 = vmatpush.msra.mxu3 %v3800_v46 }
 0x4f4   :  { %v3972_v55 = vld [vmem:[#allocation8 + $0x1b88] sm:$0xff]  ;;  %4940 = vmatpush.msrb.mxu0 %v3908_v59  ;;  %v4181_v59 = vadd.f32 %v7772_v37, %v4152_v33  ;;  %v4294_v37 = vadd.f32 %v7810_v38, %v4265_v44 }
 0x4f5   :  { %v4036_v56 = vld [vmem:[#allocation8 + $0x1d88] sm:$0xff]  ;;  %4969 = vmatpush.msrb.mxu1 %v3972_v55  ;;  %v4462_v55 = vadd.f32 %v7859_v3, %v4433_v18  ;;  %v9019_v18 = vld [vmem:[#allocation67_spill] sm:$0xff] }
 0x4f6   :  { %v3796_v19 = vld [vmem:[#allocation8 + $0x1608] sm:$0xff]  ;;  %4998 = vmatpush.msrb.mxu2 %v4036_v56  ;;  %v4378_v56 = vadd.f32 %v7846_v57, %v4349_v36  ;;  %v4210_v43 = vadd.f32 %v7780_v16, %v4181_v59  ;;  %v7926_v57 = vpop.f32.mrf.mxu1 }
 0x4f7   :  { %v3904_v0 = vld [vmem:[#allocation8 + $0x1968] sm:$0xff]  ;;  %4923 = vmatpush.msra.mxu3 %v3796_v19  ;;  %v4491_v3 = vadd.f32 %v4490_v13, %v4462_v55 }
 0x4f8   :  { %v3968_v42 = vld [vmem:[#allocation8 + $0x1b68] sm:$0xff]  ;;  %4941 = vmatpush.msrb.mxu0 %v3904_v0  ;;  %v4239_v38 = vadd.f32 %v7794_v62, %v4210_v43  ;;  %4901 = vmatmul.f32.gmra.mxu2 %v9019_v18  ;;  %v9020_v62 = vld [vmem:[#allocation51_spill] sm:$0xff] }
 0x4f9   :  { %v4032_v51 = vld [vmem:[#allocation8 + $0x1d68] sm:$0xff]  ;;  %4970 = vmatpush.msrb.mxu1 %v3968_v42  ;;  %v4323_v42 = vadd.f32 %v7816_v17, %v4294_v37  ;;  %4843 = vmatmul.f32.gmra.mxu0 %v7563_v12 }
 0x4fa   :  { %v4112_v23 = vld [vmem:[#allocation8 + $0x1fe8] sm:$0xff]  ;;  %4999 = vmatpush.msrb.mxu2 %v4032_v51  ;;  %v4407_v51 = vadd.f32 %v7848_v35, %v4378_v56  ;;  %4872 = vmatmul.f32.gmra.mxu1 %v7565_v54  ;;  %v4520_v35 = vadd.f32 %v7903_v48, %v4491_v3  ;;  %v4268_v44 = vadd.f32 %v7820_v39, %v4239_v38  ;;  %v4577_v48 = vpop.f32.mrf.mxu3  ;;  %v4496_v39 = vpop.f32.mrf.mxu0  ;;  %v9021_v38 = vld [vmem:[#allocation83_spill] sm:$0xff] }
 0x4fb   :  { %v3900_v10 = vld [vmem:[#allocation8 + $0x1948] sm:$0xff]  ;;  %5024 = vmatpush.msrb.mxu3 %v4112_v23  ;;  %v4352_v36 = vadd.f32 %v7830_v45, %v4323_v42 }
 0x4fc   :  { %v3964_v8 = vld [vmem:[#allocation8 + $0x1b48] sm:$0xff]  ;;  %4942 = vmatpush.msrb.mxu0 %v3900_v10  ;;  %v4436_v13 = vadd.f32 %v7856_v60, %v4407_v51 }
 0x4fd   :  { %v4028_v32 = vld [vmem:[#allocation8 + $0x1d48] sm:$0xff]  ;;  %4971 = vmatpush.msrb.mxu1 %v3964_v8  ;;  %v4381_v55 = vadd.f32 %v7862_v31, %v4352_v36 }
 0x4fe   :  { %v9018_v52 = vld [vmem:[#allocation65_spill] sm:$0xff]  ;;  %5000 = vmatpush.msrb.mxu2 %v4028_v32  ;;  %v4551_v32 = vpop.f32.mrf.mxu2  ;;  %v4465_v59 = vadd.f32 %v7877_v25, %v4436_v13  ;;  %v7943_v43 = vpop.f32.mrf.mxu1 }
 0x4ff   :  { %4924 = vmatmul.f32.vlgmr.msra.gmra.mxu3 %v9018_v52  ;;  %v4108_v40 = vld [vmem:[#allocation8 + $0x1fc8] sm:$0xff]  ;;  %v4410_v37 = vadd.f32 %v7864_v50, %v4381_v55  ;;  %v3281_v55 = vld [vmem:[#allocation8 + $0x5f0] sm:$0xff] }
 0x500   :  { %v3896_v26 = vld [vmem:[#allocation8 + $0x1928] sm:$0xff]  ;;  %5025 = vmatpush.msrb.mxu3 %v4108_v40  ;;  %4904 = vmatmul.f32.gmra.mxu2 %v7610_v9 }
 0x501   :  { %v3960_v30 = vld [vmem:[#allocation8 + $0x1b28] sm:$0xff]  ;;  %4943 = vmatpush.msrb.mxu0 %v3896_v26  ;;  %v4549_v26 = vadd.f32 %v4548_v63, %v4520_v35  ;;  %v4297_v63 = vadd.f32 %v7822_v6, %v4268_v44 }
 0x502   :  { %v4024_v46 = vld [vmem:[#allocation8 + $0x1d28] sm:$0xff]  ;;  %4972 = vmatpush.msrb.mxu1 %v3960_v30  ;;  %4846 = vmatmul.f32.gmra.mxu0 %v7603_v24 }
 0x503   :  { %v4104_v22 = vld [vmem:[#allocation8 + $0x1fa8] sm:$0xff]  ;;  %5001 = vmatpush.msrb.mxu2 %v4024_v46  ;;  %v4326_v25 = vadd.f32 %v7828_v21, %v4297_v63  ;;  %4875 = vmatmul.f32.gmra.mxu1 %v7608_v41  ;;  %v9069_v41 = vld [vmem:[#allocation23_spill] sm:$0xff] }
 0x504   :  { %v3892_v5 = vld [vmem:[#allocation8 + $0x1908] sm:$0xff]  ;;  %5026 = vmatpush.msrb.mxu3 %v4104_v22  ;;  %v4578_v22 = vadd.f32 %v4577_v48, %v4549_v26  ;;  %v3217_v48 = vld [vmem:[#allocation8 + $0x3f0] sm:$0xff] }
 0x505   :  { %v3956_v11 = vld [vmem:[#allocation8 + $0x1b08] sm:$0xff]  ;;  %4944 = vmatpush.msrb.mxu0 %v3892_v5 }
 0x506   :  { %v4020_v19 = vld [vmem:[#allocation8 + $0x1d08] sm:$0xff]  ;;  %4973 = vmatpush.msrb.mxu1 %v3956_v11  ;;  %5981 = vst [vmem:[#allocation11] sm:$0xff] %v4578_v22  ;;  %v3149_v22 = vld [vmem:[#allocation8 + $0x1d0] sm:$0xff] }
 0x507   :  { %v4100_v0 = vld [vmem:[#allocation8 + $0x1f88] sm:$0xff]  ;;  %5002 = vmatpush.msrb.mxu2 %v4020_v19  ;;  %4927 = vmatmul.f32.gmra.mxu3 %v9020_v62  ;;  %v4494_v19 = vadd.f32 %v7920_v34, %v4465_v59  ;;  %v4439_v34 = vadd.f32 %v7874_v29, %v4410_v37 }
 0x508   :  { %v3888_v15 = vld [vmem:[#allocation8 + $0x18e8] sm:$0xff]  ;;  %5027 = vmatpush.msrb.mxu3 %v4100_v0 }
 0x509   :  { %v3952_v33 = vld [vmem:[#allocation8 + $0x1ae8] sm:$0xff]  ;;  %4945 = vmatpush.msrb.mxu0 %v3888_v15  ;;  %v4523_v21 = vadd.f32 %v7926_v57, %v4494_v19  ;;  %v4468_v57 = vadd.f32 %v7899_v47, %v4439_v34  ;;  %v9024_v19 = vld [vmem:[#allocation86_spill] sm:$0xff] }
 0x50a   :  { %v4016_v16 = vld [vmem:[#allocation8 + $0x1ce8] sm:$0xff]  ;;  %4974 = vmatpush.msrb.mxu1 %v3952_v33  ;;  %v4554_v33 = vpop.f32.mrf.mxu2  ;;  %v3141_v34 = vld [vmem:[#allocation8 + $0x190] sm:$0xff] }
 0x50b   :  { %v4096_v23 = vld [vmem:[#allocation8 + $0x1f68] sm:$0xff]  ;;  %5003 = vmatpush.msrb.mxu2 %v4016_v16  ;;  %v4355_v16 = vadd.f32 %v7842_v1, %v4326_v25  ;;  %v4552_v29 = vadd.f32 %v4551_v32, %v4523_v21  ;;  %v4499_v1 = vpop.f32.mrf.mxu0  ;;  %v4497_v32 = vadd.f32 %v4496_v39, %v4468_v57  ;;  %v3145_v25 = vld [vmem:[#allocation8 + $0x1b0] sm:$0xff] }
 0x50c   :  { %v3884_v17 = vld [vmem:[#allocation8 + $0x18c8] sm:$0xff]  ;;  %5028 = vmatpush.msrb.mxu3 %v4096_v23  ;;  %v3205_v21 = vld [vmem:[#allocation8 + $0x390] sm:$0xff] }
 0x50d   :  { %v3948_v10 = vld [vmem:[#allocation8 + $0x1ac8] sm:$0xff]  ;;  %4946 = vmatpush.msrb.mxu0 %v3884_v17  ;;  %v3133_v57 = vld [vmem:[#allocation8 + $0x150] sm:$0xff] }
 0x50e   :  { %v4012_v8 = vld [vmem:[#allocation8 + $0x1cc8] sm:$0xff]  ;;  %4975 = vmatpush.msrb.mxu1 %v3948_v10  ;;  %v4580_v10 = vpop.f32.mrf.mxu3 }
 0x50f   :  { %v4092_v60 = vld [vmem:[#allocation8 + $0x1f48] sm:$0xff]  ;;  %5004 = vmatpush.msrb.mxu2 %v4012_v8  ;;  %4930 = vmatmul.f32.gmra.mxu3 %v9021_v38  ;;  %v4384_v8 = vadd.f32 %v7879_v7, %v4355_v16  ;;  %v3137_v16 = vld [vmem:[#allocation8 + $0x170] sm:$0xff] }
 0x510   :  { %v3880_v40 = vld [vmem:[#allocation8 + $0x18a8] sm:$0xff]  ;;  %5029 = vmatpush.msrb.mxu3 %v4092_v60  ;;  %v4581_v60 = vadd.f32 %v4580_v10, %v4552_v29  ;;  %v3345_v10 = vld [vmem:[#allocation8 + $0x7f0] sm:$0xff] }
 0x511   :  { %v3944_v30 = vld [vmem:[#allocation8 + $0x1aa8] sm:$0xff]  ;;  %4947 = vmatpush.msrb.mxu0 %v3880_v40  ;;  %v4413_v7 = vadd.f32 %v7883_v27, %v4384_v8  ;;  %v3213_v27 = vld [vmem:[#allocation8 + $0x3d0] sm:$0xff] }
 0x512   :  { %v4008_v46 = vld [vmem:[#allocation8 + $0x1ca8] sm:$0xff]  ;;  %4976 = vmatpush.msrb.mxu1 %v3944_v30  ;;  %v7956_v30 = vpop.f32.mrf.mxu1  ;;  %5985 = vst [vmem:[#allocation11 + $0x20] sm:$0xff] %v4581_v60  ;;  %v4557_v63 = vpop.f32.mrf.mxu2  ;;  %v3761_v38 = vld [vmem:[#allocation8 + $0x14f0] sm:$0xff] }
 0x513   :  { %v4088_v45 = vld [vmem:[#allocation8 + $0x1f28] sm:$0xff]  ;;  %5005 = vmatpush.msrb.mxu2 %v4008_v46  ;;  %v3153_v46 = vld [vmem:[#allocation8 + $0x1f0] sm:$0xff] }
 0x514   :  { %v3876_v56 = vld [vmem:[#allocation8 + $0x1888] sm:$0xff]  ;;  %5030 = vmatpush.msrb.mxu3 %v4088_v45  ;;  %v4442_v45 = vadd.f32 %v7895_v4, %v4413_v7  ;;  %v3209_v4 = vld [vmem:[#allocation8 + $0x3b0] sm:$0xff] }
 0x515   :  { %v3940_v5 = vld [vmem:[#allocation8 + $0x1a88] sm:$0xff]  ;;  %4948 = vmatpush.msrb.mxu0 %v3876_v56  ;;  %v3257_v7 = vld [vmem:[#allocation8 + $0x530] sm:$0xff] }
 0x516   :  { %v4004_v11 = vld [vmem:[#allocation8 + $0x1c88] sm:$0xff]  ;;  %4977 = vmatpush.msrb.mxu1 %v3940_v5  ;;  %v4526_v5 = vadd.f32 %v7943_v43, %v4497_v32 }
 0x517   :  { %v4084_v31 = vld [vmem:[#allocation8 + $0x1f08] sm:$0xff]  ;;  %5006 = vmatpush.msrb.mxu2 %v4004_v11  ;;  %v3277_v11 = vld [vmem:[#allocation8 + $0x5d0] sm:$0xff]  ;;  %4933 = vmatmul.f32.gmra.mxu3 %v9024_v19 }
 0x518   :  { %v3872_v3 = vld [vmem:[#allocation8 + $0x1868] sm:$0xff]  ;;  %5031 = vmatpush.msrb.mxu3 %v4084_v31  ;;  %v4555_v37 = vadd.f32 %v4554_v33, %v4526_v5 }
 0x519   :  { %v3936_v0 = vld [vmem:[#allocation8 + $0x1a68] sm:$0xff]  ;;  %4949 = vmatpush.msrb.mxu0 %v3872_v3  ;;  %v3273_v3 = vld [vmem:[#allocation8 + $0x5b0] sm:$0xff] }
 0x51a   :  { %v4000_v6 = vld [vmem:[#allocation8 + $0x1c68] sm:$0xff]  ;;  %4978 = vmatpush.msrb.mxu1 %v3936_v0  ;;  %v4583_v0 = vpop.f32.mrf.mxu3  ;;  %v7968_v33 = vpop.f32.mrf.mxu1 }
 0x51b   :  { %v4080_v42 = vld [vmem:[#allocation8 + $0x1ee8] sm:$0xff]  ;;  %5007 = vmatpush.msrb.mxu2 %v4000_v6  ;;  %v4471_v6 = vadd.f32 %v7922_v58, %v4442_v45 }
 0x51c   :  { %v3868_v51 = vld [vmem:[#allocation8 + $0x1848] sm:$0xff]  ;;  %5032 = vmatpush.msrb.mxu3 %v4080_v42  ;;  %v4584_v42 = vadd.f32 %v4583_v0, %v4555_v37  ;;  %v3249_v37 = vld [vmem:[#allocation8 + $0x4f0] sm:$0xff] }
 0x51d   :  { %v3932_v50 = vld [vmem:[#allocation8 + $0x1a48] sm:$0xff]  ;;  %4950 = vmatpush.msrb.mxu0 %v3868_v51  ;;  %v7966_v51 = vpop.f32.mrf.mxu0  ;;  %v3117_v0 = vld [vmem:[#allocation8 + $0xd0] sm:$0xff] }
 0x51e   :  { %v3996_v15 = vld [vmem:[#allocation8 + $0x1c48] sm:$0xff]  ;;  %4979 = vmatpush.msrb.mxu1 %v3932_v50  ;;  %v3269_v50 = vld [vmem:[#allocation8 + $0x590] sm:$0xff]  ;;  %5989 = vst [vmem:[#allocation11 + $0x40] sm:$0xff] %v4584_v42  ;;  %v9032_v42 = vld [vmem:[#allocation71_spill] sm:$0xff] }
 0x51f   :  { %v4076_v13 = vld [vmem:[#allocation8 + $0x1ec8] sm:$0xff]  ;;  %5008 = vmatpush.msrb.mxu2 %v3996_v15  ;;  %v4500_v15 = vadd.f32 %v4499_v1, %v4471_v6  ;;  %v7974_v1 = vpop.f32.mrf.mxu2  ;;  %v3181_v6 = vld [vmem:[#allocation8 + $0x2d0] sm:$0xff] }
 0x520   :  { %v3864_v23 = vld [vmem:[#allocation8 + $0x1828] sm:$0xff]  ;;  %5033 = vmatpush.msrb.mxu3 %v4076_v13  ;;  %v3201_v13 = vld [vmem:[#allocation8 + $0x370] sm:$0xff] }
 0x521   :  { %v3928_v17 = vld [vmem:[#allocation8 + $0x1a28] sm:$0xff]  ;;  %4951 = vmatpush.msrb.mxu0 %v3864_v23  ;;  %v4529_v8 = vadd.f32 %v7956_v30, %v4500_v15  ;;  %v3337_v30 = vld [vmem:[#allocation8 + $0x7b0] sm:$0xff] }
 0x522   :  { %v3992_v35 = vld [vmem:[#allocation8 + $0x1c28] sm:$0xff]  ;;  %4980 = vmatpush.msrb.mxu1 %v3928_v17  ;;  %v3265_v17 = vld [vmem:[#allocation8 + $0x570] sm:$0xff]  ;;  %v7979_v5 = vpop.f32.mrf.mxu1 }
 0x523   :  { %v4072_v36 = vld [vmem:[#allocation8 + $0x1ea8] sm:$0xff]  ;;  %5009 = vmatpush.msrb.mxu2 %v3992_v35  ;;  %v4558_v32 = vadd.f32 %v4557_v63, %v4529_v8  ;;  %v3185_v63 = vld [vmem:[#allocation8 + $0x2f0] sm:$0xff] }
 0x524   :  { %v3860_v44 = vld [vmem:[#allocation8 + $0x1808] sm:$0xff]  ;;  %5034 = vmatpush.msrb.mxu3 %v4072_v36  ;;  %v3197_v36 = vld [vmem:[#allocation8 + $0x350] sm:$0xff] }
 0x525   :  { %v3924_v40 = vld [vmem:[#allocation8 + $0x1a08] sm:$0xff]  ;;  %4952 = vmatpush.msrb.mxu0 %v3860_v44  ;;  %v3261_v44 = vld [vmem:[#allocation8 + $0x550] sm:$0xff]  ;;  %v7977_v45 = vpop.f32.mrf.mxu0 }
 0x526   :  { %v3988_v26 = vld [vmem:[#allocation8 + $0x1c08] sm:$0xff]  ;;  %4981 = vmatpush.msrb.mxu1 %v3924_v40  ;;  %4953 = vmatmul.f32.vlgmr.msrb.gmra.mxu0 %v7644_v28  ;;  %v3341_v40 = vld [vmem:[#allocation8 + $0x7d0] sm:$0xff] }
 0x527   :  { %v4068_v47 = vld [vmem:[#allocation8 + $0x1e88] sm:$0xff]  ;;  %5010 = vmatpush.msrb.mxu2 %v3988_v26  ;;  %5053 = vmatpush.msra.mxu0 %v3153_v46  ;;  %v3129_v26 = vld [vmem:[#allocation8 + $0x130] sm:$0xff]  ;;  %v4586_v46 = vpop.f32.mrf.mxu3 }
 0x528   :  { %v9022_v59 = vld [vmem:[#allocation52_spill] sm:$0xff]  ;;  %5035 = vmatpush.msrb.mxu3 %v4068_v47  ;;  %5082 = vmatpush.msra.mxu1 %v3217_v48  ;;  %v9027_v35 = vld [vmem:[#allocation53_spill] sm:$0xff] }
 0x529   :  { %4982 = vmatmul.f32.vlgmr.msrb.gmra.mxu1 %v9022_v59  ;;  %v9023_v56 = vld [vmem:[#allocation68_spill] sm:$0xff]  ;;  %5111 = vmatpush.msra.mxu2 %v3281_v55  ;;  %v9028_v60 = vld [vmem:[#allocation69_spill] sm:$0xff]  ;;  %v4587_v55 = vadd.f32 %v4586_v46, %v4558_v32  ;;  %v9033_v32 = vld [vmem:[#allocation87_spill] sm:$0xff] }
 0x52a   :  { %5011 = vmatmul.f32.vlgmr.msrb.gmra.mxu2 %v9023_v56  ;;  %v4064_v39 = vld [vmem:[#allocation8 + $0x1e68] sm:$0xff]  ;;  %5054 = vmatpush.msra.mxu0 %v3149_v22  ;;  %v3193_v47 = vld [vmem:[#allocation8 + $0x330] sm:$0xff] }
 0x52b   :  { %v4060_v31 = vld [vmem:[#allocation8 + $0x1e48] sm:$0xff]  ;;  %5036 = vmatpush.msrb.mxu3 %v4064_v39  ;;  %5083 = vmatpush.msra.mxu1 %v3213_v27  ;;  %v3125_v48 = vld [vmem:[#allocation8 + $0x110] sm:$0xff]  ;;  %5993 = vst [vmem:[#allocation11 + $0x60] sm:$0xff] %v4587_v55 }
 0x52c   :  { %5112 = vmatpush.msra.mxu2 %v3277_v11  ;;  %v4056_v43 = vld [vmem:[#allocation8 + $0x1e28] sm:$0xff]  ;;  %5055 = vmatpush.msra.mxu0 %v3145_v25  ;;  %v3189_v39 = vld [vmem:[#allocation8 + $0x310] sm:$0xff] }
 0x52d   :  { %5037 = vmatpush.msrb.mxu3 %v4060_v31  ;;  %5084 = vmatpush.msra.mxu1 %v3209_v4  ;;  %v4052_v58 = vld [vmem:[#allocation8 + $0x1e08] sm:$0xff]  ;;  %v3253_v22 = vld [vmem:[#allocation8 + $0x510] sm:$0xff]  ;;  %v9031_v4 = vld [vmem:[#allocation55_spill] sm:$0xff] }
 0x52e   :  { %5113 = vmatpush.msra.mxu2 %v3273_v3  ;;  %5056 = vmatpush.msra.mxu0 %v3141_v34  ;;  %v9025_v23 = vld [vmem:[#allocation84_spill] sm:$0xff]  ;;  %v3333_v27 = vld [vmem:[#allocation8 + $0x790] sm:$0xff]  ;;  %v7984_v34 = vpop.f32.mrf.mxu2 }
 0x52f   :  { %5038 = vmatpush.msrb.mxu3 %v4056_v43  ;;  %5085 = vmatpush.msra.mxu1 %v3205_v21  ;;  %v9026_v29 = vld [vmem:[#allocation100_spill] sm:$0xff]  ;;  %v3121_v11 = vld [vmem:[#allocation8 + $0xf0] sm:$0xff] }
 0x530   :  { %5114 = vmatpush.msra.mxu2 %v3269_v50  ;;  %4956 = vmatmul.f32.gmra.mxu0 %v9025_v23  ;;  %v9029_v31 = vld [vmem:[#allocation85_spill] sm:$0xff]  ;;  %v9035_v46 = vld [vmem:[#allocation58_spill] sm:$0xff]  ;;  %v9060_v19 = vld [vmem:[#allocation44_spill] sm:$0xff] }
 0x531   :  { %4985 = vmatmul.f32.gmra.mxu1 %v9026_v29  ;;  %5039 = vmatpush.msrb.mxu3 %v4052_v58  ;;  %v9030_v25 = vld [vmem:[#allocation101_spill] sm:$0xff] }
 0x532   :  { %5014 = vmatmul.f32.gmra.mxu2 %v9027_v35  ;;  %5057 = vmatpush.msra.mxu0 %v3137_v16  ;;  %v3329_v3 = vld [vmem:[#allocation8 + $0x770] sm:$0xff]  ;;  %v7987_v16 = vpop.f32.mrf.mxu3 }
 0x533   :  { %5086 = vmatpush.msra.mxu1 %v3201_v13  ;;  %5115 = vmatpush.msra.mxu2 %v3265_v17  ;;  %v3245_v43 = vld [vmem:[#allocation8 + $0x4d0] sm:$0xff] }
 0x534   :  { %5040 = vmatmul.f32.vlgmr.msrb.gmra.mxu3 %v9028_v60  ;;  %5058 = vmatpush.msra.mxu0 %v3133_v57  ;;  %v3325_v21 = vld [vmem:[#allocation8 + $0x750] sm:$0xff] }
 0x535   :  { %5140 = vmatpush.msra.mxu3 %v3345_v10  ;;  %5087 = vmatpush.msra.mxu1 %v3197_v36  ;;  %v3113_v50 = vld [vmem:[#allocation8 + $0xb0] sm:$0xff]  ;;  %v7989_v10 = vpop.f32.mrf.mxu0  ;;  %v7991_v36 = vpop.f32.mrf.mxu1 }
 0x536   :  { %5116 = vmatpush.msra.mxu2 %v3261_v44  ;;  %5059 = vmatpush.msra.mxu0 %v3129_v26  ;;  %v3177_v15 = vld [vmem:[#allocation8 + $0x2b0] sm:$0xff] }
 0x537   :  { %5141 = vmatpush.msra.mxu3 %v3341_v40  ;;  %5088 = vmatpush.msra.mxu1 %v3193_v47  ;;  %v3241_v58 = vld [vmem:[#allocation8 + $0x4b0] sm:$0xff]  ;;  %v9034_v47 = vld [vmem:[#allocation103_spill] sm:$0xff] }
 0x538   :  { %5117 = vmatpush.msra.mxu2 %v3257_v7  ;;  %5060 = vmatpush.msra.mxu0 %v3125_v48  ;;  %v3321_v13 = vld [vmem:[#allocation8 + $0x730] sm:$0xff] }
 0x539   :  { %5142 = vmatpush.msra.mxu3 %v3337_v30  ;;  %5089 = vmatpush.msra.mxu1 %v3189_v39  ;;  %v3109_v17 = vld [vmem:[#allocation8 + $0x90] sm:$0xff] }
 0x53a   :  { %5118 = vmatpush.msra.mxu2 %v3253_v22  ;;  %4959 = vmatmul.f32.gmra.mxu0 %v9029_v31  ;;  %v3173_v57 = vld [vmem:[#allocation8 + $0x290] sm:$0xff]  ;;  %v7996_v22 = vpop.f32.mrf.mxu2 }
 0x53b   :  { %4988 = vmatmul.f32.gmra.mxu1 %v9030_v25  ;;  %5017 = vmatmul.f32.gmra.mxu2 %v9031_v4  ;;  %v3237_v8 = vld [vmem:[#allocation8 + $0x490] sm:$0xff] }
 0x53c   :  { %5143 = vmatpush.msra.mxu3 %v3333_v27  ;;  %5061 = vmatpush.msra.mxu0 %v3121_v11  ;;  %v3317_v44 = vld [vmem:[#allocation8 + $0x710] sm:$0xff] }
 0x53d   :  { %5090 = vmatpush.msra.mxu1 %v3185_v63  ;;  %5119 = vmatpush.msra.mxu2 %v3249_v37  ;;  %v3105_v40 = vld [vmem:[#allocation8 + $0x70] sm:$0xff] }
 0x53e   :  { %5043 = vmatmul.f32.gmra.mxu3 %v9032_v42  ;;  %5062 = vmatpush.msra.mxu0 %v3117_v0  ;;  %v3169_v26 = vld [vmem:[#allocation8 + $0x270] sm:$0xff]  ;;  %v7999_v0 = vpop.f32.mrf.mxu3 }
 0x53f   :  { %5144 = vmatpush.msra.mxu3 %v3329_v3  ;;  %5091 = vmatpush.msra.mxu1 %v3181_v6  ;;  %v3233_v7 = vld [vmem:[#allocation8 + $0x470] sm:$0xff] }
 0x540   :  { %5120 = vmatpush.msra.mxu2 %v3245_v43  ;;  %5063 = vmatpush.msra.mxu0 %v3113_v50  ;;  %v3313_v30 = vld [vmem:[#allocation8 + $0x6f0] sm:$0xff] }
 0x541   :  { %5145 = vmatpush.msra.mxu3 %v3325_v21  ;;  %5092 = vmatpush.msra.mxu1 %v3177_v15  ;;  %v3101_v48 = vld [vmem:[#allocation8 + $0x50] sm:$0xff]  ;;  %v8001_v21 = vpop.f32.mrf.mxu0 }
 0x542   :  { %5121 = vmatpush.msra.mxu2 %v3241_v58  ;;  %5064 = vmatpush.msra.mxu0 %v3109_v17  ;;  %v3165_v55 = vld [vmem:[#allocation8 + $0x250] sm:$0xff]  ;;  %v8003_v58 = vpop.f32.mrf.mxu1 }
 0x543   :  { %5146 = vmatpush.msra.mxu3 %v3321_v13  ;;  %5093 = vmatpush.msra.mxu1 %v3173_v57  ;;  %v3229_v39 = vld [vmem:[#allocation8 + $0x450] sm:$0xff] }
 0x544   :  { %5122 = vmatpush.msra.mxu2 %v3237_v8  ;;  %4962 = vmatmul.f32.gmra.mxu0 %v9033_v32  ;;  %v9036_v27 = vld [vmem:[#allocation74_spill] sm:$0xff]  ;;  %v9037_v8 = vld [vmem:[#allocation179_spill] sm:$0xff]  ;;  %v9050_v42 = vld [vmem:[#allocation33_spill] sm:$0xff] }
 0x545   :  { %4991 = vmatmul.f32.gmra.mxu1 %v9034_v47  ;;  %5020 = vmatmul.f32.gmra.mxu2 %v9035_v46  ;;  %v3309_v11 = vld [vmem:[#allocation8 + $0x6d0] sm:$0xff] }
 0x546   :  { %5147 = vmatpush.msra.mxu3 %v3317_v44  ;;  %5065 = vmatpush.msra.mxu0 %v3105_v40  ;;  %v3097_v63 = vld [vmem:[#allocation8 + $0x30] sm:$0xff]  ;;  %v9038_v44 = vld [vmem:[#allocation180_spill] sm:$0xff] }
 0x547   :  { %5094 = vmatpush.msra.mxu1 %v3169_v26  ;;  %5123 = vmatpush.msra.mxu2 %v3233_v7  ;;  %v3161_v37 = vld [vmem:[#allocation8 + $0x230] sm:$0xff] }
 0x548   :  { %5046 = vmatmul.f32.gmra.mxu3 %v9036_v27  ;;  %5066 = vmatpush.msra.mxu0 %v3101_v48  ;;  %v3225_v3 = vld [vmem:[#allocation8 + $0x430] sm:$0xff]  ;;  %v9046_v27 = vld [vmem:[#allocation32_spill] sm:$0xff] }
 0x549   :  { %5148 = vmatpush.msra.mxu3 %v3313_v30  ;;  %5095 = vmatpush.msra.mxu1 %v3165_v55  ;;  %v3305_v6 = vld [vmem:[#allocation8 + $0x6b0] sm:$0xff] }
 0x54a   :  { %5124 = vmatpush.msra.mxu2 %v3229_v39  ;;  %v3093_v43 = vld [vmem:[#allocation8 + $0x10] sm:$0xff]  ;;  %5067 = vmatpush.msra.mxu0 %v3097_v63  ;;  %v8008_v39 = vpop.f32.mrf.mxu2 }
 0x54b   :  { %5149 = vmatpush.msra.mxu3 %v3309_v11  ;;  %v3157_v50 = vld [vmem:[#allocation8 + $0x210] sm:$0xff]  ;;  %5096 = vmatpush.msra.mxu1 %v3161_v37 }
 0x54c   :  { %v3221_v15 = vld [vmem:[#allocation8 + $0x410] sm:$0xff]  ;;  %5125 = vmatpush.msra.mxu2 %v3225_v3  ;;  %5068 = vmatpush.msra.mxu0 %v3093_v43  ;;  %v8011_v43 = vpop.f32.mrf.mxu3 }
 0x54d   :  { %5150 = vmatpush.msra.mxu3 %v3305_v6  ;;  %v3301_v13 = vld [vmem:[#allocation8 + $0x690] sm:$0xff]  ;;  %5097 = vmatpush.msra.mxu1 %v3157_v50 }
 0x54e   :  { %5126 = vmatpush.msra.mxu2 %v3221_v15  ;;  %v3409_v17 = vld [vmem:[#allocation8 + $0x9f0] sm:$0xff]  ;;  %5069 = vmatmul.f32.vlgmr.msra.gmra.mxu0 %v9037_v8 }
 0x54f   :  { %v3473_v57 = vld [vmem:[#allocation8 + $0xbf0] sm:$0xff]  ;;  %5098 = vmatmul.f32.vlgmr.msra.gmra.mxu1 %v9038_v44  ;;  %5151 = vmatpush.msra.mxu3 %v3301_v13  ;;  %v8013_v13 = vpop.f32.mrf.mxu0 }
 0x550   :  { %v3537_v40 = vld [vmem:[#allocation8 + $0xdf0] sm:$0xff]  ;;  %5169 = vmatpush.msrb.mxu0 %v3409_v17  ;;  %5198 = vmatpush.msrb.mxu1 %v3473_v57 }
 0x551   :  { %v9039_v26 = vld [vmem:[#allocation181_spill] sm:$0xff]  ;;  %5227 = vmatpush.msrb.mxu2 %v3537_v40  ;;  %v9040_v11 = vld [vmem:[#allocation90_spill] sm:$0xff]  ;;  %v8015_v40 = vpop.f32.mrf.mxu1 }
 0x552   :  { %5127 = vmatmul.f32.vlgmr.msra.gmra.mxu2 %v9039_v26  ;;  %v3297_v7 = vld [vmem:[#allocation8 + $0x670] sm:$0xff]  ;;  %5049 = vmatmul.f32.gmra.mxu3 %v9040_v11 }
 0x553   :  { %v3405_v30 = vld [vmem:[#allocation8 + $0x9d0] sm:$0xff]  ;;  %5152 = vmatpush.msra.mxu3 %v3297_v7 }
 0x554   :  { %v3469_v48 = vld [vmem:[#allocation8 + $0xbd0] sm:$0xff]  ;;  %5170 = vmatpush.msrb.mxu0 %v3405_v30  ;;  %v8023_v8 = vpop.f32.mrf.mxu3 }
 0x555   :  { %v3533_v55 = vld [vmem:[#allocation8 + $0xdd0] sm:$0xff]  ;;  %5199 = vmatpush.msrb.mxu1 %v3469_v48 }
 0x556   :  { %v3293_v63 = vld [vmem:[#allocation8 + $0x650] sm:$0xff]  ;;  %5228 = vmatpush.msrb.mxu2 %v3533_v55 }
 0x557   :  { %v3401_v37 = vld [vmem:[#allocation8 + $0x9b0] sm:$0xff]  ;;  %5153 = vmatpush.msra.mxu3 %v3293_v63 }
 0x558   :  { %v3465_v3 = vld [vmem:[#allocation8 + $0xbb0] sm:$0xff]  ;;  %5171 = vmatpush.msrb.mxu0 %v3401_v37 }
 0x559   :  { %v3529_v6 = vld [vmem:[#allocation8 + $0xdb0] sm:$0xff]  ;;  %5200 = vmatpush.msrb.mxu1 %v3465_v3 }
 0x55a   :  { %v3289_v50 = vld [vmem:[#allocation8 + $0x630] sm:$0xff]  ;;  %5229 = vmatpush.msrb.mxu2 %v3529_v6 }
 0x55b   :  { %v3397_v15 = vld [vmem:[#allocation8 + $0x990] sm:$0xff]  ;;  %5154 = vmatpush.msra.mxu3 %v3289_v50 }
 0x55c   :  { %v3461_v17 = vld [vmem:[#allocation8 + $0xb90] sm:$0xff]  ;;  %5172 = vmatpush.msrb.mxu0 %v3397_v15  ;;  %v8020_v15 = vpop.f32.mrf.mxu2  ;;  %v8035_v32 = vpop.f32.mrf.mxu3 }
 0x55d   :  { %v3525_v57 = vld [vmem:[#allocation8 + $0xd90] sm:$0xff]  ;;  %5201 = vmatpush.msrb.mxu1 %v3461_v17 }
 0x55e   :  { %v3285_v7 = vld [vmem:[#allocation8 + $0x610] sm:$0xff]  ;;  %5230 = vmatpush.msrb.mxu2 %v3525_v57 }
 0x55f   :  { %v3393_v30 = vld [vmem:[#allocation8 + $0x970] sm:$0xff]  ;;  %5155 = vmatpush.msra.mxu3 %v3285_v7 }
 0x560   :  { %v3457_v48 = vld [vmem:[#allocation8 + $0xb70] sm:$0xff]  ;;  %5173 = vmatpush.msrb.mxu0 %v3393_v30 }
 0x561   :  { %v9041_v55 = vld [vmem:[#allocation18_spill] sm:$0xff]  ;;  %5202 = vmatpush.msrb.mxu1 %v3457_v48  ;;  %v8025_v48 = vpop.f32.mrf.mxu0 }
 0x562   :  { %5072 = vmatmul.f32.gmra.mxu0 %v9041_v55  ;;  %v9042_v11 = vld [vmem:[#allocation26_spill] sm:$0xff] }
 0x563   :  { %5101 = vmatmul.f32.gmra.mxu1 %v9042_v11  ;;  %v3521_v26 = vld [vmem:[#allocation8 + $0xd70] sm:$0xff] }
 0x564   :  { %v9043_v63 = vld [vmem:[#allocation34_spill] sm:$0xff]  ;;  %5231 = vmatpush.msrb.mxu2 %v3521_v26  ;;  %v8047_v31 = vpop.f32.mrf.mxu3 }
 0x565   :  { %5130 = vmatmul.f32.gmra.mxu2 %v9043_v63  ;;  %v3601_v37 = vld [vmem:[#allocation8 + $0xff0] sm:$0xff] }
 0x566   :  { %v3389_v3 = vld [vmem:[#allocation8 + $0x950] sm:$0xff]  ;;  %5256 = vmatpush.msrb.mxu3 %v3601_v37 }
 0x567   :  { %v3453_v6 = vld [vmem:[#allocation8 + $0xb50] sm:$0xff]  ;;  %5174 = vmatpush.msrb.mxu0 %v3389_v3 }
 0x568   :  { %v3517_v50 = vld [vmem:[#allocation8 + $0xd50] sm:$0xff]  ;;  %5203 = vmatpush.msrb.mxu1 %v3453_v6 }
 0x569   :  { %v9044_v17 = vld [vmem:[#allocation182_spill] sm:$0xff]  ;;  %5232 = vmatpush.msrb.mxu2 %v3517_v50  ;;  %v9045_v50 = vld [vmem:[#allocation24_spill] sm:$0xff] }
 0x56a   :  { %5156 = vmatmul.f32.vlgmr.msra.gmra.mxu3 %v9044_v17  ;;  %v3597_v57 = vld [vmem:[#allocation8 + $0xfd0] sm:$0xff]  ;;  %v8027_v17 = vpop.f32.mrf.mxu1  ;;  %5075 = vmatmul.f32.gmra.mxu0 %v9045_v50 }
 0x56b   :  { %v3385_v44 = vld [vmem:[#allocation8 + $0x930] sm:$0xff]  ;;  %5257 = vmatpush.msrb.mxu3 %v3597_v57  ;;  %5104 = vmatmul.f32.gmra.mxu1 %v9046_v27  ;;  %v9047_v57 = vld [vmem:[#allocation40_spill] sm:$0xff] }
 0x56c   :  { %v3449_v11 = vld [vmem:[#allocation8 + $0xb30] sm:$0xff]  ;;  %5175 = vmatpush.msrb.mxu0 %v3385_v44  ;;  %v8059_v23 = vpop.f32.mrf.mxu3 }
 0x56d   :  { %v3513_v55 = vld [vmem:[#allocation8 + $0xd30] sm:$0xff]  ;;  %5204 = vmatpush.msrb.mxu1 %v3449_v11  ;;  %5133 = vmatmul.f32.gmra.mxu2 %v9047_v57 }
 0x56e   :  { %v3593_v7 = vld [vmem:[#allocation8 + $0xfb0] sm:$0xff]  ;;  %5233 = vmatpush.msrb.mxu2 %v3513_v55 }
 0x56f   :  { %v3381_v30 = vld [vmem:[#allocation8 + $0x910] sm:$0xff]  ;;  %5258 = vmatpush.msrb.mxu3 %v3593_v7 }
 0x570   :  { %v3445_v63 = vld [vmem:[#allocation8 + $0xb10] sm:$0xff]  ;;  %5176 = vmatpush.msrb.mxu0 %v3381_v30  ;;  %v8032_v30 = vpop.f32.mrf.mxu2 }
 0x571   :  { %v3509_v26 = vld [vmem:[#allocation8 + $0xd10] sm:$0xff]  ;;  %5205 = vmatpush.msrb.mxu1 %v3445_v63 }
 0x572   :  { %v3589_v37 = vld [vmem:[#allocation8 + $0xf90] sm:$0xff]  ;;  %5234 = vmatpush.msrb.mxu2 %v3509_v26 }
 0x573   :  { %v3377_v3 = vld [vmem:[#allocation8 + $0x8f0] sm:$0xff]  ;;  %5259 = vmatpush.msrb.mxu3 %v3589_v37  ;;  %5107 = vmatmul.f32.gmra.mxu1 %v9050_v42 }
 0x574   :  { %v3441_v6 = vld [vmem:[#allocation8 + $0xaf0] sm:$0xff]  ;;  %5177 = vmatpush.msrb.mxu0 %v3377_v3  ;;  %v8071_v28 = vpop.f32.mrf.mxu3 }
 0x575   :  { %v3505_v46 = vld [vmem:[#allocation8 + $0xcf0] sm:$0xff]  ;;  %5206 = vmatpush.msrb.mxu1 %v3441_v6  ;;  %v8037_v6 = vpop.f32.mrf.mxu0  ;;  %9063 = vst [vmem:[#allocation72_spill] sm:$0xff] %v8071_v28  ;;  %v9065_v28 = vld [vmem:[#allocation47_spill] sm:$0xff] }
 0x576   :  { %v3585_v44 = vld [vmem:[#allocation8 + $0xf70] sm:$0xff]  ;;  %5235 = vmatpush.msrb.mxu2 %v3505_v46 }
 0x577   :  { %v3373_v11 = vld [vmem:[#allocation8 + $0x8d0] sm:$0xff]  ;;  %5260 = vmatpush.msrb.mxu3 %v3585_v44 }
 0x578   :  { %v3437_v55 = vld [vmem:[#allocation8 + $0xad0] sm:$0xff]  ;;  %5178 = vmatpush.msrb.mxu0 %v3373_v11 }
 0x579   :  { %v3501_v7 = vld [vmem:[#allocation8 + $0xcd0] sm:$0xff]  ;;  %5207 = vmatpush.msrb.mxu1 %v3437_v55 }
 0x57a   :  { %v9048_v63 = vld [vmem:[#allocation42_spill] sm:$0xff]  ;;  %5236 = vmatpush.msrb.mxu2 %v3501_v7  ;;  %v9049_v7 = vld [vmem:[#allocation25_spill] sm:$0xff] }
 0x57b   :  { %5159 = vmatmul.f32.gmra.mxu3 %v9048_v63  ;;  %v3581_v26 = vld [vmem:[#allocation8 + $0xf50] sm:$0xff]  ;;  %v8039_v63 = vpop.f32.mrf.mxu1  ;;  %5078 = vmatmul.f32.gmra.mxu0 %v9049_v7 }
 0x57c   :  { %v3369_v47 = vld [vmem:[#allocation8 + $0x8b0] sm:$0xff]  ;;  %5261 = vmatpush.msrb.mxu3 %v3581_v26 }
 0x57d   :  { %v3433_v27 = vld [vmem:[#allocation8 + $0xab0] sm:$0xff]  ;;  %5179 = vmatpush.msrb.mxu0 %v3369_v47 }
 0x57e   :  { %v3497_v50 = vld [vmem:[#allocation8 + $0xcb0] sm:$0xff]  ;;  %5208 = vmatpush.msrb.mxu1 %v3433_v27 }
 0x57f   :  { %v3577_v37 = vld [vmem:[#allocation8 + $0xf30] sm:$0xff]  ;;  %5237 = vmatpush.msrb.mxu2 %v3497_v50 }
 0x580   :  { %v3365_v3 = vld [vmem:[#allocation8 + $0x890] sm:$0xff]  ;;  %5262 = vmatpush.msrb.mxu3 %v3577_v37 }
 0x581   :  { %v3429_v57 = vld [vmem:[#allocation8 + $0xa90] sm:$0xff]  ;;  %5180 = vmatpush.msrb.mxu0 %v3365_v3  ;;  %v8044_v3 = vpop.f32.mrf.mxu2 }
 0x582   :  { %v3493_v46 = vld [vmem:[#allocation8 + $0xc90] sm:$0xff]  ;;  %5209 = vmatpush.msrb.mxu1 %v3429_v57  ;;  %v8085_v9 = vpop.f32.mrf.mxu3 }
 0x583   :  { %v3573_v44 = vld [vmem:[#allocation8 + $0xf10] sm:$0xff]  ;;  %5238 = vmatpush.msrb.mxu2 %v3493_v46 }
 0x584   :  { %v3361_v11 = vld [vmem:[#allocation8 + $0x870] sm:$0xff]  ;;  %5263 = vmatpush.msrb.mxu3 %v3573_v44 }
 0x585   :  { %v3425_v55 = vld [vmem:[#allocation8 + $0xa70] sm:$0xff]  ;;  %5181 = vmatpush.msrb.mxu0 %v3361_v11 }
 0x586   :  { %v3489_v4 = vld [vmem:[#allocation8 + $0xc70] sm:$0xff]  ;;  %5210 = vmatpush.msrb.mxu1 %v3425_v55  ;;  %v8049_v55 = vpop.f32.mrf.mxu0 }
 0x587   :  { %v9051_v26 = vld [vmem:[#allocation41_spill] sm:$0xff]  ;;  %5239 = vmatpush.msrb.mxu2 %v3489_v4  ;;  %v9055_v60 = vld [vmem:[#allocation30_spill] sm:$0xff] }
 0x588   :  { %5136 = vmatmul.f32.gmra.mxu2 %v9051_v26  ;;  %v3569_v47 = vld [vmem:[#allocation8 + $0xef0] sm:$0xff] }
 0x589   :  { %v3357_v27 = vld [vmem:[#allocation8 + $0x850] sm:$0xff]  ;;  %5264 = vmatpush.msrb.mxu3 %v3569_v47 }
 0x58a   :  { %v3421_v50 = vld [vmem:[#allocation8 + $0xa50] sm:$0xff]  ;;  %5182 = vmatpush.msrb.mxu0 %v3357_v27 }
 0x58b   :  { %v3485_v37 = vld [vmem:[#allocation8 + $0xc50] sm:$0xff]  ;;  %5211 = vmatpush.msrb.mxu1 %v3421_v50 }
 0x58c   :  { %v9052_v57 = vld [vmem:[#allocation17_spill] sm:$0xff]  ;;  %5240 = vmatpush.msrb.mxu2 %v3485_v37  ;;  %v9054_v37 = vld [vmem:[#allocation22_spill] sm:$0xff] }
 0x58d   :  { %5162 = vmatmul.f32.gmra.mxu3 %v9052_v57  ;;  %v3565_v46 = vld [vmem:[#allocation8 + $0xed0] sm:$0xff]  ;;  %v8051_v57 = vpop.f32.mrf.mxu1 }
 0x58e   :  { %v3353_v25 = vld [vmem:[#allocation8 + $0x830] sm:$0xff]  ;;  %5265 = vmatpush.msrb.mxu3 %v3565_v46  ;;  %9053 = vst [vmem:[#allocation106_spill] sm:$0xff] %v8051_v57 }
 0x58f   :  { %v3417_v42 = vld [vmem:[#allocation8 + $0xa30] sm:$0xff]  ;;  %5183 = vmatpush.msrb.mxu0 %v3353_v25 }
 0x590   :  { %v3481_v7 = vld [vmem:[#allocation8 + $0xc30] sm:$0xff]  ;;  %5212 = vmatpush.msrb.mxu1 %v3417_v42 }
 0x591   :  { %v3561_v44 = vld [vmem:[#allocation8 + $0xeb0] sm:$0xff]  ;;  %5241 = vmatpush.msrb.mxu2 %v3481_v7 }
 0x592   :  { %v3349_v11 = vld [vmem:[#allocation8 + $0x810] sm:$0xff]  ;;  %5266 = vmatpush.msrb.mxu3 %v3561_v44 }
 0x593   :  { %v3413_v26 = vld [vmem:[#allocation8 + $0xa10] sm:$0xff]  ;;  %5184 = vmatpush.msrb.mxu0 %v3349_v11  ;;  %v8056_v11 = vpop.f32.mrf.mxu2 }
 0x594   :  { %v3477_v4 = vld [vmem:[#allocation8 + $0xc10] sm:$0xff]  ;;  %5213 = vmatpush.msrb.mxu1 %v3413_v26  ;;  %5185 = vmatmul.f32.vlgmr.msrb.gmra.mxu0 %v9054_v37  ;;  %9057 = vst [vmem:[#allocation56_spill] sm:$0xff] %v8056_v11  ;;  %v9058_v26 = vld [vmem:[#allocation19_spill] sm:$0xff] }
 0x595   :  { %v3557_v47 = vld [vmem:[#allocation8 + $0xe90] sm:$0xff]  ;;  %5242 = vmatpush.msrb.mxu2 %v3477_v4  ;;  %5214 = vmatmul.f32.vlgmr.msrb.gmra.mxu1 %v9055_v60 }
 0x596   :  { %v3665_v27 = vld [vmem:[#allocation8 + $0x11f0] sm:$0xff]  ;;  %5267 = vmatpush.msrb.mxu3 %v3557_v47 }
 0x597   :  { %v3729_v50 = vld [vmem:[#allocation8 + $0x13f0] sm:$0xff]  ;;  %5285 = vmatpush.msra.mxu0 %v3665_v27  ;;  %5165 = vmatmul.f32.gmra.mxu3 %v9058_v26  ;;  %v8063_v26 = vpop.f32.mrf.mxu1 }
 0x598   :  { %v3793_v35 = vld [vmem:[#allocation8 + $0x15f0] sm:$0xff]  ;;  %5314 = vmatpush.msra.mxu1 %v3729_v50  ;;  %v8061_v50 = vpop.f32.mrf.mxu0 }
 0x599   :  { %v9056_v46 = vld [vmem:[#allocation38_spill] sm:$0xff]  ;;  %5343 = vmatpush.msra.mxu2 %v3793_v35  ;;  %v9067_v11 = vld [vmem:[#allocation29_spill] sm:$0xff] }
 0x59a   :  { %5243 = vmatmul.f32.vlgmr.msrb.gmra.mxu2 %v9056_v46  ;;  %v3553_v25 = vld [vmem:[#allocation8 + $0xe70] sm:$0xff] }
 0x59b   :  { %v3661_v42 = vld [vmem:[#allocation8 + $0x11d0] sm:$0xff]  ;;  %5268 = vmatpush.msrb.mxu3 %v3553_v25 }
 0x59c   :  { %v3725_v7 = vld [vmem:[#allocation8 + $0x13d0] sm:$0xff]  ;;  %5286 = vmatpush.msra.mxu0 %v3661_v42 }
 0x59d   :  { %v3789_v44 = vld [vmem:[#allocation8 + $0x15d0] sm:$0xff]  ;;  %5315 = vmatpush.msra.mxu1 %v3725_v7 }
 0x59e   :  { %v3549_v4 = vld [vmem:[#allocation8 + $0xe50] sm:$0xff]  ;;  %5344 = vmatpush.msra.mxu2 %v3789_v44  ;;  %v9059_v44 = vld [vmem:[#allocation36_spill] sm:$0xff]  ;;  %5217 = vmatmul.f32.gmra.mxu1 %v9060_v19 }
 0x59f   :  { %v3657_v29 = vld [vmem:[#allocation8 + $0x11b0] sm:$0xff]  ;;  %5269 = vmatpush.msrb.mxu3 %v3549_v4  ;;  %5188 = vmatmul.f32.gmra.mxu0 %v9059_v44 }
 0x5a0   :  { %v3721_v60 = vld [vmem:[#allocation8 + $0x13b0] sm:$0xff]  ;;  %5287 = vmatpush.msra.mxu0 %v3657_v29 }
 0x5a1   :  { %v3785_v37 = vld [vmem:[#allocation8 + $0x15b0] sm:$0xff]  ;;  %5316 = vmatpush.msra.mxu1 %v3721_v60 }
 0x5a2   :  { %v3545_v47 = vld [vmem:[#allocation8 + $0xe30] sm:$0xff]  ;;  %5345 = vmatpush.msra.mxu2 %v3785_v37 }
 0x5a3   :  { %v3653_v27 = vld [vmem:[#allocation8 + $0x1190] sm:$0xff]  ;;  %5270 = vmatpush.msrb.mxu3 %v3545_v47 }
 0x5a4   :  { %v3717_v46 = vld [vmem:[#allocation8 + $0x1390] sm:$0xff]  ;;  %5288 = vmatpush.msra.mxu0 %v3653_v27  ;;  %v8068_v27 = vpop.f32.mrf.mxu2 }
 0x5a5   :  { %v3781_v35 = vld [vmem:[#allocation8 + $0x1590] sm:$0xff]  ;;  %5317 = vmatpush.msra.mxu1 %v3717_v46 }
 0x5a6   :  { %v3541_v25 = vld [vmem:[#allocation8 + $0xe10] sm:$0xff]  ;;  %5346 = vmatpush.msra.mxu2 %v3781_v35  ;;  %5220 = vmatmul.f32.gmra.mxu1 %v9065_v28 }
 0x5a7   :  { %v3649_v42 = vld [vmem:[#allocation8 + $0x1170] sm:$0xff]  ;;  %5271 = vmatpush.msrb.mxu3 %v3541_v25 }
 0x5a8   :  { %v3713_v7 = vld [vmem:[#allocation8 + $0x1370] sm:$0xff]  ;;  %5289 = vmatpush.msra.mxu0 %v3649_v42 }
 0x5a9   :  { %v3777_v56 = vld [vmem:[#allocation8 + $0x1570] sm:$0xff]  ;;  %5318 = vmatpush.msra.mxu1 %v3713_v7  ;;  %v8073_v7 = vpop.f32.mrf.mxu0 }
 0x5aa   :  { %v9061_v4 = vld [vmem:[#allocation21_spill] sm:$0xff]  ;;  %5347 = vmatpush.msra.mxu2 %v3777_v56  ;;  %v9062_v46 = vld [vmem:[#allocation46_spill] sm:$0xff] }
 0x5ab   :  { %5246 = vmatmul.f32.gmra.mxu2 %v9061_v4  ;;  %v3857_v29 = vld [vmem:[#allocation8 + $0x17f0] sm:$0xff]  ;;  %5272 = vmatmul.f32.vlgmr.msrb.gmra.mxu3 %v9062_v46  ;;  %v8075_v46 = vpop.f32.mrf.mxu1 }
 0x5ac   :  { %v3645_v60 = vld [vmem:[#allocation8 + $0x1150] sm:$0xff]  ;;  %5372 = vmatpush.msra.mxu3 %v3857_v29 }
 0x5ad   :  { %v3709_v37 = vld [vmem:[#allocation8 + $0x1350] sm:$0xff]  ;;  %5290 = vmatpush.msra.mxu0 %v3645_v60 }
 0x5ae   :  { %v3773_v47 = vld [vmem:[#allocation8 + $0x1550] sm:$0xff]  ;;  %5319 = vmatpush.msra.mxu1 %v3709_v37 }
 0x5af   :  { %v3853_v35 = vld [vmem:[#allocation8 + $0x17d0] sm:$0xff]  ;;  %5348 = vmatpush.msra.mxu2 %v3773_v47 }
 0x5b0   :  { %v3641_v59 = vld [vmem:[#allocation8 + $0x1130] sm:$0xff]  ;;  %5373 = vmatpush.msra.mxu3 %v3853_v35  ;;  %v9066_v35 = vld [vmem:[#allocation63_spill] sm:$0xff] }
 0x5b1   :  { %v3705_v19 = vld [vmem:[#allocation8 + $0x1330] sm:$0xff]  ;;  %5291 = vmatpush.msra.mxu0 %v3641_v59  ;;  %v8087_v57 = vpop.f32.mrf.mxu0 }
 0x5b2   :  { %v3769_v44 = vld [vmem:[#allocation8 + $0x1530] sm:$0xff]  ;;  %5320 = vmatpush.msra.mxu1 %v3705_v19  ;;  %9068 = vst [vmem:[#allocation88_spill] sm:$0xff] %v8087_v57  ;;  %v9071_v57 = vld [vmem:[#allocation39_spill] sm:$0xff] }
 0x5b3   :  { %v3849_v25 = vld [vmem:[#allocation8 + $0x17b0] sm:$0xff]  ;;  %5349 = vmatpush.msra.mxu2 %v3769_v44  ;;  %5275 = vmatmul.f32.gmra.mxu3 %v9067_v11 }
 0x5b4   :  { %v3637_v42 = vld [vmem:[#allocation8 + $0x1110] sm:$0xff]  ;;  %5374 = vmatpush.msra.mxu3 %v3849_v25  ;;  %5249 = vmatmul.f32.gmra.mxu2 %v9066_v35 }
 0x5b5   :  { %v3701_v4 = vld [vmem:[#allocation8 + $0x1310] sm:$0xff]  ;;  %5292 = vmatpush.msra.mxu0 %v3637_v42  ;;  %v8080_v42 = vpop.f32.mrf.mxu2 }
 0x5b6   :  { %v3765_v56 = vld [vmem:[#allocation8 + $0x1510] sm:$0xff]  ;;  %5321 = vmatpush.msra.mxu1 %v3701_v4  ;;  %v6076_v4 = vld [vmem:[#allocation10] sm:$0xf] }
 0x5b7   :  { %v3845_v29 = vld [vmem:[#allocation8 + $0x1790] sm:$0xff]  ;;  %5350 = vmatpush.msra.mxu2 %v3765_v56  ;;  %v8082_v56 = vperm.slane %v6076_v4, 1 }
 0x5b8   :  { %v3633_v60 = vld [vmem:[#allocation8 + $0x10f0] sm:$0xff]  ;;  %5375 = vmatpush.msra.mxu3 %v3845_v29 }
 0x5b9   :  { %v3697_v37 = vld [vmem:[#allocation8 + $0x12f0] sm:$0xff]  ;;  %5293 = vmatpush.msra.mxu0 %v3633_v60  ;;  %5351 = vmatpush.msra.mxu2 %v3761_v38  ;;  %v4607_v11 = vadd.f32 %v7966_v51, %v8082_v56 }
 0x5ba   :  { %v9064_v47 = vld [vmem:[#allocation45_spill] sm:$0xff]  ;;  %5322 = vmatpush.msra.mxu1 %v3697_v37 }
 0x5bb   :  { %5191 = vmatmul.f32.gmra.mxu0 %v9064_v47  ;;  %v3841_v59 = vld [vmem:[#allocation8 + $0x1770] sm:$0xff]  ;;  %v4636_v24 = vadd.f32 %v7968_v33, %v4607_v11 }
 0x5bc   :  { %v3629_v19 = vld [vmem:[#allocation8 + $0x10d0] sm:$0xff]  ;;  %5376 = vmatpush.msra.mxu3 %v3841_v59  ;;  %v8091_v59 = vpop.f32.mrf.mxu1  ;;  %5252 = vmatmul.f32.gmra.mxu2 %v9071_v57 }
 0x5bd   :  { %v3693_v44 = vld [vmem:[#allocation8 + $0x12d0] sm:$0xff]  ;;  %5294 = vmatpush.msra.mxu0 %v3629_v19 }
 0x5be   :  { %v3757_v25 = vld [vmem:[#allocation8 + $0x14d0] sm:$0xff]  ;;  %5323 = vmatpush.msra.mxu1 %v3693_v44 }
 0x5bf   :  { %v3837_v47 = vld [vmem:[#allocation8 + $0x1750] sm:$0xff]  ;;  %5352 = vmatpush.msra.mxu2 %v3757_v25 }
 0x5c0   :  { %v3625_v28 = vld [vmem:[#allocation8 + $0x10b0] sm:$0xff]  ;;  %5377 = vmatpush.msra.mxu3 %v3837_v47  ;;  %v9070_v47 = vld [vmem:[#allocation31_spill] sm:$0xff] }
 0x5c1   :  { %v3689_v35 = vld [vmem:[#allocation8 + $0x12b0] sm:$0xff]  ;;  %5295 = vmatpush.msra.mxu0 %v3625_v28  ;;  %5223 = vmatmul.f32.gmra.mxu1 %v9070_v47 }
 0x5c2   :  { %v3753_v29 = vld [vmem:[#allocation8 + $0x14b0] sm:$0xff]  ;;  %5324 = vmatpush.msra.mxu1 %v3689_v35 }
 0x5c3   :  { %v3833_v60 = vld [vmem:[#allocation8 + $0x1730] sm:$0xff]  ;;  %5353 = vmatpush.msra.mxu2 %v3753_v29  ;;  %5194 = vmatmul.f32.gmra.mxu0 %v9069_v41 }
 0x5c4   :  { %v3621_v37 = vld [vmem:[#allocation8 + $0x1090] sm:$0xff]  ;;  %5378 = vmatpush.msra.mxu3 %v3833_v60 }
 0x5c5   :  { %v3685_v4 = vld [vmem:[#allocation8 + $0x1290] sm:$0xff]  ;;  %5296 = vmatpush.msra.mxu0 %v3621_v37  ;;  %v8097_v37 = vpop.f32.mrf.mxu2 }
 0x5c6   :  { %v3749_v38 = vld [vmem:[#allocation8 + $0x1490] sm:$0xff]  ;;  %5325 = vmatpush.msra.mxu1 %v3685_v4  ;;  %9072 = vst [vmem:[#allocation104_spill] sm:$0xff] %v8097_v37  ;;  %v4665_v4 = vadd.f32 %v7974_v1, %v4636_v24  ;;  %v8104_v37 = vpop.f32.mrf.mxu0 }
 0x5c7   :  { %v3829_v19 = vld [vmem:[#allocation8 + $0x1710] sm:$0xff]  ;;  %5354 = vmatpush.msra.mxu2 %v3749_v38  ;;  %v9073_v38 = vld [vmem:[#allocation79_spill] sm:$0xff] }
 0x5c8   :  { %v3617_v44 = vld [vmem:[#allocation8 + $0x1070] sm:$0xff]  ;;  %5379 = vmatpush.msra.mxu3 %v3829_v19  ;;  %v8101_v19 = vpop.f32.mrf.mxu3 }
 0x5c9   :  { %v3681_v25 = vld [vmem:[#allocation8 + $0x1270] sm:$0xff]  ;;  %5297 = vmatpush.msra.mxu0 %v3617_v44  ;;  %5278 = vmatmul.f32.gmra.mxu3 %v9073_v38  ;;  %v4694_v44 = vadd.f32 %v7987_v16, %v4665_v4 }
 0x5ca   :  { %v3745_v28 = vld [vmem:[#allocation8 + $0x1470] sm:$0xff]  ;;  %5326 = vmatpush.msra.mxu1 %v3681_v25 }
 0x5cb   :  { %v3825_v51 = vld [vmem:[#allocation8 + $0x16f0] sm:$0xff]  ;;  %5355 = vmatpush.msra.mxu2 %v3745_v28  ;;  %v4610_v28 = vadd.f32 %v7977_v45, %v8082_v56 }
 0x5cc   :  { %v3613_v35 = vld [vmem:[#allocation8 + $0x1050] sm:$0xff]  ;;  %5380 = vmatpush.msra.mxu3 %v3825_v51  ;;  %v4723_v51 = vadd.f32 %v8013_v13, %v4694_v44 }
 0x5cd   :  { %v3677_v29 = vld [vmem:[#allocation8 + $0x1250] sm:$0xff]  ;;  %5298 = vmatpush.msra.mxu0 %v3613_v35  ;;  %v8109_v35 = vpop.f32.mrf.mxu1  ;;  %v4639_v45 = vadd.f32 %v7979_v5, %v4610_v28 }
 0x5ce   :  { %v3741_v60 = vld [vmem:[#allocation8 + $0x1450] sm:$0xff]  ;;  %5327 = vmatpush.msra.mxu1 %v3677_v29  ;;  %v4752_v13 = vadd.f32 %v8015_v40, %v4723_v51 }
 0x5cf   :  { %v3821_v47 = vld [vmem:[#allocation8 + $0x16d0] sm:$0xff]  ;;  %5356 = vmatpush.msra.mxu2 %v3741_v60  ;;  %v4668_v44 = vadd.f32 %v7984_v34, %v4639_v45 }
 0x5d0   :  { %v3609_v41 = vld [vmem:[#allocation8 + $0x1030] sm:$0xff]  ;;  %5381 = vmatpush.msra.mxu3 %v3821_v47  ;;  %v8121_v51 = vpop.f32.mrf.mxu3 }
 0x5d1   :  { %v3673_v33 = vld [vmem:[#allocation8 + $0x1230] sm:$0xff]  ;;  %5299 = vmatpush.msra.mxu0 %v3609_v41 }
 0x5d2   :  { %v3737_v11 = vld [vmem:[#allocation8 + $0x1430] sm:$0xff]  ;;  %5328 = vmatpush.msra.mxu1 %v3673_v33 }
 0x5d3   :  { %v3817_v25 = vld [vmem:[#allocation8 + $0x16b0] sm:$0xff]  ;;  %5357 = vmatpush.msra.mxu2 %v3737_v11  ;;  %v8116_v11 = vpop.f32.mrf.mxu2 }
 0x5d4   :  { %v3605_v57 = vld [vmem:[#allocation8 + $0x1010] sm:$0xff]  ;;  %5382 = vmatpush.msra.mxu3 %v3817_v25  ;;  %v4781_v25 = vadd.f32 %v8020_v15, %v4752_v13  ;;  %v4954_v15 = vpop.f32.mrf.mxu0  ;;  %v4613_v13 = vadd.f32 %v7989_v10, %v8082_v56 }
 0x5d5   :  { %v3669_v24 = vld [vmem:[#allocation8 + $0x1210] sm:$0xff]  ;;  %5300 = vmatpush.msra.mxu0 %v3605_v57 }
 0x5d6   :  { %v3733_v1 = vld [vmem:[#allocation8 + $0x1410] sm:$0xff]  ;;  %5329 = vmatpush.msra.mxu1 %v3669_v24  ;;  %5301 = vmatmul.f32.vlgmr.msra.gmra.mxu0 %v9014_v49 }
 0x5d7   :  { %v3813_v16 = vld [vmem:[#allocation8 + $0x1690] sm:$0xff]  ;;  %5358 = vmatpush.msra.mxu2 %v3733_v1  ;;  %5330 = vmatmul.f32.vlgmr.msra.gmra.mxu1 %v9015_v2 }
 0x5d8   :  { %v3921_v29 = vld [vmem:[#allocation8 + $0x19f0] sm:$0xff]  ;;  %5359 = vmatmul.f32.vlgmr.msra.gmra.mxu2 %v9016_v61  ;;  %5383 = vmatpush.msra.mxu3 %v3813_v16  ;;  %v4697_v16 = vadd.f32 %v7999_v0, %v4668_v44  ;;  %v8129_v0 = vpop.f32.mrf.mxu1 }
 0x5d9   :  { %v3985_v60 = vld [vmem:[#allocation8 + $0x1bf0] sm:$0xff]  ;;  %5401 = vmatpush.msrb.mxu0 %v3921_v29  ;;  %v4810_v29 = vadd.f32 %v8035_v32, %v4781_v25 }
 0x5da   :  { %v4049_v41 = vld [vmem:[#allocation8 + $0x1df0] sm:$0xff]  ;;  %5430 = vmatpush.msrb.mxu1 %v3985_v60 }
 0x5db   :  { %v3809_v47 = vld [vmem:[#allocation8 + $0x1670] sm:$0xff]  ;;  %5459 = vmatpush.msrb.mxu2 %v4049_v41 }
 0x5dc   :  { %v3917_v4 = vld [vmem:[#allocation8 + $0x19d0] sm:$0xff]  ;;  %5384 = vmatpush.msra.mxu3 %v3809_v47  ;;  %v4726_v47 = vadd.f32 %v8025_v48, %v4697_v16  ;;  %v4642_v48 = vadd.f32 %v7991_v36, %v4613_v13 }
 0x5dd   :  { %v3981_v57 = vld [vmem:[#allocation8 + $0x1bd0] sm:$0xff]  ;;  %5402 = vmatpush.msrb.mxu0 %v3917_v4  ;;  %v4839_v4 = vadd.f32 %v8061_v50, %v4810_v29 }
 0x5de   :  { %v4045_v33 = vld [vmem:[#allocation8 + $0x1dd0] sm:$0xff]  ;;  %5431 = vmatpush.msrb.mxu1 %v3981_v57  ;;  %5304 = vmatmul.f32.gmra.mxu0 %v7517_v20  ;;  %v4755_v50 = vadd.f32 %v8027_v17, %v4726_v47  ;;  %v4671_v16 = vadd.f32 %v7996_v22, %v4642_v48  ;;  %v8146_v47 = vpop.f32.mrf.mxu0 }
 0x5df   :  { %v9074_v24 = vld [vmem:[#allocation50_spill] sm:$0xff]  ;;  %5460 = vmatpush.msrb.mxu2 %v4045_v33  ;;  %5333 = vmatmul.f32.gmra.mxu1 %v7519_v14  ;;  %v4868_v44 = vadd.f32 %v8063_v26, %v4839_v4  ;;  %v4616_v4 = vadd.f32 %v8001_v21, %v8082_v56 }
 0x5e0   :  { %5281 = vmatmul.f32.gmra.mxu3 %v9074_v24  ;;  %v3805_v5 = vld [vmem:[#allocation8 + $0x1650] sm:$0xff]  ;;  %5362 = vmatmul.f32.gmra.mxu2 %v7521_v53  ;;  %v4784_v29 = vadd.f32 %v8032_v30, %v4755_v50 }
 0x5e1   :  { %v3913_v40 = vld [vmem:[#allocation8 + $0x19b0] sm:$0xff]  ;;  %5385 = vmatpush.msra.mxu3 %v3805_v5  ;;  %v4897_v36 = vadd.f32 %v8068_v27, %v4868_v44  ;;  %v4645_v56 = vadd.f32 %v8003_v58, %v4616_v4 }
 0x5e2   :  { %v3977_v1 = vld [vmem:[#allocation8 + $0x1bb0] sm:$0xff]  ;;  %5403 = vmatpush.msrb.mxu0 %v3913_v40  ;;  %v4813_v13 = vadd.f32 %v8047_v31, %v4784_v29 }
 0x5e3   :  { %v4041_v28 = vld [vmem:[#allocation8 + $0x1db0] sm:$0xff]  ;;  %5432 = vmatpush.msrb.mxu1 %v3977_v1  ;;  %v4926_v22 = vadd.f32 %v8085_v9, %v4897_v36 }
 0x5e4   :  { %v3801_v34 = vld [vmem:[#allocation8 + $0x1630] sm:$0xff]  ;;  %5461 = vmatpush.msrb.mxu2 %v4041_v28  ;;  %v5012_v28 = vpop.f32.mrf.mxu2 }
 0x5e5   :  { %v3909_v60 = vld [vmem:[#allocation8 + $0x1990] sm:$0xff]  ;;  %5386 = vmatpush.msra.mxu3 %v3801_v34  ;;  %v4955_v31 = vadd.f32 %v4954_v15, %v4926_v22 }
 0x5e6   :  { %v3973_v41 = vld [vmem:[#allocation8 + $0x1b90] sm:$0xff]  ;;  %5404 = vmatpush.msrb.mxu0 %v3909_v60 }
 0x5e7   :  { %v4037_v45 = vld [vmem:[#allocation8 + $0x1d90] sm:$0xff]  ;;  %5433 = vmatpush.msrb.mxu1 %v3973_v41  ;;  %v8141_v41 = vpop.f32.mrf.mxu3  ;;  %5307 = vmatmul.f32.gmra.mxu0 %v7563_v12 }
 0x5e8   :  { %v3797_v32 = vld [vmem:[#allocation8 + $0x1610] sm:$0xff]  ;;  %5462 = vmatpush.msrb.mxu2 %v4037_v45  ;;  %v4700_v45 = vadd.f32 %v8011_v43, %v4671_v16  ;;  %v4842_v43 = vadd.f32 %v8073_v7, %v4813_v13  ;;  %5336 = vmatmul.f32.gmra.mxu1 %v7565_v54 }
 0x5e9   :  { %v3905_v57 = vld [vmem:[#allocation8 + $0x1970] sm:$0xff]  ;;  %5387 = vmatpush.msra.mxu3 %v3797_v32  ;;  %5365 = vmatmul.f32.gmra.mxu2 %v9019_v18 }
 0x5ea   :  { %v3969_v33 = vld [vmem:[#allocation8 + $0x1b70] sm:$0xff]  ;;  %5405 = vmatpush.msrb.mxu0 %v3905_v57  ;;  %5388 = vmatmul.f32.vlgmr.msra.gmra.mxu3 %v9018_v52  ;;  %v4871_v15 = vadd.f32 %v8075_v46, %v4842_v43 }
 0x5eb   :  { %v4033_v10 = vld [vmem:[#allocation8 + $0x1d70] sm:$0xff]  ;;  %5434 = vmatpush.msrb.mxu1 %v3969_v33  ;;  %v4729_v33 = vadd.f32 %v8037_v6, %v4700_v45  ;;  %v4960_v45 = vpop.f32.mrf.mxu0 }
 0x5ec   :  { %v4113_v25 = vld [vmem:[#allocation8 + $0x1ff0] sm:$0xff]  ;;  %5463 = vmatpush.msrb.mxu2 %v4033_v10  ;;  %v8152_v10 = vpop.f32.mrf.mxu1 }
 0x5ed   :  { %v3901_v5 = vld [vmem:[#allocation8 + $0x1950] sm:$0xff]  ;;  %5488 = vmatpush.msrb.mxu3 %v4113_v25  ;;  %v4758_v7 = vadd.f32 %v8039_v63, %v4729_v33  ;;  %v4984_v25 = vadd.f32 %v8129_v0, %v4955_v31  ;;  %v4900_v63 = vadd.f32 %v8080_v42, %v4871_v15  ;;  %v9076_v33 = vld [vmem:[#allocation99_spill] sm:$0xff] }
 0x5ee   :  { %v3965_v40 = vld [vmem:[#allocation8 + $0x1b50] sm:$0xff]  ;;  %5406 = vmatpush.msrb.mxu0 %v3901_v5  ;;  %v4674_v5 = vadd.f32 %v8008_v39, %v4645_v56 }
 0x5ef   :  { %v4029_v1 = vld [vmem:[#allocation8 + $0x1d50] sm:$0xff]  ;;  %5435 = vmatpush.msrb.mxu1 %v3965_v40  ;;  %v4787_v16 = vadd.f32 %v8044_v3, %v4758_v7  ;;  %v5013_v36 = vadd.f32 %v5012_v28, %v4984_v25  ;;  %v4929_v3 = vadd.f32 %v8101_v19, %v4900_v63  ;;  %5310 = vmatmul.f32.gmra.mxu0 %v9076_v33 }
 0x5f0   :  { %v4109_v17 = vld [vmem:[#allocation8 + $0x1fd0] sm:$0xff]  ;;  %5464 = vmatpush.msrb.mxu2 %v4029_v1  ;;  %v5015_v1 = vpop.f32.mrf.mxu2 }
 0x5f1   :  { %v3897_v26 = vld [vmem:[#allocation8 + $0x1930] sm:$0xff]  ;;  %5489 = vmatpush.msrb.mxu3 %v4109_v17  ;;  %v4703_v17 = vadd.f32 %v8023_v8, %v4674_v5  ;;  %v9081_v5 = vld [vmem:[#allocation104_spill] sm:$0xff] }
 0x5f2   :  { %v3961_v34 = vld [vmem:[#allocation8 + $0x1b30] sm:$0xff]  ;;  %5407 = vmatpush.msrb.mxu0 %v3897_v26  ;;  %5391 = vmatmul.f32.gmra.mxu3 %v9020_v62  ;;  %v5041_v26 = vpop.f32.mrf.mxu3 }
 0x5f3   :  { %v4025_v60 = vld [vmem:[#allocation8 + $0x1d30] sm:$0xff]  ;;  %5436 = vmatpush.msrb.mxu1 %v3961_v34  ;;  %v4816_v34 = vadd.f32 %v8059_v23, %v4787_v16  ;;  %v5042_v13 = vadd.f32 %v5041_v26, %v5013_v36  ;;  %v4732_v8 = vadd.f32 %v8049_v55, %v4703_v17  ;;  %v4958_v23 = vadd.f32 %v8146_v47, %v4929_v3  ;;  %v9083_v36 = vld [vmem:[#allocation72_spill] sm:$0xff] }
 0x5f4   :  { %v4105_v30 = vld [vmem:[#allocation8 + $0x1fb0] sm:$0xff]  ;;  %5465 = vmatpush.msrb.mxu2 %v4025_v60  ;;  %v8171_v4 = vpop.f32.mrf.mxu1 }
 0x5f5   :  { %v3893_v27 = vld [vmem:[#allocation8 + $0x1910] sm:$0xff]  ;;  %5490 = vmatpush.msrb.mxu3 %v4105_v30  ;;  %v9075_v30 = vld [vmem:[#allocation88_spill] sm:$0xff]  ;;  %5982 = vst [vmem:[#allocation11 + $0x8] sm:$0xff] %v5042_v13 }
 0x5f6   :  { %v3957_v32 = vld [vmem:[#allocation8 + $0x1b10] sm:$0xff]  ;;  %5408 = vmatpush.msrb.mxu0 %v3893_v27  ;;  %v4845_v27 = vadd.f32 %v9075_v30, %v4816_v34  ;;  %v4963_v34 = vpop.f32.mrf.mxu0 }
 0x5f7   :  { %v4021_v57 = vld [vmem:[#allocation8 + $0x1d10] sm:$0xff]  ;;  %5437 = vmatpush.msrb.mxu1 %v3957_v32 }
 0x5f8   :  { %v4101_v9 = vld [vmem:[#allocation8 + $0x1f90] sm:$0xff]  ;;  %5466 = vmatpush.msrb.mxu2 %v4021_v57 }
 0x5f9   :  { %v3889_v48 = vld [vmem:[#allocation8 + $0x18f0] sm:$0xff]  ;;  %5491 = vmatpush.msrb.mxu3 %v4101_v9 }
 0x5fa   :  { %v3953_v21 = vld [vmem:[#allocation8 + $0x1af0] sm:$0xff]  ;;  %5409 = vmatpush.msrb.mxu0 %v3889_v48  ;;  %v4874_v48 = vadd.f32 %v8091_v59, %v4845_v27  ;;  %v9085_v27 = vld [vmem:[#allocation52_spill] sm:$0xff] }
 0x5fb   :  { %v4017_v6 = vld [vmem:[#allocation8 + $0x1cf0] sm:$0xff]  ;;  %5438 = vmatpush.msrb.mxu1 %v3953_v21 }
 0x5fc   :  { %v4097_v50 = vld [vmem:[#allocation8 + $0x1f70] sm:$0xff]  ;;  %5467 = vmatpush.msrb.mxu2 %v4017_v6  ;;  %v4987_v6 = vadd.f32 %v8152_v10, %v4958_v23  ;;  %v5044_v10 = vpop.f32.mrf.mxu3  ;;  %v3282_v23 = vld [vmem:[#allocation8 + $0x5f8] sm:$0xff] }
 0x5fd   :  { %v3885_v44 = vld [vmem:[#allocation8 + $0x18d0] sm:$0xff]  ;;  %5492 = vmatpush.msrb.mxu3 %v4097_v50  ;;  %v5018_v50 = vpop.f32.mrf.mxu2 }
 0x5fe   :  { %v3949_v58 = vld [vmem:[#allocation8 + $0x1ad0] sm:$0xff]  ;;  %5410 = vmatpush.msrb.mxu0 %v3885_v44  ;;  %v9080_v44 = vld [vmem:[#allocation56_spill] sm:$0xff]  ;;  %v5016_v63 = vadd.f32 %v5015_v1, %v4987_v6  ;;  %v3146_v6 = vld [vmem:[#allocation8 + $0x1b8] sm:$0xff] }
 0x5ff   :  { %v4013_v40 = vld [vmem:[#allocation8 + $0x1cd0] sm:$0xff]  ;;  %5439 = vmatpush.msrb.mxu1 %v3949_v58  ;;  %v4903_v58 = vadd.f32 %v9081_v5, %v4874_v48  ;;  %v3142_v5 = vld [vmem:[#allocation8 + $0x198] sm:$0xff] }
 0x600   :  { %v4093_v46 = vld [vmem:[#allocation8 + $0x1f50] sm:$0xff]  ;;  %5468 = vmatpush.msrb.mxu2 %v4013_v40  ;;  %v9082_v40 = vld [vmem:[#allocation83_spill] sm:$0xff]  ;;  %v5045_v3 = vadd.f32 %v5044_v10, %v5016_v63  ;;  %v9088_v10 = vld [vmem:[#allocation84_spill] sm:$0xff] }
 0x601   :  { %v3881_v29 = vld [vmem:[#allocation8 + $0x18b0] sm:$0xff]  ;;  %5493 = vmatpush.msrb.mxu3 %v4093_v46 }
 0x602   :  { %v3945_v39 = vld [vmem:[#allocation8 + $0x1ab0] sm:$0xff]  ;;  %5411 = vmatpush.msrb.mxu0 %v3881_v29  ;;  %5394 = vmatmul.f32.gmra.mxu3 %v9082_v40  ;;  %5986 = vst [vmem:[#allocation11 + $0x28] sm:$0xff] %v5045_v3  ;;  %v3198_v3 = vld [vmem:[#allocation8 + $0x358] sm:$0xff] }
 0x603   :  { %v4009_v0 = vld [vmem:[#allocation8 + $0x1cb0] sm:$0xff]  ;;  %5440 = vmatpush.msrb.mxu1 %v3945_v39  ;;  %v4932_v39 = vadd.f32 %v8121_v51, %v4903_v58  ;;  %v3154_v51 = vld [vmem:[#allocation8 + $0x1f8] sm:$0xff] }
 0x604   :  { %v4089_v42 = vld [vmem:[#allocation8 + $0x1f30] sm:$0xff]  ;;  %5469 = vmatpush.msrb.mxu2 %v4009_v0  ;;  %v3642_v40 = vld [vmem:[#allocation8 + $0x1138] sm:$0xff] }
 0x605   :  { %v3877_v60 = vld [vmem:[#allocation8 + $0x1890] sm:$0xff]  ;;  %5494 = vmatpush.msrb.mxu3 %v4089_v42  ;;  %v4961_v13 = vadd.f32 %v4960_v45, %v4932_v39 }
 0x606   :  { %v3941_v28 = vld [vmem:[#allocation8 + $0x1a90] sm:$0xff]  ;;  %5412 = vmatpush.msrb.mxu0 %v3877_v60 }
 0x607   :  { %v4005_v22 = vld [vmem:[#allocation8 + $0x1c90] sm:$0xff]  ;;  %5441 = vmatpush.msrb.mxu1 %v3941_v28  ;;  %v8185_v28 = vpop.f32.mrf.mxu1 }
 0x608   :  { %v4085_v19 = vld [vmem:[#allocation8 + $0x1f10] sm:$0xff]  ;;  %5470 = vmatpush.msrb.mxu2 %v4005_v22 }
 0x609   :  { %v3873_v32 = vld [vmem:[#allocation8 + $0x1870] sm:$0xff]  ;;  %5495 = vmatpush.msrb.mxu3 %v4085_v19  ;;  %v9086_v19 = vld [vmem:[#allocation68_spill] sm:$0xff] }
 0x60a   :  { %v3937_v57 = vld [vmem:[#allocation8 + $0x1a70] sm:$0xff]  ;;  %5413 = vmatpush.msrb.mxu0 %v3873_v32  ;;  %v3150_v32 = vld [vmem:[#allocation8 + $0x1d8] sm:$0xff] }
 0x60b   :  { %v9077_v43 = vld [vmem:[#allocation54_spill] sm:$0xff]  ;;  %5442 = vmatpush.msrb.mxu1 %v3937_v57  ;;  %v4990_v57 = vadd.f32 %v8171_v4, %v4961_v13  ;;  %v9090_v39 = vld [vmem:[#allocation53_spill] sm:$0xff] }
 0x60c   :  { %5339 = vmatmul.f32.gmra.mxu1 %v9077_v43  ;;  %v4001_v55 = vld [vmem:[#allocation8 + $0x1c70] sm:$0xff]  ;;  %v3342_v13 = vld [vmem:[#allocation8 + $0x7d8] sm:$0xff] }
 0x60d   :  { %v9078_v31 = vld [vmem:[#allocation106_spill] sm:$0xff]  ;;  %5471 = vmatpush.msrb.mxu2 %v4001_v55 }
 0x60e   :  { %v4761_v9 = vadd.f32 %v9078_v31, %v4732_v8  ;;  %v9079_v47 = vld [vmem:[#allocation70_spill] sm:$0xff] }
 0x60f   :  { %5368 = vmatmul.f32.gmra.mxu2 %v9079_v47  ;;  %v4081_v21 = vld [vmem:[#allocation8 + $0x1ef0] sm:$0xff]  ;;  %v3218_v8 = vld [vmem:[#allocation8 + $0x3f8] sm:$0xff]  ;;  %v8197_v63 = vpop.f32.mrf.mxu1 }
 0x610   :  { %v3869_v56 = vld [vmem:[#allocation8 + $0x1850] sm:$0xff]  ;;  %v4790_v25 = vadd.f32 %v9080_v44, %v4761_v9  ;;  %5496 = vmatpush.msrb.mxu3 %v4081_v21  ;;  %v3214_v55 = vld [vmem:[#allocation8 + $0x3d8] sm:$0xff]  ;;  %v5021_v9 = vpop.f32.mrf.mxu2  ;;  %v5047_v44 = vpop.f32.mrf.mxu3 }
 0x611   :  { %v3933_v7 = vld [vmem:[#allocation8 + $0x1a50] sm:$0xff]  ;;  %5414 = vmatpush.msrb.mxu0 %v3869_v56  ;;  %v3278_v31 = vld [vmem:[#allocation8 + $0x5d8] sm:$0xff] }
 0x612   :  { %v3997_v15 = vld [vmem:[#allocation8 + $0x1c50] sm:$0xff]  ;;  %v4819_v17 = vadd.f32 %v9083_v36, %v4790_v25  ;;  %5443 = vmatpush.msrb.mxu1 %v3933_v7  ;;  %v3210_v7 = vld [vmem:[#allocation8 + $0x3b8] sm:$0xff]  ;;  %v9089_v36 = vld [vmem:[#allocation100_spill] sm:$0xff] }
 0x613   :  { %v4077_v59 = vld [vmem:[#allocation8 + $0x1ed0] sm:$0xff]  ;;  %5472 = vmatpush.msrb.mxu2 %v3997_v15  ;;  %v3274_v15 = vld [vmem:[#allocation8 + $0x5b8] sm:$0xff] }
 0x614   :  { %v3865_v16 = vld [vmem:[#allocation8 + $0x1830] sm:$0xff]  ;;  %5497 = vmatpush.msrb.mxu3 %v4077_v59  ;;  %v4848_v1 = vadd.f32 %v8104_v37, %v4819_v17  ;;  %v8195_v59 = vpop.f32.mrf.mxu0  ;;  %v3266_v17 = vld [vmem:[#allocation8 + $0x578] sm:$0xff] }
 0x615   :  { %v3929_v46 = vld [vmem:[#allocation8 + $0x1a30] sm:$0xff]  ;;  %5415 = vmatpush.msrb.mxu0 %v3865_v16  ;;  %v3270_v16 = vld [vmem:[#allocation8 + $0x598] sm:$0xff] }
 0x616   :  { %v3993_v29 = vld [vmem:[#allocation8 + $0x1c30] sm:$0xff]  ;;  %5444 = vmatpush.msrb.mxu1 %v3929_v46  ;;  %v4877_v37 = vadd.f32 %v8109_v35, %v4848_v1  ;;  %v5019_v35 = vadd.f32 %v5018_v50, %v4990_v57  ;;  %v3762_v47 = vld [vmem:[#allocation8 + $0x14f8] sm:$0xff] }
 0x617   :  { %v4073_v0 = vld [vmem:[#allocation8 + $0x1eb0] sm:$0xff]  ;;  %5473 = vmatpush.msrb.mxu2 %v3993_v29  ;;  %v3202_v29 = vld [vmem:[#allocation8 + $0x378] sm:$0xff] }
 0x618   :  { %v3861_v26 = vld [vmem:[#allocation8 + $0x1810] sm:$0xff]  ;;  %5498 = vmatpush.msrb.mxu3 %v4073_v0  ;;  %v4906_v48 = vadd.f32 %v8116_v11, %v4877_v37  ;;  %v5048_v58 = vadd.f32 %v5047_v44, %v5019_v35  ;;  %v3206_v11 = vld [vmem:[#allocation8 + $0x398] sm:$0xff]  ;;  %v5050_v37 = vpop.f32.mrf.mxu3 }
 0x619   :  { %v3925_v42 = vld [vmem:[#allocation8 + $0x1a10] sm:$0xff]  ;;  %5416 = vmatpush.msrb.mxu0 %v3861_v26  ;;  %v3346_v0 = vld [vmem:[#allocation8 + $0x7f8] sm:$0xff] }
 0x61a   :  { %v3989_v60 = vld [vmem:[#allocation8 + $0x1c10] sm:$0xff]  ;;  %5445 = vmatpush.msrb.mxu1 %v3925_v42  ;;  %v4935_v4 = vadd.f32 %v8141_v41, %v4906_v48  ;;  %5990 = vst [vmem:[#allocation11 + $0x48] sm:$0xff] %v5048_v58  ;;  %v3138_v41 = vld [vmem:[#allocation8 + $0x178] sm:$0xff] }
 0x61b   :  { %v4069_v22 = vld [vmem:[#allocation8 + $0x1e90] sm:$0xff]  ;;  %5474 = vmatpush.msrb.mxu2 %v3989_v60  ;;  %5446 = vmatmul.f32.vlgmr.msrb.gmra.mxu1 %v9085_v27  ;;  %v3134_v26 = vld [vmem:[#allocation8 + $0x158] sm:$0xff]  ;;  %v8203_v60 = vpop.f32.mrf.mxu2  ;;  %v9125_v27 = vld [vmem:[#allocation44_spill] sm:$0xff] }
 0x61c   :  { %v9084_v30 = vld [vmem:[#allocation102_spill] sm:$0xff]  ;;  %5475 = vmatmul.f32.vlgmr.msrb.gmra.mxu2 %v9086_v19  ;;  %5499 = vmatpush.msrb.mxu3 %v4069_v22  ;;  %v4964_v50 = vadd.f32 %v4963_v34, %v4935_v4  ;;  %v9091_v1 = vld [vmem:[#allocation69_spill] sm:$0xff]  ;;  %v8206_v57 = vpop.f32.mrf.mxu0  ;;  %v9094_v44 = vld [vmem:[#allocation55_spill] sm:$0xff] }
 0x61d   :  { %5417 = vmatmul.f32.vlgmr.msrb.gmra.mxu0 %v9084_v30  ;;  %v4065_v45 = vld [vmem:[#allocation8 + $0x1e70] sm:$0xff]  ;;  %5546 = vmatpush.msra.mxu1 %v3218_v8  ;;  %v3262_v42 = vld [vmem:[#allocation8 + $0x558] sm:$0xff] }
 0x61e   :  { %5517 = vmatpush.msra.mxu0 %v3154_v51  ;;  %5575 = vmatpush.msra.mxu2 %v3282_v23  ;;  %v9087_v21 = vld [vmem:[#allocation86_spill] sm:$0xff]  ;;  %v4993_v34 = vadd.f32 %v8185_v28, %v4964_v50  ;;  %v9092_v35 = vld [vmem:[#allocation85_spill] sm:$0xff] }
 0x61f   :  { %5397 = vmatmul.f32.gmra.mxu3 %v9087_v21  ;;  %v4061_v56 = vld [vmem:[#allocation8 + $0x1e50] sm:$0xff]  ;;  %5547 = vmatpush.msra.mxu1 %v3214_v55  ;;  %v3130_v22 = vld [vmem:[#allocation8 + $0x138] sm:$0xff] }
 0x620   :  { %5500 = vmatpush.msrb.mxu3 %v4065_v45  ;;  %5518 = vmatpush.msra.mxu0 %v3150_v32  ;;  %v4057_v25 = vld [vmem:[#allocation8 + $0x1e30] sm:$0xff]  ;;  %v5022_v51 = vadd.f32 %v5021_v9, %v4993_v34  ;;  %v3194_v8 = vld [vmem:[#allocation8 + $0x338] sm:$0xff]  ;;  %v8208_v9 = vpop.f32.mrf.mxu1 }
 0x621   :  { %5576 = vmatpush.msra.mxu2 %v3278_v31  ;;  %5548 = vmatpush.msra.mxu1 %v3210_v7  ;;  %v4053_v46 = vld [vmem:[#allocation8 + $0x1e10] sm:$0xff]  ;;  %v3258_v23 = vld [vmem:[#allocation8 + $0x538] sm:$0xff] }
 0x622   :  { %5501 = vmatpush.msrb.mxu3 %v4061_v56  ;;  %5519 = vmatpush.msra.mxu0 %v3146_v6  ;;  %v3338_v28 = vld [vmem:[#allocation8 + $0x7b8] sm:$0xff]  ;;  %v5051_v32 = vadd.f32 %v5050_v37, %v5022_v51  ;;  %v9093_v7 = vld [vmem:[#allocation101_spill] sm:$0xff] }
 0x623   :  { %5577 = vmatpush.msra.mxu2 %v3274_v15  ;;  %5549 = vmatpush.msra.mxu1 %v3206_v11  ;;  %v3126_v45 = vld [vmem:[#allocation8 + $0x118] sm:$0xff]  ;;  %v8213_v11 = vpop.f32.mrf.mxu2 }
 0x624   :  { %5502 = vmatpush.msrb.mxu3 %v4057_v25  ;;  %5520 = vmatpush.msra.mxu0 %v3142_v5  ;;  %v3190_v55 = vld [vmem:[#allocation8 + $0x318] sm:$0xff]  ;;  %5994 = vst [vmem:[#allocation11 + $0x68] sm:$0xff] %v5051_v32  ;;  %v8218_v34 = vpop.f32.mrf.mxu0 }
 0x625   :  { %5578 = vmatpush.msra.mxu2 %v3270_v16  ;;  %5420 = vmatmul.f32.gmra.mxu0 %v9088_v10  ;;  %v3254_v31 = vld [vmem:[#allocation8 + $0x518] sm:$0xff] }
 0x626   :  { %5449 = vmatmul.f32.gmra.mxu1 %v9089_v36  ;;  %5478 = vmatmul.f32.gmra.mxu2 %v9090_v39  ;;  %v3334_v48 = vld [vmem:[#allocation8 + $0x798] sm:$0xff] }
 0x627   :  { %5503 = vmatpush.msrb.mxu3 %v4053_v46  ;;  %5521 = vmatpush.msra.mxu0 %v3138_v41  ;;  %v3122_v56 = vld [vmem:[#allocation8 + $0xf8] sm:$0xff] }
 0x628   :  { %5550 = vmatpush.msra.mxu1 %v3202_v29  ;;  %5579 = vmatpush.msra.mxu2 %v3266_v17  ;;  %v3186_v6 = vld [vmem:[#allocation8 + $0x2f8] sm:$0xff]  ;;  %v8216_v17 = vpop.f32.mrf.mxu3 }
 0x629   :  { %5504 = vmatmul.f32.vlgmr.msrb.gmra.mxu3 %v9091_v1  ;;  %5522 = vmatpush.msra.mxu0 %v3134_v26  ;;  %v3250_v15 = vld [vmem:[#allocation8 + $0x4f8] sm:$0xff] }
 0x62a   :  { %5604 = vmatpush.msra.mxu3 %v3346_v0  ;;  %5551 = vmatpush.msra.mxu1 %v3198_v3  ;;  %v3330_v4 = vld [vmem:[#allocation8 + $0x778] sm:$0xff] }
 0x62b   :  { %5580 = vmatpush.msra.mxu2 %v3262_v42  ;;  %5523 = vmatpush.msra.mxu0 %v3130_v22  ;;  %v3118_v25 = vld [vmem:[#allocation8 + $0xd8] sm:$0xff] }
 0x62c   :  { %5605 = vmatpush.msra.mxu3 %v3342_v13  ;;  %5552 = vmatpush.msra.mxu1 %v3194_v8  ;;  %v3182_v5 = vld [vmem:[#allocation8 + $0x2d8] sm:$0xff]  ;;  %v8220_v13 = vpop.f32.mrf.mxu1 }
 0x62d   :  { %5581 = vmatpush.msra.mxu2 %v3258_v23  ;;  %5524 = vmatpush.msra.mxu0 %v3126_v45  ;;  %v3246_v58 = vld [vmem:[#allocation8 + $0x4d8] sm:$0xff] }
 0x62e   :  { %5606 = vmatpush.msra.mxu3 %v3338_v28  ;;  %5553 = vmatpush.msra.mxu1 %v3190_v55  ;;  %v9095_v16 = vld [vmem:[#allocation71_spill] sm:$0xff]  ;;  %v9098_v45 = vld [vmem:[#allocation58_spill] sm:$0xff] }
 0x62f   :  { %5582 = vmatpush.msra.mxu2 %v3254_v31  ;;  %5423 = vmatmul.f32.gmra.mxu0 %v9092_v35  ;;  %v3326_v50 = vld [vmem:[#allocation8 + $0x758] sm:$0xff] }
 0x630   :  { %5452 = vmatmul.f32.gmra.mxu1 %v9093_v7  ;;  %5481 = vmatmul.f32.gmra.mxu2 %v9094_v44  ;;  %v3114_v46 = vld [vmem:[#allocation8 + $0xb8] sm:$0xff]  ;;  %v9113_v7 = vld [vmem:[#allocation33_spill] sm:$0xff] }
 0x631   :  { %5607 = vmatpush.msra.mxu3 %v3334_v48  ;;  %5525 = vmatpush.msra.mxu0 %v3122_v56  ;;  %v3178_v41 = vld [vmem:[#allocation8 + $0x2b8] sm:$0xff]  ;;  %v8225_v56 = vpop.f32.mrf.mxu2 }
 0x632   :  { %5554 = vmatpush.msra.mxu1 %v3186_v6  ;;  %5583 = vmatpush.msra.mxu2 %v3250_v15  ;;  %v3242_v29 = vld [vmem:[#allocation8 + $0x4b8] sm:$0xff] }
 0x633   :  { %5507 = vmatmul.f32.gmra.mxu3 %v9095_v16  ;;  %5526 = vmatpush.msra.mxu0 %v3118_v25  ;;  %v3322_v0 = vld [vmem:[#allocation8 + $0x738] sm:$0xff] }
 0x634   :  { %5608 = vmatpush.msra.mxu3 %v3330_v4  ;;  %5555 = vmatpush.msra.mxu1 %v3182_v5  ;;  %v3110_v26 = vld [vmem:[#allocation8 + $0x98] sm:$0xff] }
 0x635   :  { %5584 = vmatpush.msra.mxu2 %v3246_v58  ;;  %5527 = vmatpush.msra.mxu0 %v3114_v46  ;;  %v3174_v3 = vld [vmem:[#allocation8 + $0x298] sm:$0xff]  ;;  %v8228_v58 = vpop.f32.mrf.mxu3 }
 0x636   :  { %5609 = vmatpush.msra.mxu3 %v3326_v50  ;;  %v3238_v42 = vld [vmem:[#allocation8 + $0x498] sm:$0xff]  ;;  %5556 = vmatpush.msra.mxu1 %v3178_v41  ;;  %v8230_v41 = vpop.f32.mrf.mxu0 }
 0x637   :  { %5585 = vmatpush.msra.mxu2 %v3242_v29  ;;  %5528 = vmatpush.msra.mxu0 %v3110_v26  ;;  %v3318_v22 = vld [vmem:[#allocation8 + $0x718] sm:$0xff]  ;;  %v8232_v26 = vpop.f32.mrf.mxu1 }
 0x638   :  { %5610 = vmatpush.msra.mxu3 %v3322_v0  ;;  %5557 = vmatpush.msra.mxu1 %v3174_v3  ;;  %v3106_v51 = vld [vmem:[#allocation8 + $0x78] sm:$0xff] }
 0x639   :  { %5586 = vmatpush.msra.mxu2 %v3238_v42  ;;  %v3170_v8 = vld [vmem:[#allocation8 + $0x278] sm:$0xff]  ;;  %5529 = vmatpush.msra.mxu0 %v3106_v51 }
 0x63a   :  { %v9096_v23 = vld [vmem:[#allocation87_spill] sm:$0xff]  ;;  %5484 = vmatmul.f32.gmra.mxu2 %v9098_v45  ;;  %5611 = vmatpush.msra.mxu3 %v3318_v22  ;;  %v9099_v6 = vld [vmem:[#allocation74_spill] sm:$0xff] }
 0x63b   :  { %5426 = vmatmul.f32.gmra.mxu0 %v9096_v23  ;;  %v9097_v37 = vld [vmem:[#allocation103_spill] sm:$0xff]  ;;  %5558 = vmatpush.msra.mxu1 %v3170_v8  ;;  %v9101_v8 = vld [vmem:[#allocation180_spill] sm:$0xff]  ;;  %v9119_v36 = vld [vmem:[#allocation30_spill] sm:$0xff] }
 0x63c   :  { %5455 = vmatmul.f32.gmra.mxu1 %v9097_v37  ;;  %v3234_v28 = vld [vmem:[#allocation8 + $0x478] sm:$0xff]  ;;  %5510 = vmatmul.f32.gmra.mxu3 %v9099_v6  ;;  %v9109_v37 = vld [vmem:[#allocation32_spill] sm:$0xff] }
 0x63d   :  { %v3314_v32 = vld [vmem:[#allocation8 + $0x6f8] sm:$0xff]  ;;  %5587 = vmatpush.msra.mxu2 %v3234_v28 }
 0x63e   :  { %v3102_v55 = vld [vmem:[#allocation8 + $0x58] sm:$0xff]  ;;  %5612 = vmatpush.msra.mxu3 %v3314_v32  ;;  %v9102_v32 = vld [vmem:[#allocation181_spill] sm:$0xff] }
 0x63f   :  { %v3166_v31 = vld [vmem:[#allocation8 + $0x258] sm:$0xff]  ;;  %5530 = vmatpush.msra.mxu0 %v3102_v55 }
 0x640   :  { %v3230_v48 = vld [vmem:[#allocation8 + $0x458] sm:$0xff]  ;;  %5559 = vmatpush.msra.mxu1 %v3166_v31 }
 0x641   :  { %v3310_v15 = vld [vmem:[#allocation8 + $0x6d8] sm:$0xff]  ;;  %5588 = vmatpush.msra.mxu2 %v3230_v48 }
 0x642   :  { %v3098_v4 = vld [vmem:[#allocation8 + $0x38] sm:$0xff]  ;;  %5613 = vmatpush.msra.mxu3 %v3310_v15 }
 0x643   :  { %v3162_v25 = vld [vmem:[#allocation8 + $0x238] sm:$0xff]  ;;  %5531 = vmatpush.msra.mxu0 %v3098_v4  ;;  %v8237_v4 = vpop.f32.mrf.mxu2 }
 0x644   :  { %v3226_v5 = vld [vmem:[#allocation8 + $0x438] sm:$0xff]  ;;  %5560 = vmatpush.msra.mxu1 %v3162_v25 }
 0x645   :  { %v3306_v50 = vld [vmem:[#allocation8 + $0x6b8] sm:$0xff]  ;;  %5589 = vmatpush.msra.mxu2 %v3226_v5 }
 0x646   :  { %v3094_v46 = vld [vmem:[#allocation8 + $0x18] sm:$0xff]  ;;  %5614 = vmatpush.msra.mxu3 %v3306_v50 }
 0x647   :  { %v3158_v29 = vld [vmem:[#allocation8 + $0x218] sm:$0xff]  ;;  %5532 = vmatpush.msra.mxu0 %v3094_v46 }
 0x648   :  { %v3222_v0 = vld [vmem:[#allocation8 + $0x418] sm:$0xff]  ;;  %5561 = vmatpush.msra.mxu1 %v3158_v29 }
 0x649   :  { %v3302_v3 = vld [vmem:[#allocation8 + $0x698] sm:$0xff]  ;;  %5590 = vmatpush.msra.mxu2 %v3222_v0  ;;  %5562 = vmatmul.f32.vlgmr.msra.gmra.mxu1 %v9101_v8  ;;  %v8240_v0 = vpop.f32.mrf.mxu3 }
 0x64a   :  { %v3410_v42 = vld [vmem:[#allocation8 + $0x9f8] sm:$0xff]  ;;  %5591 = vmatmul.f32.vlgmr.msra.gmra.mxu2 %v9102_v32  ;;  %5615 = vmatpush.msra.mxu3 %v3302_v3 }
 0x64b   :  { %v3474_v22 = vld [vmem:[#allocation8 + $0xbf8] sm:$0xff]  ;;  %5633 = vmatpush.msrb.mxu0 %v3410_v42 }
 0x64c   :  { %v9100_v51 = vld [vmem:[#allocation179_spill] sm:$0xff]  ;;  %5662 = vmatpush.msrb.mxu1 %v3474_v22  ;;  %v9103_v25 = vld [vmem:[#allocation90_spill] sm:$0xff]  ;;  %v8242_v22 = vpop.f32.mrf.mxu0 }
 0x64d   :  { %5533 = vmatmul.f32.vlgmr.msra.gmra.mxu0 %v9100_v51  ;;  %v3538_v28 = vld [vmem:[#allocation8 + $0xdf8] sm:$0xff]  ;;  %5513 = vmatmul.f32.gmra.mxu3 %v9103_v25 }
 0x64e   :  { %v3298_v55 = vld [vmem:[#allocation8 + $0x678] sm:$0xff]  ;;  %5691 = vmatpush.msrb.mxu2 %v3538_v28  ;;  %v8244_v28 = vpop.f32.mrf.mxu1 }
 0x64f   :  { %v3406_v31 = vld [vmem:[#allocation8 + $0x9d8] sm:$0xff]  ;;  %5616 = vmatpush.msra.mxu3 %v3298_v55 }
 0x650   :  { %v3470_v48 = vld [vmem:[#allocation8 + $0xbd8] sm:$0xff]  ;;  %5634 = vmatpush.msrb.mxu0 %v3406_v31 }
 0x651   :  { %v3534_v15 = vld [vmem:[#allocation8 + $0xdd8] sm:$0xff]  ;;  %5663 = vmatpush.msrb.mxu1 %v3470_v48  ;;  %v8252_v45 = vpop.f32.mrf.mxu3 }
 0x652   :  { %v3294_v5 = vld [vmem:[#allocation8 + $0x658] sm:$0xff]  ;;  %5692 = vmatpush.msrb.mxu2 %v3534_v15 }
 0x653   :  { %v3402_v50 = vld [vmem:[#allocation8 + $0x9b8] sm:$0xff]  ;;  %5617 = vmatpush.msra.mxu3 %v3294_v5 }
 0x654   :  { %v3466_v46 = vld [vmem:[#allocation8 + $0xbb8] sm:$0xff]  ;;  %5635 = vmatpush.msrb.mxu0 %v3402_v50 }
 0x655   :  { %v3530_v29 = vld [vmem:[#allocation8 + $0xdb8] sm:$0xff]  ;;  %5664 = vmatpush.msrb.mxu1 %v3466_v46 }
 0x656   :  { %v3290_v3 = vld [vmem:[#allocation8 + $0x638] sm:$0xff]  ;;  %5693 = vmatpush.msrb.mxu2 %v3530_v29 }
 0x657   :  { %v3398_v42 = vld [vmem:[#allocation8 + $0x998] sm:$0xff]  ;;  %5618 = vmatpush.msra.mxu3 %v3290_v3 }
 0x658   :  { %v3462_v51 = vld [vmem:[#allocation8 + $0xb98] sm:$0xff]  ;;  %5636 = vmatpush.msrb.mxu0 %v3398_v42  ;;  %v8249_v42 = vpop.f32.mrf.mxu2 }
 0x659   :  { %v3526_v8 = vld [vmem:[#allocation8 + $0xd98] sm:$0xff]  ;;  %5665 = vmatpush.msrb.mxu1 %v3462_v51  ;;  %v8264_v44 = vpop.f32.mrf.mxu3 }
 0x65a   :  { %v3286_v32 = vld [vmem:[#allocation8 + $0x618] sm:$0xff]  ;;  %5694 = vmatpush.msrb.mxu2 %v3526_v8 }
 0x65b   :  { %v3394_v55 = vld [vmem:[#allocation8 + $0x978] sm:$0xff]  ;;  %5619 = vmatpush.msra.mxu3 %v3286_v32 }
 0x65c   :  { %v3458_v31 = vld [vmem:[#allocation8 + $0xb78] sm:$0xff]  ;;  %5637 = vmatpush.msrb.mxu0 %v3394_v55 }
 0x65d   :  { %v9104_v48 = vld [vmem:[#allocation18_spill] sm:$0xff]  ;;  %5666 = vmatpush.msrb.mxu1 %v3458_v31  ;;  %v8254_v31 = vpop.f32.mrf.mxu0 }
 0x65e   :  { %5536 = vmatmul.f32.gmra.mxu0 %v9104_v48  ;;  %v9105_v15 = vld [vmem:[#allocation26_spill] sm:$0xff] }
 0x65f   :  { %5565 = vmatmul.f32.gmra.mxu1 %v9105_v15  ;;  %v3522_v25 = vld [vmem:[#allocation8 + $0xd78] sm:$0xff] }
 0x660   :  { %v9106_v5 = vld [vmem:[#allocation34_spill] sm:$0xff]  ;;  %5695 = vmatpush.msrb.mxu2 %v3522_v25 }
 0x661   :  { %5594 = vmatmul.f32.gmra.mxu2 %v9106_v5  ;;  %v3602_v50 = vld [vmem:[#allocation8 + $0xff8] sm:$0xff]  ;;  %v8276_v39 = vpop.f32.mrf.mxu3 }
 0x662   :  { %v3390_v46 = vld [vmem:[#allocation8 + $0x958] sm:$0xff]  ;;  %5720 = vmatpush.msrb.mxu3 %v3602_v50 }
 0x663   :  { %v3454_v29 = vld [vmem:[#allocation8 + $0xb58] sm:$0xff]  ;;  %5638 = vmatpush.msrb.mxu0 %v3390_v46 }
 0x664   :  { %v3518_v3 = vld [vmem:[#allocation8 + $0xd58] sm:$0xff]  ;;  %5667 = vmatpush.msrb.mxu1 %v3454_v29 }
 0x665   :  { %v9107_v51 = vld [vmem:[#allocation182_spill] sm:$0xff]  ;;  %5696 = vmatpush.msrb.mxu2 %v3518_v3  ;;  %v9108_v3 = vld [vmem:[#allocation24_spill] sm:$0xff] }
 0x666   :  { %5620 = vmatmul.f32.vlgmr.msra.gmra.mxu3 %v9107_v51  ;;  %v3598_v8 = vld [vmem:[#allocation8 + $0xfd8] sm:$0xff]  ;;  %v8256_v51 = vpop.f32.mrf.mxu1  ;;  %5539 = vmatmul.f32.gmra.mxu0 %v9108_v3 }
 0x667   :  { %v3386_v6 = vld [vmem:[#allocation8 + $0x938] sm:$0xff]  ;;  %5721 = vmatpush.msrb.mxu3 %v3598_v8  ;;  %5568 = vmatmul.f32.gmra.mxu1 %v9109_v37  ;;  %v9110_v8 = vld [vmem:[#allocation40_spill] sm:$0xff] }
 0x668   :  { %v3450_v48 = vld [vmem:[#allocation8 + $0xb38] sm:$0xff]  ;;  %5639 = vmatpush.msrb.mxu0 %v3386_v6 }
 0x669   :  { %v3514_v15 = vld [vmem:[#allocation8 + $0xd38] sm:$0xff]  ;;  %5668 = vmatpush.msrb.mxu1 %v3450_v48  ;;  %5597 = vmatmul.f32.gmra.mxu2 %v9110_v8  ;;  %v8288_v19 = vpop.f32.mrf.mxu3 }
 0x66a   :  { %v3594_v32 = vld [vmem:[#allocation8 + $0xfb8] sm:$0xff]  ;;  %5697 = vmatpush.msrb.mxu2 %v3514_v15  ;;  %9123 = vst [vmem:[#allocation105_spill] sm:$0xff] %v8288_v19 }
 0x66b   :  { %v3382_v55 = vld [vmem:[#allocation8 + $0x918] sm:$0xff]  ;;  %5722 = vmatpush.msrb.mxu3 %v3594_v32 }
 0x66c   :  { %v3446_v5 = vld [vmem:[#allocation8 + $0xb18] sm:$0xff]  ;;  %5640 = vmatpush.msrb.mxu0 %v3382_v55  ;;  %v8261_v55 = vpop.f32.mrf.mxu2 }
 0x66d   :  { %v3510_v25 = vld [vmem:[#allocation8 + $0xd18] sm:$0xff]  ;;  %5669 = vmatpush.msrb.mxu1 %v3446_v5 }
 0x66e   :  { %v3590_v50 = vld [vmem:[#allocation8 + $0xf98] sm:$0xff]  ;;  %5698 = vmatpush.msrb.mxu2 %v3510_v25 }
 0x66f   :  { %v3378_v46 = vld [vmem:[#allocation8 + $0x8f8] sm:$0xff]  ;;  %5723 = vmatpush.msrb.mxu3 %v3590_v50  ;;  %5571 = vmatmul.f32.gmra.mxu1 %v9113_v7 }
 0x670   :  { %v3442_v29 = vld [vmem:[#allocation8 + $0xaf8] sm:$0xff]  ;;  %5641 = vmatpush.msrb.mxu0 %v3378_v46 }
 0x671   :  { %v3506_v23 = vld [vmem:[#allocation8 + $0xcf8] sm:$0xff]  ;;  %5670 = vmatpush.msrb.mxu1 %v3442_v29  ;;  %v8266_v29 = vpop.f32.mrf.mxu0 }
 0x672   :  { %v3586_v6 = vld [vmem:[#allocation8 + $0xf78] sm:$0xff]  ;;  %5699 = vmatpush.msrb.mxu2 %v3506_v23 }
 0x673   :  { %v3374_v48 = vld [vmem:[#allocation8 + $0x8d8] sm:$0xff]  ;;  %5724 = vmatpush.msrb.mxu3 %v3586_v6 }
 0x674   :  { %v3438_v15 = vld [vmem:[#allocation8 + $0xad8] sm:$0xff]  ;;  %5642 = vmatpush.msrb.mxu0 %v3374_v48 }
 0x675   :  { %v3502_v32 = vld [vmem:[#allocation8 + $0xcd8] sm:$0xff]  ;;  %5671 = vmatpush.msrb.mxu1 %v3438_v15 }
 0x676   :  { %v9111_v5 = vld [vmem:[#allocation42_spill] sm:$0xff]  ;;  %5700 = vmatpush.msrb.mxu2 %v3502_v32  ;;  %v9112_v32 = vld [vmem:[#allocation25_spill] sm:$0xff]  ;;  %v9137_v19 = vld [vmem:[#allocation39_spill] sm:$0xff] }
 0x677   :  { %5623 = vmatmul.f32.gmra.mxu3 %v9111_v5  ;;  %v3582_v25 = vld [vmem:[#allocation8 + $0xf58] sm:$0xff]  ;;  %v8268_v5 = vpop.f32.mrf.mxu1  ;;  %5542 = vmatmul.f32.gmra.mxu0 %v9112_v32 }
 0x678   :  { %v3370_v16 = vld [vmem:[#allocation8 + $0x8b8] sm:$0xff]  ;;  %5725 = vmatpush.msrb.mxu3 %v3582_v25  ;;  %v9114_v25 = vld [vmem:[#allocation41_spill] sm:$0xff] }
 0x679   :  { %v3434_v37 = vld [vmem:[#allocation8 + $0xab8] sm:$0xff]  ;;  %5643 = vmatpush.msrb.mxu0 %v3370_v16  ;;  %5600 = vmatmul.f32.gmra.mxu2 %v9114_v25 }
 0x67a   :  { %v3498_v3 = vld [vmem:[#allocation8 + $0xcb8] sm:$0xff]  ;;  %5672 = vmatpush.msrb.mxu1 %v3434_v37 }
 0x67b   :  { %v3578_v50 = vld [vmem:[#allocation8 + $0xf38] sm:$0xff]  ;;  %5701 = vmatpush.msrb.mxu2 %v3498_v3 }
 0x67c   :  { %v3366_v46 = vld [vmem:[#allocation8 + $0x898] sm:$0xff]  ;;  %5726 = vmatpush.msrb.mxu3 %v3578_v50 }
 0x67d   :  { %v3430_v8 = vld [vmem:[#allocation8 + $0xa98] sm:$0xff]  ;;  %5644 = vmatpush.msrb.mxu0 %v3366_v46  ;;  %v8273_v46 = vpop.f32.mrf.mxu2 }
 0x67e   :  { %v3494_v23 = vld [vmem:[#allocation8 + $0xc98] sm:$0xff]  ;;  %5673 = vmatpush.msrb.mxu1 %v3430_v8  ;;  %v9115_v8 = vld [vmem:[#allocation17_spill] sm:$0xff] }
 0x67f   :  { %v3574_v6 = vld [vmem:[#allocation8 + $0xf18] sm:$0xff]  ;;  %5702 = vmatpush.msrb.mxu2 %v3494_v23  ;;  %5626 = vmatmul.f32.gmra.mxu3 %v9115_v8  ;;  %v8280_v8 = vpop.f32.mrf.mxu1 }
 0x680   :  { %v3362_v48 = vld [vmem:[#allocation8 + $0x878] sm:$0xff]  ;;  %5727 = vmatpush.msrb.mxu3 %v3574_v6  ;;  %9117 = vst [vmem:[#allocation73_spill] sm:$0xff] %v8280_v8 }
 0x681   :  { %v3426_v15 = vld [vmem:[#allocation8 + $0xa78] sm:$0xff]  ;;  %5645 = vmatpush.msrb.mxu0 %v3362_v48 }
 0x682   :  { %v3490_v35 = vld [vmem:[#allocation8 + $0xc78] sm:$0xff]  ;;  %5674 = vmatpush.msrb.mxu1 %v3426_v15  ;;  %v8278_v15 = vpop.f32.mrf.mxu0 }
 0x683   :  { %v3570_v16 = vld [vmem:[#allocation8 + $0xef8] sm:$0xff]  ;;  %5703 = vmatpush.msrb.mxu2 %v3490_v35  ;;  %9116 = vst [vmem:[#allocation57_spill] sm:$0xff] %v8278_v15 }
 0x684   :  { %v3358_v37 = vld [vmem:[#allocation8 + $0x858] sm:$0xff]  ;;  %5728 = vmatpush.msrb.mxu3 %v3570_v16 }
 0x685   :  { %v3422_v3 = vld [vmem:[#allocation8 + $0xa58] sm:$0xff]  ;;  %5646 = vmatpush.msrb.mxu0 %v3358_v37 }
 0x686   :  { %v3486_v50 = vld [vmem:[#allocation8 + $0xc58] sm:$0xff]  ;;  %5675 = vmatpush.msrb.mxu1 %v3422_v3 }
 0x687   :  { %v3566_v23 = vld [vmem:[#allocation8 + $0xed8] sm:$0xff]  ;;  %5704 = vmatpush.msrb.mxu2 %v3486_v50 }
 0x688   :  { %v3354_v1 = vld [vmem:[#allocation8 + $0x838] sm:$0xff]  ;;  %5729 = vmatpush.msrb.mxu3 %v3566_v23 }
 0x689   :  { %v3418_v7 = vld [vmem:[#allocation8 + $0xa38] sm:$0xff]  ;;  %5647 = vmatpush.msrb.mxu0 %v3354_v1 }
 0x68a   :  { %v3482_v32 = vld [vmem:[#allocation8 + $0xc38] sm:$0xff]  ;;  %5676 = vmatpush.msrb.mxu1 %v3418_v7 }
 0x68b   :  { %v3562_v6 = vld [vmem:[#allocation8 + $0xeb8] sm:$0xff]  ;;  %5705 = vmatpush.msrb.mxu2 %v3482_v32 }
 0x68c   :  { %v3350_v48 = vld [vmem:[#allocation8 + $0x818] sm:$0xff]  ;;  %5730 = vmatpush.msrb.mxu3 %v3562_v6 }
 0x68d   :  { %v3414_v25 = vld [vmem:[#allocation8 + $0xa18] sm:$0xff]  ;;  %5648 = vmatpush.msrb.mxu0 %v3350_v48  ;;  %v8285_v48 = vpop.f32.mrf.mxu2 }
 0x68e   :  { %v3478_v35 = vld [vmem:[#allocation8 + $0xc18] sm:$0xff]  ;;  %5677 = vmatpush.msrb.mxu1 %v3414_v25  ;;  %9121 = vst [vmem:[#allocation89_spill] sm:$0xff] %v8285_v48  ;;  %v8300_v48 = vpop.f32.mrf.mxu3 }
 0x68f   :  { %v3558_v16 = vld [vmem:[#allocation8 + $0xe98] sm:$0xff]  ;;  %5706 = vmatpush.msrb.mxu2 %v3478_v35  ;;  %5678 = vmatmul.f32.vlgmr.msrb.gmra.mxu1 %v9119_v36  ;;  %9128 = vst [vmem:[#allocation59_spill] sm:$0xff] %v8300_v48 }
 0x690   :  { %v3666_v37 = vld [vmem:[#allocation8 + $0x11f8] sm:$0xff]  ;;  %5731 = vmatpush.msrb.mxu3 %v3558_v16 }
 0x691   :  { %v3730_v3 = vld [vmem:[#allocation8 + $0x13f8] sm:$0xff]  ;;  %5749 = vmatpush.msra.mxu0 %v3666_v37 }
 0x692   :  { %v9118_v50 = vld [vmem:[#allocation22_spill] sm:$0xff]  ;;  %5778 = vmatpush.msra.mxu1 %v3730_v3  ;;  %v9122_v25 = vld [vmem:[#allocation19_spill] sm:$0xff]  ;;  %v8290_v3 = vpop.f32.mrf.mxu0 }
 0x693   :  { %5649 = vmatmul.f32.vlgmr.msrb.gmra.mxu0 %v9118_v50  ;;  %v3794_v10 = vld [vmem:[#allocation8 + $0x15f8] sm:$0xff]  ;;  %5629 = vmatmul.f32.gmra.mxu3 %v9122_v25  ;;  %v8292_v25 = vpop.f32.mrf.mxu1 }
 0x694   :  { %v9120_v23 = vld [vmem:[#allocation38_spill] sm:$0xff]  ;;  %5807 = vmatpush.msra.mxu2 %v3794_v10  ;;  %v9130_v48 = vld [vmem:[#allocation47_spill] sm:$0xff] }
 0x695   :  { %5707 = vmatmul.f32.vlgmr.msrb.gmra.mxu2 %v9120_v23  ;;  %v3554_v1 = vld [vmem:[#allocation8 + $0xe78] sm:$0xff] }
 0x696   :  { %v3662_v7 = vld [vmem:[#allocation8 + $0x11d8] sm:$0xff]  ;;  %5732 = vmatpush.msrb.mxu3 %v3554_v1 }
 0x697   :  { %v3726_v32 = vld [vmem:[#allocation8 + $0x13d8] sm:$0xff]  ;;  %5750 = vmatpush.msra.mxu0 %v3662_v7  ;;  %5681 = vmatmul.f32.gmra.mxu1 %v9125_v27 }
 0x698   :  { %v3790_v6 = vld [vmem:[#allocation8 + $0x15d8] sm:$0xff]  ;;  %5779 = vmatpush.msra.mxu1 %v3726_v32 }
 0x699   :  { %v3550_v35 = vld [vmem:[#allocation8 + $0xe58] sm:$0xff]  ;;  %5808 = vmatpush.msra.mxu2 %v3790_v6  ;;  %v9124_v6 = vld [vmem:[#allocation36_spill] sm:$0xff] }
 0x69a   :  { %v3658_v21 = vld [vmem:[#allocation8 + $0x11b8] sm:$0xff]  ;;  %5733 = vmatpush.msrb.mxu3 %v3550_v35  ;;  %v9126_v35 = vld [vmem:[#allocation21_spill] sm:$0xff] }
 0x69b   :  { %v3722_v36 = vld [vmem:[#allocation8 + $0x13b8] sm:$0xff]  ;;  %5751 = vmatpush.msra.mxu0 %v3658_v21 }
 0x69c   :  { %v3786_v50 = vld [vmem:[#allocation8 + $0x15b8] sm:$0xff]  ;;  %5780 = vmatpush.msra.mxu1 %v3722_v36  ;;  %5652 = vmatmul.f32.gmra.mxu0 %v9124_v6 }
 0x69d   :  { %v3546_v16 = vld [vmem:[#allocation8 + $0xe38] sm:$0xff]  ;;  %5809 = vmatpush.msra.mxu2 %v3786_v50 }
 0x69e   :  { %v3654_v37 = vld [vmem:[#allocation8 + $0x1198] sm:$0xff]  ;;  %5734 = vmatpush.msrb.mxu3 %v3546_v16  ;;  %5710 = vmatmul.f32.gmra.mxu2 %v9126_v35 }
 0x69f   :  { %v3718_v23 = vld [vmem:[#allocation8 + $0x1398] sm:$0xff]  ;;  %5752 = vmatpush.msra.mxu0 %v3654_v37  ;;  %v8297_v37 = vpop.f32.mrf.mxu2  ;;  %5684 = vmatmul.f32.gmra.mxu1 %v9130_v48 }
 0x6a0   :  { %v3782_v10 = vld [vmem:[#allocation8 + $0x1598] sm:$0xff]  ;;  %5781 = vmatpush.msra.mxu1 %v3718_v23 }
 0x6a1   :  { %v3542_v1 = vld [vmem:[#allocation8 + $0xe18] sm:$0xff]  ;;  %5810 = vmatpush.msra.mxu2 %v3782_v10 }
 0x6a2   :  { %v3650_v7 = vld [vmem:[#allocation8 + $0x1178] sm:$0xff]  ;;  %5735 = vmatpush.msrb.mxu3 %v3542_v1 }
 0x6a3   :  { %v3714_v32 = vld [vmem:[#allocation8 + $0x1378] sm:$0xff]  ;;  %5753 = vmatpush.msra.mxu0 %v3650_v7 }
 0x6a4   :  { %v3778_v30 = vld [vmem:[#allocation8 + $0x1578] sm:$0xff]  ;;  %5782 = vmatpush.msra.mxu1 %v3714_v32  ;;  %v8302_v32 = vpop.f32.mrf.mxu0 }
 0x6a5   :  { %v3858_v21 = vld [vmem:[#allocation8 + $0x17f8] sm:$0xff]  ;;  %5811 = vmatpush.msra.mxu2 %v3778_v30 }
 0x6a6   :  { %v3646_v36 = vld [vmem:[#allocation8 + $0x1158] sm:$0xff]  ;;  %5836 = vmatpush.msra.mxu3 %v3858_v21 }
 0x6a7   :  { %v3710_v50 = vld [vmem:[#allocation8 + $0x1358] sm:$0xff]  ;;  %5754 = vmatpush.msra.mxu0 %v3646_v36 }
 0x6a8   :  { %v3774_v16 = vld [vmem:[#allocation8 + $0x1558] sm:$0xff]  ;;  %5783 = vmatpush.msra.mxu1 %v3710_v50 }
 0x6a9   :  { %v9127_v23 = vld [vmem:[#allocation46_spill] sm:$0xff]  ;;  %5812 = vmatpush.msra.mxu2 %v3774_v16  ;;  %5755 = vmatpush.msra.mxu0 %v3642_v40  ;;  %v9129_v16 = vld [vmem:[#allocation45_spill] sm:$0xff]  ;;  %v9135_v15 = vld [vmem:[#allocation23_spill] sm:$0xff] }
 0x6aa   :  { %5736 = vmatmul.f32.vlgmr.msrb.gmra.mxu3 %v9127_v23  ;;  %v3854_v10 = vld [vmem:[#allocation8 + $0x17d8] sm:$0xff]  ;;  %v8304_v23 = vpop.f32.mrf.mxu1  ;;  %5655 = vmatmul.f32.gmra.mxu0 %v9129_v16  ;;  %v9133_v16 = vld [vmem:[#allocation29_spill] sm:$0xff] }
 0x6ab   :  { %v3706_v27 = vld [vmem:[#allocation8 + $0x1338] sm:$0xff]  ;;  %5837 = vmatpush.msra.mxu3 %v3854_v10 }
 0x6ac   :  { %v3770_v6 = vld [vmem:[#allocation8 + $0x1538] sm:$0xff]  ;;  %5784 = vmatpush.msra.mxu1 %v3706_v27  ;;  %v8319_v33 = vpop.f32.mrf.mxu0 }
 0x6ad   :  { %v3850_v1 = vld [vmem:[#allocation8 + $0x17b8] sm:$0xff]  ;;  %5813 = vmatpush.msra.mxu2 %v3770_v6  ;;  %9134 = vst [vmem:[#allocation91_spill] sm:$0xff] %v8319_v33 }
 0x6ae   :  { %v3638_v7 = vld [vmem:[#allocation8 + $0x1118] sm:$0xff]  ;;  %5838 = vmatpush.msra.mxu3 %v3850_v1 }
 0x6af   :  { %v3702_v35 = vld [vmem:[#allocation8 + $0x1318] sm:$0xff]  ;;  %5756 = vmatpush.msra.mxu0 %v3638_v7  ;;  %v8309_v7 = vpop.f32.mrf.mxu2 }
 0x6b0   :  { %v3766_v30 = vld [vmem:[#allocation8 + $0x1518] sm:$0xff]  ;;  %5785 = vmatpush.msra.mxu1 %v3702_v35  ;;  %v8311_v35 = vld [vmem:[#allocation10] sm:$0xf] }
 0x6b1   :  { %v3846_v21 = vld [vmem:[#allocation8 + $0x1798] sm:$0xff]  ;;  %5814 = vmatpush.msra.mxu2 %v3766_v30  ;;  %9132 = vst [vmem:[#allocation75_spill] sm:$0xff] %v8311_v35  ;;  %v8314_v30 = vperm.slane %v8311_v35, 2 }
 0x6b2   :  { %v3634_v36 = vld [vmem:[#allocation8 + $0x10f8] sm:$0xff]  ;;  %5839 = vmatpush.msra.mxu3 %v3846_v21  ;;  %5658 = vmatmul.f32.gmra.mxu0 %v9135_v15 }
 0x6b3   :  { %v3698_v50 = vld [vmem:[#allocation8 + $0x12f8] sm:$0xff]  ;;  %5757 = vmatpush.msra.mxu0 %v3634_v36  ;;  %5815 = vmatpush.msra.mxu2 %v3762_v47  ;;  %v8317_v36 = vpop.f32.mrf.mxu3 }
 0x6b4   :  { %v9131_v10 = vld [vmem:[#allocation63_spill] sm:$0xff]  ;;  %5786 = vmatpush.msra.mxu1 %v3698_v50  ;;  %5739 = vmatmul.f32.gmra.mxu3 %v9133_v16  ;;  %v5071_v16 = vadd.f32 %v8195_v59, %v8314_v30 }
 0x6b5   :  { %5713 = vmatmul.f32.gmra.mxu2 %v9131_v10  ;;  %v3842_v40 = vld [vmem:[#allocation8 + $0x1778] sm:$0xff] }
 0x6b6   :  { %v3630_v27 = vld [vmem:[#allocation8 + $0x10d8] sm:$0xff]  ;;  %5840 = vmatpush.msra.mxu3 %v3842_v40  ;;  %v8323_v40 = vpop.f32.mrf.mxu1  ;;  %v5100_v33 = vadd.f32 %v8197_v63, %v5071_v16 }
 0x6b7   :  { %v3694_v6 = vld [vmem:[#allocation8 + $0x12d8] sm:$0xff]  ;;  %5758 = vmatpush.msra.mxu0 %v3630_v27 }
 0x6b8   :  { %v3758_v1 = vld [vmem:[#allocation8 + $0x14d8] sm:$0xff]  ;;  %5787 = vmatpush.msra.mxu1 %v3694_v6 }
 0x6b9   :  { %v3838_v48 = vld [vmem:[#allocation8 + $0x1758] sm:$0xff]  ;;  %5816 = vmatpush.msra.mxu2 %v3758_v1 }
 0x6ba   :  { %v3626_v8 = vld [vmem:[#allocation8 + $0x10b8] sm:$0xff]  ;;  %5841 = vmatpush.msra.mxu3 %v3838_v48 }
 0x6bb   :  { %v3690_v21 = vld [vmem:[#allocation8 + $0x12b8] sm:$0xff]  ;;  %5759 = vmatpush.msra.mxu0 %v3626_v8  ;;  %v8333_v16 = vpop.f32.mrf.mxu3 }
 0x6bc   :  { %v3754_v10 = vld [vmem:[#allocation8 + $0x14b8] sm:$0xff]  ;;  %5788 = vmatpush.msra.mxu1 %v3690_v21  ;;  %5742 = vmatmul.f32.gmra.mxu3 %v9073_v38 }
 0x6bd   :  { %v3834_v50 = vld [vmem:[#allocation8 + $0x1738] sm:$0xff]  ;;  %5817 = vmatpush.msra.mxu2 %v3754_v10 }
 0x6be   :  { %v3622_v43 = vld [vmem:[#allocation8 + $0x1098] sm:$0xff]  ;;  %5842 = vmatpush.msra.mxu3 %v3834_v50  ;;  %5716 = vmatmul.f32.gmra.mxu2 %v9137_v19  ;;  %v5129_v50 = vadd.f32 %v8203_v60, %v5100_v33  ;;  %v5074_v60 = vadd.f32 %v8206_v57, %v8314_v30 }
 0x6bf   :  { %v3686_v35 = vld [vmem:[#allocation8 + $0x1298] sm:$0xff]  ;;  %5760 = vmatpush.msra.mxu0 %v3622_v43 }
 0x6c0   :  { %v3750_v47 = vld [vmem:[#allocation8 + $0x1498] sm:$0xff]  ;;  %5789 = vmatpush.msra.mxu1 %v3686_v35  ;;  %v8329_v35 = vpop.f32.mrf.mxu2  ;;  %v5103_v57 = vadd.f32 %v8208_v9, %v5074_v60 }
 0x6c1   :  { %v3830_v27 = vld [vmem:[#allocation8 + $0x1718] sm:$0xff]  ;;  %5818 = vmatpush.msra.mxu2 %v3750_v47 }
 0x6c2   :  { %v3618_v6 = vld [vmem:[#allocation8 + $0x1078] sm:$0xff]  ;;  %5843 = vmatpush.msra.mxu3 %v3830_v27  ;;  %v5158_v27 = vadd.f32 %v8216_v17, %v5129_v50 }
 0x6c3   :  { %v3682_v1 = vld [vmem:[#allocation8 + $0x1278] sm:$0xff]  ;;  %5761 = vmatpush.msra.mxu0 %v3618_v6 }
 0x6c4   :  { %v9136_v48 = vld [vmem:[#allocation31_spill] sm:$0xff]  ;;  %5790 = vmatpush.msra.mxu1 %v3682_v1  ;;  %5745 = vmatmul.f32.gmra.mxu3 %v9074_v24 }
 0x6c5   :  { %5687 = vmatmul.f32.gmra.mxu1 %v9136_v48  ;;  %v3746_v8 = vld [vmem:[#allocation8 + $0x1478] sm:$0xff]  ;;  %v8336_v48 = vpop.f32.mrf.mxu0 }
 0x6c6   :  { %v3826_v59 = vld [vmem:[#allocation8 + $0x16f8] sm:$0xff]  ;;  %5819 = vmatpush.msra.mxu2 %v3746_v8  ;;  %v5187_v8 = vadd.f32 %v8242_v22, %v5158_v27 }
 0x6c7   :  { %v3614_v21 = vld [vmem:[#allocation8 + $0x1058] sm:$0xff]  ;;  %5844 = vmatpush.msra.mxu3 %v3826_v59  ;;  %v8341_v59 = vpop.f32.mrf.mxu1 }
 0x6c8   :  { %v3678_v43 = vld [vmem:[#allocation8 + $0x1258] sm:$0xff]  ;;  %5762 = vmatpush.msra.mxu0 %v3614_v21  ;;  %v5216_v22 = vadd.f32 %v8244_v28, %v5187_v8  ;;  %v5077_v8 = vadd.f32 %v8218_v34, %v8314_v30 }
 0x6c9   :  { %v3742_v10 = vld [vmem:[#allocation8 + $0x1458] sm:$0xff]  ;;  %5791 = vmatpush.msra.mxu1 %v3678_v43 }
 0x6ca   :  { %v3822_v15 = vld [vmem:[#allocation8 + $0x16d8] sm:$0xff]  ;;  %5820 = vmatpush.msra.mxu2 %v3742_v10 }
 0x6cb   :  { %v3610_v47 = vld [vmem:[#allocation8 + $0x1038] sm:$0xff]  ;;  %5845 = vmatpush.msra.mxu3 %v3822_v15 }
 0x6cc   :  { %v3674_v63 = vld [vmem:[#allocation8 + $0x1238] sm:$0xff]  ;;  %5763 = vmatpush.msra.mxu0 %v3610_v47 }
 0x6cd   :  { %v3738_v19 = vld [vmem:[#allocation8 + $0x1438] sm:$0xff]  ;;  %5792 = vmatpush.msra.mxu1 %v3674_v63 }
 0x6ce   :  { %v3818_v6 = vld [vmem:[#allocation8 + $0x16b8] sm:$0xff]  ;;  %5821 = vmatpush.msra.mxu2 %v3738_v19  ;;  %v8348_v19 = vpop.f32.mrf.mxu2 }
 0x6cf   :  { %v3606_v1 = vld [vmem:[#allocation8 + $0x1018] sm:$0xff]  ;;  %5846 = vmatpush.msra.mxu3 %v3818_v6  ;;  %v8353_v6 = vpop.f32.mrf.mxu3 }
 0x6d0   :  { %v3670_v33 = vld [vmem:[#allocation8 + $0x1218] sm:$0xff]  ;;  %5764 = vmatpush.msra.mxu0 %v3606_v1 }
 0x6d1   :  { %v3734_v38 = vld [vmem:[#allocation8 + $0x1418] sm:$0xff]  ;;  %5793 = vmatpush.msra.mxu1 %v3670_v33  ;;  %5765 = vmatmul.f32.vlgmr.msra.gmra.mxu0 %v9014_v49  ;;  %v5132_v49 = vadd.f32 %v8213_v11, %v5103_v57 }
 0x6d2   :  { %v3814_v17 = vld [vmem:[#allocation8 + $0x1698] sm:$0xff]  ;;  %5822 = vmatpush.msra.mxu2 %v3734_v38  ;;  %5794 = vmatmul.f32.vlgmr.msra.gmra.mxu1 %v9015_v2  ;;  %v5245_v2 = vadd.f32 %v8249_v42, %v5216_v22  ;;  %v5418_v42 = vpop.f32.mrf.mxu0 }
 0x6d3   :  { %v3922_v21 = vld [vmem:[#allocation8 + $0x19f8] sm:$0xff]  ;;  %5823 = vmatmul.f32.vlgmr.msra.gmra.mxu2 %v9016_v61  ;;  %5847 = vmatpush.msra.mxu3 %v3814_v17  ;;  %v5161_v1 = vadd.f32 %v8228_v58, %v5132_v49  ;;  %v8361_v58 = vpop.f32.mrf.mxu1 }
 0x6d4   :  { %v3986_v43 = vld [vmem:[#allocation8 + $0x1bf8] sm:$0xff]  ;;  %5865 = vmatpush.msrb.mxu0 %v3922_v21  ;;  %v5274_v33 = vadd.f32 %v8264_v44, %v5245_v2 }
 0x6d5   :  { %v4050_v10 = vld [vmem:[#allocation8 + $0x1df8] sm:$0xff]  ;;  %5894 = vmatpush.msrb.mxu1 %v3986_v43  ;;  %v5190_v17 = vadd.f32 %v8254_v31, %v5161_v1  ;;  %v5106_v31 = vadd.f32 %v8220_v13, %v5077_v8 }
 0x6d6   :  { %v3810_v50 = vld [vmem:[#allocation8 + $0x1678] sm:$0xff]  ;;  %5923 = vmatpush.msrb.mxu2 %v4050_v10  ;;  %v5303_v21 = vadd.f32 %v8290_v3, %v5274_v33 }
 0x6d7   :  { %v3918_v15 = vld [vmem:[#allocation8 + $0x19d8] sm:$0xff]  ;;  %5848 = vmatpush.msra.mxu3 %v3810_v50  ;;  %v5219_v3 = vadd.f32 %v8256_v51, %v5190_v17  ;;  %v8373_v2 = vpop.f32.mrf.mxu3 }
 0x6d8   :  { %v3982_v47 = vld [vmem:[#allocation8 + $0x1bd8] sm:$0xff]  ;;  %5866 = vmatpush.msrb.mxu0 %v3918_v15  ;;  %v5332_v57 = vadd.f32 %v8292_v25, %v5303_v21 }
 0x6d9   :  { %v4046_v63 = vld [vmem:[#allocation8 + $0x1dd8] sm:$0xff]  ;;  %5895 = vmatpush.msrb.mxu1 %v3982_v47  ;;  %5768 = vmatmul.f32.gmra.mxu0 %v7517_v20  ;;  %v5135_v20 = vadd.f32 %v8225_v56, %v5106_v31 }
 0x6da   :  { %v3806_v9 = vld [vmem:[#allocation8 + $0x1658] sm:$0xff]  ;;  %5924 = vmatpush.msrb.mxu2 %v4046_v63  ;;  %5797 = vmatmul.f32.gmra.mxu1 %v7519_v14  ;;  %v5476_v63 = vpop.f32.mrf.mxu2  ;;  %v5248_v14 = vadd.f32 %v8261_v55, %v5219_v3  ;;  %v5361_v13 = vadd.f32 %v8297_v37, %v5332_v57 }
 0x6db   :  { %v3914_v28 = vld [vmem:[#allocation8 + $0x19b8] sm:$0xff]  ;;  %5849 = vmatpush.msra.mxu3 %v3806_v9  ;;  %5826 = vmatmul.f32.gmra.mxu2 %v7521_v53  ;;  %v5164_v9 = vadd.f32 %v8240_v0, %v5135_v20 }
 0x6dc   :  { %v3978_v61 = vld [vmem:[#allocation8 + $0x1bb8] sm:$0xff]  ;;  %5867 = vmatpush.msrb.mxu0 %v3914_v28  ;;  %v5277_v28 = vadd.f32 %v8276_v39, %v5248_v14  ;;  %v5390_v56 = vadd.f32 %v8317_v36, %v5361_v13 }
 0x6dd   :  { %v4042_v27 = vld [vmem:[#allocation8 + $0x1db8] sm:$0xff]  ;;  %5896 = vmatpush.msrb.mxu1 %v3978_v61  ;;  %v8378_v61 = vpop.f32.mrf.mxu0  ;;  %v5193_v33 = vadd.f32 %v8266_v29, %v5164_v9  ;;  %v9143_v9 = vld [vmem:[#allocation73_spill] sm:$0xff] }
 0x6de   :  { %v3802_v11 = vld [vmem:[#allocation8 + $0x1638] sm:$0xff]  ;;  %5925 = vmatpush.msrb.mxu2 %v4042_v27  ;;  %v5306_v0 = vadd.f32 %v8302_v32, %v5277_v28  ;;  %v5419_v39 = vadd.f32 %v5418_v42, %v5390_v56 }
 0x6df   :  { %v3910_v38 = vld [vmem:[#allocation8 + $0x1998] sm:$0xff]  ;;  %5850 = vmatpush.msra.mxu3 %v3802_v11  ;;  %v8384_v11 = vpop.f32.mrf.mxu1  ;;  %v5222_v32 = vadd.f32 %v8268_v5, %v5193_v33 }
 0x6e0   :  { %v3974_v24 = vld [vmem:[#allocation8 + $0x1b98] sm:$0xff]  ;;  %5868 = vmatpush.msrb.mxu0 %v3910_v38  ;;  %v5335_v42 = vadd.f32 %v8304_v23, %v5306_v0  ;;  %v5448_v8 = vadd.f32 %v8361_v58, %v5419_v39  ;;  %v9145_v0 = vld [vmem:[#allocation89_spill] sm:$0xff] }
 0x6e1   :  { %v4038_v60 = vld [vmem:[#allocation8 + $0x1d98] sm:$0xff]  ;;  %5897 = vmatpush.msrb.mxu1 %v3974_v24  ;;  %5771 = vmatmul.f32.gmra.mxu0 %v7563_v12 }
 0x6e2   :  { %v3798_v44 = vld [vmem:[#allocation8 + $0x1618] sm:$0xff]  ;;  %5926 = vmatpush.msrb.mxu2 %v4038_v60  ;;  %5800 = vmatmul.f32.gmra.mxu1 %v7565_v54  ;;  %v5479_v21 = vpop.f32.mrf.mxu2  ;;  %v5251_v54 = vadd.f32 %v8273_v46, %v5222_v32  ;;  %v5364_v5 = vadd.f32 %v8309_v7, %v5335_v42 }
 0x6e3   :  { %v3906_v43 = vld [vmem:[#allocation8 + $0x1978] sm:$0xff]  ;;  %5851 = vmatpush.msra.mxu3 %v3798_v44  ;;  %5829 = vmatmul.f32.gmra.mxu2 %v9019_v18  ;;  %v5477_v44 = vadd.f32 %v5476_v63, %v5448_v8 }
 0x6e4   :  { %v3970_v10 = vld [vmem:[#allocation8 + $0x1b78] sm:$0xff]  ;;  %5869 = vmatpush.msrb.mxu0 %v3906_v43  ;;  %5852 = vmatmul.f32.vlgmr.msra.gmra.mxu3 %v9018_v52  ;;  %v5080_v52 = vadd.f32 %v8230_v41, %v8314_v30  ;;  %v5393_v46 = vadd.f32 %v8333_v16, %v5364_v5 }
 0x6e5   :  { %v4034_v34 = vld [vmem:[#allocation8 + $0x1d78] sm:$0xff]  ;;  %5898 = vmatpush.msrb.mxu1 %v3970_v10  ;;  %v5505_v10 = vpop.f32.mrf.mxu3  ;;  %v5424_v57 = vpop.f32.mrf.mxu0 }
 0x6e6   :  { %v4114_v22 = vld [vmem:[#allocation8 + $0x1ff8] sm:$0xff]  ;;  %5927 = vmatpush.msrb.mxu2 %v4034_v34  ;;  %v5109_v30 = vadd.f32 %v8232_v26, %v5080_v52  ;;  %v9138_v34 = vld [vmem:[#allocation105_spill] sm:$0xff]  ;;  %v5422_v20 = vadd.f32 %v8378_v61, %v5393_v46 }
 0x6e7   :  { %v3902_v50 = vld [vmem:[#allocation8 + $0x1958] sm:$0xff]  ;;  %5952 = vmatpush.msrb.mxu3 %v4114_v22  ;;  %v5280_v31 = vadd.f32 %v9138_v34, %v5251_v54  ;;  %v8403_v14 = vpop.f32.mrf.mxu1 }
 0x6e8   :  { %v3966_v15 = vld [vmem:[#allocation8 + $0x1b58] sm:$0xff]  ;;  %5870 = vmatpush.msrb.mxu0 %v3902_v50  ;;  %v5138_v17 = vadd.f32 %v8237_v4, %v5109_v30  ;;  %v5451_v52 = vadd.f32 %v8384_v11, %v5422_v20 }
 0x6e9   :  { %v4030_v47 = vld [vmem:[#allocation8 + $0x1d58] sm:$0xff]  ;;  %5899 = vmatpush.msrb.mxu1 %v3966_v15 }
 0x6ea   :  { %v4110_v51 = vld [vmem:[#allocation8 + $0x1fd8] sm:$0xff]  ;;  %5928 = vmatpush.msrb.mxu2 %v4030_v47  ;;  %v5167_v43 = vadd.f32 %v8252_v45, %v5138_v17  ;;  %v9139_v45 = vld [vmem:[#allocation57_spill] sm:$0xff]  ;;  %v5482_v33 = vpop.f32.mrf.mxu2  ;;  %v5480_v30 = vadd.f32 %v5479_v21, %v5451_v52 }
 0x6eb   :  { %v3898_v25 = vld [vmem:[#allocation8 + $0x1938] sm:$0xff]  ;;  %5953 = vmatpush.msrb.mxu3 %v4110_v51 }
 0x6ec   :  { %v3962_v53 = vld [vmem:[#allocation8 + $0x1b38] sm:$0xff]  ;;  %5871 = vmatpush.msrb.mxu0 %v3898_v25  ;;  %5855 = vmatmul.f32.gmra.mxu3 %v9020_v62  ;;  %v5506_v62 = vadd.f32 %v5505_v10, %v5477_v44  ;;  %v5196_v15 = vadd.f32 %v9139_v45, %v5167_v43  ;;  %v9149_v44 = vld [vmem:[#allocation52_spill] sm:$0xff] }
 0x6ed   :  { %v4026_v49 = vld [vmem:[#allocation8 + $0x1d38] sm:$0xff]  ;;  %5900 = vmatpush.msrb.mxu1 %v3962_v53  ;;  %v5508_v11 = vpop.f32.mrf.mxu3 }
 0x6ee   :  { %v4106_v55 = vld [vmem:[#allocation8 + $0x1fb8] sm:$0xff]  ;;  %5929 = vmatpush.msrb.mxu2 %v4026_v49  ;;  %5983 = vst [vmem:[#allocation11 + $0x10] sm:$0xff] %v5506_v62  ;;  %v5225_v28 = vadd.f32 %v9143_v9, %v5196_v15 }
 0x6ef   :  { %v3894_v37 = vld [vmem:[#allocation8 + $0x1918] sm:$0xff]  ;;  %5954 = vmatpush.msrb.mxu3 %v4106_v55 }
 0x6f0   :  { %v3958_v27 = vld [vmem:[#allocation8 + $0x1b18] sm:$0xff]  ;;  %5872 = vmatpush.msrb.mxu0 %v3894_v37  ;;  %v5254_v39 = vadd.f32 %v9145_v0, %v5225_v28 }
 0x6f1   :  { %v4022_v1 = vld [vmem:[#allocation8 + $0x1d18] sm:$0xff]  ;;  %5901 = vmatpush.msrb.mxu1 %v3958_v27 }
 0x6f2   :  { %v4102_v36 = vld [vmem:[#allocation8 + $0x1f98] sm:$0xff]  ;;  %5930 = vmatpush.msrb.mxu2 %v4022_v1 }
 0x6f3   :  { %v3890_v38 = vld [vmem:[#allocation8 + $0x18f8] sm:$0xff]  ;;  %5955 = vmatpush.msrb.mxu3 %v4102_v36 }
 0x6f4   :  { %v3954_v41 = vld [vmem:[#allocation8 + $0x1af8] sm:$0xff]  ;;  %5873 = vmatpush.msrb.mxu0 %v3890_v38 }
 0x6f5   :  { %v4018_v29 = vld [vmem:[#allocation8 + $0x1cf8] sm:$0xff]  ;;  %5902 = vmatpush.msrb.mxu1 %v3954_v41 }
 0x6f6   :  { %v4098_v24 = vld [vmem:[#allocation8 + $0x1f78] sm:$0xff]  ;;  %5931 = vmatpush.msrb.mxu2 %v4018_v29 }
 0x6f7   :  { %v3886_v60 = vld [vmem:[#allocation8 + $0x18d8] sm:$0xff]  ;;  %5956 = vmatpush.msrb.mxu3 %v4098_v24 }
 0x6f8   :  { %v3950_v26 = vld [vmem:[#allocation8 + $0x1ad8] sm:$0xff]  ;;  %5874 = vmatpush.msrb.mxu0 %v3886_v60 }
 0x6f9   :  { %v4014_v12 = vld [vmem:[#allocation8 + $0x1cd8] sm:$0xff]  ;;  %5903 = vmatpush.msrb.mxu1 %v3950_v26  ;;  %v5509_v26 = vadd.f32 %v5508_v11, %v5480_v30 }
 0x6fa   :  { %v4094_v18 = vld [vmem:[#allocation8 + $0x1f58] sm:$0xff]  ;;  %5932 = vmatpush.msrb.mxu2 %v4014_v12 }
 0x6fb   :  { %v3882_v23 = vld [vmem:[#allocation8 + $0x18b8] sm:$0xff]  ;;  %5957 = vmatpush.msrb.mxu3 %v4094_v18  ;;  %v5456_v18 = vpop.f32.mrf.mxu1  ;;  %5987 = vst [vmem:[#allocation11 + $0x30] sm:$0xff] %v5509_v26 }
 0x6fc   :  { %v3946_v4 = vld [vmem:[#allocation8 + $0x1ab8] sm:$0xff]  ;;  %5875 = vmatpush.msrb.mxu0 %v3882_v23 }
 0x6fd   :  { %v4010_v58 = vld [vmem:[#allocation8 + $0x1cb8] sm:$0xff]  ;;  %5904 = vmatpush.msrb.mxu1 %v3946_v4 }
 0x6fe   :  { %v4090_v7 = vld [vmem:[#allocation8 + $0x1f38] sm:$0xff]  ;;  %5933 = vmatpush.msrb.mxu2 %v4010_v58  ;;  %v9150_v58 = vld [vmem:[#allocation68_spill] sm:$0xff] }
 0x6ff   :  { %v3878_v3 = vld [vmem:[#allocation8 + $0x1898] sm:$0xff]  ;;  %5958 = vmatpush.msrb.mxu3 %v4090_v7 }
 0x700   :  { %v3942_v22 = vld [vmem:[#allocation8 + $0x1a98] sm:$0xff]  ;;  %5876 = vmatpush.msrb.mxu0 %v3878_v3 }
 0x701   :  { %v4006_v50 = vld [vmem:[#allocation8 + $0x1c98] sm:$0xff]  ;;  %5905 = vmatpush.msrb.mxu1 %v3942_v22  ;;  %v5511_v22 = vpop.f32.mrf.mxu3 }
 0x702   :  { %v9140_v47 = vld [vmem:[#allocation91_spill] sm:$0xff]  ;;  %5934 = vmatpush.msrb.mxu2 %v4006_v50  ;;  %v9142_v53 = vld [vmem:[#allocation54_spill] sm:$0xff] }
 0x703   :  { %v5309_v63 = vadd.f32 %v9140_v47, %v5280_v31  ;;  %v4086_v16 = vld [vmem:[#allocation8 + $0x1f18] sm:$0xff]  ;;  %5803 = vmatmul.f32.gmra.mxu1 %v9142_v53  ;;  %v5485_v31 = vpop.f32.mrf.mxu2  ;;  %v5563_v20 = vpop.f32.mrf.mxu1 }
 0x704   :  { %v3874_v13 = vld [vmem:[#allocation8 + $0x1878] sm:$0xff]  ;;  %5959 = vmatpush.msrb.mxu3 %v4086_v16  ;;  %v9154_v16 = vld [vmem:[#allocation100_spill] sm:$0xff] }
 0x705   :  { %v3938_v51 = vld [vmem:[#allocation8 + $0x1a78] sm:$0xff]  ;;  %v5338_v56 = vadd.f32 %v8323_v40, %v5309_v63  ;;  %5877 = vmatpush.msrb.mxu0 %v3874_v13  ;;  %v9155_v13 = vld [vmem:[#allocation53_spill] sm:$0xff] }
 0x706   :  { %v9141_v25 = vld [vmem:[#allocation99_spill] sm:$0xff]  ;;  %v9144_v55 = vld [vmem:[#allocation70_spill] sm:$0xff]  ;;  %5906 = vmatpush.msrb.mxu1 %v3938_v51  ;;  %v9156_v51 = vld [vmem:[#allocation69_spill] sm:$0xff] }
 0x707   :  { %5774 = vmatmul.f32.gmra.mxu0 %v9141_v25  ;;  %v4002_v49 = vld [vmem:[#allocation8 + $0x1c78] sm:$0xff]  ;;  %5832 = vmatmul.f32.gmra.mxu2 %v9144_v55  ;;  %v5367_v36 = vadd.f32 %v8329_v35, %v5338_v56  ;;  %v5427_v35 = vpop.f32.mrf.mxu0  ;;  %v9157_v55 = vld [vmem:[#allocation85_spill] sm:$0xff] }
 0x708   :  { %v4082_v37 = vld [vmem:[#allocation8 + $0x1ef8] sm:$0xff]  ;;  %5935 = vmatpush.msrb.mxu2 %v4002_v49 }
 0x709   :  { %v3870_v61 = vld [vmem:[#allocation8 + $0x1858] sm:$0xff]  ;;  %5960 = vmatpush.msrb.mxu3 %v4082_v37  ;;  %v5396_v60 = vadd.f32 %v8353_v6, %v5367_v36  ;;  %v5514_v9 = vpop.f32.mrf.mxu3  ;;  %v9158_v37 = vld [vmem:[#allocation101_spill] sm:$0xff] }
 0x70a   :  { %v3934_v27 = vld [vmem:[#allocation8 + $0x1a58] sm:$0xff]  ;;  %5878 = vmatpush.msrb.mxu0 %v3870_v61 }
 0x70b   :  { %v3998_v1 = vld [vmem:[#allocation8 + $0x1c58] sm:$0xff]  ;;  %5907 = vmatpush.msrb.mxu1 %v3934_v27  ;;  %v5425_v5 = vadd.f32 %v5424_v57, %v5396_v60  ;;  %v5566_v27 = vpop.f32.mrf.mxu1 }
 0x70c   :  { %v9146_v38 = vld [vmem:[#allocation83_spill] sm:$0xff]  ;;  %5936 = vmatpush.msrb.mxu2 %v3998_v1  ;;  %v9148_v6 = vld [vmem:[#allocation102_spill] sm:$0xff] }
 0x70d   :  { %5858 = vmatmul.f32.gmra.mxu3 %v9146_v38  ;;  %v4078_v40 = vld [vmem:[#allocation8 + $0x1ed8] sm:$0xff] }
 0x70e   :  { %v3866_v41 = vld [vmem:[#allocation8 + $0x1838] sm:$0xff]  ;;  %5961 = vmatpush.msrb.mxu3 %v4078_v40 }
 0x70f   :  { %v3930_v29 = vld [vmem:[#allocation8 + $0x1a38] sm:$0xff]  ;;  %5879 = vmatpush.msrb.mxu0 %v3866_v41  ;;  %v5534_v45 = vpop.f32.mrf.mxu0 }
 0x710   :  { %v3994_v32 = vld [vmem:[#allocation8 + $0x1c38] sm:$0xff]  ;;  %5908 = vmatpush.msrb.mxu1 %v3930_v29 }
 0x711   :  { %v9147_v42 = vld [vmem:[#allocation59_spill] sm:$0xff]  ;;  %5937 = vmatpush.msrb.mxu2 %v3994_v32  ;;  %v9151_v10 = vld [vmem:[#allocation86_spill] sm:$0xff]  ;;  %v5621_v40 = vpop.f32.mrf.mxu3 }
 0x712   :  { %v5283_v24 = vadd.f32 %v9147_v42, %v5254_v39  ;;  %v4074_v8 = vld [vmem:[#allocation8 + $0x1eb8] sm:$0xff] }
 0x713   :  { %v3862_v17 = vld [vmem:[#allocation8 + $0x1818] sm:$0xff]  ;;  %5962 = vmatpush.msrb.mxu3 %v4074_v8  ;;  %v5569_v42 = vpop.f32.mrf.mxu1 }
 0x714   :  { %v3926_v12 = vld [vmem:[#allocation8 + $0x1a18] sm:$0xff]  ;;  %v5312_v21 = vadd.f32 %v8336_v48, %v5283_v24  ;;  %5880 = vmatpush.msrb.mxu0 %v3862_v17  ;;  %v5454_v48 = vadd.f32 %v8403_v14, %v5425_v5  ;;  %v9153_v14 = vld [vmem:[#allocation84_spill] sm:$0xff] }
 0x715   :  { %v3990_v54 = vld [vmem:[#allocation8 + $0x1c18] sm:$0xff]  ;;  %5909 = vmatpush.msrb.mxu1 %v3926_v12  ;;  %5881 = vmatmul.f32.vlgmr.msrb.gmra.mxu0 %v9148_v6 }
 0x716   :  { %v4070_v23 = vld [vmem:[#allocation8 + $0x1e98] sm:$0xff]  ;;  %5938 = vmatpush.msrb.mxu2 %v3990_v54  ;;  %5910 = vmatmul.f32.vlgmr.msrb.gmra.mxu1 %v9149_v44  ;;  %v5341_v4 = vadd.f32 %v8341_v59, %v5312_v21  ;;  %v5483_v57 = vadd.f32 %v5482_v33, %v5454_v48 }
 0x717   :  { %v4066_v43 = vld [vmem:[#allocation8 + $0x1e78] sm:$0xff]  ;;  %5939 = vmatmul.f32.vlgmr.msrb.gmra.mxu2 %v9150_v58  ;;  %5963 = vmatpush.msrb.mxu3 %v4070_v23  ;;  %v5537_v56 = vpop.f32.mrf.mxu0 }
 0x718   :  { %5861 = vmatmul.f32.gmra.mxu3 %v9151_v10  ;;  %v4062_v34 = vld [vmem:[#allocation8 + $0x1e58] sm:$0xff]  ;;  %v5370_v3 = vadd.f32 %v8348_v19, %v5341_v4  ;;  %v5512_v50 = vadd.f32 %v5511_v22, %v5483_v57 }
 0x719   :  { %v9152_v46 = vld [vmem:[#allocation75_spill] sm:$0xff]  ;;  %5964 = vmatpush.msrb.mxu3 %v4066_v43  ;;  %v9163_v41 = vld [vmem:[#allocation58_spill] sm:$0xff] }
 0x71a   :  { %v4120_v7 = vperm.slane %v9152_v46, 3  ;;  %v4058_v62 = vld [vmem:[#allocation8 + $0x1e38] sm:$0xff]  ;;  %v5399_v59 = vadd.f32 %v8373_v2, %v5370_v3  ;;  %5991 = vst [vmem:[#allocation11 + $0x50] sm:$0xff] %v5512_v50  ;;  %v5592_v2 = vpop.f32.mrf.mxu2 }
 0x71b   :  { %5965 = vmatpush.msrb.mxu3 %v4062_v34  ;;  %v4054_v15 = vld [vmem:[#allocation8 + $0x1e18] sm:$0xff]  ;;  %v5572_v21 = vpop.f32.mrf.mxu1 }
 0x71c   :  { %v5535_v47 = vadd.f32 %v5534_v45, %v4120_v7  ;;  %v5428_v63 = vadd.f32 %v5427_v35, %v5399_v59  ;;  %v5538_v61 = vadd.f32 %v5537_v56, %v4120_v7  ;;  %v9159_v52 = vld [vmem:[#allocation55_spill] sm:$0xff]  ;;  %v9164_v32 = vld [vmem:[#allocation74_spill] sm:$0xff]  ;;  %v5624_v35 = vpop.f32.mrf.mxu3 }
 0x71d   :  { %5966 = vmatpush.msrb.mxu3 %v4058_v62  ;;  %5884 = vmatmul.f32.gmra.mxu0 %v9153_v14  ;;  %v9160_v1 = vld [vmem:[#allocation71_spill] sm:$0xff]  ;;  %v9165_v17 = vld [vmem:[#allocation90_spill] sm:$0xff] }
 0x71e   :  { %5913 = vmatmul.f32.gmra.mxu1 %v9154_v16  ;;  %v5564_v19 = vadd.f32 %v5563_v20, %v5535_v47  ;;  %v5457_v25 = vadd.f32 %v5456_v18, %v5428_v63  ;;  %v5567_v33 = vadd.f32 %v5566_v27, %v5538_v61  ;;  %v9161_v36 = vld [vmem:[#allocation87_spill] sm:$0xff] }
 0x71f   :  { %5942 = vmatmul.f32.gmra.mxu2 %v9155_v13  ;;  %5967 = vmatpush.msrb.mxu3 %v4054_v15  ;;  %v9162_v38 = vld [vmem:[#allocation103_spill] sm:$0xff]  ;;  %v5540_v30 = vpop.f32.mrf.mxu0 }
 0x720   :  { %5968 = vmatmul.f32.vlgmr.msrb.gmra.mxu3 %v9156_v51  ;;  %v5486_v53 = vadd.f32 %v5485_v31, %v5457_v25  ;;  %v5593_v49 = vadd.f32 %v5592_v2, %v5564_v19  ;;  %v5541_v11 = vadd.f32 %v5540_v30, %v4120_v7 }
 0x722   :  { %v5515_v28 = vadd.f32 %v5514_v9, %v5486_v53  ;;  %v5595_v0 = vpop.f32.mrf.mxu2  ;;  %v5622_v29 = vadd.f32 %v5621_v40, %v5593_v49  ;;  %v5570_v24 = vadd.f32 %v5569_v42, %v5541_v11 }
 0x723   :  { %v5596_v39 = vadd.f32 %v5595_v0, %v5567_v33  ;;  %v5679_v4 = vpop.f32.mrf.mxu1 }
 0x724   :  { %5995 = vst [vmem:[#allocation11 + $0x70] sm:$0xff] %v5515_v28  ;;  %v5627_v6 = vpop.f32.mrf.mxu3 }
 0x725   :  { %5887 = vmatmul.f32.gmra.mxu0 %v9157_v55  ;;  %v5625_v12 = vadd.f32 %v5624_v35, %v5596_v39 }
 0x726   :  { %5916 = vmatmul.f32.gmra.mxu1 %v9158_v37 }
 0x727   :  { %5945 = vmatmul.f32.gmra.mxu2 %v9159_v52  ;;  %v5543_v26 = vpop.f32.mrf.mxu0 }
 0x728   :  { %5971 = vmatmul.f32.gmra.mxu3 %v9160_v1  ;;  %v5544_v54 = vadd.f32 %v5543_v26, %v4120_v7 }
 0x72a   :  { %v5598_v60 = vpop.f32.mrf.mxu2  ;;  %v5573_v5 = vadd.f32 %v5572_v21, %v5544_v54 }
 0x72b   :  { %v5599_v8 = vadd.f32 %v5598_v60, %v5570_v24  ;;  %v5682_v31 = vpop.f32.mrf.mxu1 }
 0x72c   :  { %v5630_v48 = vpop.f32.mrf.mxu3 }
 0x72d   :  { %5890 = vmatmul.f32.gmra.mxu0 %v9161_v36  ;;  %v5628_v44 = vadd.f32 %v5627_v6, %v5599_v8 }
 0x72e   :  { %5919 = vmatmul.f32.gmra.mxu1 %v9162_v38 }
 0x72f   :  { %5948 = vmatmul.f32.gmra.mxu2 %v9163_v41  ;;  %v5650_v43 = vpop.f32.mrf.mxu0 }
 0x730   :  { %5974 = vmatmul.f32.gmra.mxu3 %v9164_v32  ;;  %v5651_v49 = vadd.f32 %v5650_v43, %v5622_v29 }
 0x732   :  { %v5601_v18 = vpop.f32.mrf.mxu2  ;;  %v5680_v56 = vadd.f32 %v5679_v4, %v5651_v49 }
 0x733   :  { %v5602_v23 = vadd.f32 %v5601_v18, %v5573_v5  ;;  %v5685_v62 = vpop.f32.mrf.mxu1 }
 0x734   :  { %v5737_v3 = vpop.f32.mrf.mxu3 }
 0x735   :  { %v5631_v10 = vadd.f32 %v5630_v48, %v5602_v23 }
 0x737   :  { %v5653_v34 = vpop.f32.mrf.mxu0 }
 0x738   :  { %5977 = vmatmul.f32.gmra.mxu3 %v9165_v17  ;;  %v5654_v61 = vadd.f32 %v5653_v34, %v5625_v12 }
 0x73a   :  { %v5708_v58 = vpop.f32.mrf.mxu2  ;;  %v5683_v39 = vadd.f32 %v5682_v31, %v5654_v61 }
 0x73b   :  { %v5709_v55 = vadd.f32 %v5708_v58, %v5680_v56 }
 0x73c   :  { %v5740_v59 = vpop.f32.mrf.mxu3 }
 0x73d   :  { %v5738_v52 = vadd.f32 %v5737_v3, %v5709_v55 }
 0x73f   :  { %v5656_v57 = vpop.f32.mrf.mxu0 }
 0x740   :  { %v5657_v40 = vadd.f32 %v5656_v57, %v5628_v44 }
 0x742   :  { %v5711_v46 = vpop.f32.mrf.mxu2  ;;  %v5688_v50 = vpop.f32.mrf.mxu1  ;;  %v5686_v60 = vadd.f32 %v5685_v62, %v5657_v40 }
 0x743   :  { %v5712_v36 = vadd.f32 %v5711_v46, %v5683_v39 }
 0x744   :  { %v5743_v15 = vpop.f32.mrf.mxu3 }
 0x745   :  { %v5741_v41 = vadd.f32 %v5740_v59, %v5712_v36 }
 0x747   :  { %v5659_v7 = vpop.f32.mrf.mxu0 }
 0x748   :  { %v5660_v12 = vadd.f32 %v5659_v7, %v5631_v10 }
 0x74a   :  { %v5714_v22 = vpop.f32.mrf.mxu2  ;;  %v5689_v58 = vadd.f32 %v5688_v50, %v5660_v12 }
 0x74b   :  { %v5715_v35 = vadd.f32 %v5714_v22, %v5686_v60 }
 0x74c   :  { %v5746_v14 = vpop.f32.mrf.mxu3 }
 0x74d   :  { %v5744_v54 = vadd.f32 %v5743_v15, %v5715_v35 }
 0x74f   :  { %v5766_v47 = vpop.f32.mrf.mxu0  ;;  %v5795_v63 = vpop.f32.mrf.mxu1 }
 0x750   :  { %v5767_v1 = vadd.f32 %v5766_v47, %v5738_v52 }
 0x752   :  { %v5717_v45 = vpop.f32.mrf.mxu2  ;;  %v5796_v38 = vadd.f32 %v5795_v63, %v5767_v1 }
 0x753   :  { %v5718_v31 = vadd.f32 %v5717_v45, %v5689_v58 }
 0x755   :  { %v5747_v57 = vadd.f32 %v5746_v14, %v5718_v31 }
 0x757   :  { %v5769_v16 = vpop.f32.mrf.mxu0  ;;  %v5798_v19 = vpop.f32.mrf.mxu1 }
 0x758   :  { %v5770_v11 = vadd.f32 %v5769_v16, %v5741_v41 }
 0x75a   :  { %v5824_v20 = vpop.f32.mrf.mxu2  ;;  %v5799_v26 = vadd.f32 %v5798_v19, %v5770_v11 }
 0x75b   :  { %v5825_v30 = vadd.f32 %v5824_v20, %v5796_v38 }
 0x75f   :  { %v5772_v25 = vpop.f32.mrf.mxu0  ;;  %v5801_v2 = vpop.f32.mrf.mxu1 }
 0x760   :  { %v5773_v18 = vadd.f32 %v5772_v25, %v5744_v54 }
 0x762   :  { %v5827_v13 = vpop.f32.mrf.mxu2  ;;  %v5802_v46 = vadd.f32 %v5801_v2, %v5773_v18 }
 0x763   :  { %v5828_v21 = vadd.f32 %v5827_v13, %v5799_v26 }
 0x767   :  { %v5853_v51 = vpop.f32.mrf.mxu3 }
 0x768   :  { %v5854_v29 = vadd.f32 %v5853_v51, %v5825_v30 }
 0x76a   :  { %v5830_v53 = vpop.f32.mrf.mxu2 }
 0x76b   :  { %v5831_v62 = vadd.f32 %v5830_v53, %v5802_v46 }
 0x76f   :  { %v5856_v9 = vpop.f32.mrf.mxu3 }
 0x770   :  { %v5857_v23 = vadd.f32 %v5856_v9, %v5828_v21 }
 0x780   :  { %v5804_v37 = vpop.f32.mrf.mxu1 }
 0x784   :  { %v5775_v28 = vpop.f32.mrf.mxu0 }
 0x785   :  { %v5776_v10 = vadd.f32 %v5775_v28, %v5747_v57 }
 0x787   :  { %v5805_v19 = vadd.f32 %v5804_v37, %v5776_v10 }
 0x78a   :  { %v5833_v27 = vpop.f32.mrf.mxu2 }
 0x78b   :  { %v5834_v50 = vadd.f32 %v5833_v27, %v5805_v19 }
 0x790   :  { %v5859_v33 = vpop.f32.mrf.mxu3 }
 0x791   :  { %v5860_v59 = vadd.f32 %v5859_v33, %v5831_v62 }
 0x792   :  { %v5882_v0 = vpop.f32.mrf.mxu0 }
 0x793   :  { %v5911_v32 = vpop.f32.mrf.mxu1  ;;  %v5883_v8 = vadd.f32 %v5882_v0, %v5854_v29 }
 0x795   :  { %v5912_v5 = vadd.f32 %v5911_v32, %v5883_v8 }
 0x79a   :  { %v5940_v42 = vpop.f32.mrf.mxu2  ;;  %v5885_v17 = vpop.f32.mrf.mxu0 }
 0x79b   :  { %v5862_v24 = vpop.f32.mrf.mxu3  ;;  %v5941_v6 = vadd.f32 %v5940_v42, %v5912_v5  ;;  %v5914_v44 = vpop.f32.mrf.mxu1  ;;  %v5886_v48 = vadd.f32 %v5885_v17, %v5857_v23 }
 0x79c   :  { %v5863_v45 = vadd.f32 %v5862_v24, %v5834_v50 }
 0x79d   :  { %v5915_v22 = vadd.f32 %v5914_v44, %v5886_v48 }
 0x7a2   :  { %v5943_v43 = vpop.f32.mrf.mxu2  ;;  %v5888_v3 = vpop.f32.mrf.mxu0 }
 0x7a3   :  { %v5969_v4 = vpop.f32.mrf.mxu3  ;;  %v5944_v7 = vadd.f32 %v5943_v43, %v5915_v22  ;;  %v5889_v47 = vadd.f32 %v5888_v3, %v5860_v59  ;;  %v5917_v20 = vpop.f32.mrf.mxu1 }
 0x7a4   :  { %v5970_v34 = vadd.f32 %v5969_v4, %v5941_v6 }
 0x7a5   :  { %v5918_v13 = vadd.f32 %v5917_v20, %v5889_v47 }
 0x7a6   :  { %5984 = vst [vmem:[#allocation11 + $0x18] sm:$0xff] %v5970_v34 }
 0x7aa   :  { %v5946_v16 = vpop.f32.mrf.mxu2  ;;  %v5891_v51 = vpop.f32.mrf.mxu0 }
 0x7ab   :  { %v5972_v15 = vpop.f32.mrf.mxu3  ;;  %v5947_v25 = vadd.f32 %v5946_v16, %v5918_v13  ;;  %v5892_v49 = vadd.f32 %v5891_v51, %v5863_v45  ;;  %v5920_v53 = vpop.f32.mrf.mxu1 }
 0x7ac   :  { %v5973_v63 = vadd.f32 %v5972_v15, %v5944_v7 }
 0x7ad   :  { %v5921_v28 = vadd.f32 %v5920_v53, %v5892_v49 }
 0x7ae   :  { %5988 = vst [vmem:[#allocation11 + $0x38] sm:$0xff] %v5973_v63 }
 0x7b2   :  { %v5949_v9 = vpop.f32.mrf.mxu2 }
 0x7b3   :  { %v5975_v2 = vpop.f32.mrf.mxu3  ;;  %v5950_v56 = vadd.f32 %v5949_v9, %v5921_v28 }
 0x7b4   :  { %v5976_v14 = vadd.f32 %v5975_v2, %v5947_v25 }
 0x7b6   :  { %5992 = vst [vmem:[#allocation11 + $0x58] sm:$0xff] %v5976_v14 }
 0x7bb   :  { %v5978_v55 = vpop.f32.mrf.mxu3 }
 0x7bc   :  { %v5979_v37 = vadd.f32 %v5978_v55, %v5950_v56 }
 0x7be   :  { %5996 = vst [vmem:[#allocation11 + $0x78] sm:$0xff] %v5979_v37 }
 0x7bf   :  { %6009 = dma.vmem_to_hbm [thread:$0]  %s6002_s4, 2048, %s6004_s21, [#allocation4], %s6234_s1, %s6234_s1, %s6235_s8  }
 0x7c0   :  { %6228 = dma.done.wait [#allocation4], 2048  }
 0x7c1   :  { %6229 = vsyncadd [#allocation4], 4294965248 }
 0x7c2   :  { %6014 = vsyncpa [#allocation3], 1 }
 0x7c3   :  { %6015 = vsyncpa [#allocation6], 1 }
 0x7c4   :  { %6016 = vsyncpa [#allocation9], 1 }
 0x7c5   :  { %6017 = vsyncpa [#allocation4], 1 }

</bundles_post_ra>
